<compile_context>
chip_gen: v7x
topology: tpu7x:2x2x1
jax: 0.10.0
libtpu: 0.0.40
codegen_flags: <defaults>
</compile_context>

<pallas_src>
import jax
import jax.numpy as jnp
from jax.experimental import pallas as pl
from jax.experimental.pallas import tpu as pltpu


# ---------------------------------------------------------------------------
# Fused kernel: conv1+BN+ReLU+pool -> conv2+BN+ReLU+pool -> FC
# ---------------------------------------------------------------------------
def convnet_kernel(x_ref, t1_ref, s1_ref, t2_ref, s2_ref, fcw_ref, fcb_ref,
                   o_ref, pad1_ref):
    # x_ref   : (28, NB, 160)  layer-1 im2col input: [out_row, n, kh*32 + pad_col]
    # t1_ref  : (160, 512)     layer-1 banded weights (kh folded into K), BN-folded
    # s1_ref  : (1, 512)       layer-1 shift (BN beta + folded bias), lane-tiled
    # t2_ref  : (5, 224, 512)  layer-2 banded weights (per kh), BN-folded
    # s2_ref  : (1, 512)       layer-2 shift, lane-tiled
    # fcw_ref : (7, 224, 128)  FC weights, permuted to (h, w*32+c) and padded
    # fcb_ref : (1, 128)       FC bias, padded to 128 lanes
    # o_ref   : (NB, 128)      logits (lanes 0..9 valid)
    # pad1_ref: (18, NB, 224)  VMEM scratch: H-padded layer-2 input,
    #                          [padded_row, n, w*16 + c]
    nb = o_ref.shape[0]
    f32 = jnp.float32

    # ----- layer 1: conv(5x5, 1->16) + BN + ReLU + pool (one MXU matmul) -----
    acc1 = jnp.dot(x_ref[...].reshape(28 * nb, 160), t1_ref[...],
                   preferred_element_type=f32)                  # (28*nb, 512)
    a = acc1.reshape(14, 2 * nb, 512)
    hpool1 = jnp.maximum(a[:, :nb, :], a[:, nb:, :])            # H max-pool
    act1 = jnp.maximum(hpool1 + s1_ref[...], 0.0)               # shift + ReLU
    pooled1 = jnp.maximum(act1[..., 0:224], act1[..., 256:480])  # W max-pool
    # pooled1: (14, nb, 224), lane = w*16 + c

    # -------- stash layer-2 input (H-halo of zeros) in VMEM scratch ----------
    zrows = jnp.zeros((2, nb, 224), f32)
    pad1_ref[0:2, :, :] = zrows
    pad1_ref[16:18, :, :] = zrows
    pad1_ref[2:16, :, :] = pooled1

    # ---------------- layer 2: conv(5x5, 16->32) + BN + ReLU + pool ----------
    acc2 = jnp.zeros((14 * nb, 512), f32)
    for kh in range(5):
        strip = pad1_ref[kh:kh + 14, :, :]                      # (14, nb, 224)
        acc2 = acc2 + jnp.dot(strip.reshape(14 * nb, 224), t2_ref[kh],
                              preferred_element_type=f32)
    b = acc2.reshape(7, 2 * nb, 512)
    hpool2 = jnp.maximum(b[:, :nb, :], b[:, nb:, :])
    act2 = jnp.maximum(hpool2 + s2_ref[...], 0.0)
    pooled2 = jnp.maximum(act2[..., 0:224], act2[..., 256:480])  # (7, nb, 224)

    # ---------------- fused FC (lane-dense, 128-wide output) -----------------
    logits = jnp.zeros((nb, 128), f32) + fcb_ref[...]
    for h in range(7):
        logits = logits + jnp.dot(pooled2[h], fcw_ref[h],
                                  preferred_element_type=f32)
    o_ref[...] = logits


# ---------------------------------------------------------------------------
# Offline weight lowering (banded / "Toeplitz" matrices, folded BN, FC perm)
# ---------------------------------------------------------------------------
def _build_t1(w1f):
    """w1f: (5, 5, 1, 16) scale-folded conv1 weights -> (5, 32, 512)."""
    kh_, kw_, _, c = w1f.shape                          # 5, 5, 1, 16
    wp = jnp.arange(32)[:, None, None]                  # padded input col
    q = jnp.arange(2)[None, :, None]                    # output col parity
    w2 = jnp.arange(14)[None, None, :]                  # pooled output col
    kw = wp - (2 * w2 + q)                              # (32, 2, 14)
    valid = (kw >= 0) & (kw < kw_)
    kwc = jnp.clip(kw, 0, kw_ - 1)
    vals = w1f[:, kwc, 0, :]                            # (5, 32, 2, 14, 16)
    vals = vals * valid[None, :, :, :, None]
    t = vals.reshape(kh_, 32, 2, 14 * c)                # cols = w2*16 + c
    t = jnp.pad(t, ((0, 0), (0, 0), (0, 0), (0, 256 - 14 * c)))
    return t.reshape(kh_, 32, 512)                      # cols = q*256 + ...


def _build_t2(w2f):
    """w2f: (5, 5, 16, 32) scale-folded conv2 weights -> (5, 224, 512)."""
    kh_, kw_, ci, co = w2f.shape                        # 5, 5, 16, 32
    wi = jnp.arange(14)[:, None, None]                  # unpadded input col
    q = jnp.arange(2)[None, :, None]
    w2 = jnp.arange(7)[None, None, :]
    kw = wi - (2 * w2 + q) + 2                          # (14, 2, 7)  (pad=2)
    valid = (kw >= 0) & (kw < kw_)
    kwc = jnp.clip(kw, 0, kw_ - 1)
    vals = w2f[:, kwc, :, :]                            # (5, 14, 2, 7, 16, 32)
    vals = vals * valid[None, :, :, :, None, None]
    t = vals.transpose(0, 1, 4, 2, 3, 5)                # (5, 14, 16, 2, 7, 32)
    t = t.reshape(kh_, 14 * ci, 2, 7 * co)              # rows = wi*16+ci
    t = jnp.pad(t, ((0, 0), (0, 0), (0, 0), (0, 256 - 7 * co)))
    return t.reshape(kh_, 14 * ci, 512)                 # cols = q*256 + w2*32+co


def _tile_shift(shift, reps):
    t = jnp.pad(jnp.tile(shift, reps), (0, 256 - reps * shift.shape[0]))
    return jnp.concatenate([t, t]).reshape(1, 512)


def _build_fc(fc_w, fc_b):
    """Permute FC rows from NCHW flatten (c*49+h*7+w) to (h, w*32+c), pad to 128."""
    k = fc_w.shape[1]
    h = jnp.arange(7)[:, None, None]
    w = jnp.arange(7)[None, :, None]
    c = jnp.arange(32)[None, None, :]
    idx = c * 49 + h * 7 + w                            # (7, 7, 32)
    wk = fc_w[idx]                                      # (7, 7, 32, k)
    wk = wk.reshape(7, 7 * 32, k)                       # rows = w*32 + c
    wk = jnp.pad(wk, ((0, 0), (0, 0), (0, 128 - k)))
    bk = jnp.pad(fc_b, (0, 128 - k)).reshape(1, 128)
    return wk, bk


# ---------------------------------------------------------------------------
# Forward pass
# ---------------------------------------------------------------------------
def convnet_forward(x_nchw, params, *, block_n=16):
    eps = 1e-5
    n = x_nchw.shape[0]
    n_pad = ((n + block_n - 1) // block_n) * block_n

    # Fold BN (eval mode) + conv bias into weights / per-channel shift.
    s1 = params["bn1_gamma"] / jnp.sqrt(params["bn1_var"] + eps)
    w1f = params["conv1_w"] * s1[None, None, None, :]
    sh1 = params["bn1_beta"] + (params["conv1_b"] - params["bn1_mean"]) * s1
    s2 = params["bn2_gamma"] / jnp.sqrt(params["bn2_var"] + eps)
    w2f = params["conv2_w"] * s2[None, None, None, :]
    sh2 = params["bn2_beta"] + (params["conv2_b"] - params["bn2_mean"]) * s2

    t1 = _build_t1(w1f).reshape(160, 512)               # rows = kh*32 + pad_col
    t2 = _build_t2(w2f)                                 # (5, 224, 512)
    s1t = _tile_shift(sh1, 14)                          # (1, 512)
    s2t = _tile_shift(sh2, 7)                           # (1, 512)
    fcw, fcb = _build_fc(params["fc_w"], params["fc_b"])

    # Input prep: drop channel, zero-pad batch / H / W, and im2col the 5 kernel
    # rows into the lane dim:  x5[i, n, kh*32 + w] = x_pad[n, i + kh, w]
    x = x_nchw[:, 0]                                    # (N, 28, 28)
    x = jnp.pad(x, ((0, n_pad - n), (2, 2), (2, 2)))    # (n_pad, 32, 32)
    taps = jnp.stack([x[:, kh:kh + 28, :] for kh in range(5)], axis=2)
    x5 = jnp.transpose(taps, (1, 0, 2, 3)).reshape(28, n_pad, 160)

    out = pl.pallas_call(
        convnet_kernel,
        out_shape=jax.ShapeDtypeStruct((n_pad, 128), jnp.float32),
        grid=(n_pad // block_n,),
        in_specs=[
            pl.BlockSpec((28, block_n, 160), lambda i: (0, i, 0)),
            pl.BlockSpec((160, 512), lambda i: (0, 0)),
            pl.BlockSpec((1, 512), lambda i: (0, 0)),
            pl.BlockSpec((5, 224, 512), lambda i: (0, 0, 0)),
            pl.BlockSpec((1, 512), lambda i: (0, 0)),
            pl.BlockSpec((7, 224, 128), lambda i: (0, 0, 0)),
            pl.BlockSpec((1, 128), lambda i: (0, 0)),
        ],
        out_specs=pl.BlockSpec((block_n, 128), lambda i: (i, 0)),
        scratch_shapes=[pltpu.VMEM((18, block_n, 224), jnp.float32)],
        compiler_params=pltpu.CompilerParams(dimension_semantics=("parallel",)),
    )(x5, t1, s1t, t2, s2t, fcw, fcb)

    return out[:n, :10]


# ---------------------------------------------------------------------------
# Pure-JAX reference (for a numerical self-check) and parameter init
# ---------------------------------------------------------------------------
def convnet_reference(x_nchw, params, eps=1e-5):
    def layer(x, w, b, gamma, beta, mean, var):
        w_oihw = jnp.transpose(w, (3, 2, 0, 1))
        y = jax.lax.conv_general_dilated(
            x, w_oihw, window_strides=(1, 1), padding=((2, 2), (2, 2)),
            dimension_numbers=("NCHW", "OIHW", "NCHW"))
        y = y + b[None, :, None, None]
        scale = gamma / jnp.sqrt(var + eps)
        y = (y - mean[None, :, None, None]) * scale[None, :, None, None] \
            + beta[None, :, None, None]
        y = jnp.maximum(y, 0.0)
        nb, c, h, w_ = y.shape
        return y.reshape(nb, c, h // 2, 2, w_ // 2, 2).max(axis=(3, 5))

    y = layer(x_nchw, params["conv1_w"], params["conv1_b"], params["bn1_gamma"],
              params["bn1_beta"], params["bn1_mean"], params["bn1_var"])
    y = layer(y, params["conv2_w"], params["conv2_b"], params["bn2_gamma"],
              params["bn2_beta"], params["bn2_mean"], params["bn2_var"])
    flat = y.reshape(y.shape[0], -1)
    return flat @ params["fc_w"] + params["fc_b"]


def init_params(key):
    ks = jax.random.split(key, 8)
    return {
        "conv1_w": jax.random.normal(ks[0], (5, 5, 1, 16), jnp.float32) * 0.1,
        "conv1_b": jax.random.normal(ks[1], (16,), jnp.float32) * 0.05,
        "bn1_gamma": jnp.ones((16,), jnp.float32) * 1.1,
        "bn1_beta": jnp.full((16,), 0.05, jnp.float32),
        "bn1_mean": jax.random.normal(ks[2], (16,), jnp.float32) * 0.1,
        "bn1_var": jnp.abs(jax.random.normal(ks[3], (16,), jnp.float32)) + 0.5,

        "conv2_w": jax.random.normal(ks[4], (5, 5, 16, 32), jnp.float32) * 0.05,
        "conv2_b": jax.random.normal(ks[5], (32,), jnp.float32) * 0.05,
        "bn2_gamma": jnp.ones((32,), jnp.float32) * 0.9,
        "bn2_beta": jnp.full((32,), -0.02, jnp.float32),
        "bn2_mean": jax.random.normal(ks[6], (32,), jnp.float32) * 0.1,
        "bn2_var": jnp.abs(jax.random.normal(ks[7], (32,), jnp.float32)) + 0.5,

        # FC stored as (in_features, out_features): y = x @ W + b
        "fc_w": jax.random.normal(jax.random.PRNGKey(42),
                                  (7 * 7 * 32, 10), jnp.float32) * 0.02,
        "fc_b": jnp.linspace(-0.1, 0.1, 10, dtype=jnp.float32),
    }


if __name__ == "__main__":
    key = jax.random.PRNGKey(0)
    kx, kp = jax.random.split(key)

    N = 2
    x = jax.random.normal(kx, (N, 1, 28, 28), jnp.float32)   # NCHW like PyTorch
    params = init_params(kp)

    logits = jax.jit(convnet_forward)(x, params)
    jax.block_until_ready(logits)
    assert logits.shape == (N, 10) and logits.dtype == jnp.float32

    ref = convnet_reference(x, params)
    err = float(jnp.max(jnp.abs(logits - ref)))
    assert err < 5e-2, f"mismatch vs reference: max abs err {err}"

    print("KERNEL_OK")
</pallas_src>

<mosaic_0001>
module attributes {stable_mosaic.version = 11 : i64} {
  func.func private @main(%arg0: i32) attributes {dimension_semantics = [#tpu.dimension_semantics<core_parallel>], iteration_bounds = array<i64: 2>, tpu.core_type = #tpu.core_type<sc_scalar_subcore>, window_params = []} {
    return
  }
}

module attributes {stable_mosaic.version = 11 : i64} {
  func.func private @main(%arg0: i32) attributes {dimension_semantics = [#tpu.dimension_semantics<core_parallel>], iteration_bounds = array<i64: 2>, tpu.core_type = #tpu.core_type<sc_scalar_subcore>, window_params = []} {
    return
  }
}

module attributes {stable_mosaic.version = 11 : i64} {
  func.func @convnet_kernel(%arg0: i32, %arg1: memref<28x16x160xf32, #tpu.memory_space<vmem>>, %arg2: memref<160x512xf32, #tpu.memory_space<vmem>>, %arg3: memref<1x512xf32, #tpu.memory_space<vmem>>, %arg4: memref<5x224x512xf32, #tpu.memory_space<vmem>>, %arg5: memref<1x512xf32, #tpu.memory_space<vmem>>, %arg6: memref<7x224x128xf32, #tpu.memory_space<vmem>>, %arg7: memref<1x128xf32, #tpu.memory_space<vmem>>, %arg8: memref<16x128xf32, #tpu.memory_space<vmem>>, %arg9: memref<18x16x224xf32, #tpu.memory_space<vmem>>) attributes {dimension_semantics = [#tpu.dimension_semantics<parallel>], iteration_bounds = array<i64: 1>, scalar_prefetch = 0 : i64, scratch_operands = 1 : i64, tpu.core_type = #tpu.core_type<tc>, window_params = [{transform_indices = @transform_0, window_bounds = array<i64: 28, 16, 160>}, {pipeline_mode = #tpu.pipeline_mode<synchronous>, transform_indices = @transform_1, window_bounds = array<i64: 160, 512>}, {pipeline_mode = #tpu.pipeline_mode<synchronous>, transform_indices = @transform_2, window_bounds = array<i64: 1, 512>}, {pipeline_mode = #tpu.pipeline_mode<synchronous>, transform_indices = @transform_3, window_bounds = array<i64: 5, 224, 512>}, {pipeline_mode = #tpu.pipeline_mode<synchronous>, transform_indices = @transform_4, window_bounds = array<i64: 1, 512>}, {pipeline_mode = #tpu.pipeline_mode<synchronous>, transform_indices = @transform_5, window_bounds = array<i64: 7, 224, 128>}, {pipeline_mode = #tpu.pipeline_mode<synchronous>, transform_indices = @transform_6, window_bounds = array<i64: 1, 128>}, {transform_indices = @transform_7, window_bounds = array<i64: 16, 128>}]} {
    %c0 = arith.constant 0 : index
    %c0_0 = arith.constant 0 : index
    %c0_1 = arith.constant 0 : index
    %0 = vector.load %arg1[%c0, %c0_0, %c0_1] : memref<28x16x160xf32, #tpu.memory_space<vmem>>, vector<28x16x160xf32>
    %1 = vector.shape_cast %0 : vector<28x16x160xf32> to vector<448x160xf32>
    %c0_2 = arith.constant 0 : index
    %c0_3 = arith.constant 0 : index
    %2 = vector.load %arg2[%c0_2, %c0_3] : memref<160x512xf32, #tpu.memory_space<vmem>>, vector<160x512xf32>
    %cst = arith.constant dense<0.000000e+00> : vector<448x512xf32>
    %3 = tpu.matmul %1, %2, %cst {dimension_numbers = #tpu.dot_dimension_numbers<[1], [0], [0], [1], [0, 0, 1, 1], [], []>} : vector<448x160xf32>, vector<160x512xf32>, vector<448x512xf32> -> vector<448x512xf32>
    %4 = vector.shape_cast %3 : vector<448x512xf32> to vector<14x32x512xf32>
    %5 = vector.extract_strided_slice %4 {offsets = [0, 0, 0], sizes = [14, 16, 512], strides = [1, 1, 1]} : vector<14x32x512xf32> to vector<14x16x512xf32>
    %6 = vector.extract_strided_slice %4 {offsets = [0, 16, 0], sizes = [14, 16, 512], strides = [1, 1, 1]} : vector<14x32x512xf32> to vector<14x16x512xf32>
    %7 = arith.maximumf %5, %6 : vector<14x16x512xf32>
    %c0_4 = arith.constant 0 : index
    %c0_5 = arith.constant 0 : index
    %8 = vector.load %arg3[%c0_4, %c0_5] : memref<1x512xf32, #tpu.memory_space<vmem>>, vector<1x512xf32>
    %9 = vector.shape_cast %8 : vector<1x512xf32> to vector<1x1x512xf32>
    %10 = vector.broadcast %9 : vector<1x1x512xf32> to vector<14x16x512xf32>
    %11 = arith.addf %7, %10 : vector<14x16x512xf32>
    %cst_6 = arith.constant 0.000000e+00 : f32
    %12 = vector.broadcast %cst_6 : f32 to vector<14x16x512xf32>
    %13 = arith.maximumf %11, %12 : vector<14x16x512xf32>
    %14 = vector.extract_strided_slice %13 {offsets = [0, 0, 0], sizes = [14, 16, 224], strides = [1, 1, 1]} : vector<14x16x512xf32> to vector<14x16x224xf32>
    %15 = vector.extract_strided_slice %13 {offsets = [0, 0, 256], sizes = [14, 16, 224], strides = [1, 1, 1]} : vector<14x16x512xf32> to vector<14x16x224xf32>
    %16 = arith.maximumf %14, %15 : vector<14x16x224xf32>
    %cst_7 = arith.constant 0.000000e+00 : f32
    %17 = vector.broadcast %cst_7 : f32 to vector<2x16x224xf32>
    %c0_8 = arith.constant 0 : index
    %c0_9 = arith.constant 0 : index
    %c0_10 = arith.constant 0 : index
    %18 = vector.load %arg9[%c0_8, %c0_9, %c0_10] : memref<18x16x224xf32, #tpu.memory_space<vmem>>, vector<2x16x224xf32>
    tpu.vector_store %arg9[%c0_8, %c0_9, %c0_10], %17 {strides = array<i32>} : memref<18x16x224xf32, #tpu.memory_space<vmem>>, vector<2x16x224xf32>,
    %c16 = arith.constant 16 : index
    %c0_11 = arith.constant 0 : index
    %c0_12 = arith.constant 0 : index
    %19 = vector.load %arg9[%c16, %c0_11, %c0_12] : memref<18x16x224xf32, #tpu.memory_space<vmem>>, vector<2x16x224xf32>
    tpu.vector_store %arg9[%c16, %c0_11, %c0_12], %17 {strides = array<i32>} : memref<18x16x224xf32, #tpu.memory_space<vmem>>, vector<2x16x224xf32>,
    %c2 = arith.constant 2 : index
    %c0_13 = arith.constant 0 : index
    %c0_14 = arith.constant 0 : index
    %20 = vector.load %arg9[%c2, %c0_13, %c0_14] : memref<18x16x224xf32, #tpu.memory_space<vmem>>, vector<14x16x224xf32>
    tpu.vector_store %arg9[%c2, %c0_13, %c0_14], %16 {strides = array<i32>} : memref<18x16x224xf32, #tpu.memory_space<vmem>>, vector<14x16x224xf32>,
    %cst_15 = arith.constant 0.000000e+00 : f32
    %21 = vector.broadcast %cst_15 : f32 to vector<224x512xf32>
    %c0_16 = arith.constant 0 : index
    %c0_17 = arith.constant 0 : index
    %c0_18 = arith.constant 0 : index
    %22 = vector.load %arg9[%c0_16, %c0_17, %c0_18] : memref<18x16x224xf32, #tpu.memory_space<vmem>>, vector<14x16x224xf32>
    %23 = vector.shape_cast %22 : vector<14x16x224xf32> to vector<224x224xf32>
    %c0_19 = arith.constant 0 : index
    %c0_20 = arith.constant 0 : index
    %c0_21 = arith.constant 0 : index
    %24 = vector.load %arg4[%c0_19, %c0_20, %c0_21] : memref<5x224x512xf32, #tpu.memory_space<vmem>>, vector<1x224x512xf32>
    %25 = vector.shape_cast %24 : vector<1x224x512xf32> to vector<224x512xf32>
    %cst_22 = arith.constant dense<0.000000e+00> : vector<224x512xf32>
    %26 = tpu.matmul %23, %25, %cst_22 {dimension_numbers = #tpu.dot_dimension_numbers<[1], [0], [0], [1], [0, 0, 1, 1], [], []>} : vector<224x224xf32>, vector<224x512xf32>, vector<224x512xf32> -> vector<224x512xf32>
    %27 = arith.addf %21, %26 : vector<224x512xf32>
    %c1 = arith.constant 1 : index
    %c0_23 = arith.constant 0 : index
    %c0_24 = arith.constant 0 : index
    %28 = vector.load %arg9[%c1, %c0_23, %c0_24] : memref<18x16x224xf32, #tpu.memory_space<vmem>>, vector<14x16x224xf32>
    %29 = vector.shape_cast %28 : vector<14x16x224xf32> to vector<224x224xf32>
    %c1_25 = arith.constant 1 : index
    %c0_26 = arith.constant 0 : index
    %c0_27 = arith.constant 0 : index
    %30 = vector.load %arg4[%c1_25, %c0_26, %c0_27] : memref<5x224x512xf32, #tpu.memory_space<vmem>>, vector<1x224x512xf32>
    %31 = vector.shape_cast %30 : vector<1x224x512xf32> to vector<224x512xf32>
    %cst_28 = arith.constant dense<0.000000e+00> : vector<224x512xf32>
    %32 = tpu.matmul %29, %31, %cst_28 {dimension_numbers = #tpu.dot_dimension_numbers<[1], [0], [0], [1], [0, 0, 1, 1], [], []>} : vector<224x224xf32>, vector<224x512xf32>, vector<224x512xf32> -> vector<224x512xf32>
    %33 = arith.addf %27, %32 : vector<224x512xf32>
    %c2_29 = arith.constant 2 : index
    %c0_30 = arith.constant 0 : index
    %c0_31 = arith.constant 0 : index
    %34 = vector.load %arg9[%c2_29, %c0_30, %c0_31] : memref<18x16x224xf32, #tpu.memory_space<vmem>>, vector<14x16x224xf32>
    %35 = vector.shape_cast %34 : vector<14x16x224xf32> to vector<224x224xf32>
    %c2_32 = arith.constant 2 : index
    %c0_33 = arith.constant 0 : index
    %c0_34 = arith.constant 0 : index
    %36 = vector.load %arg4[%c2_32, %c0_33, %c0_34] : memref<5x224x512xf32, #tpu.memory_space<vmem>>, vector<1x224x512xf32>
    %37 = vector.shape_cast %36 : vector<1x224x512xf32> to vector<224x512xf32>
    %cst_35 = arith.constant dense<0.000000e+00> : vector<224x512xf32>
    %38 = tpu.matmul %35, %37, %cst_35 {dimension_numbers = #tpu.dot_dimension_numbers<[1], [0], [0], [1], [0, 0, 1, 1], [], []>} : vector<224x224xf32>, vector<224x512xf32>, vector<224x512xf32> -> vector<224x512xf32>
    %39 = arith.addf %33, %38 : vector<224x512xf32>
    %c3 = arith.constant 3 : index
    %c0_36 = arith.constant 0 : index
    %c0_37 = arith.constant 0 : index
    %40 = vector.load %arg9[%c3, %c0_36, %c0_37] : memref<18x16x224xf32, #tpu.memory_space<vmem>>, vector<14x16x224xf32>
    %41 = vector.shape_cast %40 : vector<14x16x224xf32> to vector<224x224xf32>
    %c3_38 = arith.constant 3 : index
    %c0_39 = arith.constant 0 : index
    %c0_40 = arith.constant 0 : index
    %42 = vector.load %arg4[%c3_38, %c0_39, %c0_40] : memref<5x224x512xf32, #tpu.memory_space<vmem>>, vector<1x224x512xf32>
    %43 = vector.shape_cast %42 : vector<1x224x512xf32> to vector<224x512xf32>
    %cst_41 = arith.constant dense<0.000000e+00> : vector<224x512xf32>
    %44 = tpu.matmul %41, %43, %cst_41 {dimension_numbers = #tpu.dot_dimension_numbers<[1], [0], [0], [1], [0, 0, 1, 1], [], []>} : vector<224x224xf32>, vector<224x512xf32>, vector<224x512xf32> -> vector<224x512xf32>
    %45 = arith.addf %39, %44 : vector<224x512xf32>
    %c4 = arith.constant 4 : index
    %c0_42 = arith.constant 0 : index
    %c0_43 = arith.constant 0 : index
    %46 = vector.load %arg9[%c4, %c0_42, %c0_43] : memref<18x16x224xf32, #tpu.memory_space<vmem>>, vector<14x16x224xf32>
    %47 = vector.shape_cast %46 : vector<14x16x224xf32> to vector<224x224xf32>
    %c4_44 = arith.constant 4 : index
    %c0_45 = arith.constant 0 : index
    %c0_46 = arith.constant 0 : index
    %48 = vector.load %arg4[%c4_44, %c0_45, %c0_46] : memref<5x224x512xf32, #tpu.memory_space<vmem>>, vector<1x224x512xf32>
    %49 = vector.shape_cast %48 : vector<1x224x512xf32> to vector<224x512xf32>
    %cst_47 = arith.constant dense<0.000000e+00> : vector<224x512xf32>
    %50 = tpu.matmul %47, %49, %cst_47 {dimension_numbers = #tpu.dot_dimension_numbers<[1], [0], [0], [1], [0, 0, 1, 1], [], []>} : vector<224x224xf32>, vector<224x512xf32>, vector<224x512xf32> -> vector<224x512xf32>
    %51 = arith.addf %45, %50 : vector<224x512xf32>
    %52 = vector.shape_cast %51 : vector<224x512xf32> to vector<7x32x512xf32>
    %53 = vector.extract_strided_slice %52 {offsets = [0, 0, 0], sizes = [7, 16, 512], strides = [1, 1, 1]} : vector<7x32x512xf32> to vector<7x16x512xf32>
    %54 = vector.extract_strided_slice %52 {offsets = [0, 16, 0], sizes = [7, 16, 512], strides = [1, 1, 1]} : vector<7x32x512xf32> to vector<7x16x512xf32>
    %55 = arith.maximumf %53, %54 : vector<7x16x512xf32>
    %c0_48 = arith.constant 0 : index
    %c0_49 = arith.constant 0 : index
    %56 = vector.load %arg5[%c0_48, %c0_49] : memref<1x512xf32, #tpu.memory_space<vmem>>, vector<1x512xf32>
    %57 = vector.shape_cast %56 : vector<1x512xf32> to vector<1x1x512xf32>
    %58 = vector.broadcast %57 : vector<1x1x512xf32> to vector<7x16x512xf32>
    %59 = arith.addf %55, %58 : vector<7x16x512xf32>
    %cst_50 = arith.constant 0.000000e+00 : f32
    %60 = vector.broadcast %cst_50 : f32 to vector<7x16x512xf32>
    %61 = arith.maximumf %59, %60 : vector<7x16x512xf32>
    %62 = vector.extract_strided_slice %61 {offsets = [0, 0, 0], sizes = [7, 16, 224], strides = [1, 1, 1]} : vector<7x16x512xf32> to vector<7x16x224xf32>
    %63 = vector.extract_strided_slice %61 {offsets = [0, 0, 256], sizes = [7, 16, 224], strides = [1, 1, 1]} : vector<7x16x512xf32> to vector<7x16x224xf32>
    %64 = arith.maximumf %62, %63 : vector<7x16x224xf32>
    %cst_51 = arith.constant 0.000000e+00 : f32
    %65 = vector.broadcast %cst_51 : f32 to vector<16x128xf32>
    %c0_52 = arith.constant 0 : index
    %c0_53 = arith.constant 0 : index
    %66 = vector.load %arg7[%c0_52, %c0_53] : memref<1x128xf32, #tpu.memory_space<vmem>>, vector<1x128xf32>
    %67 = vector.broadcast %66 : vector<1x128xf32> to vector<16x128xf32>
    %68 = arith.addf %65, %67 : vector<16x128xf32>
    %69 = vector.extract_strided_slice %64 {offsets = [0, 0, 0], sizes = [1, 16, 224], strides = [1, 1, 1]} : vector<7x16x224xf32> to vector<1x16x224xf32>
    %70 = vector.shape_cast %69 : vector<1x16x224xf32> to vector<16x224xf32>
    %c0_54 = arith.constant 0 : index
    %c0_55 = arith.constant 0 : index
    %c0_56 = arith.constant 0 : index
    %71 = vector.load %arg6[%c0_54, %c0_55, %c0_56] : memref<7x224x128xf32, #tpu.memory_space<vmem>>, vector<1x224x128xf32>
    %72 = vector.shape_cast %71 : vector<1x224x128xf32> to vector<224x128xf32>
    %cst_57 = arith.constant dense<0.000000e+00> : vector<16x128xf32>
    %73 = tpu.matmul %70, %72, %cst_57 {dimension_numbers = #tpu.dot_dimension_numbers<[1], [0], [0], [1], [0, 0, 1, 1], [], []>} : vector<16x224xf32>, vector<224x128xf32>, vector<16x128xf32> -> vector<16x128xf32>
    %74 = arith.addf %68, %73 : vector<16x128xf32>
    %75 = vector.extract_strided_slice %64 {offsets = [1, 0, 0], sizes = [1, 16, 224], strides = [1, 1, 1]} : vector<7x16x224xf32> to vector<1x16x224xf32>
    %76 = vector.shape_cast %75 : vector<1x16x224xf32> to vector<16x224xf32>
    %c1_58 = arith.constant 1 : index
    %c0_59 = arith.constant 0 : index
    %c0_60 = arith.constant 0 : index
    %77 = vector.load %arg6[%c1_58, %c0_59, %c0_60] : memref<7x224x128xf32, #tpu.memory_space<vmem>>, vector<1x224x128xf32>
    %78 = vector.shape_cast %77 : vector<1x224x128xf32> to vector<224x128xf32>
    %cst_61 = arith.constant dense<0.000000e+00> : vector<16x128xf32>
    %79 = tpu.matmul %76, %78, %cst_61 {dimension_numbers = #tpu.dot_dimension_numbers<[1], [0], [0], [1], [0, 0, 1, 1], [], []>} : vector<16x224xf32>, vector<224x128xf32>, vector<16x128xf32> -> vector<16x128xf32>
    %80 = arith.addf %74, %79 : vector<16x128xf32>
    %81 = vector.extract_strided_slice %64 {offsets = [2, 0, 0], sizes = [1, 16, 224], strides = [1, 1, 1]} : vector<7x16x224xf32> to vector<1x16x224xf32>
    %82 = vector.shape_cast %81 : vector<1x16x224xf32> to vector<16x224xf32>
    %c2_62 = arith.constant 2 : index
    %c0_63 = arith.constant 0 : index
    %c0_64 = arith.constant 0 : index
    %83 = vector.load %arg6[%c2_62, %c0_63, %c0_64] : memref<7x224x128xf32, #tpu.memory_space<vmem>>, vector<1x224x128xf32>
    %84 = vector.shape_cast %83 : vector<1x224x128xf32> to vector<224x128xf32>
    %cst_65 = arith.constant dense<0.000000e+00> : vector<16x128xf32>
    %85 = tpu.matmul %82, %84, %cst_65 {dimension_numbers = #tpu.dot_dimension_numbers<[1], [0], [0], [1], [0, 0, 1, 1], [], []>} : vector<16x224xf32>, vector<224x128xf32>, vector<16x128xf32> -> vector<16x128xf32>
    %86 = arith.addf %80, %85 : vector<16x128xf32>
    %87 = vector.extract_strided_slice %64 {offsets = [3, 0, 0], sizes = [1, 16, 224], strides = [1, 1, 1]} : vector<7x16x224xf32> to vector<1x16x224xf32>
    %88 = vector.shape_cast %87 : vector<1x16x224xf32> to vector<16x224xf32>
    %c3_66 = arith.constant 3 : index
    %c0_67 = arith.constant 0 : index
    %c0_68 = arith.constant 0 : index
    %89 = vector.load %arg6[%c3_66, %c0_67, %c0_68] : memref<7x224x128xf32, #tpu.memory_space<vmem>>, vector<1x224x128xf32>
    %90 = vector.shape_cast %89 : vector<1x224x128xf32> to vector<224x128xf32>
    %cst_69 = arith.constant dense<0.000000e+00> : vector<16x128xf32>
    %91 = tpu.matmul %88, %90, %cst_69 {dimension_numbers = #tpu.dot_dimension_numbers<[1], [0], [0], [1], [0, 0, 1, 1], [], []>} : vector<16x224xf32>, vector<224x128xf32>, vector<16x128xf32> -> vector<16x128xf32>
    %92 = arith.addf %86, %91 : vector<16x128xf32>
    %93 = vector.extract_strided_slice %64 {offsets = [4, 0, 0], sizes = [1, 16, 224], strides = [1, 1, 1]} : vector<7x16x224xf32> to vector<1x16x224xf32>
    %94 = vector.shape_cast %93 : vector<1x16x224xf32> to vector<16x224xf32>
    %c4_70 = arith.constant 4 : index
    %c0_71 = arith.constant 0 : index
    %c0_72 = arith.constant 0 : index
    %95 = vector.load %arg6[%c4_70, %c0_71, %c0_72] : memref<7x224x128xf32, #tpu.memory_space<vmem>>, vector<1x224x128xf32>
    %96 = vector.shape_cast %95 : vector<1x224x128xf32> to vector<224x128xf32>
    %cst_73 = arith.constant dense<0.000000e+00> : vector<16x128xf32>
    %97 = tpu.matmul %94, %96, %cst_73 {dimension_numbers = #tpu.dot_dimension_numbers<[1], [0], [0], [1], [0, 0, 1, 1], [], []>} : vector<16x224xf32>, vector<224x128xf32>, vector<16x128xf32> -> vector<16x128xf32>
    %98 = arith.addf %92, %97 : vector<16x128xf32>
    %99 = vector.extract_strided_slice %64 {offsets = [5, 0, 0], sizes = [1, 16, 224], strides = [1, 1, 1]} : vector<7x16x224xf32> to vector<1x16x224xf32>
    %100 = vector.shape_cast %99 : vector<1x16x224xf32> to vector<16x224xf32>
    %c5 = arith.constant 5 : index
    %c0_74 = arith.constant 0 : index
    %c0_75 = arith.constant 0 : index
    %101 = vector.load %arg6[%c5, %c0_74, %c0_75] : memref<7x224x128xf32, #tpu.memory_space<vmem>>, vector<1x224x128xf32>
    %102 = vector.shape_cast %101 : vector<1x224x128xf32> to vector<224x128xf32>
    %cst_76 = arith.constant dense<0.000000e+00> : vector<16x128xf32>
    %103 = tpu.matmul %100, %102, %cst_76 {dimension_numbers = #tpu.dot_dimension_numbers<[1], [0], [0], [1], [0, 0, 1, 1], [], []>} : vector<16x224xf32>, vector<224x128xf32>, vector<16x128xf32> -> vector<16x128xf32>
    %104 = arith.addf %98, %103 : vector<16x128xf32>
    %105 = vector.extract_strided_slice %64 {offsets = [6, 0, 0], sizes = [1, 16, 224], strides = [1, 1, 1]} : vector<7x16x224xf32> to vector<1x16x224xf32>
    %106 = vector.shape_cast %105 : vector<1x16x224xf32> to vector<16x224xf32>
    %c6 = arith.constant 6 : index
    %c0_77 = arith.constant 0 : index
    %c0_78 = arith.constant 0 : index
    %107 = vector.load %arg6[%c6, %c0_77, %c0_78] : memref<7x224x128xf32, #tpu.memory_space<vmem>>, vector<1x224x128xf32>
    %108 = vector.shape_cast %107 : vector<1x224x128xf32> to vector<224x128xf32>
    %cst_79 = arith.constant dense<0.000000e+00> : vector<16x128xf32>
    %109 = tpu.matmul %106, %108, %cst_79 {dimension_numbers = #tpu.dot_dimension_numbers<[1], [0], [0], [1], [0, 0, 1, 1], [], []>} : vector<16x224xf32>, vector<224x128xf32>, vector<16x128xf32> -> vector<16x128xf32>
    %110 = arith.addf %104, %109 : vector<16x128xf32>
    %c0_80 = arith.constant 0 : index
    %c0_81 = arith.constant 0 : index
    %111 = vector.load %arg8[%c0_80, %c0_81] : memref<16x128xf32, #tpu.memory_space<vmem>>, vector<16x128xf32>
    tpu.vector_store %arg8[%c0_80, %c0_81], %110 {strides = array<i32>} : memref<16x128xf32, #tpu.memory_space<vmem>>, vector<16x128xf32>,
    return
  }
  func.func @transform_0(%arg0: i32) -> (i32, i32, i32) {
    %c0_i32 = arith.constant 0 : i32
    %c0_i32_0 = arith.constant 0 : i32
    %c0_i32_1 = arith.constant 0 : i32
    return %c0_i32, %arg0, %c0_i32_0 : i32, i32, i32
  }
  func.func @transform_1(%arg0: i32) -> (i32, i32) {
    %c0_i32 = arith.constant 0 : i32
    %c0_i32_0 = arith.constant 0 : i32
    %c0_i32_1 = arith.constant 0 : i32
    return %c0_i32, %c0_i32_0 : i32, i32
  }
  func.func @transform_2(%arg0: i32) -> (i32, i32) {
    %c0_i32 = arith.constant 0 : i32
    %c0_i32_0 = arith.constant 0 : i32
    %c0_i32_1 = arith.constant 0 : i32
    return %c0_i32, %c0_i32_0 : i32, i32
  }
  func.func @transform_3(%arg0: i32) -> (i32, i32, i32) {
    %c0_i32 = arith.constant 0 : i32
    %c0_i32_0 = arith.constant 0 : i32
    %c0_i32_1 = arith.constant 0 : i32
    %c0_i32_2 = arith.constant 0 : i32
    return %c0_i32, %c0_i32_0, %c0_i32_1 : i32, i32, i32
  }
  func.func @transform_4(%arg0: i32) -> (i32, i32) {
    %c0_i32 = arith.constant 0 : i32
    %c0_i32_0 = arith.constant 0 : i32
    %c0_i32_1 = arith.constant 0 : i32
    return %c0_i32, %c0_i32_0 : i32, i32
  }
  func.func @transform_5(%arg0: i32) -> (i32, i32, i32) {
    %c0_i32 = arith.constant 0 : i32
    %c0_i32_0 = arith.constant 0 : i32
    %c0_i32_1 = arith.constant 0 : i32
    %c0_i32_2 = arith.constant 0 : i32
    return %c0_i32, %c0_i32_0, %c0_i32_1 : i32, i32, i32
  }
  func.func @transform_6(%arg0: i32) -> (i32, i32) {
    %c0_i32 = arith.constant 0 : i32
    %c0_i32_0 = arith.constant 0 : i32
    %c0_i32_1 = arith.constant 0 : i32
    return %c0_i32, %c0_i32_0 : i32, i32
  }
  func.func @transform_7(%arg0: i32) -> (i32, i32) {
    %c0_i32 = arith.constant 0 : i32
    %c0_i32_0 = arith.constant 0 : i32
    return %arg0, %c0_i32 : i32, i32
  }
}

</mosaic_0001>

<bundles_post_ra>
// kernel: tile.13
= control target key start
LH: loop header
LB: loop body
LE: loop exit
PB: predicated region body
PF: predicated region fallthrough
CT: control target
= control target key end

     0   :  { %s28_s0 = inlined_call_operand.vmem [shape: f32[16], index: 0, kind: input, shape index: {}]   ;;  %s29_s1 = inlined_call_operand.vmem [shape: f32[14,16], index: 1, kind: output, shape index: {}]  }
   0x1   :  { %v4_v0 = vld [vmem:[%s28_s0] ss:$0 sm:$0xff] }
   0x2   :  { %5 = vst [vmem:[%s29_s1] sm:$0xff] %v4_v0  ;;  %8 = vst [vmem:[%s29_s1 + $0x8] sm:$0xff] %v4_v0 }

// kernel: tile.14
= control target key start
LH: loop header
LB: loop body
LE: loop exit
PB: predicated region body
PF: predicated region fallthrough
CT: control target
= control target key end

     0   :  { %s19_s8 = smov 3  ;;  %s73_s9 = smov 112   ;;  %vm4_vm0 = vcmask 130048   ;;  %vm10_vm1 = vcmask 1048448   ;;  %vm16_vm2 = vcmask 917248   ;;  %vm23_vm3 = vcmask 786048   ;;  %s117_s0 = inlined_call_operand.vmem [shape: f32[14,16], index: 0, kind: input, shape index: {}]   ;;  %s118_s1 = inlined_call_operand.vmem [shape: f32[224], index: 1, kind: output, shape index: {}]  }
   0x1   :  { %v59_v0 = vld [vmem:[%s117_s0 + $0x7] sm:$0x1]   ;;  %v61_v1 = vld [vmem:[%s117_s0 + $0x5] ss:$8 sm:%s19_s8]   ;;  %s74_s12 = smov 80   ;;  %s26_s15 = smov 3 }
   0x2   :  { %8 = vrot.lane.b32.xlu0 %v59_v0, %s73_s9  ;;  %21 = vrot.lane.b32.xlu1 %v61_v1, %s74_s12  ;;  %v60_v2 = vld [vmem:[%s117_s0 + $0x6] sm:$0x1]   ;;  %s33_s18 = smov 3  ;;  %s40_s19 = smov 3  ;;  %vm30_vm4 = vcmask 654848   ;;  %vm37_vm5 = vcmask 523648  }
   0x3   :  { %v62_v3 = vld [vmem:[%s117_s0 + $0x4] ss:$8 sm:%s26_s15]   ;;  %s75_s20 = smov 96   ;;  %s76_s21 = smov 64   ;;  %v63_v4 = vld [vmem:[%s117_s0 + $0x3] ss:$8 sm:%s33_s18]  }
   0x4   :  { %s2_s24 = smov 3  ;;  %v64_v5 = vld [vmem:[%s117_s0 + $0x2] ss:$8 sm:%s40_s19]   ;;  %s47_s27 = smov 3  ;;  %vm44_vm6 = vcmask 392448   ;;  %vm51_vm7 = vcmask 261248  }
   0x5   :  { %v3_v6 = vld [vmem:[%s117_s0] ss:$8 sm:%s2_s24]   ;;  %s77_s30 = smov 48   ;;  %s78_s2 = smov 32   ;;  %v65_v7 = vld [vmem:[%s117_s0 + $0x1] ss:$8 sm:%s47_s27]  }
   0x6   :  { %14 = vrot.lane.b32.xlu0 %v60_v2, %s75_s20  ;;  %28 = vrot.lane.b32.xlu1 %v62_v3, %s76_s21  ;;  %5 = vst.msk [vmem:[#allocation0] sm:$0x3] %vm4_vm0, %v3_v6   ;;  %s79_s0 = smov 16  }
   0xa   :  { %35 = vrot.lane.b32.xlu0 %v63_v4, %s77_s30  ;;  %42 = vrot.lane.b32.xlu1 %v64_v5, %s78_s2 }
   0xe   :  { %49 = vrot.lane.b32.xlu0 %v65_v7, %s79_s0 }
  0x74   :  { %v9_v8 = vpop.permute.xlu0 %8   ;;  %v22_v9 = vpop.permute.xlu1 %21  }
  0x75   :  { %11 = vst.msk [vmem:[#allocation0] sm:$0x1] %vm10_vm1, %v9_v8  }
  0x78   :  { %v15_v10 = vpop.permute.xlu0 %14   ;;  %v29_v11 = vpop.permute.xlu1 %28  }
  0x79   :  { %17 = vst.msk [vmem:[#allocation0] sm:$0x1] %vm16_vm2, %v15_v10  }
  0x7a   :  { %24 = vst.msk [vmem:[#allocation0] sm:$0x3] %vm23_vm3, %v22_v9  }
  0x7b   :  { %31 = vst.msk [vmem:[#allocation0] sm:$0x3] %vm30_vm4, %v29_v11  }
  0x7c   :  { %v36_v12 = vpop.permute.xlu0 %35   ;;  %v43_v13 = vpop.permute.xlu1 %42  }
  0x7d   :  { %38 = vst.msk [vmem:[#allocation0] sm:$0x3] %vm37_vm5, %v36_v12  }
  0x7e   :  { %45 = vst.msk [vmem:[#allocation0] sm:$0x3] %vm44_vm6, %v43_v13  }
  0x80   :  { %v50_v14 = vpop.permute.xlu0 %49  }
  0x81   :  { %52 = vst.msk [vmem:[#allocation0] sm:$0x3] %vm51_vm7, %v50_v14  }
  0x88   :  { %v56_v15 = vld [vmem:[#allocation0] sm:$0x3] }
  0x89   :  { %58 = vst [vmem:[%s118_s1] sm:$0x3] %v56_v15 }

// kernel: tile.18
= control target key start
LH: loop header
LB: loop body
LE: loop exit
PB: predicated region body
PF: predicated region fallthrough
CT: control target
= control target key end

     0   :  { %s22_s0 = inlined_call_operand.vmem [shape: f32[32], index: 0, kind: input, shape index: {}]   ;;  %s23_s1 = inlined_call_operand.vmem [shape: f32[7,32], index: 1, kind: output, shape index: {}]  }
   0x1   :  { %v4_v0 = vld [vmem:[%s22_s0] ss:$0 sm:$0xff] }
   0x2   :  { %5 = vst [vmem:[%s23_s1] sm:$0xff] %v4_v0 }

// kernel: tile.19
= control target key start
LH: loop header
LB: loop body
LE: loop exit
PB: predicated region body
PF: predicated region fallthrough
CT: control target
= control target key end

     0   :  { %s13_s8 = smov 3  ;;  %s38_s9 = smov 96   ;;  %vm4_vm0 = vcmask 261120   ;;  %vm10_vm1 = vcmask 1048320   ;;  %vm17_vm2 = vcmask 785920   ;;  %vm24_vm3 = vcmask 523520   ;;  %s66_s0 = inlined_call_operand.vmem [shape: f32[7,32], index: 0, kind: input, shape index: {}]   ;;  %s67_s1 = inlined_call_operand.vmem [shape: f32[224], index: 1, kind: output, shape index: {}]  }
   0x1   :  { %v32_v0 = vld [vmem:[%s66_s0 + $0x3] sm:$0x1]   ;;  %s20_s10 = smov 3  ;;  %v33_v1 = vld [vmem:[%s66_s0 + $0x2] ss:$4 sm:%s13_s8]   ;;  %s2_s15 = smov 3 }
   0x2   :  { %8 = vrot.lane.b32.xlu0 %v32_v0, %s38_s9  ;;  %v34_v2 = vld [vmem:[%s66_s0 + $0x1] ss:$4 sm:%s20_s10]   ;;  %s39_s16 = smov 32  }
   0x3   :  { %22 = vrot.lane.b32.xlu1 %v34_v2, %s39_s16  ;;  %v3_v3 = vld [vmem:[%s66_s0] ss:$4 sm:%s2_s15]   ;;  %s40_s0 = smov 64  }
   0x4   :  { %5 = vst.msk [vmem:[#allocation0] sm:$0x3] %vm4_vm0, %v3_v3  }
   0x6   :  { %15 = vrot.lane.b32.xlu0 %v33_v1, %s40_s0 }
  0x74   :  { %v9_v4 = vpop.permute.xlu0 %8  }
  0x75   :  { %11 = vst.msk [vmem:[#allocation0] sm:$0x1] %vm10_vm1, %v9_v4   ;;  %v23_v5 = vpop.permute.xlu1 %22  }
  0x78   :  { %v16_v6 = vpop.permute.xlu0 %15  }
  0x79   :  { %18 = vst.msk [vmem:[#allocation0] sm:$0x3] %vm17_vm2, %v16_v6  }
  0x7a   :  { %25 = vst.msk [vmem:[#allocation0] sm:$0x3] %vm24_vm3, %v23_v5  }
  0x81   :  { %v29_v7 = vld [vmem:[#allocation0] sm:$0x3] }
  0x82   :  { %31 = vst [vmem:[%s67_s1] sm:$0x3] %v29_v7 }

// kernel: convnet_forward.1
= control target key start
LH: loop header
LB: loop body
LE: loop exit
PB: predicated region body
PF: predicated region fallthrough
CT: control target
= control target key end

     0   :  { %vm218_vm0 = vcmask 261120   ;;  %vm1604_vm1 = vcmask 785408   ;;  %s14512_s1 = inlined_call_operand.vmem [shape: f32[160,512], index: 1, kind: input, shape index: {}]   ;;  %s14513_s0 = inlined_call_operand.vmem [shape: f32[28,16,160], index: 0, kind: input, shape index: {}]   ;;  %s14514_s3 = inlined_call_operand.vmem [shape: f32[5,224,512], index: 3, kind: input, shape index: {}]   ;;  %s14515_s2 = inlined_call_operand.vmem [shape: f32[1,512], index: 2, kind: input, shape index: {}]   ;;  %s14516_s5 = inlined_call_operand.vmem [shape: f32[7,224,128], index: 5, kind: input, shape index: {}]   ;;  %s14517_s4 = inlined_call_operand.vmem [shape: f32[1,512], index: 4, kind: input, shape index: {}]   ;;  %s14518_s6 = inlined_call_operand.vmem [shape: f32[1,128], index: 6, kind: input, shape index: {}]   ;;  %s14519_s7 = inlined_call_operand.vmem [shape: f32[16,128], index: 7, kind: output, shape index: {}]  }
   0x1   :  { %v139_v0 = vld [vmem:[%s14512_s1 + $0x8] sm:$0xff]  ;;  %v138_v2 = vld [vmem:[%s14512_s1] sm:$0xff]  ;;  %v141_v61 = vld [vmem:[%s14512_s1 + $0x18] sm:$0xff] }
   0x2   :  { %v143_v1 = vld [vmem:[%s14512_s1 + $0x28] sm:$0xff]  ;;  %v142_v4 = vld [vmem:[%s14512_s1 + $0x20] sm:$0xff]  ;;  %v145_v62 = vld [vmem:[%s14512_s1 + $0x38] sm:$0xff] }
   0x3   :  { %v7649_v3 = vpack.c.bf16 %v143_v1, %v139_v0  ;;  %v147_v5 = vld [vmem:[%s14512_s1 + $0x48] sm:$0xff]  ;;  %v7651_v7 = vpack.c.bf16 %v142_v4, %v138_v2  ;;  %v146_v9 = vld [vmem:[%s14512_s1 + $0x40] sm:$0xff]  ;;  %v7689_v0 = vpack.c.bf16 %v145_v62, %v141_v61  ;;  %v140_v1 = vld [vmem:[%s14512_s1 + $0x10] sm:$0xff] }
   0x4   :  { %v151_v6 = vld [vmem:[%s14512_s1 + $0x68] sm:$0xff]  ;;  %v150_v10 = vld [vmem:[%s14512_s1 + $0x60] sm:$0xff]  ;;  %v144_v2 = vld [vmem:[%s14512_s1 + $0x30] sm:$0xff] }
   0x5   :  { %v7653_v8 = vpack.c.bf16 %v151_v6, %v147_v5  ;;  %v155_v11 = vld [vmem:[%s14512_s1 + $0x88] sm:$0xff]  ;;  %7650 = vmatprep.subr.bf16.mxu0 %v7649_v3  ;;  %8583 = vmatprep.subr.bf16.mxu1 %v7649_v3  ;;  %v7655_v13 = vpack.c.bf16 %v150_v10, %v146_v9  ;;  %v154_v15 = vld [vmem:[%s14512_s1 + $0x80] sm:$0xff]  ;;  %v149_v3 = vld [vmem:[%s14512_s1 + $0x58] sm:$0xff] }
   0x6   :  { %v159_v12 = vld [vmem:[%s14512_s1 + $0xa8] sm:$0xff]  ;;  %7652 = vmatpush1.bf16.msra.mxu0 %v7651_v7  ;;  %8593 = vmatpush1.bf16.msra.mxu1 %v7651_v7  ;;  %v158_v16 = vld [vmem:[%s14512_s1 + $0xa0] sm:$0xff]  ;;  %v153_v4 = vld [vmem:[%s14512_s1 + $0x78] sm:$0xff]  ;;  %v7691_v7 = vpack.c.bf16 %v144_v2, %v140_v1 }
   0x7   :  { %7654 = vmatprep.subr.bf16.mxu0 %v7653_v8  ;;  %8584 = vmatprep.subr.bf16.mxu1 %v7653_v8  ;;  %v7657_v14 = vpack.c.bf16 %v159_v12, %v155_v11  ;;  %v163_v17 = vld [vmem:[%s14512_s1 + $0xc8] sm:$0xff]  ;;  %v7659_v19 = vpack.c.bf16 %v158_v16, %v154_v15  ;;  %v162_v21 = vld [vmem:[%s14512_s1 + $0xc0] sm:$0xff]  ;;  %v9368_v8 = vld [vmem:[%s14513_s0 + $0x18] sm:$0xff]  ;;  %v7693_v9 = vpack.c.bf16 %v153_v4, %v149_v3 }
   0x8   :  { %v167_v18 = vld [vmem:[%s14512_s1 + $0xe8] sm:$0xff]  ;;  %v166_v22 = vld [vmem:[%s14512_s1 + $0xe0] sm:$0xff]  ;;  %v9373_v10 = vld [vmem:[%s14513_s0 + $0xf8] sm:$0xff] }
   0x9   :  { %v7661_v20 = vpack.c.bf16 %v167_v18, %v163_v17  ;;  %v171_v23 = vld [vmem:[%s14512_s1 + $0x108] sm:$0xff]  ;;  %v7663_v25 = vpack.c.bf16 %v166_v22, %v162_v21  ;;  %v170_v26 = vld [vmem:[%s14512_s1 + $0x100] sm:$0xff]  ;;  %v148_v11 = vld [vmem:[%s14512_s1 + $0x50] sm:$0xff] }
   0xa   :  { %7656 = vmatpush1.bf16.msra.mxu0 %v7655_v13  ;;  %8594 = vmatpush1.bf16.msra.mxu1 %v7655_v13  ;;  %v175_v24 = vld [vmem:[%s14512_s1 + $0x128] sm:$0xff]  ;;  %v174_v28 = vld [vmem:[%s14512_s1 + $0x120] sm:$0xff]  ;;  %v152_v12 = vld [vmem:[%s14512_s1 + $0x70] sm:$0xff] }
   0xb   :  { %7658 = vmatprep.subr.bf16.mxu0 %v7657_v14  ;;  %8585 = vmatprep.subr.bf16.mxu1 %v7657_v14  ;;  %v7665_v27 = vpack.c.bf16 %v175_v24, %v171_v23  ;;  %v9266_v29 = vld [vmem:[%s14513_s0 + $0x8] sm:$0xff]  ;;  %v7667_v33 = vpack.c.bf16 %v174_v28, %v170_v26  ;;  %v178_v35 = vld [vmem:[%s14512_s1 + $0x140] sm:$0xff]  ;;  %v157_v13 = vld [vmem:[%s14512_s1 + $0x98] sm:$0xff] }
   0xc   :  { %v9271_v30 = vld [vmem:[%s14513_s0 + $0xe8] sm:$0xff]  ;;  %6626 = vmatprep.mubr.msk.f32.mxu0 %vm218_vm0, %v9266_v29  ;;  %v182_v36 = vld [vmem:[%s14512_s1 + $0x160] sm:$0xff]  ;;  %v161_v14 = vld [vmem:[%s14512_s1 + $0xb8] sm:$0xff] }
   0xd   :  { %v179_v31 = vld [vmem:[%s14512_s1 + $0x148] sm:$0xff]  ;;  %6640 = vmatprep.mubr.msk.f32.mxu1 %vm218_vm0, %v9271_v30  ;;  %v7671_v39 = vpack.c.bf16 %v182_v36, %v178_v35  ;;  %v186_v41 = vld [vmem:[%s14512_s1 + $0x180] sm:$0xff]  ;;  %v9394_v15 = vld [vmem:[%s14513_s0 + $0x10] sm:$0xff] }
   0xe   :  { %7660 = vmatpush1.bf16.msra.mxu0 %v7659_v19  ;;  %8595 = vmatpush1.bf16.msra.mxu1 %v7659_v19  ;;  %v183_v32 = vld [vmem:[%s14512_s1 + $0x168] sm:$0xff]  ;;  %v190_v42 = vld [vmem:[%s14512_s1 + $0x1a0] sm:$0xff]  ;;  %v9399_v16 = vld [vmem:[%s14513_s0 + $0xf0] sm:$0xff]  ;;  %v7695_v19 = vpack.c.bf16 %v152_v12, %v148_v11 }
   0xf   :  { %7662 = vmatprep.subr.bf16.mxu0 %v7661_v20  ;;  %8586 = vmatprep.subr.bf16.mxu1 %v7661_v20  ;;  %v7669_v34 = vpack.c.bf16 %v183_v32, %v179_v31  ;;  %v187_v37 = vld [vmem:[%s14512_s1 + $0x188] sm:$0xff]  ;;  %v7675_v45 = vpack.c.bf16 %v190_v42, %v186_v41  ;;  %v194_v47 = vld [vmem:[%s14512_s1 + $0x1c0] sm:$0xff]  ;;  %v7697_v20 = vpack.c.bf16 %v161_v14, %v157_v13  ;;  %v156_v21 = vld [vmem:[%s14512_s1 + $0x90] sm:$0xff] }
  0x10   :  { %v191_v38 = vld [vmem:[%s14512_s1 + $0x1a8] sm:$0xff]  ;;  %v198_v48 = vld [vmem:[%s14512_s1 + $0x1e0] sm:$0xff]  ;;  %v160_v22 = vld [vmem:[%s14512_s1 + $0xb0] sm:$0xff] }
  0x11   :  { %v7673_v40 = vpack.c.bf16 %v191_v38, %v187_v37  ;;  %v195_v43 = vld [vmem:[%s14512_s1 + $0x1c8] sm:$0xff]  ;;  %v7679_v51 = vpack.c.bf16 %v198_v48, %v194_v47  ;;  %v202_v53 = vld [vmem:[%s14512_s1 + $0x200] sm:$0xff]  ;;  %v165_v23 = vld [vmem:[%s14512_s1 + $0xd8] sm:$0xff]  ;;  %v7699_v31 = vpack.c.bf16 %v160_v22, %v156_v21 }
  0x12   :  { %7664 = vmatpush1.bf16.msra.mxu0 %v7663_v25  ;;  %8596 = vmatpush1.bf16.msra.mxu1 %v7663_v25  ;;  %v199_v44 = vld [vmem:[%s14512_s1 + $0x1e8] sm:$0xff]  ;;  %v206_v54 = vld [vmem:[%s14512_s1 + $0x220] sm:$0xff]  ;;  %v169_v24 = vld [vmem:[%s14512_s1 + $0xf8] sm:$0xff] }
  0x13   :  { %7666 = vmatprep.subr.bf16.mxu0 %v7665_v27  ;;  %8587 = vmatprep.subr.bf16.mxu1 %v7665_v27  ;;  %v7677_v46 = vpack.c.bf16 %v199_v44, %v195_v43  ;;  %v203_v49 = vld [vmem:[%s14512_s1 + $0x208] sm:$0xff]  ;;  %v7683_v57 = vpack.c.bf16 %v206_v54, %v202_v53  ;;  %v210_v59 = vld [vmem:[%s14512_s1 + $0x240] sm:$0xff]  ;;  %v9444_v27 = vld [vmem:[%s14513_s0 + $0x38] sm:$0xff]  ;;  %v7701_v32 = vpack.c.bf16 %v169_v24, %v165_v23 }
  0x14   :  { %v207_v50 = vld [vmem:[%s14512_s1 + $0x228] sm:$0xff]  ;;  %v214_v60 = vld [vmem:[%s14512_s1 + $0x260] sm:$0xff]  ;;  %v9449_v28 = vld [vmem:[%s14513_s0 + $0x118] sm:$0xff] }
  0x15   :  { %v7681_v52 = vpack.c.bf16 %v207_v50, %v203_v49  ;;  %v211_v55 = vld [vmem:[%s14512_s1 + $0x248] sm:$0xff]  ;;  %v7687_v63 = vpack.c.bf16 %v214_v60, %v210_v59  ;;  %v9358_v5 = vld [vmem:[%s14513_s0] sm:$0xff]  ;;  %v173_v35 = vld [vmem:[%s14512_s1 + $0x118] sm:$0xff] }
  0x16   :  { %7668 = vmatpush1.bf16.msra.mxu0 %v7667_v33  ;;  %8597 = vmatpush1.bf16.msra.mxu1 %v7667_v33  ;;  %v215_v56 = vld [vmem:[%s14512_s1 + $0x268] sm:$0xff]  ;;  %v9363_v6 = vld [vmem:[%s14513_s0 + $0xe0] sm:$0xff]  ;;  %v164_v33 = vld [vmem:[%s14512_s1 + $0xd0] sm:$0xff] }
  0x17   :  { %7670 = vmatprep.subr.bf16.mxu0 %v7669_v34  ;;  %8588 = vmatprep.subr.bf16.mxu1 %v7669_v34  ;;  %v7685_v58 = vpack.c.bf16 %v215_v56, %v211_v55  ;;  %v9406_v17 = vld [vmem:[%s14513_s0 + $0x28] sm:$0xff]  ;;  %v9434_v25 = vld [vmem:[%s14513_s0 + $0x20] sm:$0xff]  ;;  %v168_v34 = vld [vmem:[%s14512_s1 + $0xf0] sm:$0xff] }
  0x18   :  { %v9411_v18 = vld [vmem:[%s14513_s0 + $0x108] sm:$0xff]  ;;  %v9439_v26 = vld [vmem:[%s14513_s0 + $0x100] sm:$0xff]  ;;  %v177_v36 = vld [vmem:[%s14512_s1 + $0x138] sm:$0xff]  ;;  %v7703_v41 = vpack.c.bf16 %v168_v34, %v164_v33 }
  0x19   :  { %v9472_v37 = vld [vmem:[%s14513_s0 + $0x30] sm:$0xff]  ;;  %v7705_v42 = vpack.c.bf16 %v177_v36, %v173_v35  ;;  %v9510_v47 = vld [vmem:[%s14513_s0 + $0x40] sm:$0xff]  ;;  %v9520_v49 = vld [vmem:[%s14513_s0 + $0x58] sm:$0xff] }
  0x1a   :  { %7672 = vmatpush1.bf16.msra.mxu0 %v7671_v39  ;;  %8598 = vmatpush1.bf16.msra.mxu1 %v7671_v39  ;;  %v9477_v38 = vld [vmem:[%s14513_s0 + $0x110] sm:$0xff]  ;;  %v9482_v39 = vld [vmem:[%s14513_s0 + $0x48] sm:$0xff]  ;;  %v9515_v48 = vld [vmem:[%s14513_s0 + $0x120] sm:$0xff] }
  0x1b   :  { %7674 = vmatprep.subr.bf16.mxu0 %v7673_v40  ;;  %8589 = vmatprep.subr.bf16.mxu1 %v7673_v40  ;;  %v9487_v40 = vld [vmem:[%s14513_s0 + $0x128] sm:$0xff]  ;;  %v172_v43 = vld [vmem:[%s14512_s1 + $0x110] sm:$0xff]  ;;  %v9525_v50 = vld [vmem:[%s14513_s0 + $0x138] sm:$0xff] }
  0x1c   :  { %v176_v44 = vld [vmem:[%s14512_s1 + $0x130] sm:$0xff]  ;;  %v189_v55 = vld [vmem:[%s14512_s1 + $0x198] sm:$0xff]  ;;  %v9558_v59 = vld [vmem:[%s14513_s0 + $0x68] sm:$0xff] }
  0x1d   :  { %v180_v53 = vld [vmem:[%s14512_s1 + $0x150] sm:$0xff]  ;;  %v193_v56 = vld [vmem:[%s14512_s1 + $0x1b8] sm:$0xff]  ;;  %v9563_v60 = vld [vmem:[%s14513_s0 + $0x148] sm:$0xff] }
  0x1e   :  { %7676 = vmatpush1.bf16.msra.mxu0 %v7675_v45  ;;  %8599 = vmatpush1.bf16.msra.mxu1 %v7675_v45  ;;  %v181_v45 = vld [vmem:[%s14512_s1 + $0x158] sm:$0xff]  ;;  %v184_v54 = vld [vmem:[%s14512_s1 + $0x170] sm:$0xff]  ;;  %v7713_v62 = vpack.c.bf16 %v193_v56, %v189_v55  ;;  %v9586_v3 = vld [vmem:[%s14513_s0 + $0x60] sm:$0xff] }
  0x1f   :  { %7678 = vmatprep.subr.bf16.mxu0 %v7677_v46  ;;  %8590 = vmatprep.subr.bf16.mxu1 %v7677_v46  ;;  %v185_v46 = vld [vmem:[%s14512_s1 + $0x178] sm:$0xff]  ;;  %v7711_v61 = vpack.c.bf16 %v184_v54, %v180_v53  ;;  %v9591_v4 = vld [vmem:[%s14513_s0 + $0x140] sm:$0xff]  ;;  %v196_v13 = vld [vmem:[%s14512_s1 + $0x1d0] sm:$0xff] }
  0x20   :  { %v197_v1 = vld [vmem:[%s14512_s1 + $0x1d8] sm:$0xff]  ;;  %v200_v14 = vld [vmem:[%s14512_s1 + $0x1f0] sm:$0xff]  ;;  %v9634_v23 = vld [vmem:[%s14513_s0 + $0x88] sm:$0xff] }
  0x21   :  { %v201_v2 = vld [vmem:[%s14512_s1 + $0x1f8] sm:$0xff]  ;;  %v9624_v21 = vld [vmem:[%s14513_s0 + $0x70] sm:$0xff]  ;;  %v9639_v24 = vld [vmem:[%s14513_s0 + $0x168] sm:$0xff] }
  0x22   :  { %7680 = vmatpush1.bf16.msra.mxu0 %v7679_v51  ;;  %8600 = vmatpush1.bf16.msra.mxu1 %v7679_v51  ;;  %v7707_v51 = vpack.c.bf16 %v176_v44, %v172_v43  ;;  %v7717_v12 = vpack.c.bf16 %v201_v2, %v197_v1  ;;  %v9629_v22 = vld [vmem:[%s14513_s0 + $0x150] sm:$0xff]  ;;  %v213_v35 = vld [vmem:[%s14512_s1 + $0x258] sm:$0xff]  ;;  %v9704_v55 = vld [vmem:[%s14513_s0 + $0xa8] sm:$0xff] }
  0x23   :  { %7682 = vmatprep.subr.bf16.mxu0 %v7681_v52  ;;  %8591 = vmatprep.subr.bf16.mxu1 %v7681_v52  ;;  %v7709_v52 = vpack.c.bf16 %v185_v46, %v181_v45  ;;  %v204_v33 = vld [vmem:[%s14512_s1 + $0x210] sm:$0xff]  ;;  %v217_v36 = vld [vmem:[%s14512_s1 + $0x278] sm:$0xff]  ;;  %v9709_v56 = vld [vmem:[%s14513_s0 + $0x188] sm:$0xff] }
  0x24   :  { %v208_v34 = vld [vmem:[%s14512_s1 + $0x230] sm:$0xff]  ;;  %v9672_v43 = vld [vmem:[%s14513_s0 + $0x98] sm:$0xff]  ;;  %v7725_v46 = vpack.c.bf16 %v217_v36, %v213_v35  ;;  %v9817_v35 = vld [vmem:[%s14513_s0 + $0x1c0] sm:$0xff] }
  0x25   :  { %v9677_v44 = vld [vmem:[%s14513_s0 + $0x178] sm:$0xff]  ;;  %v7723_v45 = vpack.c.bf16 %v208_v34, %v204_v33  ;;  %v9694_v53 = vld [vmem:[%s14513_s0 + $0x90] sm:$0xff]  ;;  %v9808_v34 = vld [vmem:[%s14513_s0 + $0x1c8] sm:$0xff]  ;;  %14603 = vst [vmem:[#allocation5_spill] sm:$0xff] %v9817_v35 }
  0x26   :  { %7684 = vmatpush1.bf16.msra.mxu0 %v7683_v57  ;;  %8601 = vmatpush1.bf16.msra.mxu1 %v7683_v57  ;;  %v9548_v57 = vld [vmem:[%s14513_s0 + $0x50] sm:$0xff]  ;;  %v9735_v1 = vld [vmem:[%s14513_s0 + $0x198] sm:$0xff]  ;;  %14602 = vst [vmem:[#allocation4_spill] sm:$0xff] %v9808_v34 }
  0x27   :  { %7686 = vmatprep.subr.bf16.mxu0 %v7685_v58  ;;  %8592 = vmatprep.subr.bf16.mxu1 %v7685_v58  ;;  %v9553_v58 = vld [vmem:[%s14513_s0 + $0x130] sm:$0xff]  ;;  %v9822_v36 = vld [vmem:[%s14513_s0 + $0x1d8] sm:$0xff] }
  0x28   :  { %v9699_v54 = vld [vmem:[%s14513_s0 + $0x170] sm:$0xff]  ;;  %14604 = vst [vmem:[#allocation6_spill] sm:$0xff] %v9822_v36 }
  0x29   :  { %v9746_v2 = vld [vmem:[%s14513_s0 + $0xb0] sm:$0xff] }
  0x2a   :  { %7688 = vmatpush1.bf16.msra.mxu0 %v7687_v63  ;;  %8602 = vmatpush1.bf16.msra.mxu1 %v7687_v63  ;;  %v188_v63 = vld [vmem:[%s14512_s1 + $0x190] sm:$0xff] }
  0x2b   :  { %7690 = vmatprep.subr.bf16.mxu1 %v7689_v0  ;;  %v192_v0 = vld [vmem:[%s14512_s1 + $0x1b0] sm:$0xff] }
  0x2c   :  { %v7715_v11 = vpack.c.bf16 %v192_v0, %v188_v63  ;;  %v9725_v63 = vld [vmem:[%s14513_s0 + $0x180] sm:$0xff]  ;;  %v9730_v0 = vld [vmem:[%s14513_s0 + $0xb8] sm:$0xff]  ;;  %v9803_v33 = vld [vmem:[%s14513_s0 + $0x1b0] sm:$0xff] }
  0x2d   :  { %452 = vmatmul.mubr.f32.vlgmr.msra.gmra.mrb[0].mxu0 %v9358_v5  ;;  %536 = vmatmul.mubr.f32.vlgmr.msra.gmra.mrb[0].mxu1 %v9363_v6  ;;  %14601 = vst [vmem:[#allocation3_spill] sm:$0xff] %v9803_v33 }
  0x2e   :  { %7692 = vmatpush1.bf16.msra.mxu1 %v7691_v7  ;;  %6627 = vmatprep.mubr.msk.f32.mxu0 %vm218_vm0, %v9368_v8  ;;  %v9596_v7 = vld [vmem:[%s14513_s0 + $0x78] sm:$0xff] }
  0x2f   :  { %6641 = vmatprep.mubr.msk.f32.mxu1 %vm218_vm0, %v9373_v10  ;;  %7694 = vmatprep.subr.bf16.mxu1 %v7693_v9  ;;  %v9601_v9 = vld [vmem:[%s14513_s0 + $0x158] sm:$0xff] }
  0x31   :  { %458 = vmatmul.mubr.f32.gmra.mrb[2].mxu0 %v9394_v15  ;;  %542 = vmatmul.mubr.f32.gmra.mrb[2].mxu1 %v9399_v16 }
  0x32   :  { %6628 = vmatprep.mubr.msk.f32.mxu0 %vm218_vm0, %v9406_v17  ;;  %6642 = vmatprep.mubr.msk.f32.mxu1 %vm218_vm0, %v9411_v18 }
  0x33   :  { %7696 = vmatpush1.bf16.msra.mxu1 %v7695_v19  ;;  %v205_v19 = vld [vmem:[%s14512_s1 + $0x218] sm:$0xff] }
  0x34   :  { %7698 = vmatprep.subr.bf16.mxu1 %v7697_v20  ;;  %v209_v20 = vld [vmem:[%s14512_s1 + $0x238] sm:$0xff] }
  0x35   :  { %464 = vmatmul.mubr.f32.gmra.mrb[4].mxu0 %v9434_v25  ;;  %548 = vmatmul.mubr.f32.gmra.mrb[4].mxu1 %v9439_v26 }
  0x36   :  { %6629 = vmatprep.mubr.msk.f32.mxu0 %vm218_vm0, %v9444_v27  ;;  %6643 = vmatprep.mubr.msk.f32.mxu1 %vm218_vm0, %v9449_v28 }
  0x37   :  { %7700 = vmatpush1.bf16.msra.mxu1 %v7699_v31  ;;  %v7719_v31 = vpack.c.bf16 %v200_v14, %v196_v13  ;;  %v9761_v13 = vld [vmem:[%s14513_s0 + $0x1a8] sm:$0xff]  ;;  %v9772_v14 = vld [vmem:[%s14513_s0 + $0xc0] sm:$0xff] }
  0x38   :  { %7702 = vmatprep.subr.bf16.mxu1 %v7701_v32  ;;  %v7721_v32 = vpack.c.bf16 %v209_v20, %v205_v19  ;;  %v9777_v19 = vld [vmem:[%s14513_s0 + $0x1a0] sm:$0xff]  ;;  %v9782_v20 = vld [vmem:[%s14513_s0 + $0xd8] sm:$0xff] }
  0x39   :  { %470 = vmatmul.mubr.f32.gmra.mrb[6].mxu0 %v9472_v37  ;;  %554 = vmatmul.mubr.f32.gmra.mrb[6].mxu1 %v9477_v38 }
  0x3a   :  { %6630 = vmatprep.mubr.msk.f32.mxu0 %vm218_vm0, %v9482_v39  ;;  %6644 = vmatprep.mubr.msk.f32.mxu1 %vm218_vm0, %v9487_v40 }
  0x3b   :  { %7704 = vmatpush1.bf16.msra.mxu1 %v7703_v41  ;;  %v9662_v41 = vld [vmem:[%s14513_s0 + $0x80] sm:$0xff] }
  0x3c   :  { %7706 = vmatprep.subr.bf16.mxu1 %v7705_v42  ;;  %v9667_v42 = vld [vmem:[%s14513_s0 + $0x160] sm:$0xff] }
  0x3d   :  { %476 = vmatmul.mubr.f32.gmra.mrb[8].mxu0 %v9510_v47  ;;  %560 = vmatmul.mubr.f32.gmra.mrb[8].mxu1 %v9515_v48 }
  0x3e   :  { %6631 = vmatprep.mubr.msk.f32.mxu0 %vm218_vm0, %v9520_v49  ;;  %6645 = vmatprep.mubr.msk.f32.mxu1 %vm218_vm0, %v9525_v50 }
  0x3f   :  { %7708 = vmatpush1.bf16.msra.mxu1 %v7707_v51  ;;  %v212_v51 = vld [vmem:[%s14512_s1 + $0x250] sm:$0xff] }
  0x40   :  { %7710 = vmatprep.subr.bf16.mxu1 %v7709_v52  ;;  %v216_v52 = vld [vmem:[%s14512_s1 + $0x270] sm:$0xff] }
  0x41   :  { %482 = vmatmul.mubr.f32.gmra.mrb[10].mxu0 %v9548_v57  ;;  %566 = vmatmul.mubr.f32.gmra.mrb[10].mxu1 %v9553_v58 }
  0x42   :  { %6632 = vmatprep.mubr.msk.f32.mxu0 %vm218_vm0, %v9558_v59  ;;  %6646 = vmatprep.mubr.msk.f32.mxu1 %vm218_vm0, %v9563_v60 }
  0x43   :  { %7712 = vmatpush1.bf16.msra.mxu1 %v7711_v61  ;;  %v7727_v61 = vpack.c.bf16 %v216_v52, %v212_v51  ;;  %v86_v51 = vld [vmem:[%s14513_s0 + $0x1e0] sm:$0xff]  ;;  %v89_v52 = vld [vmem:[%s14513_s0 + $0x1f8] sm:$0xff] }
  0x44   :  { %7714 = vmatprep.subr.bf16.mxu1 %v7713_v62  ;;  %v9720_v62 = vld [vmem:[%s14513_s0 + $0xa0] sm:$0xff] }
  0x45   :  { %488 = vmatmul.mubr.f32.gmra.mrb[12].mxu0 %v9586_v3  ;;  %572 = vmatmul.mubr.f32.gmra.mrb[12].mxu1 %v9591_v4 }
  0x46   :  { %6633 = vmatprep.mubr.msk.f32.mxu0 %vm218_vm0, %v9596_v7  ;;  %6647 = vmatprep.mubr.msk.f32.mxu1 %vm218_vm0, %v9601_v9 }
  0x47   :  { %7716 = vmatpush1.bf16.msra.mxu1 %v7715_v11  ;;  %v9751_v11 = vld [vmem:[%s14513_s0 + $0x190] sm:$0xff] }
  0x48   :  { %7718 = vmatprep.subr.bf16.mxu1 %v7717_v12  ;;  %v9756_v12 = vld [vmem:[%s14513_s0 + $0xc8] sm:$0xff] }
  0x49   :  { %494 = vmatmul.mubr.f32.gmra.mrb[14].mxu0 %v9624_v21  ;;  %578 = vmatmul.mubr.f32.gmra.mrb[14].mxu1 %v9629_v22 }
  0x4a   :  { %6634 = vmatprep.mubr.msk.f32.mxu0 %vm218_vm0, %v9634_v23  ;;  %6648 = vmatprep.mubr.msk.f32.mxu1 %vm218_vm0, %v9639_v24 }
  0x4b   :  { %7720 = vmatpush1.bf16.msra.mxu1 %v7719_v31  ;;  %v9787_v31 = vld [vmem:[%s14513_s0 + $0x1b8] sm:$0xff] }
  0x4c   :  { %7722 = vmatprep.subr.bf16.mxu1 %v7721_v32  ;;  %v9798_v32 = vld [vmem:[%s14513_s0 + $0xd0] sm:$0xff] }
  0x4d   :  { %500 = vmatmul.mubr.f32.gmra.mrb[16].mxu0 %v9662_v41  ;;  %584 = vmatmul.mubr.f32.gmra.mrb[16].mxu1 %v9667_v42 }
  0x4e   :  { %6635 = vmatprep.mubr.msk.f32.mxu0 %vm218_vm0, %v9672_v43  ;;  %6649 = vmatprep.mubr.msk.f32.mxu1 %vm218_vm0, %v9677_v44 }
  0x4f   :  { %7724 = vmatpush1.bf16.msra.mxu1 %v7723_v45  ;;  %v84_v45 = vld [vmem:[%s14513_s0 + $0x1d0] sm:$0xff] }
  0x50   :  { %7726 = vmatprep.subr.bf16.mxu1 %v7725_v46  ;;  %v87_v46 = vld [vmem:[%s14513_s0 + $0x1e8] sm:$0xff] }
  0x51   :  { %506 = vmatmul.mubr.f32.gmra.mrb[18].mxu0 %v9694_v53  ;;  %590 = vmatmul.mubr.f32.gmra.mrb[18].mxu1 %v9699_v54 }
  0x52   :  { %6636 = vmatprep.mubr.msk.f32.mxu0 %vm218_vm0, %v9704_v55  ;;  %6650 = vmatprep.mubr.msk.f32.mxu1 %vm218_vm0, %v9709_v56 }
  0x53   :  { %7728 = vmatpush1.bf16.msra.mxu1 %v7727_v61  ;;  %v88_v61 = vld [vmem:[%s14513_s0 + $0x1f0] sm:$0xff] }
  0x55   :  { %512 = vmatmul.mubr.f32.gmra.mrb[20].mxu0 %v9720_v62  ;;  %596 = vmatmul.mubr.f32.gmra.mrb[20].mxu1 %v9725_v63 }
  0x56   :  { %6637 = vmatprep.mubr.msk.f32.mxu0 %vm218_vm0, %v9730_v0  ;;  %6651 = vmatprep.mubr.msk.f32.mxu1 %vm218_vm0, %v9735_v1 }
  0x59   :  { %518 = vmatmul.mubr.f32.gmra.mrb[22].mxu0 %v9746_v2  ;;  %602 = vmatmul.mubr.f32.gmra.mrb[22].mxu1 %v9751_v11 }
  0x5a   :  { %6638 = vmatprep.mubr.msk.f32.mxu0 %vm218_vm0, %v9756_v12  ;;  %6652 = vmatprep.mubr.msk.f32.mxu1 %vm218_vm0, %v9761_v13 }
  0x5d   :  { %524 = vmatmul.mubr.f32.gmra.mrb[24].mxu0 %v9772_v14  ;;  %608 = vmatmul.mubr.f32.gmra.mrb[24].mxu1 %v9777_v19 }
  0x5e   :  { %6639 = vmatprep.mubr.msk.f32.mxu0 %vm218_vm0, %v9782_v20  ;;  %6653 = vmatprep.mubr.msk.f32.mxu1 %vm218_vm0, %v9787_v31 }
  0x61   :  { %530 = vmatmul.mubr.f32.gmra.mrb[26].mxu0 %v9798_v32  ;;  %614 = vmatmul.mubr.f32.gmra.mrb[26].mxu1 %v9803_v33  ;;  %v6752_v33 = vld [vmem:[%s14514_s3 + $0x3f0] sm:$0xff] }
  0x62   :  { %6654 = vmatprep.mubr.msk.f32.mxu1 %vm218_vm0, %v9808_v34  ;;  %v130_v34 = vld [vmem:[%s14513_s0 + $0x340] sm:$0xff] }
  0x65   :  { %620 = vmatmul.mubr.f32.gmra.mrb[28].mxu1 %v9817_v35 }
  0x66   :  { %6655 = vmatprep.mubr.msk.f32.mxu1 %vm218_vm0, %v9822_v36  ;;  %v6745_v36 = vld [vmem:[%s14514_s3 + $0x3b8] sm:$0xff] }
  0x69   :  { %626 = vmatmul.mubr.f32.gmra.mrb[30].mxu1 %v84_v45  ;;  %v91_v45 = vld [vmem:[%s14513_s0 + $0x208] sm:$0xff] }
  0x6a   :  { %6656 = vmatprep.mubr.msk.f32.mxu1 %vm218_vm0, %v87_v46  ;;  %v90_v46 = vld [vmem:[%s14513_s0 + $0x200] sm:$0xff] }
  0x6d   :  { %632 = vmatmul.mubr.f32.gmra.mrb[32].mxu1 %v86_v51  ;;  %v93_v51 = vld [vmem:[%s14513_s0 + $0x218] sm:$0xff] }
  0x6e   :  { %6657 = vmatprep.mubr.msk.f32.mxu1 %vm218_vm0, %v89_v52  ;;  %v92_v52 = vld [vmem:[%s14513_s0 + $0x210] sm:$0xff] }
  0x71   :  { %638 = vmatmul.mubr.f32.gmra.mrb[34].mxu1 %v88_v61  ;;  %v95_v61 = vld [vmem:[%s14513_s0 + $0x228] sm:$0xff] }
  0x72   :  { %6658 = vmatprep.mubr.msk.f32.mxu1 %vm218_vm0, %v91_v45  ;;  %v94_v45 = vld [vmem:[%s14513_s0 + $0x220] sm:$0xff] }
  0x75   :  { %644 = vmatmul.mubr.f32.gmra.mrb[36].mxu1 %v90_v46  ;;  %v97_v46 = vld [vmem:[%s14513_s0 + $0x238] sm:$0xff] }
  0x76   :  { %6659 = vmatprep.mubr.msk.f32.mxu1 %vm218_vm0, %v93_v51  ;;  %v96_v51 = vld [vmem:[%s14513_s0 + $0x230] sm:$0xff] }
  0x79   :  { %650 = vmatmul.mubr.f32.gmra.mrb[38].mxu1 %v92_v52  ;;  %v99_v52 = vld [vmem:[%s14513_s0 + $0x248] sm:$0xff] }
  0x7a   :  { %6660 = vmatprep.mubr.msk.f32.mxu1 %vm218_vm0, %v95_v61  ;;  %v98_v61 = vld [vmem:[%s14513_s0 + $0x240] sm:$0xff] }
  0x7d   :  { %656 = vmatmul.mubr.f32.gmra.mrb[40].mxu1 %v94_v45  ;;  %v101_v45 = vld [vmem:[%s14513_s0 + $0x258] sm:$0xff] }
  0x7e   :  { %6661 = vmatprep.mubr.msk.f32.mxu1 %vm218_vm0, %v97_v46  ;;  %v100_v46 = vld [vmem:[%s14513_s0 + $0x250] sm:$0xff] }
  0x81   :  { %662 = vmatmul.mubr.f32.gmra.mrb[42].mxu1 %v96_v51  ;;  %v103_v51 = vld [vmem:[%s14513_s0 + $0x268] sm:$0xff] }
  0x82   :  { %6662 = vmatprep.mubr.msk.f32.mxu1 %vm218_vm0, %v99_v52  ;;  %v102_v52 = vld [vmem:[%s14513_s0 + $0x260] sm:$0xff] }
  0x85   :  { %668 = vmatmul.mubr.f32.gmra.mrb[44].mxu1 %v98_v61  ;;  %v105_v61 = vld [vmem:[%s14513_s0 + $0x278] sm:$0xff] }
  0x86   :  { %6663 = vmatprep.mubr.msk.f32.mxu1 %vm218_vm0, %v101_v45  ;;  %v104_v45 = vld [vmem:[%s14513_s0 + $0x270] sm:$0xff] }
  0x89   :  { %674 = vmatmul.mubr.f32.gmra.mrb[46].mxu1 %v100_v46  ;;  %v107_v46 = vld [vmem:[%s14513_s0 + $0x288] sm:$0xff] }
  0x8a   :  { %6664 = vmatprep.mubr.msk.f32.mxu1 %vm218_vm0, %v103_v51  ;;  %v106_v51 = vld [vmem:[%s14513_s0 + $0x280] sm:$0xff] }
  0x8d   :  { %680 = vmatmul.mubr.f32.gmra.mrb[48].mxu1 %v102_v52  ;;  %v109_v52 = vld [vmem:[%s14513_s0 + $0x298] sm:$0xff] }
  0x8e   :  { %6665 = vmatprep.mubr.msk.f32.mxu1 %vm218_vm0, %v105_v61  ;;  %v108_v61 = vld [vmem:[%s14513_s0 + $0x290] sm:$0xff] }
  0x91   :  { %686 = vmatmul.mubr.f32.gmra.mrb[50].mxu1 %v104_v45  ;;  %v111_v45 = vld [vmem:[%s14513_s0 + $0x2a8] sm:$0xff] }
  0x92   :  { %6666 = vmatprep.mubr.msk.f32.mxu1 %vm218_vm0, %v107_v46  ;;  %v110_v46 = vld [vmem:[%s14513_s0 + $0x2a0] sm:$0xff] }
  0x95   :  { %692 = vmatmul.mubr.f32.gmra.mrb[52].mxu1 %v106_v51  ;;  %v113_v51 = vld [vmem:[%s14513_s0 + $0x2b8] sm:$0xff] }
  0x96   :  { %6667 = vmatprep.mubr.msk.f32.mxu1 %vm218_vm0, %v109_v52  ;;  %v112_v52 = vld [vmem:[%s14513_s0 + $0x2b0] sm:$0xff] }
  0x99   :  { %698 = vmatmul.mubr.f32.gmra.mrb[54].mxu1 %v108_v61  ;;  %v115_v61 = vld [vmem:[%s14513_s0 + $0x2c8] sm:$0xff] }
  0x9a   :  { %6668 = vmatprep.mubr.msk.f32.mxu1 %vm218_vm0, %v111_v45  ;;  %v114_v45 = vld [vmem:[%s14513_s0 + $0x2c0] sm:$0xff] }
  0x9d   :  { %704 = vmatmul.mubr.f32.gmra.mrb[56].mxu1 %v110_v46  ;;  %v117_v46 = vld [vmem:[%s14513_s0 + $0x2d8] sm:$0xff] }
  0x9e   :  { %6669 = vmatprep.mubr.msk.f32.mxu1 %vm218_vm0, %v113_v51  ;;  %v116_v51 = vld [vmem:[%s14513_s0 + $0x2d0] sm:$0xff] }
  0xa1   :  { %710 = vmatmul.mubr.f32.gmra.mrb[58].mxu1 %v112_v52  ;;  %v119_v52 = vld [vmem:[%s14513_s0 + $0x2e8] sm:$0xff] }
  0xa2   :  { %6670 = vmatprep.mubr.msk.f32.mxu1 %vm218_vm0, %v115_v61  ;;  %v118_v61 = vld [vmem:[%s14513_s0 + $0x2e0] sm:$0xff] }
  0xa5   :  { %716 = vmatmul.mubr.f32.gmra.mrb[60].mxu1 %v114_v45  ;;  %v121_v45 = vld [vmem:[%s14513_s0 + $0x2f8] sm:$0xff] }
  0xa6   :  { %6671 = vmatprep.mubr.msk.f32.mxu1 %vm218_vm0, %v117_v46  ;;  %v120_v46 = vld [vmem:[%s14513_s0 + $0x2f0] sm:$0xff] }
  0xa9   :  { %722 = vmatmul.mubr.f32.gmra.mrb[62].mxu1 %v116_v51  ;;  %v123_v51 = vld [vmem:[%s14513_s0 + $0x308] sm:$0xff] }
  0xaa   :  { %6672 = vmatprep.mubr.msk.f32.mxu1 %vm218_vm0, %v119_v52  ;;  %v122_v52 = vld [vmem:[%s14513_s0 + $0x300] sm:$0xff] }
  0xad   :  { %728 = vmatmul.mubr.f32.gmra.mrb[64].mxu1 %v118_v61  ;;  %v125_v61 = vld [vmem:[%s14513_s0 + $0x318] sm:$0xff] }
  0xae   :  { %6673 = vmatprep.mubr.msk.f32.mxu1 %vm218_vm0, %v121_v45  ;;  %v124_v45 = vld [vmem:[%s14513_s0 + $0x310] sm:$0xff] }
  0xb1   :  { %734 = vmatmul.mubr.f32.gmra.mrb[66].mxu1 %v120_v46  ;;  %v127_v46 = vld [vmem:[%s14513_s0 + $0x328] sm:$0xff] }
  0xb2   :  { %6674 = vmatprep.mubr.msk.f32.mxu1 %vm218_vm0, %v123_v51  ;;  %v126_v51 = vld [vmem:[%s14513_s0 + $0x320] sm:$0xff] }
  0xb5   :  { %740 = vmatmul.mubr.f32.gmra.mrb[68].mxu1 %v122_v52  ;;  %v129_v52 = vld [vmem:[%s14513_s0 + $0x338] sm:$0xff] }
  0xb6   :  { %6675 = vmatprep.mubr.msk.f32.mxu1 %vm218_vm0, %v125_v61  ;;  %v6741_v61 = vld [vmem:[%s14514_s3 + $0x398] sm:$0xff] }
  0xb7   :  { %v7785_v35 = vpack.c.bf16 %v6745_v36, %v6741_v61  ;;  %v133_v36 = vld [vmem:[%s14513_s0 + $0x358] sm:$0xff]  ;;  %v136_v61 = vld [vmem:[%s14513_s0 + $0x370] sm:$0xff] }
  0xb9   :  { %746 = vmatmul.mubr.f32.gmra.mrb[70].mxu1 %v124_v45  ;;  %v128_v45 = vld [vmem:[%s14513_s0 + $0x330] sm:$0xff]  ;;  %7786 = vmatprep.subr.bf16.mxu1 %v7785_v35 }
  0xba   :  { %6676 = vmatprep.mubr.msk.f32.mxu1 %vm218_vm0, %v127_v46  ;;  %v131_v46 = vld [vmem:[%s14513_s0 + $0x348] sm:$0xff]  ;;  %v132_v35 = vld [vmem:[%s14513_s0 + $0x350] sm:$0xff] }
  0xbd   :  { %752 = vmatmul.mubr.f32.gmra.mrb[72].mxu1 %v126_v51  ;;  %v135_v51 = vld [vmem:[%s14513_s0 + $0x368] sm:$0xff] }
  0xbe   :  { %6677 = vmatprep.mubr.msk.f32.mxu1 %vm218_vm0, %v129_v52  ;;  %v134_v52 = vld [vmem:[%s14513_s0 + $0x360] sm:$0xff] }
  0xc1   :  { %758 = vmatmul.mubr.f32.gmra.mrb[74].mxu1 %v128_v45  ;;  %v6740_v45 = vld [vmem:[%s14514_s3 + $0x390] sm:$0xff] }
  0xc2   :  { %6678 = vmatprep.mubr.msk.f32.mxu1 %vm218_vm0, %v131_v46  ;;  %v6744_v46 = vld [vmem:[%s14514_s3 + $0x3b0] sm:$0xff] }
  0xc5   :  { %764 = vmatmul.mubr.f32.gmra.mrb[76].mxu1 %v130_v34  ;;  %v137_v34 = vld [vmem:[%s14513_s0 + $0x378] sm:$0xff] }
  0xc6   :  { %6679 = vmatprep.mubr.msk.f32.mxu1 %vm218_vm0, %v133_v36  ;;  %v6749_v36 = vld [vmem:[%s14514_s3 + $0x3d8] sm:$0xff] }
  0xc9   :  { %770 = vmatmul.mubr.f32.gmra.mrb[78].mxu1 %v132_v35  ;;  %v6753_v35 = vld [vmem:[%s14514_s3 + $0x3f8] sm:$0xff] }
  0xca   :  { %6680 = vmatprep.mubr.msk.f32.mxu1 %vm218_vm0, %v135_v51  ;;  %v7787_v51 = vpack.c.bf16 %v6744_v46, %v6740_v45  ;;  %v6738_v46 = vld [vmem:[%s14514_s3 + $0x380] sm:$0xff] }
  0xcd   :  { %776 = vmatmul.mubr.f32.gmra.mrb[80].mxu1 %v134_v52  ;;  %v7789_v52 = vpack.c.bf16 %v6753_v35, %v6749_v36  ;;  %v6742_v36 = vld [vmem:[%s14514_s3 + $0x3a0] sm:$0xff] }
  0xce   :  { %6681 = vmatprep.mubr.msk.f32.mxu1 %vm218_vm0, %v137_v34  ;;  %v6748_v34 = vld [vmem:[%s14514_s3 + $0x3d0] sm:$0xff]  ;;  %v7731_v35 = vpack.c.bf16 %v6742_v36, %v6738_v46 }
  0xd1   :  { %782 = vmatmul.mubr.f32.gmra.mrb[82].mxu1 %v136_v61  ;;  %v7791_v61 = vpack.c.bf16 %v6752_v33, %v6748_v34  ;;  %v6751_v34 = vld [vmem:[%s14514_s3 + $0x3e8] sm:$0xff] }
  0xd2   :  { %6682 = vmatprep.mubr.msk.f32.mxu1 %vm218_vm0, %v9266_v29  ;;  %v6757_v29 = vld [vmem:[%s14514_s3 + $0x418] sm:$0xff] }
  0xd5   :  { %853 = vmatmul.mubr.f32.vlgmr.msra.gmra.mrb[84].mxu1 %v9358_v5  ;;  %v6761_v5 = vld [vmem:[%s14514_s3 + $0x438] sm:$0xff] }
  0xd6   :  { %6683 = vmatprep.mubr.msk.f32.mxu1 %vm218_vm0, %v9368_v8  ;;  %7788 = vmatpush1.bf16.msra.mxu1 %v7787_v51  ;;  %v7793_v45 = vpack.c.bf16 %v6761_v5, %v6757_v29  ;;  %v6756_v8 = vld [vmem:[%s14514_s3 + $0x410] sm:$0xff]  ;;  %v6746_v5 = vld [vmem:[%s14514_s3 + $0x3c0] sm:$0xff] }
  0xd7   :  { %7790 = vmatprep.subr.bf16.mxu1 %v7789_v52 }
  0xd9   :  { %859 = vmatmul.mubr.f32.gmra.mrb[86].mxu1 %v9394_v15  ;;  %v6760_v15 = vld [vmem:[%s14514_s3 + $0x430] sm:$0xff] }
  0xda   :  { %6684 = vmatprep.mubr.msk.f32.mxu1 %vm218_vm0, %v9406_v17  ;;  %7792 = vmatpush1.bf16.msra.mxu1 %v7791_v61  ;;  %v7795_v17 = vpack.c.bf16 %v6760_v15, %v6756_v8 }
  0xdb   :  { %7794 = vmatprep.subr.bf16.mxu1 %v7793_v45  ;;  %v6750_v45 = vld [vmem:[%s14514_s3 + $0x3e0] sm:$0xff] }
  0xdc   :  { %v7735_v8 = vpack.c.bf16 %v6750_v45, %v6746_v5 }
  0xdd   :  { %865 = vmatmul.mubr.f32.gmra.mrb[88].mxu1 %v9434_v25  ;;  %v6765_v25 = vld [vmem:[%s14514_s3 + $0x458] sm:$0xff] }
  0xde   :  { %6685 = vmatprep.mubr.msk.f32.mxu1 %vm218_vm0, %v9444_v27  ;;  %7796 = vmatpush1.bf16.msra.mxu1 %v7795_v17  ;;  %v6769_v27 = vld [vmem:[%s14514_s3 + $0x478] sm:$0xff] }
  0xe1   :  { %871 = vmatmul.mubr.f32.gmra.mrb[90].mxu1 %v9472_v37  ;;  %v7797_v37 = vpack.c.bf16 %v6769_v27, %v6765_v25  ;;  %v6759_v25 = vld [vmem:[%s14514_s3 + $0x428] sm:$0xff] }
  0xe2   :  { %6686 = vmatprep.mubr.msk.f32.mxu1 %vm218_vm0, %v9482_v39  ;;  %v6764_v39 = vld [vmem:[%s14514_s3 + $0x450] sm:$0xff] }
  0xe3   :  { %7798 = vmatprep.subr.bf16.mxu1 %v7797_v37 }
  0xe5   :  { %877 = vmatmul.mubr.f32.gmra.mrb[92].mxu1 %v9510_v47  ;;  %v6768_v47 = vld [vmem:[%s14514_s3 + $0x470] sm:$0xff] }
  0xe6   :  { %6687 = vmatprep.mubr.msk.f32.mxu1 %vm218_vm0, %v9520_v49  ;;  %v7799_v49 = vpack.c.bf16 %v6768_v47, %v6764_v39  ;;  %v6754_v47 = vld [vmem:[%s14514_s3 + $0x400] sm:$0xff] }
  0xe8   :  { %7800 = vmatpush1.bf16.msra.mxu1 %v7799_v49  ;;  %v6758_v49 = vld [vmem:[%s14514_s3 + $0x420] sm:$0xff] }
  0xe9   :  { %883 = vmatmul.mubr.f32.gmra.mrb[94].mxu1 %v9548_v57  ;;  %v6773_v57 = vld [vmem:[%s14514_s3 + $0x498] sm:$0xff] }
  0xea   :  { %6688 = vmatprep.mubr.msk.f32.mxu1 %vm218_vm0, %v9558_v59  ;;  %v6777_v59 = vld [vmem:[%s14514_s3 + $0x4b8] sm:$0xff] }
  0xed   :  { %889 = vmatmul.mubr.f32.gmra.mrb[96].mxu1 %v9586_v3  ;;  %v7801_v3 = vpack.c.bf16 %v6777_v59, %v6773_v57  ;;  %v6781_v57 = vld [vmem:[%s14514_s3 + $0x4d8] sm:$0xff] }
  0xee   :  { %6689 = vmatprep.mubr.msk.f32.mxu1 %vm218_vm0, %v9596_v7  ;;  %v6772_v7 = vld [vmem:[%s14514_s3 + $0x490] sm:$0xff]  ;;  %v6785_v59 = vld [vmem:[%s14514_s3 + $0x4f8] sm:$0xff] }
  0xef   :  { %7802 = vmatprep.subr.bf16.mxu1 %v7801_v3  ;;  %v7739_v3 = vpack.c.bf16 %v6758_v49, %v6754_v47 }
  0xf1   :  { %895 = vmatmul.mubr.f32.gmra.mrb[98].mxu1 %v9624_v21  ;;  %v6776_v21 = vld [vmem:[%s14514_s3 + $0x4b0] sm:$0xff] }
  0xf2   :  { %6690 = vmatprep.mubr.msk.f32.mxu1 %vm218_vm0, %v9634_v23  ;;  %v7803_v23 = vpack.c.bf16 %v6776_v21, %v6772_v7  ;;  %v7805_v7 = vpack.c.bf16 %v6785_v59, %v6781_v57  ;;  %v6770_v57 = vld [vmem:[%s14514_s3 + $0x480] sm:$0xff] }
  0xf4   :  { %7804 = vmatpush1.bf16.msra.mxu1 %v7803_v23 }
  0xf5   :  { %901 = vmatmul.mubr.f32.gmra.mrb[100].mxu1 %v9662_v41  ;;  %7806 = vmatprep.subr.bf16.mxu1 %v7805_v7  ;;  %v6774_v7 = vld [vmem:[%s14514_s3 + $0x4a0] sm:$0xff] }
  0xf6   :  { %6691 = vmatprep.mubr.msk.f32.mxu1 %vm218_vm0, %v9672_v43 }
  0xf9   :  { %907 = vmatmul.mubr.f32.gmra.mrb[102].mxu1 %v9694_v53  ;;  %v6739_v53 = vld [vmem:[%s14514_s3 + $0x388] sm:$0xff] }
  0xfa   :  { %6692 = vmatprep.mubr.msk.f32.mxu1 %vm218_vm0, %v9704_v55  ;;  %v6743_v55 = vld [vmem:[%s14514_s3 + $0x3a8] sm:$0xff] }
  0xfd   :  { %913 = vmatmul.mubr.f32.gmra.mrb[104].mxu1 %v9720_v62 }
  0xfe   :  { %6693 = vmatprep.mubr.msk.f32.mxu1 %vm218_vm0, %v9730_v0  ;;  %v7729_v0 = vpack.c.bf16 %v6743_v55, %v6739_v53  ;;  %v6784_v53 = vld [vmem:[%s14514_s3 + $0x4f0] sm:$0xff]  ;;  %v6763_v55 = vld [vmem:[%s14514_s3 + $0x448] sm:$0xff] }
 0x100   :  { %v10107_v41 = vpop.f32.mrb[0].mxu1  ;;  %v10109_v43 = vpop.f32.mrb[0].mxu0  ;;  %7730 = vmatprep.subr.bf16.mxu0 %v7729_v0 }
 0x101   :  { %v10117_v33 = vpop.f32.mrb[1].mxu1  ;;  %919 = vmatmul.mubr.f32.gmra.mrb[106].mxu1 %v9746_v2  ;;  %v10120_v62 = vpop.f32.mrb[1].mxu0  ;;  %7732 = vmatpush1.bf16.msra.mxu0 %v7731_v35  ;;  %v6747_v2 = vld [vmem:[%s14514_s3 + $0x3c8] sm:$0xff] }
 0x102   :  { %6694 = vmatprep.mubr.msk.f32.mxu1 %vm218_vm0, %v9756_v12  ;;  %v7733_v29 = vpack.c.bf16 %v6751_v34, %v6747_v2  ;;  %v6767_v2 = vld [vmem:[%s14514_s3 + $0x468] sm:$0xff]  ;;  %v6762_v34 = vld [vmem:[%s14514_s3 + $0x440] sm:$0xff] }
 0x103   :  { %v7741_v5 = vpack.c.bf16 %v6767_v2, %v6763_v55  ;;  %v6779_v55 = vld [vmem:[%s14514_s3 + $0x4c8] sm:$0xff] }
 0x104   :  { %v10130_v51 = vpop.f32.mrb[2].mxu1  ;;  %v10132_v52 = vpop.f32.mrb[2].mxu0  ;;  %7734 = vmatprep.subr.bf16.mxu0 %v7733_v29  ;;  %v6766_v29 = vld [vmem:[%s14514_s3 + $0x460] sm:$0xff] }
 0x105   :  { %v10140_v61 = vpop.f32.mrb[3].mxu1  ;;  %925 = vmatmul.mubr.f32.gmra.mrb[108].mxu1 %v9772_v14  ;;  %v10143_v12 = vpop.f32.mrb[3].mxu0  ;;  %7736 = vmatpush1.bf16.msra.mxu0 %v7735_v8  ;;  %v6755_v14 = vld [vmem:[%s14514_s3 + $0x408] sm:$0xff]  ;;  %v7743_v45 = vpack.c.bf16 %v6766_v29, %v6762_v34 }
 0x106   :  { %6695 = vmatprep.mubr.msk.f32.mxu1 %vm218_vm0, %v9782_v20  ;;  %v7737_v39 = vpack.c.bf16 %v6759_v25, %v6755_v14  ;;  %v6771_v25 = vld [vmem:[%s14514_s3 + $0x488] sm:$0xff] }
 0x108   :  { %v10153_v15 = vpop.f32.mrb[4].mxu1  ;;  %v10155_v17 = vpop.f32.mrb[4].mxu0  ;;  %7738 = vmatprep.subr.bf16.mxu0 %v7737_v39  ;;  %v6775_v39 = vld [vmem:[%s14514_s3 + $0x4a8] sm:$0xff] }
 0x109   :  { %v10163_v27 = vpop.f32.mrb[5].mxu1  ;;  %931 = vmatmul.mubr.f32.gmra.mrb[110].mxu1 %v9798_v32  ;;  %v10168_v37 = vpop.f32.mrb[5].mxu0  ;;  %7740 = vmatpush1.bf16.msra.mxu0 %v7739_v3  ;;  %v7745_v3 = vpack.c.bf16 %v6775_v39, %v6771_v25  ;;  %v6790_v25 = vld [vmem:[%s14514_s3 + $0x520] sm:$0xff] }
 0x10a   :  { %6696 = vmatprep.mubr.msk.f32.mxu1 %vm218_vm0, %v9271_v30  ;;  %v6780_v30 = vld [vmem:[%s14514_s3 + $0x4d0] sm:$0xff]  ;;  %7742 = vmatprep.subr.bf16.mxu0 %v7741_v5  ;;  %v6778_v5 = vld [vmem:[%s14514_s3 + $0x4c0] sm:$0xff] }
 0x10b   :  { %v7807_v35 = vpack.c.bf16 %v6784_v53, %v6780_v30  ;;  %v7747_v30 = vpack.c.bf16 %v6774_v7, %v6770_v57  ;;  %v6791_v7 = vld [vmem:[%s14514_s3 + $0x528] sm:$0xff] }
 0x10c   :  { %v10186_v21 = vpop.f32.mrb[6].mxu1  ;;  %v10188_v23 = vpop.f32.mrb[6].mxu0 }
 0x10d   :  { %v10199_v0 = vpop.f32.mrb[7].mxu1  ;;  %937 = vmatmul.mubr.f32.gmra.mrb[112].mxu1 %v9363_v6  ;;  %v10204_v36 = vpop.f32.mrb[7].mxu0  ;;  %7744 = vmatpush1.bf16.msra.mxu0 %v7743_v45  ;;  %v6782_v45 = vld [vmem:[%s14514_s3 + $0x4e0] sm:$0xff] }
 0x10e   :  { %6697 = vmatprep.mubr.msk.f32.mxu1 %vm218_vm0, %v9373_v10  ;;  %7808 = vmatpush1.bf16.msra.mxu1 %v7807_v35  ;;  %v6783_v35 = vld [vmem:[%s14514_s3 + $0x4e8] sm:$0xff]  ;;  %v7751_v39 = vpack.c.bf16 %v6782_v45, %v6778_v5  ;;  %v6793_v5 = vld [vmem:[%s14514_s3 + $0x538] sm:$0xff]  ;;  %v6786_v45 = vld [vmem:[%s14514_s3 + $0x500] sm:$0xff] }
 0x10f   :  { %7746 = vmatprep.subr.bf16.mxu0 %v7745_v3  ;;  %v7749_v29 = vpack.c.bf16 %v6783_v35, %v6779_v55  ;;  %v6787_v3 = vld [vmem:[%s14514_s3 + $0x508] sm:$0xff] }
 0x110   :  { %v10219_v8 = vpop.f32.mrb[8].mxu1  ;;  %v10221_v14 = vpop.f32.mrb[8].mxu0 }
 0x111   :  { %v10231_v47 = vpop.f32.mrb[9].mxu1  ;;  %943 = vmatmul.mubr.f32.gmra.mrb[114].mxu1 %v9399_v16  ;;  %v10234_v49 = vpop.f32.mrb[9].mxu0  ;;  %7748 = vmatpush1.bf16.msra.mxu0 %v7747_v30  ;;  %v6789_v30 = vld [vmem:[%s14514_s3 + $0x518] sm:$0xff] }
 0x112   :  { %6698 = vmatprep.mubr.msk.f32.mxu1 %vm218_vm0, %v9411_v18  ;;  %7750 = vmatprep.subr.bf16.mxu0 %v7749_v29  ;;  %v7753_v29 = vpack.c.bf16 %v6791_v7, %v6787_v3  ;;  %v7755_v3 = vpack.c.bf16 %v6790_v25, %v6786_v45  ;;  %v6788_v7 = vld [vmem:[%s14514_s3 + $0x510] sm:$0xff]  ;;  %v6799_v25 = vld [vmem:[%s14514_s3 + $0x568] sm:$0xff] }
 0x113   :  { %v6792_v18 = vld [vmem:[%s14514_s3 + $0x530] sm:$0xff] }
 0x114   :  { %v10246_v16 = vpop.f32.mrb[10].mxu1  ;;  %v10248_v53 = vpop.f32.mrb[10].mxu0  ;;  %v7811_v59 = vpack.c.bf16 %v6792_v18, %v6788_v7  ;;  %v6794_v7 = vld [vmem:[%s14514_s3 + $0x540] sm:$0xff]  ;;  %v6800_v18 = vld [vmem:[%s14514_s3 + $0x570] sm:$0xff] }
 0x115   :  { %v10258_v2 = vpop.f32.mrb[11].mxu1  ;;  %949 = vmatmul.mubr.f32.gmra.mrb[116].mxu1 %v9439_v26  ;;  %v10261_v34 = vpop.f32.mrb[11].mxu0  ;;  %7752 = vmatpush1.bf16.msra.mxu0 %v7751_v39  ;;  %v7809_v39 = vpack.c.bf16 %v6793_v5, %v6789_v30  ;;  %v6797_v30 = vld [vmem:[%s14514_s3 + $0x558] sm:$0xff] }
 0x116   :  { %14605 = vst [vmem:[#allocation7_spill] sm:$0xff] %v10258_v2  ;;  %6699 = vmatprep.mubr.msk.f32.mxu1 %vm218_vm0, %v9449_v28  ;;  %7754 = vmatprep.subr.bf16.mxu0 %v7753_v29 }
 0x117   :  { %7810 = vmatprep.subr.bf16.mxu1 %v7809_v39  ;;  %v6801_v39 = vld [vmem:[%s14514_s3 + $0x578] sm:$0xff] }
 0x118   :  { %v10273_v26 = vpop.f32.mrb[12].mxu1  ;;  %v10275_v57 = vpop.f32.mrb[12].mxu0  ;;  %7812 = vmatpush1.bf16.msra.mxu1 %v7811_v59  ;;  %v6807_v59 = vld [vmem:[%s14514_s3 + $0x5a8] sm:$0xff] }
 0x119   :  { %14606 = vst [vmem:[#allocation8_spill] sm:$0xff] %v10273_v26  ;;  %v10286_v55 = vpop.f32.mrb[13].mxu1  ;;  %955 = vmatmul.mubr.f32.gmra.mrb[118].mxu1 %v9477_v38  ;;  %v10291_v35 = vpop.f32.mrb[13].mxu0  ;;  %7756 = vmatpush1.bf16.msra.mxu0 %v7755_v3  ;;  %v6798_v38 = vld [vmem:[%s14514_s3 + $0x560] sm:$0xff]  ;;  %v7813_v3 = vpack.c.bf16 %v6801_v39, %v6797_v30 }
 0x11a   :  { %14607 = vst [vmem:[#allocation9_spill] sm:$0xff] %v10286_v55  ;;  %6700 = vmatprep.mubr.msk.f32.mxu1 %vm218_vm0, %v9487_v40  ;;  %v6795_v40 = vld [vmem:[%s14514_s3 + $0x548] sm:$0xff] }
 0x11b   :  { %v7757_v45 = vpack.c.bf16 %v6799_v25, %v6795_v40  ;;  %v7759_v40 = vpack.c.bf16 %v6798_v38, %v6794_v7  ;;  %v6796_v25 = vld [vmem:[%s14514_s3 + $0x550] sm:$0xff]  ;;  %7814 = vmatprep.subr.bf16.mxu1 %v7813_v3  ;;  %v6805_v38 = vld [vmem:[%s14514_s3 + $0x598] sm:$0xff]  ;;  %v6802_v3 = vld [vmem:[%s14514_s3 + $0x580] sm:$0xff] }
 0x11c   :  { %v10312_v10 = vpop.f32.mrb[14].mxu1  ;;  %v10314_v28 = vpop.f32.mrb[14].mxu0  ;;  %v7815_v6 = vpack.c.bf16 %v6800_v18, %v6796_v25  ;;  %v6809_v7 = vld [vmem:[%s14514_s3 + $0x5b8] sm:$0xff]  ;;  %v6806_v25 = vld [vmem:[%s14514_s3 + $0x5a0] sm:$0xff] }
 0x11d   :  { %14608 = vst [vmem:[#allocation10_spill] sm:$0xff] %v10312_v10  ;;  %v10325_v5 = vpop.f32.mrb[15].mxu1  ;;  %961 = vmatmul.mubr.f32.gmra.mrb[120].mxu1 %v9515_v48  ;;  %v10330_v29 = vpop.f32.mrb[15].mxu0  ;;  %7758 = vmatprep.subr.bf16.mxu0 %v7757_v45 }
 0x11e   :  { %14609 = vst [vmem:[#allocation11_spill] sm:$0xff] %v10325_v5  ;;  %6701 = vmatprep.mubr.msk.f32.mxu1 %vm218_vm0, %v9525_v50  ;;  %v6803_v50 = vld [vmem:[%s14514_s3 + $0x588] sm:$0xff]  ;;  %7760 = vmatpush1.bf16.msra.mxu0 %v7759_v40  ;;  %v7763_v40 = vpack.c.bf16 %v6806_v25, %v6802_v3 }
 0x11f   :  { %v7761_v39 = vpack.c.bf16 %v6807_v59, %v6803_v50  ;;  %7816 = vmatpush1.bf16.msra.mxu1 %v7815_v6  ;;  %v6804_v50 = vld [vmem:[%s14514_s3 + $0x590] sm:$0xff]  ;;  %v6815_v6 = vld [vmem:[%s14514_s3 + $0x5e8] sm:$0xff] }
 0x120   :  { %v10351_v46 = vpop.f32.mrb[16].mxu1  ;;  %v10353_v32 = vpop.f32.mrb[16].mxu0  ;;  %v6808_v59 = vld [vmem:[%s14514_s3 + $0x5b0] sm:$0xff] }
 0x121   :  { %14610 = vst [vmem:[#allocation12_spill] sm:$0xff] %v10351_v46  ;;  %v10366_v18 = vpop.f32.mrb[17].mxu1  ;;  %967 = vmatmul.mubr.f32.gmra.mrb[122].mxu1 %v9553_v58  ;;  %v10369_v45 = vpop.f32.mrb[17].mxu0  ;;  %v7817_v58 = vpack.c.bf16 %v6809_v7, %v6805_v38  ;;  %7762 = vmatprep.subr.bf16.mxu0 %v7761_v39  ;;  %v7819_v48 = vpack.c.bf16 %v6808_v59, %v6804_v50  ;;  %v6813_v38 = vld [vmem:[%s14514_s3 + $0x5d8] sm:$0xff]  ;;  %v6810_v50 = vld [vmem:[%s14514_s3 + $0x5c0] sm:$0xff]  ;;  %v6824_v39 = vld [vmem:[%s14514_s3 + $0x630] sm:$0xff] }
 0x122   :  { %14611 = vst [vmem:[#allocation13_spill] sm:$0xff] %v10366_v18  ;;  %6702 = vmatprep.mubr.msk.f32.mxu1 %vm218_vm0, %v9563_v60  ;;  %v6811_v60 = vld [vmem:[%s14514_s3 + $0x5c8] sm:$0xff]  ;;  %7764 = vmatpush1.bf16.msra.mxu0 %v7763_v40  ;;  %v6814_v59 = vld [vmem:[%s14514_s3 + $0x5e0] sm:$0xff] }
 0x123   :  { %7818 = vmatprep.subr.bf16.mxu1 %v7817_v58  ;;  %v7765_v25 = vpack.c.bf16 %v6815_v6, %v6811_v60  ;;  %v6817_v58 = vld [vmem:[%s14514_s3 + $0x5f8] sm:$0xff]  ;;  %v7767_v40 = vpack.c.bf16 %v6814_v59, %v6810_v50  ;;  %v6812_v60 = vld [vmem:[%s14514_s3 + $0x5d0] sm:$0xff] }
 0x124   :  { %v10390_v20 = vpop.f32.mrb[18].mxu1  ;;  %v10392_v46 = vpop.f32.mrb[18].mxu0  ;;  %7820 = vmatpush1.bf16.msra.mxu1 %v7819_v48  ;;  %v6816_v6 = vld [vmem:[%s14514_s3 + $0x5f0] sm:$0xff]  ;;  %v6823_v48 = vld [vmem:[%s14514_s3 + $0x628] sm:$0xff] }
 0x125   :  { %14612 = vst [vmem:[#allocation14_spill] sm:$0xff] %v10390_v20  ;;  %v10405_v7 = vpop.f32.mrb[19].mxu1  ;;  %973 = vmatmul.mubr.f32.gmra.mrb[124].mxu1 %v9591_v4  ;;  %v10408_v3 = vpop.f32.mrb[19].mxu0  ;;  %v7821_v4 = vpack.c.bf16 %v6817_v58, %v6813_v38  ;;  %7766 = vmatprep.subr.bf16.mxu0 %v7765_v25  ;;  %v7823_v30 = vpack.c.bf16 %v6816_v6, %v6812_v60  ;;  %v6821_v38 = vld [vmem:[%s14514_s3 + $0x618] sm:$0xff]  ;;  %v6818_v60 = vld [vmem:[%s14514_s3 + $0x600] sm:$0xff] }
 0x126   :  { %14613 = vst [vmem:[#allocation15_spill] sm:$0xff] %v10405_v7  ;;  %6703 = vmatprep.mubr.msk.f32.mxu1 %vm218_vm0, %v9601_v9  ;;  %v6819_v9 = vld [vmem:[%s14514_s3 + $0x608] sm:$0xff]  ;;  %7768 = vmatpush1.bf16.msra.mxu0 %v7767_v40  ;;  %v6822_v6 = vld [vmem:[%s14514_s3 + $0x620] sm:$0xff] }
 0x127   :  { %7822 = vmatprep.subr.bf16.mxu1 %v7821_v4  ;;  %v7769_v59 = vpack.c.bf16 %v6823_v48, %v6819_v9  ;;  %v6825_v4 = vld [vmem:[%s14514_s3 + $0x638] sm:$0xff]  ;;  %v7771_v9 = vpack.c.bf16 %v6822_v6, %v6818_v60  ;;  %v6820_v48 = vld [vmem:[%s14514_s3 + $0x610] sm:$0xff] }
 0x128   :  { %v10429_v20 = vpop.f32.mrb[20].mxu1  ;;  %v10431_v10 = vpop.f32.mrb[20].mxu0  ;;  %7824 = vmatpush1.bf16.msra.mxu1 %v7823_v30  ;;  %v7825_v40 = vpack.c.bf16 %v6825_v4, %v6821_v38  ;;  %v7827_v25 = vpack.c.bf16 %v6824_v39, %v6820_v48  ;;  %v6831_v30 = vld [vmem:[%s14514_s3 + $0x668] sm:$0xff]  ;;  %v6829_v38 = vld [vmem:[%s14514_s3 + $0x658] sm:$0xff]  ;;  %v6830_v48 = vld [vmem:[%s14514_s3 + $0x660] sm:$0xff] }
 0x129   :  { %14614 = vst [vmem:[#allocation16_spill] sm:$0xff] %v10429_v20  ;;  %v10442_v58 = vpop.f32.mrb[21].mxu1  ;;  %979 = vmatmul.mubr.f32.gmra.mrb[126].mxu1 %v9629_v22  ;;  %v10447_v50 = vpop.f32.mrb[21].mxu0  ;;  %7770 = vmatprep.subr.bf16.mxu0 %v7769_v59  ;;  %v6833_v6 = vld [vmem:[%s14514_s3 + $0x678] sm:$0xff]  ;;  %v6832_v39 = vld [vmem:[%s14514_s3 + $0x670] sm:$0xff] }
 0x12a   :  { %14615 = vst [vmem:[#allocation17_spill] sm:$0xff] %v10442_v58  ;;  %6704 = vmatprep.mubr.msk.f32.mxu1 %vm218_vm0, %v9639_v24  ;;  %7826 = vmatprep.subr.bf16.mxu1 %v7825_v40  ;;  %v6827_v24 = vld [vmem:[%s14514_s3 + $0x648] sm:$0xff]  ;;  %v6826_v40 = vld [vmem:[%s14514_s3 + $0x640] sm:$0xff] }
 0x12b   :  { %7772 = vmatpush1.bf16.msra.mxu0 %v7771_v9  ;;  %v7773_v60 = vpack.c.bf16 %v6831_v30, %v6827_v24  ;;  %v7829_v9 = vpack.c.bf16 %v6833_v6, %v6829_v38  ;;  %v7775_v24 = vpack.c.bf16 %v6830_v48, %v6826_v40  ;;  %v6828_v30 = vld [vmem:[%s14514_s3 + $0x650] sm:$0xff]  ;;  %v6837_v38 = vld [vmem:[%s14514_s3 + $0x698] sm:$0xff] }
 0x12c   :  { %v10468_v7 = vpop.f32.mrb[22].mxu1  ;;  %v10470_v5 = vpop.f32.mrb[22].mxu0  ;;  %7828 = vmatpush1.bf16.msra.mxu1 %v7827_v25  ;;  %v7831_v22 = vpack.c.bf16 %v6832_v39, %v6828_v30  ;;  %v6839_v25 = vld [vmem:[%s14514_s3 + $0x6a8] sm:$0xff]  ;;  %v6841_v48 = vld [vmem:[%s14514_s3 + $0x6b8] sm:$0xff]  ;;  %v6838_v30 = vld [vmem:[%s14514_s3 + $0x6a0] sm:$0xff] }
 0x12d   :  { %14616 = vst [vmem:[#allocation18_spill] sm:$0xff] %v10468_v7  ;;  %v10481_v4 = vpop.f32.mrb[23].mxu1  ;;  %985 = vmatmul.mubr.f32.gmra.mrb[128].mxu1 %v9667_v42  ;;  %v10486_v59 = vpop.f32.mrb[23].mxu0  ;;  %7774 = vmatprep.subr.bf16.mxu0 %v7773_v60  ;;  %v7833_v20 = vpack.c.bf16 %v6841_v48, %v6837_v38  ;;  %v6840_v60 = vld [vmem:[%s14514_s3 + $0x6b0] sm:$0xff]  ;;  %v6842_v39 = vld [vmem:[%s14514_s3 + $0x6c0] sm:$0xff] }
 0x12e   :  { %14617 = vst [vmem:[#allocation19_spill] sm:$0xff] %v10481_v4  ;;  %6705 = vmatprep.mubr.msk.f32.mxu1 %vm218_vm0, %v9677_v44  ;;  %7830 = vmatprep.subr.bf16.mxu1 %v7829_v9  ;;  %v6835_v44 = vld [vmem:[%s14514_s3 + $0x688] sm:$0xff]  ;;  %v6834_v9 = vld [vmem:[%s14514_s3 + $0x680] sm:$0xff]  ;;  %v6844_v7 = vld [vmem:[%s14514_s3 + $0x6d0] sm:$0xff] }
 0x12f   :  { %7776 = vmatpush1.bf16.msra.mxu0 %v7775_v24  ;;  %v6836_v24 = vld [vmem:[%s14514_s3 + $0x690] sm:$0xff]  ;;  %v7779_v26 = vpack.c.bf16 %v6838_v30, %v6834_v9  ;;  %v6845_v9 = vld [vmem:[%s14514_s3 + $0x6d8] sm:$0xff] }
 0x130   :  { %v10507_v18 = vpop.f32.mrb[24].mxu0  ;;  %v10509_v55 = vpop.f32.mrb[24].mxu1  ;;  %7832 = vmatpush1.bf16.msra.mxu1 %v7831_v22  ;;  %v6847_v22 = vld [vmem:[%s14514_s3 + $0x6e8] sm:$0xff]  ;;  %v6849_v30 = vld [vmem:[%s14514_s3 + $0x6f8] sm:$0xff] }
 0x131   :  { %14618 = vst [vmem:[#allocation20_spill] sm:$0xff] %v10509_v55  ;;  %v10524_v6 = vpop.f32.mrb[25].mxu0  ;;  %v10526_v40 = vpop.f32.mrb[25].mxu1  ;;  %991 = vmatmul.mubr.f32.gmra.mrb[130].mxu1 %v9699_v54  ;;  %v7777_v54 = vpack.c.bf16 %v6839_v25, %v6835_v44  ;;  %7834 = vmatprep.subr.bf16.mxu1 %v7833_v20  ;;  %v6848_v44 = vld [vmem:[%s14514_s3 + $0x6f0] sm:$0xff] }
 0x132   :  { %14619 = vst [vmem:[#allocation21_spill] sm:$0xff] %v10526_v40  ;;  %6706 = vmatprep.mubr.msk.f32.mxu1 %vm218_vm0, %v9709_v56  ;;  %v6843_v56 = vld [vmem:[%s14514_s3 + $0x6c8] sm:$0xff]  ;;  %v1745_v40 = vld [vmem:[%s14514_s3 + $0x58] sm:$0xff] }
 0x133   :  { %7778 = vmatprep.subr.bf16.mxu0 %v7777_v54  ;;  %v7835_v54 = vpack.c.bf16 %v6840_v60, %v6836_v24  ;;  %v14537_v60 = vmov 0.0   ;;  %v14628_v24 = vld [vmem:[#allocation3_spill] sm:$0xff] }
 0x134   :  { %v10547_v42 = vpop.f32.mrb[26].mxu0  ;;  %v10549_v55 = vpop.f32.mrb[26].mxu1  ;;  %7780 = vmatpush1.bf16.msra.mxu0 %v7779_v26  ;;  %v7839_v26 = vpack.c.bf16 %v6848_v44, %v6844_v7  ;;  %1609 = vst.msk [vmem:[#allocation2 + $0x28] sm:$0xff] %vm1604_vm1, %v14537_v60  ;;  %1603 = vst [vmem:[#allocation2] sm:$0xff] %v14537_v60  ;;  %v14629_v44 = vld [vmem:[#allocation4_spill] sm:$0xff]  ;;  %v9110_v7 = vld [vmem:[%s14513_s0 + $0x1f0] sm:$0xff] }
 0x135   :  { %14620 = vst [vmem:[#allocation22_spill] sm:$0xff] %v10549_v55  ;;  %v10564_v38 = vpop.f32.mrb[27].mxu0  ;;  %v10566_v48 = vpop.f32.mrb[27].mxu1  ;;  %997 = vmatmul.mubr.f32.gmra.mrb[132].mxu1 %v9725_v63  ;;  %v6846_v63 = vld [vmem:[%s14514_s3 + $0x6e0] sm:$0xff]  ;;  %v7781_v55 = vpack.c.bf16 %v6847_v22, %v6843_v56  ;;  %1605 = vst.msk [vmem:[#allocation2 + $0x8] sm:$0xff] %vm1604_vm1, %v14537_v60 }
 0x136   :  { %14621 = vst [vmem:[#allocation23_spill] sm:$0xff] %v10566_v48  ;;  %6707 = vmatprep.mubr.msk.f32.mxu1 %vm218_vm0, %v9735_v1  ;;  %v7837_v1 = vpack.c.bf16 %v6849_v30, %v6845_v9  ;;  %v7783_v20 = vpack.c.bf16 %v6846_v63, %v6842_v39  ;;  %7836 = vmatpush1.bf16.msra.mxu1 %v7835_v54  ;;  %1607 = vst.msk [vmem:[#allocation2 + $0x18] sm:$0xff] %vm1604_vm1, %v14537_v60  ;;  %v14632_v63 = vld [vmem:[#allocation5_spill] sm:$0xff]  ;;  %v9108_v54 = vld [vmem:[%s14513_s0 + $0x1e0] sm:$0xff] }
 0x137   :  { %7782 = vmatprep.subr.bf16.mxu0 %v7781_v55  ;;  %1611 = vst.msk [vmem:[#allocation2 + $0x38] sm:$0xff] %vm1604_vm1, %v14537_v60  ;;  %1614 = vst.msk [vmem:[#allocation2 + $0x208] sm:$0xff] %vm1604_vm1, %v14537_v60  ;;  %v9109_v9 = vld [vmem:[%s14513_s0 + $0x1f8] sm:$0xff] }
 0x138   :  { %v10593_v25 = vpop.f32.mrb[28].mxu1  ;;  %1616 = vst.msk [vmem:[#allocation2 + $0x218] sm:$0xff] %vm1604_vm1, %v14537_v60  ;;  %1618 = vst.msk [vmem:[#allocation2 + $0x228] sm:$0xff] %vm1604_vm1, %v14537_v60  ;;  %7838 = vmatprep.subr.bf16.mxu1 %v7837_v1  ;;  %7784 = vmatpush1.bf16.msra.mxu0 %v7783_v20  ;;  %v14633_v1 = vld [vmem:[#allocation6_spill] sm:$0xff] }
 0x139   :  { %14622 = vst [vmem:[#allocation24_spill] sm:$0xff] %v10593_v25  ;;  %v10595_v48 = vpop.f32.mrb[29].mxu1  ;;  %1003 = vmatmul.mubr.f32.gmra.mrb[134].mxu1 %v9751_v11  ;;  %1620 = vst.msk [vmem:[#allocation2 + $0x238] sm:$0xff] %vm1604_vm1, %v14537_v60  ;;  %v1750_v25 = vld [vmem:[%s14514_s3 + $0x80] sm:$0xff] }
 0x13a   :  { %14623 = vst [vmem:[#allocation25_spill] sm:$0xff] %v10595_v48  ;;  %6708 = vmatprep.mubr.msk.f32.mxu1 %vm218_vm0, %v9761_v13  ;;  %7840 = vmatpush1.bf16.msra.mxu1 %v7839_v26 }
 0x13b   :  { %v10631_v56 = vld [vmem:[#allocation2 + $0x28] sm:$0xff] }
 0x13c   :  { %v10617_v11 = vpop.f32.mrb[30].mxu1  ;;  %6850 = vmatprep.mubr.msk.f32.mxu0 %vm1604_vm1, %v10631_v56 }
 0x13d   :  { %14624 = vst [vmem:[#allocation26_spill] sm:$0xff] %v10617_v11  ;;  %v10619_v13 = vpop.f32.mrb[31].mxu1  ;;  %1009 = vmatmul.mubr.f32.gmra.mrb[136].mxu1 %v9777_v19  ;;  %2165 = vmatmul.mubr.f32.vlgmr.msra.gmra.mrb[28].mxu0 %v14537_v60  ;;  %v1303_v11 = vlaneseq }
 0x13e   :  { %14625 = vst [vmem:[#allocation27_spill] sm:$0xff] %v10619_v13  ;;  %6709 = vmatprep.mubr.msk.f32.mxu1 %vm218_vm0, %v9787_v31  ;;  %v10633_v22 = vld [vmem:[#allocation2 + $0x38] sm:$0xff] }
 0x13f   :  { %6851 = vmatprep.mubr.msk.f32.mxu0 %vm1604_vm1, %v10633_v22 }
 0x140   :  { %v10624_v55 = vpop.f32.mrb[32].mxu1 }
 0x141   :  { %14626 = vst [vmem:[#allocation28_spill] sm:$0xff] %v10624_v55  ;;  %v10628_v39 = vpop.f32.mrb[33].mxu1  ;;  %1015 = vmatmul.mubr.f32.gmra.mrb[138].mxu1 %v14628_v24  ;;  %2171 = vmatmul.mubr.f32.gmra.mrb[30].mxu0 %v14537_v60  ;;  %v9106_v24 = vld [vmem:[%s14513_s0 + $0x1d0] sm:$0xff]  ;;  %v9111_v60 = vld [vmem:[%s14513_s0 + $0x208] sm:$0xff] }
 0x142   :  { %14627 = vst [vmem:[#allocation29_spill] sm:$0xff] %v10628_v39  ;;  %6710 = vmatprep.mubr.msk.f32.mxu1 %vm218_vm0, %v14629_v44  ;;  %v9107_v44 = vld [vmem:[%s14513_s0 + $0x1e8] sm:$0xff]  ;;  %v9150_v39 = vld [vmem:[%s14513_s0 + $0x330] sm:$0xff] }
 0x144   :  { %v10642_v31 = vpop.f32.mrb[34].mxu1 }
 0x145   :  { %14630 = vst [vmem:[#allocation3_spill] sm:$0xff] %v10642_v31  ;;  %v10648_v30 = vpop.f32.mrb[35].mxu1  ;;  %1021 = vmatmul.mubr.f32.gmra.mrb[140].mxu1 %v14632_v63 }
 0x146   :  { %14631 = vst [vmem:[#allocation4_spill] sm:$0xff] %v10648_v30  ;;  %6711 = vmatprep.mubr.msk.f32.mxu1 %vm218_vm0, %v14633_v1 }
 0x148   :  { %v10656_v20 = vpop.f32.mrb[36].mxu1 }
 0x149   :  { %14634 = vst [vmem:[#allocation5_spill] sm:$0xff] %v10656_v20  ;;  %v10658_v26 = vpop.f32.mrb[37].mxu1  ;;  %1027 = vmatmul.mubr.f32.gmra.mrb[142].mxu1 %v9106_v24  ;;  %v9119_v20 = vld [vmem:[%s14513_s0 + $0x248] sm:$0xff] }
 0x14a   :  { %14635 = vst [vmem:[#allocation6_spill] sm:$0xff] %v10658_v26  ;;  %6712 = vmatprep.mubr.msk.f32.mxu1 %vm218_vm0, %v9107_v44  ;;  %v9114_v44 = vld [vmem:[%s14513_s0 + $0x210] sm:$0xff] }
 0x14c   :  { %v10667_v63 = vpop.f32.mrb[38].mxu1 }
 0x14d   :  { %14636 = vst [vmem:[#allocation30_spill] sm:$0xff] %v10667_v63  ;;  %v10669_v1 = vpop.f32.mrb[39].mxu1  ;;  %1033 = vmatmul.mubr.f32.gmra.mrb[144].mxu1 %v9108_v54  ;;  %v9118_v63 = vld [vmem:[%s14513_s0 + $0x230] sm:$0xff] }
 0x14e   :  { %14637 = vst [vmem:[#allocation31_spill] sm:$0xff] %v10669_v1  ;;  %6713 = vmatprep.mubr.msk.f32.mxu1 %vm218_vm0, %v9109_v9  ;;  %v9117_v1 = vld [vmem:[%s14513_s0 + $0x238] sm:$0xff] }
 0x150   :  { %v10678_v24 = vpop.f32.mrb[40].mxu1 }
 0x151   :  { %14638 = vst [vmem:[#allocation32_spill] sm:$0xff] %v10678_v24  ;;  %v10682_v19 = vpop.f32.mrb[41].mxu1  ;;  %1039 = vmatmul.mubr.f32.gmra.mrb[146].mxu1 %v9110_v7  ;;  %v9112_v7 = vld [vmem:[%s14513_s0 + $0x200] sm:$0xff] }
 0x152   :  { %14639 = vst [vmem:[#allocation33_spill] sm:$0xff] %v10682_v19  ;;  %6714 = vmatprep.mubr.msk.f32.mxu1 %vm218_vm0, %v9111_v60  ;;  %v9113_v19 = vld [vmem:[%s14513_s0 + $0x218] sm:$0xff] }
 0x154   :  { %v10693_v9 = vpop.f32.mrb[42].mxu1 }
 0x155   :  { %14640 = vst [vmem:[#allocation34_spill] sm:$0xff] %v10693_v9  ;;  %v10697_v24 = vpop.f32.mrb[43].mxu1  ;;  %1045 = vmatmul.mubr.f32.gmra.mrb[148].mxu1 %v9112_v7  ;;  %v9115_v7 = vld [vmem:[%s14513_s0 + $0x228] sm:$0xff] }
 0x156   :  { %14641 = vst [vmem:[#allocation35_spill] sm:$0xff] %v10697_v24  ;;  %6715 = vmatprep.mubr.msk.f32.mxu1 %vm218_vm0, %v9113_v19  ;;  %v9116_v19 = vld [vmem:[%s14513_s0 + $0x220] sm:$0xff] }
 0x158   :  { %v10708_v60 = vpop.f32.mrb[44].mxu1 }
 0x159   :  { %14642 = vst [vmem:[#allocation36_spill] sm:$0xff] %v10708_v60  ;;  %v10710_v26 = vpop.f32.mrb[45].mxu1  ;;  %1051 = vmatmul.mubr.f32.gmra.mrb[150].mxu1 %v9114_v44  ;;  %v9127_v60 = vld [vmem:[%s14513_s0 + $0x288] sm:$0xff] }
 0x15a   :  { %14643 = vst [vmem:[#allocation37_spill] sm:$0xff] %v10710_v26  ;;  %6716 = vmatprep.mubr.msk.f32.mxu1 %vm218_vm0, %v9115_v7  ;;  %v9122_v7 = vld [vmem:[%s14513_s0 + $0x250] sm:$0xff] }
 0x15c   :  { %v10719_v54 = vpop.f32.mrb[46].mxu1 }
 0x15d   :  { %14644 = vst [vmem:[#allocation38_spill] sm:$0xff] %v10719_v54  ;;  %v10721_v24 = vpop.f32.mrb[47].mxu1  ;;  %1057 = vmatmul.mubr.f32.gmra.mrb[152].mxu1 %v9116_v19  ;;  %v9126_v54 = vld [vmem:[%s14513_s0 + $0x270] sm:$0xff] }
 0x15e   :  { %14645 = vst [vmem:[#allocation39_spill] sm:$0xff] %v10721_v24  ;;  %6717 = vmatprep.mubr.msk.f32.mxu1 %vm218_vm0, %v9117_v1  ;;  %v9125_v24 = vld [vmem:[%s14513_s0 + $0x278] sm:$0xff] }
 0x160   :  { %v10730_v44 = vpop.f32.mrb[48].mxu1 }
 0x161   :  { %14646 = vst [vmem:[#allocation40_spill] sm:$0xff] %v10730_v44  ;;  %v10734_v9 = vpop.f32.mrb[49].mxu1  ;;  %1063 = vmatmul.mubr.f32.gmra.mrb[154].mxu1 %v9118_v63  ;;  %v9120_v63 = vld [vmem:[%s14513_s0 + $0x240] sm:$0xff] }
 0x162   :  { %14647 = vst [vmem:[#allocation41_spill] sm:$0xff] %v10734_v9  ;;  %6718 = vmatprep.mubr.msk.f32.mxu1 %vm218_vm0, %v9119_v20  ;;  %v9121_v9 = vld [vmem:[%s14513_s0 + $0x258] sm:$0xff] }
 0x164   :  { %v10745_v1 = vpop.f32.mrb[50].mxu1 }
 0x165   :  { %14648 = vst [vmem:[#allocation42_spill] sm:$0xff] %v10745_v1  ;;  %v10749_v44 = vpop.f32.mrb[51].mxu1  ;;  %1069 = vmatmul.mubr.f32.gmra.mrb[156].mxu1 %v9120_v63  ;;  %v9123_v63 = vld [vmem:[%s14513_s0 + $0x268] sm:$0xff] }
 0x166   :  { %14649 = vst [vmem:[#allocation43_spill] sm:$0xff] %v10749_v44  ;;  %6719 = vmatprep.mubr.msk.f32.mxu1 %vm218_vm0, %v9121_v9  ;;  %v9124_v9 = vld [vmem:[%s14513_s0 + $0x260] sm:$0xff] }
 0x168   :  { %v10760_v20 = vpop.f32.mrb[52].mxu1 }
 0x169   :  { %14650 = vst [vmem:[#allocation44_spill] sm:$0xff] %v10760_v20  ;;  %v10762_v26 = vpop.f32.mrb[53].mxu1  ;;  %1075 = vmatmul.mubr.f32.gmra.mrb[158].mxu1 %v9122_v7  ;;  %v9135_v20 = vld [vmem:[%s14513_s0 + $0x2c8] sm:$0xff] }
 0x16a   :  { %14651 = vst [vmem:[#allocation45_spill] sm:$0xff] %v10762_v26  ;;  %6720 = vmatprep.mubr.msk.f32.mxu1 %vm218_vm0, %v9123_v63  ;;  %v9130_v63 = vld [vmem:[%s14513_s0 + $0x290] sm:$0xff] }
 0x16c   :  { %v10771_v19 = vpop.f32.mrb[54].mxu1 }
 0x16d   :  { %14652 = vst [vmem:[#allocation46_spill] sm:$0xff] %v10771_v19  ;;  %v10773_v44 = vpop.f32.mrb[55].mxu1  ;;  %1081 = vmatmul.mubr.f32.gmra.mrb[160].mxu1 %v9124_v9  ;;  %v9134_v19 = vld [vmem:[%s14513_s0 + $0x2b0] sm:$0xff] }
 0x16e   :  { %14653 = vst [vmem:[#allocation47_spill] sm:$0xff] %v10773_v44  ;;  %6721 = vmatprep.mubr.msk.f32.mxu1 %vm218_vm0, %v9125_v24  ;;  %v9133_v44 = vld [vmem:[%s14513_s0 + $0x2b8] sm:$0xff] }
 0x170   :  { %v10782_v7 = vpop.f32.mrb[56].mxu1 }
 0x171   :  { %14654 = vst [vmem:[#allocation48_spill] sm:$0xff] %v10782_v7  ;;  %v10786_v1 = vpop.f32.mrb[57].mxu1  ;;  %1087 = vmatmul.mubr.f32.gmra.mrb[162].mxu1 %v9126_v54  ;;  %v9128_v54 = vld [vmem:[%s14513_s0 + $0x280] sm:$0xff] }
 0x172   :  { %14655 = vst [vmem:[#allocation49_spill] sm:$0xff] %v10786_v1  ;;  %6722 = vmatprep.mubr.msk.f32.mxu1 %vm218_vm0, %v9127_v60  ;;  %v9129_v1 = vld [vmem:[%s14513_s0 + $0x298] sm:$0xff] }
 0x174   :  { %v10797_v24 = vpop.f32.mrb[58].mxu1 }
 0x175   :  { %14656 = vst [vmem:[#allocation50_spill] sm:$0xff] %v10797_v24  ;;  %v10801_v7 = vpop.f32.mrb[59].mxu1  ;;  %1093 = vmatmul.mubr.f32.gmra.mrb[164].mxu1 %v9128_v54  ;;  %v9131_v54 = vld [vmem:[%s14513_s0 + $0x2a8] sm:$0xff] }
 0x176   :  { %14657 = vst [vmem:[#allocation51_spill] sm:$0xff] %v10801_v7  ;;  %6723 = vmatprep.mubr.msk.f32.mxu1 %vm218_vm0, %v9129_v1  ;;  %v9132_v1 = vld [vmem:[%s14513_s0 + $0x2a0] sm:$0xff] }
 0x178   :  { %v10812_v60 = vpop.f32.mrb[60].mxu1 }
 0x179   :  { %14658 = vst [vmem:[#allocation52_spill] sm:$0xff] %v10812_v60  ;;  %v10814_v26 = vpop.f32.mrb[61].mxu1  ;;  %1099 = vmatmul.mubr.f32.gmra.mrb[166].mxu1 %v9130_v63  ;;  %v9143_v60 = vld [vmem:[%s14513_s0 + $0x308] sm:$0xff] }
 0x17a   :  { %14659 = vst [vmem:[#allocation53_spill] sm:$0xff] %v10814_v26  ;;  %6724 = vmatprep.mubr.msk.f32.mxu1 %vm218_vm0, %v9131_v54  ;;  %v9138_v54 = vld [vmem:[%s14513_s0 + $0x2d0] sm:$0xff] }
 0x17c   :  { %v10823_v9 = vpop.f32.mrb[62].mxu1 }
 0x17d   :  { %14660 = vst [vmem:[#allocation54_spill] sm:$0xff] %v10823_v9  ;;  %v10825_v7 = vpop.f32.mrb[63].mxu1  ;;  %1105 = vmatmul.mubr.f32.gmra.mrb[168].mxu1 %v9132_v1  ;;  %v9142_v9 = vld [vmem:[%s14513_s0 + $0x2f0] sm:$0xff] }
 0x17e   :  { %14661 = vst [vmem:[#allocation55_spill] sm:$0xff] %v10825_v7  ;;  %6725 = vmatprep.mubr.msk.f32.mxu1 %vm218_vm0, %v9133_v44  ;;  %v9141_v7 = vld [vmem:[%s14513_s0 + $0x2f8] sm:$0xff] }
 0x180   :  { %v10834_v63 = vpop.f32.mrb[64].mxu1 }
 0x181   :  { %14662 = vst [vmem:[#allocation56_spill] sm:$0xff] %v10834_v63  ;;  %v10838_v24 = vpop.f32.mrb[65].mxu1  ;;  %1111 = vmatmul.mubr.f32.gmra.mrb[170].mxu1 %v9134_v19  ;;  %v9136_v19 = vld [vmem:[%s14513_s0 + $0x2c0] sm:$0xff] }
 0x182   :  { %14663 = vst [vmem:[#allocation57_spill] sm:$0xff] %v10838_v24  ;;  %6726 = vmatprep.mubr.msk.f32.mxu1 %vm218_vm0, %v9135_v20  ;;  %v9137_v24 = vld [vmem:[%s14513_s0 + $0x2d8] sm:$0xff] }
 0x184   :  { %v10849_v44 = vpop.f32.mrb[66].mxu1 }
 0x185   :  { %14664 = vst [vmem:[#allocation58_spill] sm:$0xff] %v10849_v44  ;;  %v10853_v63 = vpop.f32.mrb[67].mxu1  ;;  %1117 = vmatmul.mubr.f32.gmra.mrb[172].mxu1 %v9136_v19  ;;  %v9139_v19 = vld [vmem:[%s14513_s0 + $0x2e8] sm:$0xff] }
 0x186   :  { %14665 = vst [vmem:[#allocation59_spill] sm:$0xff] %v10853_v63  ;;  %6727 = vmatprep.mubr.msk.f32.mxu1 %vm218_vm0, %v9137_v24  ;;  %v9140_v24 = vld [vmem:[%s14513_s0 + $0x2e0] sm:$0xff] }
 0x188   :  { %v10864_v20 = vpop.f32.mrb[68].mxu1 }
 0x189   :  { %14666 = vst [vmem:[#allocation60_spill] sm:$0xff] %v10864_v20  ;;  %v10866_v26 = vpop.f32.mrb[69].mxu1  ;;  %1123 = vmatmul.mubr.f32.gmra.mrb[174].mxu1 %v9138_v54  ;;  %v1738_v20 = vld [vmem:[%s14514_s3 + $0x20] sm:$0xff] }
 0x18a   :  { %14667 = vst [vmem:[#allocation61_spill] sm:$0xff] %v10866_v26  ;;  %6728 = vmatprep.mubr.msk.f32.mxu1 %vm218_vm0, %v9139_v19  ;;  %v9146_v19 = vld [vmem:[%s14513_s0 + $0x310] sm:$0xff] }
 0x18c   :  { %v10875_v1 = vpop.f32.mrb[70].mxu1 }
 0x18d   :  { %14668 = vst [vmem:[#allocation62_spill] sm:$0xff] %v10875_v1  ;;  %v10877_v63 = vpop.f32.mrb[71].mxu1  ;;  %1129 = vmatmul.mubr.f32.gmra.mrb[176].mxu1 %v9140_v24 }
 0x18e   :  { %14669 = vst [vmem:[#allocation63_spill] sm:$0xff] %v10877_v63  ;;  %6729 = vmatprep.mubr.msk.f32.mxu1 %vm218_vm0, %v9141_v7  ;;  %v9149_v63 = vld [vmem:[%s14513_s0 + $0x338] sm:$0xff] }
 0x190   :  { %v10886_v54 = vpop.f32.mrb[72].mxu1 }
 0x191   :  { %14670 = vst [vmem:[#allocation64_spill] sm:$0xff] %v10886_v54  ;;  %v10890_v44 = vpop.f32.mrb[73].mxu1  ;;  %1135 = vmatmul.mubr.f32.gmra.mrb[178].mxu1 %v9142_v9  ;;  %v9144_v9 = vld [vmem:[%s14513_s0 + $0x300] sm:$0xff] }
 0x192   :  { %14671 = vst [vmem:[#allocation65_spill] sm:$0xff] %v10890_v44  ;;  %6730 = vmatprep.mubr.msk.f32.mxu1 %vm218_vm0, %v9143_v60  ;;  %v9145_v44 = vld [vmem:[%s14513_s0 + $0x318] sm:$0xff] }
 0x194   :  { %v10901_v7 = vpop.f32.mrb[74].mxu1 }
 0x195   :  { %14672 = vst [vmem:[#allocation66_spill] sm:$0xff] %v10901_v7  ;;  %v10905_v54 = vpop.f32.mrb[75].mxu1  ;;  %1141 = vmatmul.mubr.f32.gmra.mrb[180].mxu1 %v9144_v9  ;;  %v9147_v9 = vld [vmem:[%s14513_s0 + $0x328] sm:$0xff]  ;;  %v1737_v7 = vld [vmem:[%s14514_s3 + $0x18] sm:$0xff] }
 0x196   :  { %14673 = vst [vmem:[#allocation67_spill] sm:$0xff] %v10905_v54  ;;  %6731 = vmatprep.mubr.msk.f32.mxu1 %vm218_vm0, %v9145_v44  ;;  %v9148_v44 = vld [vmem:[%s14513_s0 + $0x320] sm:$0xff] }
 0x198   :  { %v10916_v60 = vpop.f32.mrb[76].mxu1 }
 0x199   :  { %14674 = vst [vmem:[#allocation68_spill] sm:$0xff] %v10916_v60  ;;  %v10918_v26 = vpop.f32.mrb[77].mxu1  ;;  %1147 = vmatmul.mubr.f32.gmra.mrb[182].mxu1 %v9146_v19  ;;  %v1735_v19 = vld [vmem:[%s14514_s3 + $0x8] sm:$0xff] }
 0x19a   :  { %14675 = vst [vmem:[#allocation69_spill] sm:$0xff] %v10918_v26  ;;  %6732 = vmatprep.mubr.msk.f32.mxu1 %vm218_vm0, %v9147_v9  ;;  %v1739_v9 = vld [vmem:[%s14514_s3 + $0x28] sm:$0xff] }
 0x19b   :  { %v7841_v1 = vpack.c.bf16 %v1739_v9, %v1735_v19  ;;  %v9155_v19 = vld [vmem:[%s14513_s0 + $0x368] sm:$0xff] }
 0x19c   :  { %v10927_v24 = vpop.f32.mrb[78].mxu1  ;;  %v1755_v26 = vld [vmem:[%s14514_s3 + $0xa8] sm:$0xff] }
 0x19d   :  { %14676 = vst [vmem:[#allocation70_spill] sm:$0xff] %v10927_v24  ;;  %v10929_v54 = vpop.f32.mrb[79].mxu1  ;;  %1153 = vmatmul.mubr.f32.gmra.mrb[184].mxu1 %v9148_v44  ;;  %v1741_v44 = vld [vmem:[%s14514_s3 + $0x38] sm:$0xff]  ;;  %7842 = vmatprep.subr.bf16.mxu0 %v7841_v1  ;;  %v9152_v1 = vld [vmem:[%s14513_s0 + $0x340] sm:$0xff] }
 0x19e   :  { %14677 = vst [vmem:[#allocation71_spill] sm:$0xff] %v10929_v54  ;;  %6733 = vmatprep.mubr.msk.f32.mxu1 %vm218_vm0, %v9149_v63  ;;  %v1734_v63 = vld [vmem:[%s14514_s3] sm:$0xff]  ;;  %v7897_v13 = vpack.c.bf16 %v1741_v44, %v1737_v7  ;;  %v9151_v7 = vld [vmem:[%s14513_s0 + $0x348] sm:$0xff]  ;;  %v10973_v44 = vshrl.u32 %v1303_v11, 7  ;;  %v9157_v54 = vld [vmem:[%s14513_s0 + $0x378] sm:$0xff] }
 0x19f   :  { %v7843_v31 = vpack.c.bf16 %v1738_v20, %v1734_v63  ;;  %v9154_v63 = vld [vmem:[%s14513_s0 + $0x350] sm:$0xff] }
 0x1a0   :  { %v10956_v30 = vpop.f32.mrb[80].mxu1  ;;  %7898 = vmatprep.subr.bf16.mxu1 %v7897_v13  ;;  %14681 = vst [vmem:[#allocation75_spill] sm:$0xff] %v10973_v44  ;;  %v9153_v13 = vld [vmem:[%s14513_s0 + $0x358] sm:$0xff]  ;;  %v14686_v60 = vsub.s32 2, %v10973_v44 }
 0x1a1   :  { %14678 = vst [vmem:[#allocation72_spill] sm:$0xff] %v10956_v30  ;;  %v10960_v9 = vpop.f32.mrb[81].mxu1  ;;  %1159 = vmatmul.mubr.f32.gmra.mrb[186].mxu1 %v9150_v39  ;;  %7844 = vmatpush1.bf16.msra.mxu0 %v7843_v31  ;;  %v1742_v31 = vld [vmem:[%s14514_s3 + $0x40] sm:$0xff]  ;;  %v14685_v30 = vmax.f32 %v10109_v43, %v10155_v17  ;;  %v14687_v43 = vmax.f32 %v10120_v62, %v10168_v37 }
 0x1a2   :  { %14679 = vst [vmem:[#allocation73_spill] sm:$0xff] %v10960_v9  ;;  %6734 = vmatprep.mubr.msk.f32.mxu1 %vm218_vm0, %v9151_v7  ;;  %v1754_v62 = vld [vmem:[%s14514_s3 + $0xa0] sm:$0xff] }
 0x1a4   :  { %v10971_v20 = vpop.f32.mrb[82].mxu1 }
 0x1a5   :  { %14680 = vst [vmem:[#allocation74_spill] sm:$0xff] %v10971_v20  ;;  %v10977_v39 = vpop.f32.mrb[83].mxu1  ;;  %1165 = vmatmul.mubr.f32.gmra.mrb[188].mxu1 %v9152_v1  ;;  %v1301_v1 = vld [vmem:[%s14515_s2] sm:$0xf]  ;;  %v14683_v20 = vsub.s32 0, %v10973_v44 }
 0x1a6   :  { %14682 = vst [vmem:[#allocation76_spill] sm:$0xff] %v10977_v39  ;;  %6735 = vmatprep.mubr.msk.f32.mxu1 %vm218_vm0, %v9153_v13  ;;  %v1743_v13 = vld [vmem:[%s14514_s3 + $0x48] sm:$0xff]  ;;  %v11043_v55 = vrot.slane %v1301_v1, %v14686_v60  ;;  %v14688_v60 = vsub.s32 3, %v10973_v44 }
 0x1a7   :  { %v11010_v24 = vrot.slane %v1301_v1, %v14683_v20 }
 0x1a8   :  { %v854_v11 = vpop.f32.mrb[84].mxu1  ;;  %v11060_v4 = vrot.slane %v1301_v1, %v14688_v60 }
 0x1a9   :  { %v856_v7 = vpop.f32.mrb[85].mxu1  ;;  %1171 = vmatmul.mubr.f32.gmra.mrb[190].mxu1 %v9154_v63  ;;  %v1747_v63 = vld [vmem:[%s14514_s3 + $0x68] sm:$0xff] }
 0x1aa   :  { %6736 = vmatprep.mubr.msk.f32.mxu1 %vm218_vm0, %v9155_v19  ;;  %v7845_v39 = vpack.c.bf16 %v1747_v63, %v1743_v13  ;;  %v9156_v19 = vld [vmem:[%s14513_s0 + $0x360] sm:$0xff]  ;;  %v14684_v63 = vsub.s32 1, %v10973_v44 }
 0x1ab   :  { %v1746_v13 = vld [vmem:[%s14514_s3 + $0x60] sm:$0xff] }
 0x1ac   :  { %v860_v48 = vpop.f32.mrb[86].mxu1  ;;  %7846 = vmatprep.subr.bf16.mxu0 %v7845_v39  ;;  %v11025_v20 = vrot.slane %v1301_v1, %v14684_v63  ;;  %v1751_v39 = vld [vmem:[%s14514_s3 + $0x88] sm:$0xff]  ;;  %v1323_v63 = vadd.f32 %v11010_v24, %v14685_v30  ;;  %v9158_v1 = vld [vmem:[%s14513_s0 + $0x370] sm:$0xff] }
 0x1ad   :  { %v11012_v9 = vpop.f32.mrb[87].mxu1  ;;  %1177 = vmatmul.mubr.f32.gmra.mrb[192].mxu1 %v9156_v19  ;;  %v7847_v19 = vpack.c.bf16 %v1746_v13, %v1742_v31  ;;  %v1740_v31 = vld [vmem:[%s14514_s3 + $0x30] sm:$0xff]  ;;  %v7849_v13 = vpack.c.bf16 %v1755_v26, %v1751_v39  ;;  %v1749_v26 = vld [vmem:[%s14514_s3 + $0x78] sm:$0xff] }
 0x1ae   :  { %6737 = vmatprep.mubr.msk.f32.mxu1 %vm218_vm0, %v9157_v54  ;;  %v1736_v54 = vld [vmem:[%s14514_s3 + $0x10] sm:$0xff]  ;;  %v1324_v17 = vadd.f32 %v11025_v20, %v14687_v43  ;;  %v7851_v43 = vpack.c.bf16 %v1754_v62, %v1750_v25  ;;  %v1435_v58 = vmax.f32 %v1323_v63, 0.0 }
 0x1af   :  { %7848 = vmatpush1.bf16.msra.mxu0 %v7847_v19  ;;  %v7899_v44 = vpack.c.bf16 %v1740_v31, %v1736_v54  ;;  %v14689_v19 = vmax.f32 %v10132_v52, %v10188_v23  ;;  %v1748_v25 = vld [vmem:[%s14514_s3 + $0x70] sm:$0xff]  ;;  %v1757_v54 = vld [vmem:[%s14514_s3 + $0xb8] sm:$0xff] }
 0x1b0   :  { %v866_v30 = vpop.f32.mrb[88].mxu1  ;;  %7850 = vmatprep.subr.bf16.mxu0 %v7849_v13 }
 0x1b1   :  { %v1191_v37 = vmax.f32 %v854_v11, %v866_v30  ;;  %v868_v39 = vpop.f32.mrb[89].mxu1  ;;  %1183 = vmatmul.mubr.f32.gmra.mrb[194].mxu1 %v9158_v1  ;;  %v1327_v2 = vadd.f32 %v11010_v24, %v14689_v19  ;;  %v7901_v30 = vpack.c.bf16 %v1749_v26, %v1745_v40  ;;  %v1744_v1 = vld [vmem:[%s14514_s3 + $0x50] sm:$0xff]  ;;  %v1753_v40 = vld [vmem:[%s14514_s3 + $0x98] sm:$0xff]  ;;  %v14691_v26 = vmov 0.0  }
 0x1b2   :  { %v1192_v60 = vmax.f32 %v856_v7, %v868_v39  ;;  %6878 = vmatprep.mubr.msk.f32.mxu1 %vm1604_vm1, %v10631_v56  ;;  %v1436_v7 = vmax.f32 %v1324_v17, 0.0  ;;  %v14690_v56 = vmax.f32 %v10143_v12, %v10204_v36  ;;  %v7903_v62 = vpack.c.bf16 %v1748_v25, %v1744_v1  ;;  %v1759_v25 = vld [vmem:[%s14514_s3 + $0xc8] sm:$0xff] }
 0x1b3   :  { %v1325_v11 = vadd.f32 %v11043_v55, %v1191_v37  ;;  %7852 = vmatpush1.bf16.msra.mxu0 %v7851_v43  ;;  %v1439_v37 = vmax.f32 %v1327_v2, 0.0  ;;  %v7905_v43 = vpack.c.bf16 %v1757_v54, %v1753_v40 }
 0x1b4   :  { %v1328_v63 = vadd.f32 %v11025_v20, %v14690_v56  ;;  %v1326_v52 = vadd.f32 %v11060_v4, %v1192_v60  ;;  %v872_v23 = vpop.f32.mrb[90].mxu1  ;;  %v1761_v56 = vld [vmem:[%s14514_s3 + $0xd8] sm:$0xff] }
 0x1b5   :  { %v1437_v31 = vmax.f32 %v1325_v11, 0.0  ;;  %v1195_v13 = vmax.f32 %v860_v48, %v872_v23  ;;  %v874_v17 = vpop.f32.mrb[91].mxu1  ;;  %2398 = vmatmul.mubr.f32.vlgmr.msra.gmra.mrb[196].mxu1 %v14691_v26  ;;  %v1752_v48 = vld [vmem:[%s14514_s3 + $0x90] sm:$0xff]  ;;  %v1765_v23 = vld [vmem:[%s14514_s3 + $0xf8] sm:$0xff] }
 0x1b6   :  { %v1438_v12 = vmax.f32 %v1326_v52, 0.0  ;;  %v1196_v36 = vmax.f32 %v11012_v9, %v874_v17  ;;  %6879 = vmatprep.mubr.msk.f32.mxu1 %vm1604_vm1, %v10633_v22  ;;  %7900 = vmatpush1.bf16.msra.mxu1 %v7899_v44  ;;  %v1756_v9 = vld [vmem:[%s14514_s3 + $0xb0] sm:$0xff]  ;;  %v1440_v19 = vmax.f32 %v1328_v63, 0.0  ;;  %v1758_v17 = vld [vmem:[%s14514_s3 + $0xc0] sm:$0xff] }
 0x1b7   :  { %v11102_v39 = vmax.f32 %v1435_v58, %v1437_v31  ;;  %v1329_v60 = vadd.f32 %v11043_v55, %v1195_v13  ;;  %7902 = vmatprep.subr.bf16.mxu1 %v7901_v30  ;;  %v7907_v1 = vpack.c.bf16 %v1756_v9, %v1752_v48  ;;  %v7909_v31 = vpack.c.bf16 %v1765_v23, %v1761_v56 }
 0x1b8   :  { %v1548_v11 = vmax.f32 %v1436_v7, %v1438_v12  ;;  %v1330_v22 = vadd.f32 %v11060_v4, %v1196_v36  ;;  %v878_v44 = vpop.f32.mrb[92].mxu1  ;;  %v1763_v7 = vld [vmem:[%s14514_s3 + $0xe8] sm:$0xff]  ;;  %v1760_v12 = vld [vmem:[%s14514_s3 + $0xd0] sm:$0xff] }
 0x1b9   :  { %1622 = vst [vmem:[#allocation2 + $0x40] sm:$0xff] %v11102_v39  ;;  %v1441_v2 = vmax.f32 %v1329_v60, 0.0  ;;  %v880_v58 = vpop.f32.mrb[93].mxu1  ;;  %2404 = vmatmul.mubr.f32.gmra.mrb[198].mxu1 %v14691_v26  ;;  %v7853_v52 = vpack.c.bf16 %v1763_v7, %v1759_v25  ;;  %v1762_v26 = vld [vmem:[%s14514_s3 + $0xe0] sm:$0xff]  ;;  %v1771_v60 = vld [vmem:[%s14514_s3 + $0x128] sm:$0xff] }
 0x1ba   :  { %1623 = vst.msk [vmem:[#allocation2 + $0x48] sm:$0xff] %vm1604_vm1, %v1548_v11  ;;  %v1442_v30 = vmax.f32 %v1330_v22, 0.0  ;;  %7904 = vmatpush1.bf16.msra.mxu1 %v7903_v62  ;;  %v7855_v36 = vpack.c.bf16 %v1762_v26, %v1758_v17  ;;  %v1764_v62 = vld [vmem:[%s14514_s3 + $0xf0] sm:$0xff]  ;;  %v1773_v11 = vld [vmem:[%s14514_s3 + $0x138] sm:$0xff]  ;;  %v1766_v22 = vld [vmem:[%s14514_s3 + $0x100] sm:$0xff] }
 0x1bb   :  { %v11124_v63 = vmax.f32 %v1439_v37, %v1441_v2  ;;  %7906 = vmatprep.subr.bf16.mxu1 %v7905_v43  ;;  %7854 = vmatprep.subr.bf16.mxu0 %v7853_v52  ;;  %v1767_v37 = vld [vmem:[%s14514_s3 + $0x108] sm:$0xff]  ;;  %v14692_v43 = vmax.f32 %v10221_v14, %v10275_v57  ;;  %v14693_v2 = vmax.f32 %v10234_v49, %v10291_v35  ;;  %v1772_v49 = vld [vmem:[%s14514_s3 + $0x130] sm:$0xff] }
 0x1bc   :  { %v1550_v40 = vmax.f32 %v1440_v19, %v1442_v30  ;;  %v884_v54 = vpop.f32.mrb[94].mxu1  ;;  %v7857_v9 = vpack.c.bf16 %v1771_v60, %v1767_v37  ;;  %v1769_v19 = vld [vmem:[%s14514_s3 + $0x118] sm:$0xff]  ;;  %7856 = vmatpush1.bf16.msra.mxu0 %v7855_v36  ;;  %v7911_v30 = vpack.c.bf16 %v1764_v62, %v1760_v12 }
 0x1bd   :  { %1624 = vst [vmem:[#allocation2 + $0x50] sm:$0xff] %v11124_v63  ;;  %v886_v13 = vpop.f32.mrb[95].mxu1  ;;  %v1331_v48 = vadd.f32 %v11010_v24, %v14692_v43  ;;  %v1332_v14 = vadd.f32 %v11025_v20, %v14693_v2  ;;  %v7913_v52 = vpack.c.bf16 %v1773_v11, %v1769_v19 }
 0x1be   :  { %1625 = vst.msk [vmem:[#allocation2 + $0x58] sm:$0xff] %vm1604_vm1, %v1550_v40  ;;  %7908 = vmatpush1.bf16.msra.mxu1 %v7907_v1  ;;  %v1770_v1 = vld [vmem:[%s14514_s3 + $0x120] sm:$0xff]  ;;  %7858 = vmatprep.subr.bf16.mxu0 %v7857_v9  ;;  %v1768_v40 = vld [vmem:[%s14514_s3 + $0x110] sm:$0xff] }
 0x1bf   :  { %7910 = vmatprep.subr.bf16.mxu1 %v7909_v31  ;;  %v7859_v23 = vpack.c.bf16 %v1770_v1, %v1766_v22  ;;  %v1443_v31 = vmax.f32 %v1331_v48, 0.0  ;;  %v1444_v12 = vmax.f32 %v1332_v14, 0.0  ;;  %v1777_v1 = vld [vmem:[%s14514_s3 + $0x158] sm:$0xff] }
 0x1c0   :  { %v890_v57 = vpop.f32.mrb[96].mxu1 }
 0x1c1   :  { %v1199_v25 = vmax.f32 %v878_v44, %v890_v57  ;;  %v892_v7 = vpop.f32.mrb[97].mxu1  ;;  %v1852_v56 = vld [vmem:[#allocation2 + $0x48] sm:$0xff]  ;;  %v14694_v44 = vmax.f32 %v10248_v53, %v10314_v28  ;;  %7860 = vmatpush1.bf16.msra.mxu0 %v7859_v23  ;;  %v7915_v53 = vpack.c.bf16 %v1772_v49, %v1768_v40 }
 0x1c2   :  { %v1200_v35 = vmax.f32 %v880_v58, %v892_v7  ;;  %6852 = vmatprep.mubr.msk.f32.mxu0 %vm1604_vm1, %v1852_v56  ;;  %6880 = vmatprep.mubr.msk.f32.mxu1 %vm1604_vm1, %v1852_v56  ;;  %v14695_v58 = vmax.f32 %v10261_v34, %v10330_v29  ;;  %v1781_v56 = vld [vmem:[%s14514_s3 + $0x178] sm:$0xff] }
 0x1c3   :  { %v1335_v17 = vadd.f32 %v11010_v24, %v14694_v44  ;;  %v1333_v26 = vadd.f32 %v11043_v55, %v1199_v25  ;;  %2177 = vmatmul.mubr.f32.gmra.mrb[32].mxu0 %v11102_v39  ;;  %2410 = vmatmul.mubr.f32.gmra.mrb[200].mxu1 %v11102_v39  ;;  %v7917_v40 = vpack.c.bf16 %v1781_v56, %v1777_v1  ;;  %v1776_v44 = vld [vmem:[%s14514_s3 + $0x150] sm:$0xff] }
 0x1c4   :  { %v1336_v36 = vadd.f32 %v11025_v20, %v14695_v58  ;;  %v1334_v62 = vadd.f32 %v11060_v4, %v1200_v35  ;;  %v896_v37 = vpop.f32.mrb[98].mxu1  ;;  %7912 = vmatpush1.bf16.msra.mxu1 %v7911_v30  ;;  %v1775_v30 = vld [vmem:[%s14514_s3 + $0x148] sm:$0xff]  ;;  %v1774_v35 = vld [vmem:[%s14514_s3 + $0x140] sm:$0xff] }
 0x1c5   :  { %v1445_v28 = vmax.f32 %v1333_v26, 0.0  ;;  %v1203_v60 = vmax.f32 %v884_v54, %v896_v37  ;;  %v898_v43 = vpop.f32.mrb[99].mxu1  ;;  %v1854_v48 = vld [vmem:[#allocation2 + $0x58] sm:$0xff]  ;;  %7914 = vmatprep.subr.bf16.mxu1 %v7913_v52  ;;  %v1447_v34 = vmax.f32 %v1335_v17, 0.0  ;;  %v1780_v26 = vld [vmem:[%s14514_s3 + $0x170] sm:$0xff]  ;;  %v1787_v58 = vld [vmem:[%s14514_s3 + $0x1a8] sm:$0xff] }
 0x1c6   :  { %v1446_v9 = vmax.f32 %v1334_v62, 0.0  ;;  %v1204_v19 = vmax.f32 %v886_v13, %v898_v43  ;;  %6853 = vmatprep.mubr.msk.f32.mxu0 %vm1604_vm1, %v1854_v48  ;;  %6881 = vmatprep.mubr.msk.f32.mxu1 %vm1604_vm1, %v1854_v48  ;;  %v1448_v11 = vmax.f32 %v1336_v36, 0.0  ;;  %v14696_v36 = vmax.f32 %v10353_v32, %v10431_v10  ;;  %v1782_v43 = vld [vmem:[%s14514_s3 + $0x180] sm:$0xff] }
 0x1c7   :  { %v1551_v29 = vmax.f32 %v1443_v31, %v1445_v28  ;;  %v1337_v39 = vadd.f32 %v11043_v55, %v1203_v60  ;;  %2183 = vmatmul.mubr.f32.gmra.mrb[34].mxu0 %v11124_v63  ;;  %2416 = vmatmul.mubr.f32.gmra.mrb[202].mxu1 %v11124_v63  ;;  %v1779_v63 = vld [vmem:[%s14514_s3 + $0x168] sm:$0xff]  ;;  %v1778_v31 = vld [vmem:[%s14514_s3 + $0x160] sm:$0xff]  ;;  %v7919_v37 = vpack.c.bf16 %v1780_v26, %v1776_v44  ;;  %v1785_v28 = vld [vmem:[%s14514_s3 + $0x198] sm:$0xff] }
 0x1c8   :  { %v1552_v22 = vmax.f32 %v1444_v12, %v1446_v9  ;;  %v1338_v54 = vadd.f32 %v11060_v4, %v1204_v19  ;;  %v902_v2 = vpop.f32.mrb[100].mxu1  ;;  %7916 = vmatpush1.bf16.msra.mxu1 %v7915_v53  ;;  %v7861_v7 = vpack.c.bf16 %v1779_v63, %v1775_v30  ;;  %v7863_v17 = vpack.c.bf16 %v1778_v31, %v1774_v35  ;;  %v1783_v12 = vld [vmem:[%s14514_s3 + $0x188] sm:$0xff]  ;;  %v1789_v60 = vld [vmem:[%s14514_s3 + $0x1b8] sm:$0xff]  ;;  %v1786_v19 = vld [vmem:[%s14514_s3 + $0x1a0] sm:$0xff] }
 0x1c9   :  { %1626 = vst [vmem:[#allocation2 + $0x60] sm:$0xff] %v1551_v29  ;;  %v1449_v13 = vmax.f32 %v1337_v39, 0.0  ;;  %v904_v14 = vpop.f32.mrb[101].mxu1  ;;  %7918 = vmatprep.subr.bf16.mxu1 %v7917_v40  ;;  %v1339_v62 = vadd.f32 %v11010_v24, %v14696_v36  ;;  %v7865_v53 = vpack.c.bf16 %v1787_v58, %v1783_v12  ;;  %v14697_v48 = vmax.f32 %v10369_v45, %v10447_v50  ;;  %v1788_v39 = vld [vmem:[%s14514_s3 + $0x1b0] sm:$0xff] }
 0x1ca   :  { %1627 = vst.msk [vmem:[#allocation2 + $0x68] sm:$0xff] %vm1604_vm1, %v1552_v22  ;;  %v1450_v57 = vmax.f32 %v1338_v54, 0.0  ;;  %7862 = vmatprep.subr.bf16.mxu0 %v7861_v7  ;;  %v7921_v9 = vpack.c.bf16 %v1789_v60, %v1785_v28  ;;  %v7867_v50 = vpack.c.bf16 %v1786_v19, %v1782_v43  ;;  %v14698_v30 = vmax.f32 %v10392_v46, %v10470_v5  ;;  %v1797_v60 = vld [vmem:[%s14514_s3 + $0x1f8] sm:$0xff]  ;;  %v1794_v19 = vld [vmem:[%s14514_s3 + $0x1e0] sm:$0xff] }
 0x1cb   :  { %v11205_v25 = vmax.f32 %v1447_v34, %v1449_v13  ;;  %v1340_v32 = vadd.f32 %v11025_v20, %v14697_v48  ;;  %7864 = vmatpush1.bf16.msra.mxu0 %v7863_v17  ;;  %v1784_v34 = vld [vmem:[%s14514_s3 + $0x190] sm:$0xff]  ;;  %v14699_v7 = vmax.f32 %v10408_v3, %v10486_v59 }
 0x1cc   :  { %v1554_v52 = vmax.f32 %v1448_v11, %v1450_v57  ;;  %v908_v23 = vpop.f32.mrb[102].mxu1  ;;  %7920 = vmatpush1.bf16.msra.mxu1 %v7919_v37  ;;  %7866 = vmatprep.subr.bf16.mxu0 %v7865_v53  ;;  %v7923_v54 = vpack.c.bf16 %v1788_v39, %v1784_v34  ;;  %v1451_v57 = vmax.f32 %v1339_v62, 0.0  ;;  %v1343_v63 = vadd.f32 %v11010_v24, %v14698_v30  ;;  %v1791_v62 = vld [vmem:[%s14514_s3 + $0x1c8] sm:$0xff]  ;;  %v1792_v34 = vld [vmem:[%s14514_s3 + $0x1d0] sm:$0xff]  ;;  %v1798_v30 = vld [vmem:[%s14514_s3 + $0x200] sm:$0xff] }
 0x1cd   :  { %1628 = vst [vmem:[#allocation2 + $0x70] sm:$0xff] %v11205_v25  ;;  %v910_v49 = vpop.f32.mrb[103].mxu1  ;;  %7922 = vmatprep.subr.bf16.mxu1 %v7921_v9  ;;  %v1795_v37 = vld [vmem:[%s14514_s3 + $0x1e8] sm:$0xff]  ;;  %v1790_v9 = vld [vmem:[%s14514_s3 + $0x1c0] sm:$0xff] }
 0x1ce   :  { %1629 = vst.msk [vmem:[#allocation2 + $0x78] sm:$0xff] %vm1604_vm1, %v1554_v52  ;;  %v7869_v28 = vpack.c.bf16 %v1795_v37, %v1791_v62  ;;  %v7871_v39 = vpack.c.bf16 %v1794_v19, %v1790_v9  ;;  %v1807_v9 = vld [vmem:[%s14514_s3 + $0x248] sm:$0xff]  ;;  %v1809_v19 = vld [vmem:[%s14514_s3 + $0x258] sm:$0xff] }
 0x1cf   :  { %7868 = vmatpush1.bf16.msra.mxu0 %v7867_v50 }
 0x1d0   :  { %v914_v10 = vpop.f32.mrb[104].mxu1  ;;  %7924 = vmatpush1.bf16.msra.mxu1 %v7923_v54  ;;  %7870 = vmatprep.subr.bf16.mxu0 %v7869_v28 }
 0x1d1   :  { %v1207_v11 = vmax.f32 %v902_v2, %v914_v10  ;;  %v916_v22 = vpop.f32.mrb[105].mxu1  ;;  %v1856_v45 = vld [vmem:[#allocation2 + $0x68] sm:$0xff]  ;;  %v1452_v2 = vmax.f32 %v1340_v32, 0.0 }
 0x1d2   :  { %v1208_v13 = vmax.f32 %v904_v14, %v916_v22  ;;  %6854 = vmatprep.mubr.msk.f32.mxu0 %vm1604_vm1, %v1856_v45  ;;  %6882 = vmatprep.mubr.msk.f32.mxu1 %vm1604_vm1, %v1856_v45  ;;  %v1344_v14 = vadd.f32 %v11025_v20, %v14699_v7  ;;  %v1799_v22 = vld [vmem:[%s14514_s3 + $0x208] sm:$0xff] }
 0x1d3   :  { %v1341_v1 = vadd.f32 %v11043_v55, %v1207_v11  ;;  %2189 = vmatmul.mubr.f32.gmra.mrb[36].mxu0 %v1551_v29  ;;  %2422 = vmatmul.mubr.f32.gmra.mrb[204].mxu1 %v1551_v29  ;;  %v1455_v29 = vmax.f32 %v1343_v63, 0.0  ;;  %v1796_v11 = vld [vmem:[%s14514_s3 + $0x1f0] sm:$0xff]  ;;  %v1803_v45 = vld [vmem:[%s14514_s3 + $0x228] sm:$0xff]  ;;  %v14700_v63 = vmax.f32 %v10507_v18, %v10107_v41 }
 0x1d4   :  { %v1342_v56 = vadd.f32 %v11060_v4, %v1208_v13  ;;  %v920_v52 = vpop.f32.mrb[106].mxu1  ;;  %v1456_v17 = vmax.f32 %v1344_v14, 0.0  ;;  %v7927_v50 = vpack.c.bf16 %v1796_v11, %v1792_v34  ;;  %v7873_v54 = vpack.c.bf16 %v1803_v45, %v1799_v22  ;;  %v1801_v13 = vld [vmem:[%s14514_s3 + $0x218] sm:$0xff]  ;;  %7872 = vmatpush1.bf16.msra.mxu0 %v7871_v39  ;;  %v1802_v14 = vld [vmem:[%s14514_s3 + $0x220] sm:$0xff] }
 0x1d5   :  { %v1453_v40 = vmax.f32 %v1341_v1, 0.0  ;;  %v1211_v35 = vmax.f32 %v908_v23, %v920_v52  ;;  %v922_v46 = vpop.f32.mrb[107].mxu1  ;;  %v1858_v5 = vld [vmem:[#allocation2 + $0x78] sm:$0xff]  ;;  %v1347_v1 = vadd.f32 %v11010_v24, %v14700_v63  ;;  %v1804_v52 = vld [vmem:[%s14514_s3 + $0x230] sm:$0xff]  ;;  %v7875_v18 = vpack.c.bf16 %v1802_v14, %v1798_v30 }
 0x1d6   :  { %v1454_v31 = vmax.f32 %v1342_v56, 0.0  ;;  %v1212_v44 = vmax.f32 %v910_v49, %v922_v46  ;;  %6855 = vmatprep.mubr.msk.f32.mxu0 %vm1604_vm1, %v1858_v5  ;;  %6883 = vmatprep.mubr.msk.f32.mxu1 %vm1604_vm1, %v1858_v5  ;;  %v1800_v56 = vld [vmem:[%s14514_s3 + $0x210] sm:$0xff]  ;;  %v14701_v5 = vmax.f32 %v10524_v6, %v10117_v33  ;;  %v14702_v33 = vmax.f32 %v10547_v42, %v10130_v51  ;;  %v1813_v11 = vld [vmem:[%s14514_s3 + $0x278] sm:$0xff] }
 0x1d7   :  { %v1555_v3 = vmax.f32 %v1451_v57, %v1453_v40  ;;  %v1345_v59 = vadd.f32 %v11043_v55, %v1211_v35  ;;  %2195 = vmatmul.mubr.f32.gmra.mrb[38].mxu0 %v11205_v25  ;;  %2428 = vmatmul.mubr.f32.gmra.mrb[206].mxu1 %v11205_v25  ;;  %v1793_v25 = vld [vmem:[%s14514_s3 + $0x1d8] sm:$0xff]  ;;  %v7931_v46 = vpack.c.bf16 %v1804_v52, %v1800_v56  ;;  %v1808_v30 = vld [vmem:[%s14514_s3 + $0x250] sm:$0xff] }
 0x1d8   :  { %v1556_v26 = vmax.f32 %v1452_v2, %v1454_v31  ;;  %v1346_v23 = vadd.f32 %v11060_v4, %v1212_v44  ;;  %v926_v12 = vpop.f32.mrb[108].mxu1  ;;  %v7925_v32 = vpack.c.bf16 %v1797_v60, %v1793_v25  ;;  %v1805_v57 = vld [vmem:[%s14514_s3 + $0x238] sm:$0xff]  ;;  %7874 = vmatprep.subr.bf16.mxu0 %v7873_v54  ;;  %v1348_v31 = vadd.f32 %v11025_v20, %v14701_v5 }
 0x1d9   :  { %1630 = vst [vmem:[#allocation2 + $0x80] sm:$0xff] %v1555_v3  ;;  %v1457_v58 = vmax.f32 %v1345_v59, 0.0  ;;  %v928_v49 = vpop.f32.mrb[109].mxu1  ;;  %v7929_v7 = vpack.c.bf16 %v1805_v57, %v1801_v13  ;;  %7876 = vmatpush1.bf16.msra.mxu0 %v7875_v18  ;;  %v1351_v6 = vadd.f32 %v11010_v24, %v14702_v33  ;;  %v1806_v13 = vld [vmem:[%s14514_s3 + $0x240] sm:$0xff]  ;;  %v1817_v52 = vld [vmem:[%s14514_s3 + $0x298] sm:$0xff]  ;;  %v14705_v33 = vmax.f32 %v10163_v27, %v10231_v47 }
 0x1da   :  { %1631 = vst.msk [vmem:[#allocation2 + $0x88] sm:$0xff] %vm1604_vm1, %v1556_v26  ;;  %v1458_v36 = vmax.f32 %v1346_v23, 0.0  ;;  %7926 = vmatprep.subr.bf16.mxu1 %v7925_v32  ;;  %v1459_v26 = vmax.f32 %v1347_v1, 0.0  ;;  %v1810_v57 = vld [vmem:[%s14514_s3 + $0x260] sm:$0xff]  ;;  %v1812_v1 = vld [vmem:[%s14514_s3 + $0x270] sm:$0xff]  ;;  %v14706_v27 = vmax.f32 %v10186_v21, %v10246_v16 }
 0x1db   :  { %v11284_v53 = vmax.f32 %v1455_v29, %v1457_v58  ;;  %7928 = vmatpush1.bf16.msra.mxu1 %v7927_v50  ;;  %v7933_v50 = vpack.c.bf16 %v1813_v11, %v1809_v19  ;;  %v7879_v63 = vpack.c.bf16 %v1810_v57, %v1806_v13  ;;  %v7935_v14 = vpack.c.bf16 %v1812_v1, %v1808_v30  ;;  %v1825_v11 = vld [vmem:[%s14514_s3 + $0x2d8] sm:$0xff]  ;;  %v1826_v1 = vld [vmem:[%s14514_s3 + $0x2e0] sm:$0xff] }
 0x1dc   :  { %v1558_v43 = vmax.f32 %v1456_v17, %v1458_v36  ;;  %v932_v48 = vpop.f32.mrb[110].mxu1  ;;  %7930 = vmatprep.subr.bf16.mxu1 %v7929_v7  ;;  %v1460_v36 = vmax.f32 %v1348_v31, 0.0  ;;  %v1819_v7 = vld [vmem:[%s14514_s3 + $0x2a8] sm:$0xff]  ;;  %v1818_v31 = vld [vmem:[%s14514_s3 + $0x2a0] sm:$0xff]  ;;  %v1359_v47 = vadd.f32 %v11010_v24, %v14706_v27 }
 0x1dd   :  { %1632 = vst [vmem:[#allocation2 + $0x90] sm:$0xff] %v11284_v53  ;;  %v934_v10 = vpop.f32.mrb[111].mxu1 }
 0x1de   :  { %1633 = vst.msk [vmem:[#allocation2 + $0x98] sm:$0xff] %vm1604_vm1, %v1558_v43 }
 0x1df   :  { %7932 = vmatpush1.bf16.msra.mxu1 %v7931_v46 }
 0x1e0   :  { %v938_v2 = vpop.f32.mrb[112].mxu1  ;;  %7934 = vmatprep.subr.bf16.mxu1 %v7933_v50  ;;  %v1829_v50 = vld [vmem:[%s14514_s3 + $0x2f8] sm:$0xff] }
 0x1e1   :  { %v1215_v40 = vmax.f32 %v926_v12, %v938_v2  ;;  %v940_v35 = vpop.f32.mrb[113].mxu1  ;;  %v1860_v41 = vld [vmem:[#allocation2 + $0x88] sm:$0xff]  ;;  %v7941_v57 = vpack.c.bf16 %v1829_v50, %v1825_v11 }
 0x1e2   :  { %v1216_v44 = vmax.f32 %v928_v49, %v940_v35  ;;  %6856 = vmatprep.mubr.msk.f32.mxu0 %vm1604_vm1, %v1860_v41  ;;  %6884 = vmatprep.mubr.msk.f32.mxu1 %vm1604_vm1, %v1860_v41  ;;  %v1815_v2 = vld [vmem:[%s14514_s3 + $0x288] sm:$0xff]  ;;  %v1814_v35 = vld [vmem:[%s14514_s3 + $0x280] sm:$0xff]  ;;  %v14704_v41 = vmax.f32 %v10153_v15, %v10219_v8 }
 0x1e3   :  { %v1349_v29 = vadd.f32 %v11043_v55, %v1215_v40  ;;  %2201 = vmatmul.mubr.f32.gmra.mrb[40].mxu0 %v1555_v3  ;;  %2434 = vmatmul.mubr.f32.gmra.mrb[208].mxu1 %v1555_v3  ;;  %v14703_v3 = vmax.f32 %v10564_v38, %v10140_v61  ;;  %v1463_v61 = vmax.f32 %v1351_v6, 0.0  ;;  %v7881_v56 = vpack.c.bf16 %v1819_v7, %v1815_v2  ;;  %v1821_v40 = vld [vmem:[%s14514_s3 + $0x2b8] sm:$0xff]  ;;  %v1824_v2 = vld [vmem:[%s14514_s3 + $0x2d0] sm:$0xff] }
 0x1e4   :  { %v1350_v59 = vadd.f32 %v11060_v4, %v1216_v44  ;;  %v944_v17 = vpop.f32.mrb[114].mxu1  ;;  %v1355_v18 = vadd.f32 %v11010_v24, %v14704_v41  ;;  %v7937_v5 = vpack.c.bf16 %v1821_v40, %v1817_v52  ;;  %v1816_v44 = vld [vmem:[%s14514_s3 + $0x290] sm:$0xff]  ;;  %7936 = vmatpush1.bf16.msra.mxu1 %v7935_v14  ;;  %v7883_v8 = vpack.c.bf16 %v1818_v31, %v1814_v35  ;;  %v1835_v52 = vld [vmem:[%s14514_s3 + $0x328] sm:$0xff]  ;;  %v1833_v41 = vld [vmem:[%s14514_s3 + $0x318] sm:$0xff] }
 0x1e5   :  { %v1461_v23 = vmax.f32 %v1349_v29, 0.0  ;;  %v1219_v12 = vmax.f32 %v932_v48, %v944_v17  ;;  %v946_v58 = vpop.f32.mrb[115].mxu1  ;;  %v1862_v49 = vld [vmem:[#allocation2 + $0x98] sm:$0xff]  ;;  %v1352_v62 = vadd.f32 %v11025_v20, %v14703_v3  ;;  %v1820_v29 = vld [vmem:[%s14514_s3 + $0x2b0] sm:$0xff]  ;;  %v1356_v6 = vadd.f32 %v11025_v20, %v14705_v33  ;;  %v14710_v31 = vld [vmem:[#allocation12_spill] sm:$0xff] }
 0x1e6   :  { %v1462_v37 = vmax.f32 %v1350_v59, 0.0  ;;  %v1220_v25 = vmax.f32 %v934_v10, %v946_v58  ;;  %6857 = vmatprep.mubr.msk.f32.mxu0 %vm1604_vm1, %v1862_v49  ;;  %6885 = vmatprep.mubr.msk.f32.mxu1 %vm1604_vm1, %v1862_v49  ;;  %v1828_v14 = vld [vmem:[%s14514_s3 + $0x2f0] sm:$0xff] }
 0x1e7   :  { %v1559_v51 = vmax.f32 %v1459_v26, %v1461_v23  ;;  %v1353_v42 = vadd.f32 %v11043_v55, %v1219_v12  ;;  %2207 = vmatmul.mubr.f32.gmra.mrb[42].mxu0 %v11284_v53  ;;  %2440 = vmatmul.mubr.f32.gmra.mrb[210].mxu1 %v11284_v53  ;;  %v1464_v32 = vmax.f32 %v1352_v62, 0.0  ;;  %v1811_v53 = vld [vmem:[%s14514_s3 + $0x268] sm:$0xff]  ;;  %v7939_v26 = vpack.c.bf16 %v1820_v29, %v1816_v44 }
 0x1e8   :  { %v1560_v28 = vmax.f32 %v1460_v36, %v1462_v37  ;;  %v1354_v60 = vadd.f32 %v11060_v4, %v1220_v25  ;;  %v950_v43 = vpop.f32.mrb[116].mxu1  ;;  %v7877_v39 = vpack.c.bf16 %v1811_v53, %v1807_v9  ;;  %7938 = vmatprep.subr.bf16.mxu1 %v7937_v5  ;;  %v1467_v36 = vmax.f32 %v1355_v18, 0.0  ;;  %v1837_v18 = vld [vmem:[%s14514_s3 + $0x338] sm:$0xff]  ;;  %v14709_v5 = vld [vmem:[#allocation8_spill] sm:$0xff] }
 0x1e9   :  { %1634 = vst [vmem:[#allocation2 + $0xa0] sm:$0xff] %v1559_v51  ;;  %v1465_v38 = vmax.f32 %v1353_v42, 0.0  ;;  %v952_v48 = vpop.f32.mrb[117].mxu1  ;;  %7940 = vmatpush1.bf16.msra.mxu1 %v7939_v26  ;;  %v1468_v42 = vmax.f32 %v1356_v6, 0.0  ;;  %v7943_v40 = vpack.c.bf16 %v1828_v14, %v1824_v2  ;;  %v14711_v44 = vmax.f32 %v14709_v5, %v14710_v31  ;;  %v1834_v6 = vld [vmem:[%s14514_s3 + $0x320] sm:$0xff] }
 0x1ea   :  { %1635 = vst.msk [vmem:[#allocation2 + $0xa8] sm:$0xff] %vm1604_vm1, %v1560_v28  ;;  %v1466_v10 = vmax.f32 %v1354_v60, 0.0  ;;  %7878 = vmatprep.subr.bf16.mxu0 %v7877_v39  ;;  %v14707_v28 = vld [vmem:[#allocation7_spill] sm:$0xff]  ;;  %v1823_v39 = vld [vmem:[%s14514_s3 + $0x2c8] sm:$0xff]  ;;  %7942 = vmatprep.subr.bf16.mxu1 %v7941_v57  ;;  %v7945_v33 = vpack.c.bf16 %v1837_v18, %v1833_v41 }
 0x1eb   :  { %v11363_v34 = vmax.f32 %v1463_v61, %v1465_v38  ;;  %7880 = vmatpush1.bf16.msra.mxu0 %v7879_v63  ;;  %v1822_v63 = vld [vmem:[%s14514_s3 + $0x2c0] sm:$0xff]  ;;  %v1363_v29 = vadd.f32 %v11010_v24, %v14711_v44 }
 0x1ec   :  { %v1562_v22 = vmax.f32 %v1464_v32, %v1466_v10  ;;  %v956_v45 = vpop.f32.mrb[118].mxu1  ;;  %7882 = vmatprep.subr.bf16.mxu0 %v7881_v56  ;;  %v7887_v7 = vpack.c.bf16 %v1826_v1, %v1822_v63  ;;  %v1831_v56 = vld [vmem:[%s14514_s3 + $0x308] sm:$0xff]  ;;  %v1842_v57 = vld [vmem:[%s14514_s3 + $0x360] sm:$0xff]  ;;  %v1840_v63 = vld [vmem:[%s14514_s3 + $0x350] sm:$0xff] }
 0x1ed   :  { %1636 = vst [vmem:[#allocation2 + $0xb0] sm:$0xff] %v11363_v34  ;;  %v958_v54 = vpop.f32.mrb[119].mxu1  ;;  %v7889_v35 = vpack.c.bf16 %v1835_v52, %v1831_v56  ;;  %7944 = vmatpush1.bf16.msra.mxu1 %v7943_v40  ;;  %v1844_v1 = vld [vmem:[%s14514_s3 + $0x370] sm:$0xff] }
 0x1ee   :  { %1637 = vst.msk [vmem:[#allocation2 + $0xb8] sm:$0xff] %vm1604_vm1, %v1562_v22  ;;  %7946 = vmatprep.subr.bf16.mxu1 %v7945_v33  ;;  %v7951_v40 = vpack.c.bf16 %v1844_v1, %v1840_v63 }
 0x1ef   :  { %7884 = vmatpush1.bf16.msra.mxu0 %v7883_v8 }
 0x1f0   :  { %v962_v46 = vpop.f32.mrb[120].mxu1 }
 0x1f1   :  { %v1223_v59 = vmax.f32 %v950_v43, %v962_v46  ;;  %v964_v17 = vpop.f32.mrb[121].mxu1  ;;  %v1864_v15 = vld [vmem:[#allocation2 + $0xa8] sm:$0xff]  ;;  %v1830_v46 = vld [vmem:[%s14514_s3 + $0x300] sm:$0xff] }
 0x1f2   :  { %v1224_v23 = vmax.f32 %v952_v48, %v964_v17  ;;  %6858 = vmatprep.mubr.msk.f32.mxu0 %vm1604_vm1, %v1864_v15  ;;  %6886 = vmatprep.mubr.msk.f32.mxu1 %vm1604_vm1, %v1864_v15  ;;  %v14713_v17 = vld [vmem:[#allocation13_spill] sm:$0xff]  ;;  %v7891_v27 = vpack.c.bf16 %v1834_v6, %v1830_v46 }
 0x1f3   :  { %v1357_v12 = vadd.f32 %v11043_v55, %v1223_v59  ;;  %2213 = vmatmul.mubr.f32.gmra.mrb[44].mxu0 %v1559_v51  ;;  %2446 = vmatmul.mubr.f32.gmra.mrb[212].mxu1 %v1559_v51  ;;  %v14708_v51 = vmax.f32 %v10199_v0, %v14707_v28  ;;  %v1471_v0 = vmax.f32 %v1359_v47, 0.0  ;;  %v14712_v59 = vld [vmem:[#allocation9_spill] sm:$0xff] }
 0x1f4   :  { %v1358_v58 = vadd.f32 %v11060_v4, %v1224_v23  ;;  %v968_v49 = vpop.f32.mrb[122].mxu1  ;;  %v14714_v15 = vmax.f32 %v14712_v59, %v14713_v17  ;;  %v1832_v23 = vld [vmem:[%s14514_s3 + $0x310] sm:$0xff]  ;;  %v6963_v59 = vld [vmem:[%s14514_s3 + $0x708] sm:$0xff] }
 0x1f5   :  { %v1469_v3 = vmax.f32 %v1357_v12, 0.0  ;;  %v1227_v62 = vmax.f32 %v956_v45, %v968_v49  ;;  %v970_v37 = vpop.f32.mrb[123].mxu1  ;;  %v1866_v25 = vld [vmem:[#allocation2 + $0xb8] sm:$0xff]  ;;  %v1360_v60 = vadd.f32 %v11025_v20, %v14708_v51  ;;  %v1836_v12 = vld [vmem:[%s14514_s3 + $0x330] sm:$0xff]  ;;  %v1839_v51 = vld [vmem:[%s14514_s3 + $0x348] sm:$0xff] }
 0x1f6   :  { %v1470_v43 = vmax.f32 %v1358_v58, 0.0  ;;  %v1228_v61 = vmax.f32 %v958_v54, %v970_v37  ;;  %6859 = vmatprep.mubr.msk.f32.mxu0 %vm1604_vm1, %v1866_v25  ;;  %6887 = vmatprep.mubr.msk.f32.mxu1 %vm1604_vm1, %v1866_v25  ;;  %v1364_v8 = vadd.f32 %v11025_v20, %v14714_v15  ;;  %v7947_v47 = vpack.c.bf16 %v1836_v12, %v1832_v23  ;;  %v6967_v17 = vld [vmem:[%s14514_s3 + $0x728] sm:$0xff]  ;;  %v6965_v15 = vld [vmem:[%s14514_s3 + $0x718] sm:$0xff] }
 0x1f7   :  { %v1563_v21 = vmax.f32 %v1467_v36, %v1469_v3  ;;  %v1361_v16 = vadd.f32 %v11043_v55, %v1227_v62  ;;  %2219 = vmatmul.mubr.f32.gmra.mrb[46].mxu0 %v11363_v34  ;;  %2452 = vmatmul.mubr.f32.gmra.mrb[214].mxu1 %v11363_v34  ;;  %v1472_v53 = vmax.f32 %v1360_v60, 0.0  ;;  %v1827_v34 = vld [vmem:[%s14514_s3 + $0x2e8] sm:$0xff]  ;;  %v1475_v37 = vmax.f32 %v1363_v29, 0.0 }
 0x1f8   :  { %v1564_v38 = vmax.f32 %v1468_v42, %v1470_v43  ;;  %v1362_v48 = vadd.f32 %v11060_v4, %v1228_v61  ;;  %v974_v32 = vpop.f32.mrb[124].mxu1  ;;  %v7885_v45 = vpack.c.bf16 %v1827_v34, %v1823_v39  ;;  %v1476_v25 = vmax.f32 %v1364_v8, 0.0  ;;  %v1843_v60 = vld [vmem:[%s14514_s3 + $0x368] sm:$0xff]  ;;  %v1841_v43 = vld [vmem:[%s14514_s3 + $0x358] sm:$0xff]  ;;  %7948 = vmatpush1.bf16.msra.mxu1 %v7947_v47  ;;  %v14718_v39 = vld [vmem:[#allocation11_spill] sm:$0xff] }
 0x1f9   :  { %1638 = vst [vmem:[#allocation2 + $0xc0] sm:$0xff] %v1563_v21  ;;  %v1473_v10 = vmax.f32 %v1361_v16, 0.0  ;;  %v976_v9 = vpop.f32.mrb[125].mxu1  ;;  %v14715_v61 = vld [vmem:[#allocation10_spill] sm:$0xff]  ;;  %v14719_v34 = vld [vmem:[#allocation15_spill] sm:$0xff]  ;;  %v7953_v8 = vpack.c.bf16 %v6967_v17, %v6963_v59  ;;  %v14721_v23 = vld [vmem:[#allocation16_spill] sm:$0xff] }
 0x1fa   :  { %1639 = vst.msk [vmem:[#allocation2 + $0xc8] sm:$0xff] %vm1604_vm1, %v1564_v38  ;;  %v1474_v19 = vmax.f32 %v1362_v48, 0.0  ;;  %7886 = vmatprep.subr.bf16.mxu0 %v7885_v45  ;;  %v14720_v11 = vmax.f32 %v14718_v39, %v14719_v34  ;;  %v14722_v12 = vld [vmem:[#allocation20_spill] sm:$0xff]  ;;  %v14736_v59 = vld [vmem:[#allocation25_spill] sm:$0xff] }
 0x1fb   :  { %v11442_v22 = vmax.f32 %v1471_v0, %v1473_v10  ;;  %7888 = vmatpush1.bf16.msra.mxu0 %v7887_v7  ;;  %v14737_v17 = vld [vmem:[#allocation29_spill] sm:$0xff] }
 0x1fc   :  { %v1566_v54 = vmax.f32 %v1472_v53, %v1474_v19  ;;  %v11447_v13 = vpop.f32.mrb[126].mxu1  ;;  %7890 = vmatprep.subr.bf16.mxu0 %v7889_v35  ;;  %v1845_v53 = vld [vmem:[%s14514_s3 + $0x378] sm:$0xff]  ;;  %v1838_v19 = vld [vmem:[%s14514_s3 + $0x340] sm:$0xff]  ;;  %v1368_v45 = vadd.f32 %v11025_v20, %v14720_v11 }
 0x1fd   :  { %1640 = vst [vmem:[#allocation2 + $0xd0] sm:$0xff] %v11442_v22  ;;  %v11450_v30 = vpop.f32.mrb[127].mxu1  ;;  %v7895_v7 = vpack.c.bf16 %v1842_v57, %v1838_v19  ;;  %v14731_v19 = vld [vmem:[#allocation23_spill] sm:$0xff] }
 0x1fe   :  { %1641 = vst.msk [vmem:[#allocation2 + $0xd8] sm:$0xff] %vm1604_vm1, %v1566_v54  ;;  %v1480_v46 = vmax.f32 %v1368_v45, 0.0 }
 0x1ff   :  { %7892 = vmatpush1.bf16.msra.mxu0 %v7891_v27 }
 0x200   :  { %v986_v26 = vpop.f32.mrb[128].mxu1 }
 0x201   :  { %v1231_v58 = vmax.f32 %v974_v32, %v986_v26  ;;  %v988_v49 = vpop.f32.mrb[129].mxu1  ;;  %v1868_v36 = vld [vmem:[#allocation2 + $0xc8] sm:$0xff]  ;;  %v6969_v26 = vld [vmem:[%s14514_s3 + $0x738] sm:$0xff] }
 0x202   :  { %v1232_v3 = vmax.f32 %v976_v9, %v988_v49  ;;  %6860 = vmatprep.mubr.msk.f32.mxu0 %vm1604_vm1, %v1868_v36  ;;  %6888 = vmatprep.mubr.msk.f32.mxu1 %vm1604_vm1, %v1868_v36  ;;  %v7893_v9 = vpack.c.bf16 %v1843_v60, %v1839_v51  ;;  %v8009_v6 = vpack.c.bf16 %v6969_v26, %v6965_v15 }
 0x203   :  { %v1365_v62 = vadd.f32 %v11043_v55, %v1231_v58  ;;  %2225 = vmatmul.mubr.f32.gmra.mrb[48].mxu0 %v1563_v21  ;;  %2458 = vmatmul.mubr.f32.gmra.mrb[216].mxu1 %v1563_v21  ;;  %v14716_v21 = vld [vmem:[#allocation14_spill] sm:$0xff]  ;;  %v14723_v58 = vmax.f32 %v14721_v23, %v14722_v12  ;;  %v14738_v15 = vmax.f32 %v14736_v59, %v14737_v17 }
 0x204   :  { %v1366_v42 = vadd.f32 %v11060_v4, %v1232_v3  ;;  %v992_v28 = vpop.f32.mrb[130].mxu1  ;;  %v14717_v16 = vmax.f32 %v14715_v61, %v14716_v21  ;;  %7894 = vmatprep.subr.bf16.mxu0 %v7893_v9  ;;  %v14724_v3 = vld [vmem:[#allocation17_spill] sm:$0xff]  ;;  %v14727_v61 = vld [vmem:[#allocation18_spill] sm:$0xff] }
 0x205   :  { %v1477_v48 = vmax.f32 %v1365_v62, 0.0  ;;  %v1235_v32 = vmax.f32 %v11447_v13, %v992_v28  ;;  %v994_v0 = vpop.f32.mrb[131].mxu1  ;;  %v1870_v10 = vld [vmem:[#allocation2 + $0xd8] sm:$0xff]  ;;  %v7949_v13 = vpack.c.bf16 %v1845_v53, %v1841_v43  ;;  %7896 = vmatpush1.bf16.msra.mxu0 %v7895_v7  ;;  %v1371_v49 = vadd.f32 %v11010_v24, %v14723_v58  ;;  %v14725_v62 = vld [vmem:[#allocation21_spill] sm:$0xff]  ;;  %v14730_v53 = vld [vmem:[#allocation19_spill] sm:$0xff] }
 0x206   :  { %v1367_v38 = vadd.f32 %v11010_v24, %v14717_v16  ;;  %v1478_v50 = vmax.f32 %v1366_v42, 0.0  ;;  %v1236_v54 = vmax.f32 %v11450_v30, %v994_v0  ;;  %6861 = vmatprep.mubr.msk.f32.mxu0 %vm1604_vm1, %v1870_v10  ;;  %6889 = vmatprep.mubr.msk.f32.mxu1 %vm1604_vm1, %v1870_v10  ;;  %v14728_v21 = vld [vmem:[#allocation22_spill] sm:$0xff]  ;;  %v14732_v39 = vmax.f32 %v14730_v53, %v14731_v19 }
 0x207   :  { %v1567_v2 = vmax.f32 %v1475_v37, %v1477_v48  ;;  %v1369_v30 = vadd.f32 %v11043_v55, %v1235_v32  ;;  %2231 = vmatmul.mubr.f32.gmra.mrb[50].mxu0 %v11442_v22  ;;  %2464 = vmatmul.mubr.f32.gmra.mrb[218].mxu1 %v11442_v22  ;;  %v14726_v37 = vmax.f32 %v14724_v3, %v14725_v62  ;;  %v1483_v43 = vmax.f32 %v1371_v49, 0.0  ;;  %v14739_v58 = vld [vmem:[#allocation26_spill] sm:$0xff]  ;;  %v14740_v49 = vld [vmem:[#allocation3_spill] sm:$0xff] }
 0x208   :  { %v1568_v14 = vmax.f32 %v1476_v25, %v1478_v50  ;;  %v1370_v56 = vadd.f32 %v11060_v4, %v1236_v54  ;;  %v998_v52 = vpop.f32.mrb[132].mxu1  ;;  %7950 = vmatprep.subr.bf16.mxu1 %v7949_v13  ;;  %v1479_v35 = vmax.f32 %v1367_v38, 0.0  ;;  %7954 = vmatprep.subr.bf16.mxu0 %v7953_v8  ;;  %v14729_v16 = vmax.f32 %v14727_v61, %v14728_v21 }
 0x209   :  { %1642 = vst [vmem:[#allocation2 + $0xe0] sm:$0xff] %v1567_v2  ;;  %v1481_v41 = vmax.f32 %v1369_v30, 0.0  ;;  %v1000_v18 = vpop.f32.mrb[133].mxu1  ;;  %7952 = vmatpush1.bf16.msra.mxu1 %v7951_v40  ;;  %v1372_v25 = vadd.f32 %v11025_v20, %v14726_v37  ;;  %v1376_v34 = vadd.f32 %v11025_v20, %v14732_v39  ;;  %v1380_v8 = vadd.f32 %v11025_v20, %v14738_v15 }
 0x20a   :  { %1643 = vst.msk [vmem:[#allocation2 + $0xe8] sm:$0xff] %vm1604_vm1, %v1568_v14  ;;  %v1482_v5 = vmax.f32 %v1370_v56, 0.0  ;;  %8010 = vmatprep.subr.bf16.mxu1 %v8009_v6  ;;  %v1375_v38 = vadd.f32 %v11010_v24, %v14729_v16 }
 0x20b   :  { %v1569_v31 = vmax.f32 %v1479_v35, %v1481_v41  ;;  %v1484_v9 = vmax.f32 %v1372_v25, 0.0  ;;  %v1488_v7 = vmax.f32 %v1376_v34, 0.0  ;;  %v1492_v25 = vmax.f32 %v1380_v8, 0.0 }
 0x20c   :  { %v1570_v22 = vmax.f32 %v1480_v46, %v1482_v5  ;;  %v1004_v44 = vpop.f32.mrb[134].mxu1  ;;  %v1487_v1 = vmax.f32 %v1375_v38, 0.0  ;;  %v14734_v46 = vld [vmem:[#allocation28_spill] sm:$0xff] }
 0x20d   :  { %1644 = vst [vmem:[#allocation2 + $0xf0] sm:$0xff] %v1569_v31  ;;  %v1006_v29 = vpop.f32.mrb[135].mxu1 }
 0x20e   :  { %1645 = vst.msk [vmem:[#allocation2 + $0xf8] sm:$0xff] %vm1604_vm1, %v1570_v22 }
 0x210   :  { %v1010_v33 = vpop.f32.mrb[136].mxu1 }
 0x211   :  { %v1239_v36 = vmax.f32 %v998_v52, %v1010_v33  ;;  %v1012_v27 = vpop.f32.mrb[137].mxu1  ;;  %v1872_v47 = vld [vmem:[#allocation2 + $0xe8] sm:$0xff] }
 0x212   :  { %v1240_v42 = vmax.f32 %v1000_v18, %v1012_v27  ;;  %6862 = vmatprep.mubr.msk.f32.mxu0 %vm1604_vm1, %v1872_v47  ;;  %6890 = vmatprep.mubr.msk.f32.mxu1 %vm1604_vm1, %v1872_v47  ;;  %v14733_v18 = vld [vmem:[#allocation24_spill] sm:$0xff] }
 0x213   :  { %v1373_v28 = vadd.f32 %v11043_v55, %v1239_v36  ;;  %2237 = vmatmul.mubr.f32.gmra.mrb[52].mxu0 %v1567_v2  ;;  %2470 = vmatmul.mubr.f32.gmra.mrb[220].mxu1 %v1567_v2  ;;  %v14735_v5 = vmax.f32 %v14733_v18, %v14734_v46  ;;  %v14741_v36 = vmax.f32 %v14739_v58, %v14740_v49 }
 0x214   :  { %v1374_v51 = vadd.f32 %v11060_v4, %v1240_v42  ;;  %v1016_v60 = vpop.f32.mrb[138].mxu1  ;;  %v14742_v42 = vld [vmem:[#allocation27_spill] sm:$0xff] }
 0x215   :  { %v1485_v48 = vmax.f32 %v1373_v28, 0.0  ;;  %v1243_v32 = vmax.f32 %v1004_v44, %v1016_v60  ;;  %v1018_v0 = vpop.f32.mrb[139].mxu1  ;;  %v1874_v10 = vld [vmem:[#allocation2 + $0xf8] sm:$0xff]  ;;  %v1383_v27 = vadd.f32 %v11010_v24, %v14741_v36  ;;  %v14743_v28 = vld [vmem:[#allocation4_spill] sm:$0xff] }
 0x216   :  { %v1486_v11 = vmax.f32 %v1374_v51, 0.0  ;;  %v1244_v45 = vmax.f32 %v1006_v29, %v1018_v0  ;;  %6863 = vmatprep.mubr.msk.f32.mxu0 %vm1604_vm1, %v1874_v10  ;;  %6891 = vmatprep.mubr.msk.f32.mxu1 %vm1604_vm1, %v1874_v10  ;;  %v14744_v51 = vmax.f32 %v14742_v42, %v14743_v28 }
 0x217   :  { %v1571_v50 = vmax.f32 %v1483_v43, %v1485_v48  ;;  %v1377_v54 = vadd.f32 %v11043_v55, %v1243_v32  ;;  %2243 = vmatmul.mubr.f32.gmra.mrb[54].mxu0 %v1569_v31  ;;  %2476 = vmatmul.mubr.f32.gmra.mrb[222].mxu1 %v1569_v31  ;;  %v1379_v31 = vadd.f32 %v11010_v24, %v14735_v5  ;;  %v1495_v0 = vmax.f32 %v1383_v27, 0.0  ;;  %v14751_v5 = vld [vmem:[#allocation30_spill] sm:$0xff] }
 0x218   :  { %v1572_v13 = vmax.f32 %v1484_v9, %v1486_v11  ;;  %v1378_v57 = vadd.f32 %v11060_v4, %v1244_v45  ;;  %v1022_v63 = vpop.f32.mrb[140].mxu1  ;;  %v1384_v60 = vadd.f32 %v11025_v20, %v14744_v51 }
 0x219   :  { %1646 = vst [vmem:[#allocation2 + $0x100] sm:$0xff] %v1571_v50  ;;  %v1489_v2 = vmax.f32 %v1377_v54, 0.0  ;;  %v1024_v30 = vpop.f32.mrb[141].mxu1  ;;  %v1491_v12 = vmax.f32 %v1379_v31, 0.0  ;;  %v14745_v54 = vld [vmem:[#allocation5_spill] sm:$0xff]  ;;  %v14752_v31 = vld [vmem:[#allocation34_spill] sm:$0xff] }
 0x21a   :  { %1647 = vst.msk [vmem:[#allocation2 + $0x108] sm:$0xff] %vm1604_vm1, %v1572_v13  ;;  %v1490_v14 = vmax.f32 %v1378_v57, 0.0  ;;  %v1496_v53 = vmax.f32 %v1384_v60, 0.0  ;;  %v14746_v13 = vld [vmem:[#allocation32_spill] sm:$0xff] }
 0x21b   :  { %v1573_v56 = vmax.f32 %v1487_v1, %v1489_v2  ;;  %v14747_v57 = vmax.f32 %v14745_v54, %v14746_v13 }
 0x21c   :  { %v1574_v52 = vmax.f32 %v1488_v7, %v1490_v14  ;;  %v1028_v40 = vpop.f32.mrb[142].mxu1  ;;  %v14748_v7 = vld [vmem:[#allocation6_spill] sm:$0xff]  ;;  %v14749_v14 = vld [vmem:[#allocation33_spill] sm:$0xff] }
 0x21d   :  { %1648 = vst [vmem:[#allocation2 + $0x110] sm:$0xff] %v1573_v56  ;;  %v1030_v35 = vpop.f32.mrb[143].mxu1 }
 0x21e   :  { %1649 = vst.msk [vmem:[#allocation2 + $0x118] sm:$0xff] %vm1604_vm1, %v1574_v52 }
 0x220   :  { %v1034_v41 = vpop.f32.mrb[144].mxu1 }
 0x221   :  { %v1247_v22 = vmax.f32 %v1022_v63, %v1034_v41  ;;  %v1036_v44 = vpop.f32.mrb[145].mxu1  ;;  %v1876_v29 = vld [vmem:[#allocation2 + $0x108] sm:$0xff]  ;;  %v1387_v63 = vadd.f32 %v11010_v24, %v14747_v57  ;;  %v14763_v57 = vld [vmem:[#allocation38_spill] sm:$0xff] }
 0x222   :  { %v1248_v26 = vmax.f32 %v1024_v30, %v1036_v44  ;;  %6864 = vmatprep.mubr.msk.f32.mxu0 %vm1604_vm1, %v1876_v29  ;;  %6892 = vmatprep.mubr.msk.f32.mxu1 %vm1604_vm1, %v1876_v29 }
 0x223   :  { %v1381_v33 = vadd.f32 %v11043_v55, %v1247_v22  ;;  %2249 = vmatmul.mubr.f32.gmra.mrb[56].mxu0 %v1571_v50  ;;  %2482 = vmatmul.mubr.f32.gmra.mrb[224].mxu1 %v1571_v50  ;;  %v1499_v46 = vmax.f32 %v1387_v63, 0.0  ;;  %v14753_v22 = vmax.f32 %v14751_v5, %v14752_v31  ;;  %v14764_v63 = vld [vmem:[#allocation42_spill] sm:$0xff] }
 0x224   :  { %v1382_v6 = vadd.f32 %v11060_v4, %v1248_v26  ;;  %v1040_v23 = vpop.f32.mrb[146].mxu1  ;;  %v14754_v26 = vld [vmem:[#allocation31_spill] sm:$0xff] }
 0x225   :  { %v1493_v47 = vmax.f32 %v1381_v33, 0.0  ;;  %v1251_v3 = vmax.f32 %v1028_v40, %v1040_v23  ;;  %v1042_v62 = vpop.f32.mrb[147].mxu1  ;;  %v1878_v37 = vld [vmem:[#allocation2 + $0x118] sm:$0xff]  ;;  %v1391_v44 = vadd.f32 %v11010_v24, %v14753_v22  ;;  %v14755_v33 = vld [vmem:[#allocation35_spill] sm:$0xff] }
 0x226   :  { %v1494_v43 = vmax.f32 %v1382_v6, 0.0  ;;  %v1252_v61 = vmax.f32 %v1030_v35, %v1042_v62  ;;  %6865 = vmatprep.mubr.msk.f32.mxu0 %vm1604_vm1, %v1878_v37  ;;  %6893 = vmatprep.mubr.msk.f32.mxu1 %vm1604_vm1, %v1878_v37  ;;  %v14756_v6 = vmax.f32 %v14754_v26, %v14755_v33 }
 0x227   :  { %v1575_v21 = vmax.f32 %v1491_v12, %v1493_v47  ;;  %v1385_v16 = vadd.f32 %v11043_v55, %v1251_v3  ;;  %2255 = vmatmul.mubr.f32.gmra.mrb[58].mxu0 %v1573_v56  ;;  %2488 = vmatmul.mubr.f32.gmra.mrb[226].mxu1 %v1573_v56  ;;  %v14750_v56 = vmax.f32 %v14748_v7, %v14749_v14  ;;  %v1503_v62 = vmax.f32 %v1391_v44, 0.0 }
 0x228   :  { %v1576_v38 = vmax.f32 %v1492_v25, %v1494_v43  ;;  %v1386_v48 = vadd.f32 %v11060_v4, %v1252_v61  ;;  %v1046_v32 = vpop.f32.mrb[148].mxu1  ;;  %v1392_v23 = vadd.f32 %v11025_v20, %v14756_v6 }
 0x229   :  { %1650 = vst [vmem:[#allocation2 + $0x120] sm:$0xff] %v1575_v21  ;;  %v1497_v10 = vmax.f32 %v1385_v16, 0.0  ;;  %v1048_v9 = vpop.f32.mrb[149].mxu1  ;;  %v1388_v52 = vadd.f32 %v11025_v20, %v14750_v56  ;;  %v14757_v16 = vld [vmem:[#allocation36_spill] sm:$0xff] }
 0x22a   :  { %1651 = vst.msk [vmem:[#allocation2 + $0x128] sm:$0xff] %vm1604_vm1, %v1576_v38  ;;  %v1498_v19 = vmax.f32 %v1386_v48, 0.0  ;;  %v1504_v42 = vmax.f32 %v1392_v23, 0.0  ;;  %v14758_v38 = vld [vmem:[#allocation40_spill] sm:$0xff] }
 0x22b   :  { %v1577_v39 = vmax.f32 %v1495_v0, %v1497_v10  ;;  %v1500_v8 = vmax.f32 %v1388_v52, 0.0  ;;  %v14759_v48 = vmax.f32 %v14757_v16, %v14758_v38 }
 0x22c   :  { %v1578_v34 = vmax.f32 %v1496_v53, %v1498_v19  ;;  %v1052_v11 = vpop.f32.mrb[150].mxu1  ;;  %v14760_v53 = vld [vmem:[#allocation37_spill] sm:$0xff] }
 0x22d   :  { %1652 = vst [vmem:[#allocation2 + $0x130] sm:$0xff] %v1577_v39  ;;  %v1054_v45 = vpop.f32.mrb[151].mxu1  ;;  %v14761_v19 = vld [vmem:[#allocation41_spill] sm:$0xff] }
 0x22e   :  { %1653 = vst.msk [vmem:[#allocation2 + $0x138] sm:$0xff] %vm1604_vm1, %v1578_v34 }
 0x230   :  { %v1058_v50 = vpop.f32.mrb[152].mxu1 }
 0x231   :  { %v1255_v1 = vmax.f32 %v1046_v32, %v1058_v50  ;;  %v1060_v2 = vpop.f32.mrb[153].mxu1  ;;  %v1880_v30 = vld [vmem:[#allocation2 + $0x128] sm:$0xff]  ;;  %v1395_v32 = vadd.f32 %v11010_v24, %v14759_v48  ;;  %v14775_v48 = vld [vmem:[#allocation46_spill] sm:$0xff] }
 0x232   :  { %v1256_v40 = vmax.f32 %v1048_v9, %v1060_v2  ;;  %6866 = vmatprep.mubr.msk.f32.mxu0 %vm1604_vm1, %v1880_v30  ;;  %6894 = vmatprep.mubr.msk.f32.mxu1 %vm1604_vm1, %v1880_v30 }
 0x233   :  { %v1389_v35 = vadd.f32 %v11043_v55, %v1255_v1  ;;  %2261 = vmatmul.mubr.f32.gmra.mrb[60].mxu0 %v1575_v21  ;;  %2494 = vmatmul.mubr.f32.gmra.mrb[228].mxu1 %v1575_v21  ;;  %v1507_v13 = vmax.f32 %v1395_v32, 0.0  ;;  %v14765_v1 = vmax.f32 %v14763_v57, %v14764_v63  ;;  %v14776_v32 = vld [vmem:[#allocation50_spill] sm:$0xff] }
 0x234   :  { %v1390_v41 = vadd.f32 %v11060_v4, %v1256_v40  ;;  %v1064_v18 = vpop.f32.mrb[154].mxu1  ;;  %v14766_v40 = vld [vmem:[#allocation39_spill] sm:$0xff] }
 0x235   :  { %v1501_v29 = vmax.f32 %v1389_v35, 0.0  ;;  %v1259_v59 = vmax.f32 %v1052_v11, %v1064_v18  ;;  %v1066_v17 = vpop.f32.mrb[155].mxu1  ;;  %v1882_v15 = vld [vmem:[#allocation2 + $0x138] sm:$0xff]  ;;  %v1399_v2 = vadd.f32 %v11010_v24, %v14765_v1  ;;  %v14767_v35 = vld [vmem:[#allocation43_spill] sm:$0xff] }
 0x236   :  { %v1502_v12 = vmax.f32 %v1390_v41, 0.0  ;;  %v1260_v58 = vmax.f32 %v1054_v45, %v1066_v17  ;;  %6867 = vmatprep.mubr.msk.f32.mxu0 %vm1604_vm1, %v1882_v15  ;;  %6895 = vmatprep.mubr.msk.f32.mxu1 %vm1604_vm1, %v1882_v15  ;;  %v14768_v41 = vmax.f32 %v14766_v40, %v14767_v35 }
 0x237   :  { %v1579_v49 = vmax.f32 %v1499_v46, %v1501_v29  ;;  %v1393_v36 = vadd.f32 %v11043_v55, %v1259_v59  ;;  %2267 = vmatmul.mubr.f32.gmra.mrb[62].mxu0 %v1577_v39  ;;  %2500 = vmatmul.mubr.f32.gmra.mrb[230].mxu1 %v1577_v39  ;;  %v14762_v39 = vmax.f32 %v14760_v53, %v14761_v19  ;;  %v1511_v17 = vmax.f32 %v1399_v2, 0.0 }
 0x238   :  { %v1580_v27 = vmax.f32 %v1500_v8, %v1502_v12  ;;  %v1394_v47 = vadd.f32 %v11060_v4, %v1260_v58  ;;  %v1070_v3 = vpop.f32.mrb[156].mxu1  ;;  %v1400_v18 = vadd.f32 %v11025_v20, %v14768_v41 }
 0x239   :  { %1654 = vst [vmem:[#allocation2 + $0x140] sm:$0xff] %v1579_v49  ;;  %v1505_v37 = vmax.f32 %v1393_v36, 0.0  ;;  %v1072_v25 = vpop.f32.mrb[157].mxu1  ;;  %v1396_v34 = vadd.f32 %v11025_v20, %v14762_v39  ;;  %v14769_v36 = vld [vmem:[#allocation44_spill] sm:$0xff] }
 0x23a   :  { %1655 = vst.msk [vmem:[#allocation2 + $0x148] sm:$0xff] %vm1604_vm1, %v1580_v27  ;;  %v1506_v28 = vmax.f32 %v1394_v47, 0.0  ;;  %v1512_v26 = vmax.f32 %v1400_v18, 0.0  ;;  %v14770_v27 = vld [vmem:[#allocation48_spill] sm:$0xff] }
 0x23b   :  { %v1581_v51 = vmax.f32 %v1503_v62, %v1505_v37  ;;  %v1508_v52 = vmax.f32 %v1396_v34, 0.0  ;;  %v14771_v47 = vmax.f32 %v14769_v36, %v14770_v27 }
 0x23c   :  { %v1582_v60 = vmax.f32 %v1504_v42, %v1506_v28  ;;  %v1076_v43 = vpop.f32.mrb[158].mxu1  ;;  %v14772_v42 = vld [vmem:[#allocation45_spill] sm:$0xff] }
 0x23d   :  { %1656 = vst [vmem:[#allocation2 + $0x150] sm:$0xff] %v1581_v51  ;;  %v1078_v61 = vpop.f32.mrb[159].mxu1  ;;  %v14773_v28 = vld [vmem:[#allocation49_spill] sm:$0xff] }
 0x23e   :  { %1657 = vst.msk [vmem:[#allocation2 + $0x158] sm:$0xff] %vm1604_vm1, %v1582_v60 }
 0x240   :  { %v1082_v21 = vpop.f32.mrb[160].mxu1 }
 0x241   :  { %v1263_v0 = vmax.f32 %v1070_v3, %v1082_v21  ;;  %v1084_v10 = vpop.f32.mrb[161].mxu1  ;;  %v1884_v9 = vld [vmem:[#allocation2 + $0x148] sm:$0xff]  ;;  %v1403_v3 = vadd.f32 %v11010_v24, %v14771_v47  ;;  %v14787_v47 = vld [vmem:[#allocation54_spill] sm:$0xff] }
 0x242   :  { %v1264_v11 = vmax.f32 %v1072_v25, %v1084_v10  ;;  %6868 = vmatprep.mubr.msk.f32.mxu0 %vm1604_vm1, %v1884_v9  ;;  %6896 = vmatprep.mubr.msk.f32.mxu1 %vm1604_vm1, %v1884_v9 }
 0x243   :  { %v1397_v45 = vadd.f32 %v11043_v55, %v1263_v0  ;;  %2273 = vmatmul.mubr.f32.gmra.mrb[64].mxu0 %v1579_v49  ;;  %2506 = vmatmul.mubr.f32.gmra.mrb[232].mxu1 %v1579_v49  ;;  %v1515_v38 = vmax.f32 %v1403_v3, 0.0  ;;  %v14777_v0 = vmax.f32 %v14775_v48, %v14776_v32  ;;  %v14788_v3 = vld [vmem:[#allocation58_spill] sm:$0xff] }
 0x244   :  { %v1398_v50 = vadd.f32 %v11060_v4, %v1264_v11  ;;  %v1088_v54 = vpop.f32.mrb[162].mxu1  ;;  %v14778_v11 = vld [vmem:[#allocation47_spill] sm:$0xff] }
 0x245   :  { %v1509_v30 = vmax.f32 %v1397_v45, 0.0  ;;  %v1267_v7 = vmax.f32 %v1076_v43, %v1088_v54  ;;  %v1090_v14 = vpop.f32.mrb[163].mxu1  ;;  %v1886_v56 = vld [vmem:[#allocation2 + $0x158] sm:$0xff]  ;;  %v1407_v10 = vadd.f32 %v11010_v24, %v14777_v0  ;;  %v14779_v45 = vld [vmem:[#allocation51_spill] sm:$0xff] }
 0x246   :  { %v1510_v46 = vmax.f32 %v1398_v50, 0.0  ;;  %v1268_v5 = vmax.f32 %v1078_v61, %v1090_v14  ;;  %6869 = vmatprep.mubr.msk.f32.mxu0 %vm1604_vm1, %v1886_v56  ;;  %6897 = vmatprep.mubr.msk.f32.mxu1 %vm1604_vm1, %v1886_v56  ;;  %v14780_v50 = vmax.f32 %v14778_v11, %v14779_v45 }
 0x247   :  { %v1583_v31 = vmax.f32 %v1507_v13, %v1509_v30  ;;  %v1401_v22 = vadd.f32 %v11043_v55, %v1267_v7  ;;  %2279 = vmatmul.mubr.f32.gmra.mrb[66].mxu0 %v1581_v51  ;;  %2512 = vmatmul.mubr.f32.gmra.mrb[234].mxu1 %v1581_v51  ;;  %v14774_v51 = vmax.f32 %v14772_v42, %v14773_v28  ;;  %v1519_v14 = vmax.f32 %v1407_v10, 0.0 }
 0x248   :  { %v1584_v44 = vmax.f32 %v1508_v52, %v1510_v46  ;;  %v1402_v29 = vadd.f32 %v11060_v4, %v1268_v5  ;;  %v1094_v59 = vpop.f32.mrb[164].mxu1  ;;  %v1408_v54 = vadd.f32 %v11025_v20, %v14780_v50 }
 0x249   :  { %1658 = vst [vmem:[#allocation2 + $0x160] sm:$0xff] %v1583_v31  ;;  %v1513_v15 = vmax.f32 %v1401_v22, 0.0  ;;  %v1096_v8 = vpop.f32.mrb[165].mxu1  ;;  %v1404_v60 = vadd.f32 %v11025_v20, %v14774_v51  ;;  %v14781_v22 = vld [vmem:[#allocation52_spill] sm:$0xff] }
 0x24a   :  { %1659 = vst.msk [vmem:[#allocation2 + $0x168] sm:$0xff] %vm1604_vm1, %v1584_v44  ;;  %v1514_v33 = vmax.f32 %v1402_v29, 0.0  ;;  %v1520_v40 = vmax.f32 %v1408_v54, 0.0  ;;  %v14782_v44 = vld [vmem:[#allocation56_spill] sm:$0xff] }
 0x24b   :  { %v1585_v6 = vmax.f32 %v1511_v17, %v1513_v15  ;;  %v1516_v34 = vmax.f32 %v1404_v60, 0.0  ;;  %v14783_v29 = vmax.f32 %v14781_v22, %v14782_v44 }
 0x24c   :  { %v1586_v23 = vmax.f32 %v1512_v26, %v1514_v33  ;;  %v1100_v12 = vpop.f32.mrb[166].mxu1  ;;  %v14784_v26 = vld [vmem:[#allocation53_spill] sm:$0xff] }
 0x24d   :  { %1660 = vst [vmem:[#allocation2 + $0x170] sm:$0xff] %v1585_v6  ;;  %v1102_v58 = vpop.f32.mrb[167].mxu1  ;;  %v14785_v33 = vld [vmem:[#allocation57_spill] sm:$0xff] }
 0x24e   :  { %1661 = vst.msk [vmem:[#allocation2 + $0x178] sm:$0xff] %vm1604_vm1, %v1586_v23 }
 0x250   :  { %v1106_v49 = vpop.f32.mrb[168].mxu1 }
 0x251   :  { %v1271_v62 = vmax.f32 %v1094_v59, %v1106_v49  ;;  %v1108_v37 = vpop.f32.mrb[169].mxu1  ;;  %v1888_v25 = vld [vmem:[#allocation2 + $0x168] sm:$0xff]  ;;  %v1411_v59 = vadd.f32 %v11010_v24, %v14783_v29  ;;  %v14799_v29 = vld [vmem:[#allocation62_spill] sm:$0xff] }
 0x252   :  { %v1272_v43 = vmax.f32 %v1096_v8, %v1108_v37  ;;  %6870 = vmatprep.mubr.msk.f32.mxu0 %vm1604_vm1, %v1888_v25  ;;  %6898 = vmatprep.mubr.msk.f32.mxu1 %vm1604_vm1, %v1888_v25 }
 0x253   :  { %v1405_v61 = vadd.f32 %v11043_v55, %v1271_v62  ;;  %2285 = vmatmul.mubr.f32.gmra.mrb[68].mxu0 %v1583_v31  ;;  %2518 = vmatmul.mubr.f32.gmra.mrb[236].mxu1 %v1583_v31  ;;  %v1523_v27 = vmax.f32 %v1411_v59, 0.0  ;;  %v14789_v62 = vmax.f32 %v14787_v47, %v14788_v3  ;;  %v14800_v59 = vld [vmem:[#allocation66_spill] sm:$0xff] }
 0x254   :  { %v1406_v21 = vadd.f32 %v11060_v4, %v1272_v43  ;;  %v1112_v16 = vpop.f32.mrb[170].mxu1  ;;  %v14790_v43 = vld [vmem:[#allocation55_spill] sm:$0xff] }
 0x255   :  { %v1517_v9 = vmax.f32 %v1405_v61, 0.0  ;;  %v1275_v53 = vmax.f32 %v1100_v12, %v1112_v16  ;;  %v1114_v19 = vpop.f32.mrb[171].mxu1  ;;  %v1890_v39 = vld [vmem:[#allocation2 + $0x178] sm:$0xff]  ;;  %v1415_v37 = vadd.f32 %v11010_v24, %v14789_v62  ;;  %v14791_v61 = vld [vmem:[#allocation59_spill] sm:$0xff] }
 0x256   :  { %v1518_v13 = vmax.f32 %v1406_v21, 0.0  ;;  %v1276_v57 = vmax.f32 %v1102_v58, %v1114_v19  ;;  %6871 = vmatprep.mubr.msk.f32.mxu0 %vm1604_vm1, %v1890_v39  ;;  %6899 = vmatprep.mubr.msk.f32.mxu1 %vm1604_vm1, %v1890_v39  ;;  %v14792_v21 = vmax.f32 %v14790_v43, %v14791_v61 }
 0x257   :  { %v1587_v63 = vmax.f32 %v1515_v38, %v1517_v9  ;;  %v1409_v1 = vadd.f32 %v11043_v55, %v1275_v53  ;;  %2291 = vmatmul.mubr.f32.gmra.mrb[70].mxu0 %v1585_v6  ;;  %2524 = vmatmul.mubr.f32.gmra.mrb[238].mxu1 %v1585_v6  ;;  %v14786_v6 = vmax.f32 %v14784_v26, %v14785_v33  ;;  %v1527_v19 = vmax.f32 %v1415_v37, 0.0 }
 0x258   :  { %v1588_v2 = vmax.f32 %v1516_v34, %v1518_v13  ;;  %v1410_v30 = vadd.f32 %v11060_v4, %v1276_v57  ;;  %v1118_v7 = vpop.f32.mrb[172].mxu1  ;;  %v1416_v16 = vadd.f32 %v11025_v20, %v14792_v21 }
 0x259   :  { %1662 = vst [vmem:[#allocation2 + $0x180] sm:$0xff] %v1587_v63  ;;  %v1521_v56 = vmax.f32 %v1409_v1, 0.0  ;;  %v1120_v52 = vpop.f32.mrb[173].mxu1  ;;  %v1412_v23 = vadd.f32 %v11025_v20, %v14786_v6  ;;  %v14793_v1 = vld [vmem:[#allocation60_spill] sm:$0xff] }
 0x25a   :  { %1663 = vst.msk [vmem:[#allocation2 + $0x188] sm:$0xff] %vm1604_vm1, %v1588_v2  ;;  %v1522_v35 = vmax.f32 %v1410_v30, 0.0  ;;  %v1528_v11 = vmax.f32 %v1416_v16, 0.0  ;;  %v14794_v2 = vld [vmem:[#allocation64_spill] sm:$0xff] }
 0x25b   :  { %v1589_v41 = vmax.f32 %v1519_v14, %v1521_v56  ;;  %v1524_v60 = vmax.f32 %v1412_v23, 0.0  ;;  %v14795_v30 = vmax.f32 %v14793_v1, %v14794_v2 }
 0x25c   :  { %v1590_v18 = vmax.f32 %v1520_v40, %v1522_v35  ;;  %v1124_v46 = vpop.f32.mrb[174].mxu1  ;;  %v14796_v40 = vld [vmem:[#allocation61_spill] sm:$0xff] }
 0x25d   :  { %1664 = vst [vmem:[#allocation2 + $0x190] sm:$0xff] %v1589_v41  ;;  %v1126_v5 = vpop.f32.mrb[175].mxu1  ;;  %v14797_v35 = vld [vmem:[#allocation65_spill] sm:$0xff] }
 0x25e   :  { %1665 = vst.msk [vmem:[#allocation2 + $0x198] sm:$0xff] %vm1604_vm1, %v1590_v18 }
 0x260   :  { %v1130_v31 = vpop.f32.mrb[176].mxu1 }
 0x261   :  { %v1279_v17 = vmax.f32 %v1118_v7, %v1130_v31  ;;  %v1132_v15 = vpop.f32.mrb[177].mxu1  ;;  %v1892_v8 = vld [vmem:[#allocation2 + $0x188] sm:$0xff]  ;;  %v1419_v7 = vadd.f32 %v11010_v24, %v14795_v30 }
 0x262   :  { %v1280_v12 = vmax.f32 %v1120_v52, %v1132_v15  ;;  %6872 = vmatprep.mubr.msk.f32.mxu0 %vm1604_vm1, %v1892_v8  ;;  %6900 = vmatprep.mubr.msk.f32.mxu1 %vm1604_vm1, %v1892_v8  ;;  %v1679_v30 = vld [vmem:[#allocation2 + $0x8] sm:$0xff] }
 0x263   :  { %v1413_v58 = vadd.f32 %v11043_v55, %v1279_v17  ;;  %2297 = vmatmul.mubr.f32.gmra.mrb[72].mxu0 %v1587_v63  ;;  %2530 = vmatmul.mubr.f32.gmra.mrb[240].mxu1 %v1587_v63  ;;  %v1531_v44 = vmax.f32 %v1419_v7, 0.0  ;;  %v14801_v17 = vmax.f32 %v14799_v29, %v14800_v59  ;;  %v6962_v7 = vld [vmem:[%s14514_s3 + $0x700] sm:$0xff]  ;;  %v6968_v29 = vld [vmem:[%s14514_s3 + $0x730] sm:$0xff] }
 0x264   :  { %v1414_v49 = vadd.f32 %v11060_v4, %v1280_v12  ;;  %v1136_v36 = vpop.f32.mrb[178].mxu1  ;;  %v14802_v12 = vld [vmem:[#allocation63_spill] sm:$0xff] }
 0x265   :  { %v1525_v25 = vmax.f32 %v1413_v58, 0.0  ;;  %v1283_v42 = vmax.f32 %v1124_v46, %v1136_v36  ;;  %v1138_v28 = vpop.f32.mrb[179].mxu1  ;;  %v11701_v51 = vld [vmem:[#allocation2 + $0x198] sm:$0xff]  ;;  %v1423_v15 = vadd.f32 %v11010_v24, %v14801_v17  ;;  %v14803_v58 = vld [vmem:[#allocation67_spill] sm:$0xff] }
 0x266   :  { %v1526_v38 = vmax.f32 %v1414_v49, 0.0  ;;  %v1284_v48 = vmax.f32 %v1126_v5, %v1138_v28  ;;  %6873 = vmatprep.mubr.msk.f32.mxu0 %vm1604_vm1, %v11701_v51  ;;  %6901 = vmatprep.mubr.msk.f32.mxu1 %vm1604_vm1, %v11701_v51  ;;  %v14804_v49 = vmax.f32 %v14802_v12, %v14803_v58  ;;  %v14814_v17 = vld [vmem:[#allocation71_spill] sm:$0xff] }
 0x267   :  { %v1591_v32 = vmax.f32 %v1523_v27, %v1525_v25  ;;  %v1417_v0 = vadd.f32 %v11043_v55, %v1283_v42  ;;  %2303 = vmatmul.mubr.f32.gmra.mrb[74].mxu0 %v1589_v41  ;;  %2536 = vmatmul.mubr.f32.gmra.mrb[242].mxu1 %v1589_v41  ;;  %v14798_v41 = vmax.f32 %v14796_v40, %v14797_v35  ;;  %v1535_v28 = vmax.f32 %v1423_v15, 0.0  ;;  %v14811_v40 = vld [vmem:[#allocation70_spill] sm:$0xff]  ;;  %v14815_v15 = vld [vmem:[#allocation76_spill] sm:$0xff] }
 0x268   :  { %v1592_v10 = vmax.f32 %v1524_v60, %v1526_v38  ;;  %v1418_v9 = vadd.f32 %v11060_v4, %v1284_v48  ;;  %v1142_v53 = vpop.f32.mrb[180].mxu1  ;;  %v1424_v36 = vadd.f32 %v11025_v20, %v14804_v49  ;;  %v14812_v35 = vld [vmem:[#allocation74_spill] sm:$0xff] }
 0x269   :  { %1666 = vst [vmem:[#allocation2 + $0x1a0] sm:$0xff] %v1591_v32  ;;  %v1529_v39 = vmax.f32 %v1417_v0, 0.0  ;;  %v1144_v34 = vpop.f32.mrb[181].mxu1  ;;  %v1420_v18 = vadd.f32 %v11025_v20, %v14798_v41  ;;  %v14813_v41 = vmax.f32 %v14811_v40, %v14812_v35  ;;  %v6986_v40 = vld [vmem:[%s14514_s3 + $0x7c0] sm:$0xff] }
 0x26a   :  { %1667 = vst.msk [vmem:[#allocation2 + $0x1a8] sm:$0xff] %vm1604_vm1, %v1592_v10  ;;  %v1530_v45 = vmax.f32 %v1418_v9, 0.0  ;;  %v1536_v61 = vmax.f32 %v1424_v36, 0.0  ;;  %v14805_v10 = vld [vmem:[#allocation68_spill] sm:$0xff]  ;;  %v6973_v36 = vld [vmem:[%s14514_s3 + $0x758] sm:$0xff]  ;;  %v6990_v35 = vld [vmem:[%s14514_s3 + $0x7e0] sm:$0xff] }
 0x26b   :  { %v1593_v50 = vmax.f32 %v1527_v19, %v1529_v39  ;;  %v1532_v23 = vmax.f32 %v1420_v18, 0.0  ;;  %v14806_v9 = vld [vmem:[#allocation72_spill] sm:$0xff]  ;;  %v1431_v18 = vadd.f32 %v11010_v24, %v14813_v41 }
 0x26c   :  { %v1594_v54 = vmax.f32 %v1528_v11, %v1530_v45  ;;  %v1148_v13 = vpop.f32.mrb[182].mxu1  ;;  %v14808_v45 = vld [vmem:[#allocation69_spill] sm:$0xff] }
 0x26d   :  { %1668 = vst [vmem:[#allocation2 + $0x1b0] sm:$0xff] %v1593_v50  ;;  %v1150_v57 = vpop.f32.mrb[183].mxu1 }
 0x26e   :  { %1669 = vst.msk [vmem:[#allocation2 + $0x1b8] sm:$0xff] %vm1604_vm1, %v1594_v54 }
 0x270   :  { %v1154_v63 = vpop.f32.mrb[184].mxu1 }
 0x271   :  { %v1287_v14 = vmax.f32 %v1142_v53, %v1154_v63  ;;  %v1156_v56 = vpop.f32.mrb[185].mxu1  ;;  %v11719_v52 = vld [vmem:[#allocation2 + $0x1a8] sm:$0xff]  ;;  %v14807_v53 = vmax.f32 %v14805_v10, %v14806_v9  ;;  %v6981_v10 = vld [vmem:[%s14514_s3 + $0x798] sm:$0xff] }
 0x272   :  { %v1288_v46 = vmax.f32 %v1144_v34, %v1156_v56  ;;  %6874 = vmatprep.mubr.msk.f32.mxu0 %vm1604_vm1, %v11719_v52  ;;  %6902 = vmatprep.mubr.msk.f32.mxu1 %vm1604_vm1, %v11719_v52  ;;  %v6985_v9 = vld [vmem:[%s14514_s3 + $0x7b8] sm:$0xff] }
 0x273   :  { %v1421_v5 = vadd.f32 %v11043_v55, %v1287_v14  ;;  %2309 = vmatmul.mubr.f32.gmra.mrb[76].mxu0 %v1591_v32  ;;  %2542 = vmatmul.mubr.f32.gmra.mrb[244].mxu1 %v1591_v32  ;;  %v1427_v19 = vadd.f32 %v11010_v24, %v14807_v53  ;;  %v6966_v14 = vld [vmem:[%s14514_s3 + $0x720] sm:$0xff] }
 0x274   :  { %v1422_v31 = vadd.f32 %v11060_v4, %v1288_v46  ;;  %v1160_v22 = vpop.f32.mrb[186].mxu1  ;;  %v7955_v49 = vpack.c.bf16 %v6966_v14, %v6962_v7  ;;  %v1685_v7 = vld [vmem:[#allocation2 + $0x38] sm:$0xff] }
 0x275   :  { %v1533_v8 = vmax.f32 %v1421_v5, 0.0  ;;  %v1291_v26 = vmax.f32 %v1148_v13, %v1160_v22  ;;  %v1162_v33 = vpop.f32.mrb[187].mxu1  ;;  %v11735_v6 = vld [vmem:[#allocation2 + $0x1b8] sm:$0xff]  ;;  %v1539_v56 = vmax.f32 %v1427_v19, 0.0  ;;  %v1683_v19 = vld [vmem:[#allocation2 + $0x28] sm:$0xff] }
 0x276   :  { %v1534_v27 = vmax.f32 %v1422_v31, 0.0  ;;  %v1292_v47 = vmax.f32 %v1150_v57, %v1162_v33  ;;  %6875 = vmatprep.mubr.msk.f32.mxu0 %vm1604_vm1, %v11735_v6  ;;  %6903 = vmatprep.mubr.msk.f32.mxu1 %vm1604_vm1, %v11735_v6 }
 0x277   :  { %v1595_v3 = vmax.f32 %v1531_v44, %v1533_v8  ;;  %v1425_v62 = vadd.f32 %v11043_v55, %v1291_v26  ;;  %2315 = vmatmul.mubr.f32.gmra.mrb[78].mxu0 %v1593_v50  ;;  %2548 = vmatmul.mubr.f32.gmra.mrb[246].mxu1 %v1593_v50  ;;  %v14809_v50 = vld [vmem:[#allocation73_spill] sm:$0xff]  ;;  %v14816_v8 = vmax.f32 %v14814_v17, %v14815_v15 }
 0x278   :  { %v1596_v37 = vmax.f32 %v1532_v23, %v1534_v27  ;;  %v1426_v25 = vadd.f32 %v11060_v4, %v1292_v47  ;;  %v1166_v42 = vpop.f32.mrb[188].mxu1  ;;  %v14810_v54 = vmax.f32 %v14808_v45, %v14809_v50  ;;  %v6964_v44 = vld [vmem:[%s14514_s3 + $0x710] sm:$0xff]  ;;  %v6971_v23 = vld [vmem:[%s14514_s3 + $0x748] sm:$0xff]  ;;  %v6977_v27 = vld [vmem:[%s14514_s3 + $0x778] sm:$0xff]  ;;  %v7967_v17 = vpack.c.bf16 %v6990_v35, %v6986_v40 }
 0x279   :  { %1670 = vst [vmem:[#allocation2 + $0x1c0] sm:$0xff] %v1595_v3  ;;  %v1537_v60 = vmax.f32 %v1425_v62, 0.0  ;;  %v1168_v43 = vpop.f32.mrb[189].mxu1  ;;  %v1432_v26 = vadd.f32 %v11025_v20, %v14816_v8  ;;  %v1543_v62 = vmax.f32 %v1431_v18, 0.0  ;;  %v6982_v45 = vld [vmem:[%s14514_s3 + $0x7a0] sm:$0xff]  ;;  %v7027_v40 = vld [vmem:[%s14514_s3 + $0x908] sm:$0xff] }
 0x27a   :  { %1671 = vst.msk [vmem:[#allocation2 + $0x1c8] sm:$0xff] %vm1604_vm1, %v1596_v37  ;;  %v1538_v21 = vmax.f32 %v1426_v25, 0.0  ;;  %v1428_v13 = vadd.f32 %v11025_v20, %v14810_v54  ;;  %v6975_v20 = vld [vmem:[%s14514_s3 + $0x768] sm:$0xff]  ;;  %v1681_v25 = vld [vmem:[#allocation2 + $0x18] sm:$0xff]  ;;  %v8017_v54 = vpack.c.bf16 %v6985_v9, %v6981_v10  ;;  %v6994_v8 = vld [vmem:[%s14514_s3 + $0x800] sm:$0xff] }
 0x27b   :  { %v1597_v16 = vmax.f32 %v1535_v28, %v1537_v60  ;;  %v6974_v28 = vld [vmem:[%s14514_s3 + $0x760] sm:$0xff]  ;;  %v1544_v60 = vmax.f32 %v1432_v26, 0.0  ;;  %v7031_v35 = vld [vmem:[%s14514_s3 + $0x928] sm:$0xff] }
 0x27c   :  { %v1598_v38 = vmax.f32 %v1536_v61, %v1538_v21  ;;  %v1172_v48 = vpop.f32.mrb[190].mxu1  ;;  %v1540_v59 = vmax.f32 %v1428_v13, 0.0  ;;  %v8013_v61 = vpack.c.bf16 %v6977_v27, %v6973_v36  ;;  %v6972_v21 = vld [vmem:[%s14514_s3 + $0x750] sm:$0xff]  ;;  %v6998_v26 = vld [vmem:[%s14514_s3 + $0x820] sm:$0xff]  ;;  %v7009_v36 = vld [vmem:[%s14514_s3 + $0x878] sm:$0xff] }
 0x27d   :  { %1672 = vst [vmem:[#allocation2 + $0x1d0] sm:$0xff] %v1597_v16  ;;  %v1174_v32 = vpop.f32.mrb[191].mxu1  ;;  %v6980_v13 = vld [vmem:[%s14514_s3 + $0x790] sm:$0xff]  ;;  %v11919_v27 = vld [vmem:[#allocation2 + $0x40] sm:$0xff] }
 0x27e   :  { %1673 = vst.msk [vmem:[#allocation2 + $0x1d8] sm:$0xff] %vm1604_vm1, %v1598_v38  ;;  %v6979_v38 = vld [vmem:[%s14514_s3 + $0x788] sm:$0xff]  ;;  %v7014_v10 = vld [vmem:[%s14514_s3 + $0x8a0] sm:$0xff] }
 0x280   :  { %v1178_v0 = vpop.f32.mrb[192].mxu1 }
 0x281   :  { %v1295_v39 = vmax.f32 %v1166_v42, %v1178_v0  ;;  %v1180_v34 = vpop.f32.mrb[193].mxu1  ;;  %v1900_v11 = vld [vmem:[#allocation2 + $0x1c8] sm:$0xff]  ;;  %v6970_v42 = vld [vmem:[%s14514_s3 + $0x740] sm:$0xff] }
 0x282   :  { %v1296_v57 = vmax.f32 %v1168_v43, %v1180_v34  ;;  %6876 = vmatprep.mubr.msk.f32.mxu0 %vm1604_vm1, %v1900_v11  ;;  %6904 = vmatprep.mubr.msk.f32.mxu1 %vm1604_vm1, %v1900_v11  ;;  %v7957_v43 = vpack.c.bf16 %v6975_v20, %v6971_v23  ;;  %v6983_v0 = vld [vmem:[%s14514_s3 + $0x7a8] sm:$0xff]  ;;  %v6978_v11 = vld [vmem:[%s14514_s3 + $0x780] sm:$0xff]  ;;  %v6996_v23 = vld [vmem:[%s14514_s3 + $0x810] sm:$0xff] }
 0x283   :  { %v1429_v63 = vadd.f32 %v11043_v55, %v1295_v39  ;;  %2321 = vmatmul.mubr.f32.gmra.mrb[80].mxu0 %v1595_v3  ;;  %2554 = vmatmul.mubr.f32.gmra.mrb[248].mxu1 %v1595_v3  ;;  %v7959_v39 = vpack.c.bf16 %v6974_v28, %v6970_v42  ;;  %v7961_v50 = vpack.c.bf16 %v6983_v0, %v6979_v38  ;;  %v7005_v20 = vld [vmem:[%s14514_s3 + $0x858] sm:$0xff]  ;;  %v7004_v28 = vld [vmem:[%s14514_s3 + $0x850] sm:$0xff]  ;;  %v11955_v38 = vld [vmem:[#allocation2 + $0x68] sm:$0xff] }
 0x284   :  { %v1430_v1 = vadd.f32 %v11060_v4, %v1296_v57  ;;  %v1184_v2 = vpop.f32.mrb[194].mxu1  ;;  %v6984_v57 = vld [vmem:[%s14514_s3 + $0x7b0] sm:$0xff]  ;;  %v7963_v14 = vpack.c.bf16 %v6982_v45, %v6978_v11  ;;  %v8029_v42 = vpack.c.bf16 %v7009_v36, %v7005_v20  ;;  %v7010_v0 = vld [vmem:[%s14514_s3 + $0x880] sm:$0xff]  ;;  %v7023_v11 = vld [vmem:[%s14514_s3 + $0x8e8] sm:$0xff] }
 0x285   :  { %v1541_v46 = vmax.f32 %v1429_v63, 0.0  ;;  %v1299_v5 = vmax.f32 %v1172_v48, %v1184_v2  ;;  %v1186_v31 = vpop.f32.mrb[195].mxu1  ;;  %v1902_v22 = vld [vmem:[#allocation2 + $0x1d8] sm:$0xff]  ;;  %v6987_v63 = vld [vmem:[%s14514_s3 + $0x7c8] sm:$0xff] }
 0x286   :  { %v1542_v33 = vmax.f32 %v1430_v1, 0.0  ;;  %v1300_v24 = vmax.f32 %v1174_v32, %v1186_v31  ;;  %6877 = vmatprep.mubr.msk.f32.mxu0 %vm1604_vm1, %v1902_v22  ;;  %6905 = vmatprep.mubr.msk.f32.mxu1 %vm1604_vm1, %v1902_v22  ;;  %v11815_v32 = vld [vmem:[#allocation2] sm:$0xff]  ;;  %v6991_v1 = vld [vmem:[%s14514_s3 + $0x7e8] sm:$0xff]  ;;  %v6989_v2 = vld [vmem:[%s14514_s3 + $0x7d8] sm:$0xff] }
 0x287   :  { %v1599_v12 = vmax.f32 %v1539_v56, %v1541_v46  ;;  %v1433_v58 = vadd.f32 %v11043_v55, %v1299_v5  ;;  %2327 = vmatmul.mubr.f32.gmra.mrb[82].mxu0 %v1597_v16  ;;  %2560 = vmatmul.mubr.f32.gmra.mrb[250].mxu1 %v1597_v16  ;;  %v8011_v55 = vpack.c.bf16 %v6968_v29, %v6964_v44  ;;  %v6976_v16 = vld [vmem:[%s14514_s3 + $0x770] sm:$0xff]  ;;  %v6995_v31 = vld [vmem:[%s14514_s3 + $0x808] sm:$0xff]  ;;  %v6997_v44 = vld [vmem:[%s14514_s3 + $0x818] sm:$0xff] }
 0x288   :  { %v1600_v47 = vmax.f32 %v1540_v59, %v1542_v33  ;;  %v1434_v3 = vadd.f32 %v11060_v4, %v1300_v24  ;;  %6906 = vmatprep.mubr.msk.f32.mxu0 %vm1604_vm1, %v1679_v30  ;;  %6934 = vmatprep.mubr.msk.f32.mxu1 %vm1604_vm1, %v1679_v30  ;;  %v8015_v34 = vpack.c.bf16 %v6976_v16, %v6972_v21  ;;  %v6993_v30 = vld [vmem:[%s14514_s3 + $0x7f8] sm:$0xff]  ;;  %v6988_v46 = vld [vmem:[%s14514_s3 + $0x7d0] sm:$0xff]  ;;  %v6999_v22 = vld [vmem:[%s14514_s3 + $0x828] sm:$0xff] }
 0x289   :  { %1674 = vst [vmem:[#allocation2 + $0x1e0] sm:$0xff] %v1599_v12  ;;  %v1545_v37 = vmax.f32 %v1433_v58, 0.0  ;;  %v8019_v56 = vpack.c.bf16 %v6984_v57, %v6980_v13  ;;  %v7965_v41 = vpack.c.bf16 %v6991_v1, %v6987_v63  ;;  %v8021_v18 = vpack.c.bf16 %v6993_v30, %v6989_v2  ;;  %v6992_v5 = vld [vmem:[%s14514_s3 + $0x7f0] sm:$0xff]  ;;  %v7001_v29 = vld [vmem:[%s14514_s3 + $0x838] sm:$0xff]  ;;  %v11887_v59 = vld [vmem:[#allocation2 + $0x48] sm:$0xff] }
 0x28a   :  { %1675 = vst.msk [vmem:[#allocation2 + $0x1e8] sm:$0xff] %vm1604_vm1, %v1600_v47  ;;  %v1546_v4 = vmax.f32 %v1434_v3, 0.0  ;;  %v8023_v15 = vpack.c.bf16 %v6992_v5, %v6988_v46  ;;  %v7969_v33 = vpack.c.bf16 %v6999_v22, %v6995_v31  ;;  %v8025_v24 = vpack.c.bf16 %v7001_v29, %v6997_v44  ;;  %v7000_v12 = vld [vmem:[%s14514_s3 + $0x830] sm:$0xff]  ;;  %v7003_v58 = vld [vmem:[%s14514_s3 + $0x848] sm:$0xff]  ;;  %v11921_v47 = vld [vmem:[#allocation2 + $0x58] sm:$0xff] }
 0x28b   :  { %v1601_v48 = vmax.f32 %v1543_v62, %v1545_v37  ;;  %2715 = vmatmul.mubr.f32.vlgmr.msra.gmra.mrb[28].mxu0 %v11815_v32  ;;  %2948 = vmatmul.mubr.f32.vlgmr.msra.gmra.mrb[196].mxu1 %v11815_v32  ;;  %v7971_v3 = vpack.c.bf16 %v6998_v26, %v6994_v8  ;;  %v7002_v62 = vld [vmem:[%s14514_s3 + $0x840] sm:$0xff]  ;;  %v7017_v21 = vld [vmem:[%s14514_s3 + $0x8b8] sm:$0xff]  ;;  %v11953_v16 = vld [vmem:[#allocation2 + $0x50] sm:$0xff]  ;;  %v7979_v57 = vpack.c.bf16 %v7014_v10, %v7010_v0 }
 0x28c   :  { %v1602_v53 = vmax.f32 %v1544_v60, %v1546_v4  ;;  %7956 = vmatpush1.bf16.msra.mxu0 %v7955_v49  ;;  %8012 = vmatpush1.bf16.msra.mxu1 %v8011_v55  ;;  %v7007_v49 = vld [vmem:[%s14514_s3 + $0x868] sm:$0xff]  ;;  %v8027_v55 = vpack.c.bf16 %v7000_v12, %v6996_v23  ;;  %v7006_v37 = vld [vmem:[%s14514_s3 + $0x860] sm:$0xff]  ;;  %v7008_v60 = vld [vmem:[%s14514_s3 + $0x870] sm:$0xff] }
 0x28d   :  { %1676 = vst [vmem:[#allocation2 + $0x1f0] sm:$0xff] %v1601_v48  ;;  %6907 = vmatprep.mubr.msk.f32.mxu0 %vm1604_vm1, %v1681_v25  ;;  %6935 = vmatprep.mubr.msk.f32.mxu1 %vm1604_vm1, %v1681_v25  ;;  %v7973_v25 = vpack.c.bf16 %v7007_v49, %v7003_v58  ;;  %v7011_v4 = vld [vmem:[%s14514_s3 + $0x888] sm:$0xff]  ;;  %v7975_v48 = vpack.c.bf16 %v7006_v37, %v7002_v62  ;;  %v7021_v45 = vld [vmem:[%s14514_s3 + $0x8d8] sm:$0xff]  ;;  %v7018_v1 = vld [vmem:[%s14514_s3 + $0x8c0] sm:$0xff] }
 0x28e   :  { %1677 = vst.msk [vmem:[#allocation2 + $0x1f8] sm:$0xff] %vm1604_vm1, %v1602_v53  ;;  %7958 = vmatprep.subr.bf16.mxu0 %v7957_v43  ;;  %8014 = vmatprep.subr.bf16.mxu1 %v8013_v61  ;;  %v7015_v43 = vld [vmem:[%s14514_s3 + $0x8a8] sm:$0xff]  ;;  %v7013_v61 = vld [vmem:[%s14514_s3 + $0x898] sm:$0xff]  ;;  %v7022_v2 = vld [vmem:[%s14514_s3 + $0x8e0] sm:$0xff] }
 0x28f   :  { %2721 = vmatmul.mubr.f32.gmra.mrb[30].mxu0 %v11815_v32  ;;  %2954 = vmatmul.mubr.f32.gmra.mrb[198].mxu1 %v11815_v32  ;;  %v7977_v9 = vpack.c.bf16 %v7015_v43, %v7011_v4  ;;  %v8033_v53 = vpack.c.bf16 %v7017_v21, %v7013_v61  ;;  %v11989_v13 = vld [vmem:[#allocation2 + $0x78] sm:$0xff]  ;;  %v12021_v46 = vld [vmem:[#allocation2 + $0x70] sm:$0xff]  ;;  %v12023_v5 = vld [vmem:[#allocation2 + $0x88] sm:$0xff]  ;;  %v7983_v31 = vpack.c.bf16 %v7022_v2, %v7018_v1 }
 0x290   :  { %6908 = vmatprep.mubr.msk.f32.mxu0 %vm1604_vm1, %v1683_v19  ;;  %6936 = vmatprep.mubr.msk.f32.mxu1 %vm1604_vm1, %v1683_v19  ;;  %v7012_v19 = vld [vmem:[%s14514_s3 + $0x890] sm:$0xff]  ;;  %v7026_v44 = vld [vmem:[%s14514_s3 + $0x900] sm:$0xff]  ;;  %v7037_v23 = vld [vmem:[%s14514_s3 + $0x958] sm:$0xff] }
 0x291   :  { %7960 = vmatpush1.bf16.msra.mxu0 %v7959_v39  ;;  %8016 = vmatpush1.bf16.msra.mxu1 %v8015_v34  ;;  %v7016_v39 = vld [vmem:[%s14514_s3 + $0x8b0] sm:$0xff]  ;;  %v7019_v34 = vld [vmem:[%s14514_s3 + $0x8c8] sm:$0xff]  ;;  %v7030_v29 = vld [vmem:[%s14514_s3 + $0x920] sm:$0xff] }
 0x292   :  { %7962 = vmatprep.subr.bf16.mxu0 %v7961_v50  ;;  %8018 = vmatprep.subr.bf16.mxu1 %v8017_v54  ;;  %v7025_v50 = vld [vmem:[%s14514_s3 + $0x8f8] sm:$0xff]  ;;  %v11987_v54 = vld [vmem:[#allocation2 + $0x60] sm:$0xff]  ;;  %v8035_v63 = vpack.c.bf16 %v7016_v39, %v7012_v19  ;;  %v7981_v30 = vpack.c.bf16 %v7023_v11, %v7019_v34  ;;  %v7028_v8 = vld [vmem:[%s14514_s3 + $0x910] sm:$0xff]  ;;  %v7987_v20 = vpack.c.bf16 %v7030_v29, %v7026_v44 }
 0x293   :  { %2727 = vmatmul.mubr.f32.gmra.mrb[32].mxu0 %v11815_v32  ;;  %2960 = vmatmul.mubr.f32.gmra.mrb[200].mxu1 %v11815_v32  ;;  %v7032_v26 = vld [vmem:[%s14514_s3 + $0x930] sm:$0xff]  ;;  %v7041_v12 = vld [vmem:[%s14514_s3 + $0x978] sm:$0xff]  ;;  %v12055_v58 = vld [vmem:[#allocation2 + $0x80] sm:$0xff] }
 0x294   :  { %6909 = vmatprep.mubr.msk.f32.mxu0 %vm1604_vm1, %v1685_v7  ;;  %6937 = vmatprep.mubr.msk.f32.mxu1 %vm1604_vm1, %v1685_v7  ;;  %v8037_v7 = vpack.c.bf16 %v7025_v50, %v7021_v45  ;;  %v12057_v49 = vld [vmem:[#allocation2 + $0x98] sm:$0xff]  ;;  %v8043_v36 = vpack.c.bf16 %v7032_v26, %v7028_v8  ;;  %v8045_v37 = vpack.c.bf16 %v7041_v12, %v7037_v23  ;;  %v12089_v61 = vld [vmem:[#allocation2 + $0x90] sm:$0xff]  ;;  %v12091_v21 = vld [vmem:[#allocation2 + $0xa8] sm:$0xff] }
 0x295   :  { %7964 = vmatpush1.bf16.msra.mxu0 %v7963_v14  ;;  %8020 = vmatpush1.bf16.msra.mxu1 %v8019_v56  ;;  %v7020_v14 = vld [vmem:[%s14514_s3 + $0x8d0] sm:$0xff]  ;;  %v7045_v4 = vld [vmem:[%s14514_s3 + $0x998] sm:$0xff]  ;;  %v7042_v0 = vld [vmem:[%s14514_s3 + $0x980] sm:$0xff] }
 0x296   :  { %7966 = vmatprep.subr.bf16.mxu0 %v7965_v41  ;;  %8022 = vmatprep.subr.bf16.mxu1 %v8021_v18  ;;  %v7024_v56 = vld [vmem:[%s14514_s3 + $0x8f0] sm:$0xff]  ;;  %v7029_v41 = vld [vmem:[%s14514_s3 + $0x918] sm:$0xff]  ;;  %v7046_v10 = vld [vmem:[%s14514_s3 + $0x9a0] sm:$0xff] }
 0x297   :  { %2733 = vmatmul.mubr.f32.gmra.mrb[34].mxu0 %v11815_v32  ;;  %2966 = vmatmul.mubr.f32.gmra.mrb[202].mxu1 %v11815_v32  ;;  %v8031_v32 = vpack.c.bf16 %v7008_v60, %v7004_v28  ;;  %v7033_v18 = vld [vmem:[%s14514_s3 + $0x938] sm:$0xff]  ;;  %v8039_v22 = vpack.c.bf16 %v7024_v56, %v7020_v14  ;;  %v7043_v28 = vld [vmem:[%s14514_s3 + $0x988] sm:$0xff]  ;;  %v7044_v19 = vld [vmem:[%s14514_s3 + $0x990] sm:$0xff]  ;;  %v7995_v1 = vpack.c.bf16 %v7046_v10, %v7042_v0 }
 0x298   :  { %6910 = vmatprep.mubr.msk.f32.mxu0 %vm1604_vm1, %v11887_v59  ;;  %6938 = vmatprep.mubr.msk.f32.mxu1 %vm1604_vm1, %v11887_v59  ;;  %v7047_v60 = vld [vmem:[%s14514_s3 + $0x9a8] sm:$0xff]  ;;  %v7049_v43 = vld [vmem:[%s14514_s3 + $0x9b8] sm:$0xff]  ;;  %v7048_v39 = vld [vmem:[%s14514_s3 + $0x9b0] sm:$0xff] }
 0x299   :  { %7968 = vmatpush1.bf16.msra.mxu0 %v7967_v17  ;;  %8024 = vmatpush1.bf16.msra.mxu1 %v8023_v15  ;;  %v7985_v17 = vpack.c.bf16 %v7031_v35, %v7027_v40  ;;  %v8041_v15 = vpack.c.bf16 %v7033_v18, %v7029_v41  ;;  %v7051_v34 = vld [vmem:[%s14514_s3 + $0x9c8] sm:$0xff]  ;;  %v7053_v45 = vld [vmem:[%s14514_s3 + $0x9d8] sm:$0xff]  ;;  %v8051_v2 = vpack.c.bf16 %v7048_v39, %v7044_v19  ;;  %v7052_v40 = vld [vmem:[%s14514_s3 + $0x9d0] sm:$0xff] }
 0x29a   :  { %7970 = vmatprep.subr.bf16.mxu0 %v7969_v33  ;;  %8026 = vmatprep.subr.bf16.mxu1 %v8025_v24  ;;  %v7035_v33 = vld [vmem:[%s14514_s3 + $0x948] sm:$0xff]  ;;  %v7057_v50 = vld [vmem:[%s14514_s3 + $0x9f8] sm:$0xff]  ;;  %v7056_v35 = vld [vmem:[%s14514_s3 + $0x9f0] sm:$0xff] }
 0x29b   :  { %2739 = vmatmul.mubr.f32.gmra.mrb[36].mxu0 %v11919_v27  ;;  %2972 = vmatmul.mubr.f32.gmra.mrb[204].mxu1 %v11919_v27  ;;  %v7039_v24 = vld [vmem:[%s14514_s3 + $0x968] sm:$0xff]  ;;  %v8053_v56 = vpack.c.bf16 %v7057_v50, %v7053_v45  ;;  %v12157_v44 = vld [vmem:[#allocation2 + $0xb0] sm:$0xff]  ;;  %v7058_v8 = vld [vmem:[%s14514_s3 + $0xa00] sm:$0xff] }
 0x29c   :  { %6911 = vmatprep.mubr.msk.f32.mxu0 %vm1604_vm1, %v11921_v47  ;;  %6939 = vmatprep.mubr.msk.f32.mxu1 %vm1604_vm1, %v11921_v47  ;;  %v7989_v62 = vpack.c.bf16 %v7039_v24, %v7035_v33  ;;  %v7055_v11 = vld [vmem:[%s14514_s3 + $0x9e8] sm:$0xff]  ;;  %v7062_v26 = vld [vmem:[%s14514_s3 + $0xa20] sm:$0xff]  ;;  %v7060_v23 = vld [vmem:[%s14514_s3 + $0xa10] sm:$0xff] }
 0x29d   :  { %7972 = vmatpush1.bf16.msra.mxu0 %v7971_v3  ;;  %8028 = vmatpush1.bf16.msra.mxu1 %v8027_v55  ;;  %v7034_v3 = vld [vmem:[%s14514_s3 + $0x940] sm:$0xff]  ;;  %v7997_v14 = vpack.c.bf16 %v7055_v11, %v7051_v34  ;;  %v7059_v41 = vld [vmem:[%s14514_s3 + $0xa08] sm:$0xff]  ;;  %v7064_v12 = vld [vmem:[%s14514_s3 + $0xa30] sm:$0xff] }
 0x29e   :  { %7974 = vmatprep.subr.bf16.mxu0 %v7973_v25  ;;  %8030 = vmatprep.subr.bf16.mxu1 %v8029_v42  ;;  %v7038_v55 = vld [vmem:[%s14514_s3 + $0x960] sm:$0xff]  ;;  %v7036_v25 = vld [vmem:[%s14514_s3 + $0x950] sm:$0xff]  ;;  %v7063_v18 = vld [vmem:[%s14514_s3 + $0xa28] sm:$0xff] }
 0x29f   :  { %2745 = vmatmul.mubr.f32.gmra.mrb[38].mxu0 %v11953_v16  ;;  %2978 = vmatmul.mubr.f32.gmra.mrb[206].mxu1 %v11953_v16  ;;  %v7040_v42 = vld [vmem:[%s14514_s3 + $0x970] sm:$0xff]  ;;  %v12159_v29 = vld [vmem:[#allocation2 + $0xc8] sm:$0xff]  ;;  %v8001_v33 = vpack.c.bf16 %v7063_v18, %v7059_v41  ;;  %v12275_v41 = vld [vmem:[#allocation2 + $0x120] sm:$0xff] }
 0x2a0   :  { %6912 = vmatprep.mubr.msk.f32.mxu0 %vm1604_vm1, %v11955_v38  ;;  %6940 = vmatprep.mubr.msk.f32.mxu1 %vm1604_vm1, %v11955_v38  ;;  %v7131_v0 = vld [vmem:[%s14514_s3 + $0xa88] sm:$0xff]  ;;  %v12225_v34 = vld [vmem:[#allocation2 + $0xd0] sm:$0xff]  ;;  %v12279_v18 = vld [vmem:[#allocation2 + $0x138] sm:$0xff] }
 0x2a1   :  { %7976 = vmatpush1.bf16.msra.mxu0 %v7975_v48  ;;  %8032 = vmatpush1.bf16.msra.mxu1 %v8031_v32  ;;  %v7991_v48 = vpack.c.bf16 %v7038_v55, %v7034_v3  ;;  %v8047_v32 = vpack.c.bf16 %v7040_v42, %v7036_v25  ;;  %v7069_v3 = vld [vmem:[%s14514_s3 + $0xa58] sm:$0xff]  ;;  %v8003_v25 = vpack.c.bf16 %v7062_v26, %v7058_v8  ;;  %v7135_v10 = vld [vmem:[%s14514_s3 + $0xaa8] sm:$0xff]  ;;  %v12305_v8 = vld [vmem:[#allocation2 + $0x150] sm:$0xff] }
 0x2a2   :  { %7978 = vmatprep.subr.bf16.mxu0 %v7977_v9  ;;  %8034 = vmatprep.subr.bf16.mxu1 %v8033_v53  ;;  %v7993_v9 = vpack.c.bf16 %v7047_v60, %v7043_v28  ;;  %v8049_v53 = vpack.c.bf16 %v7049_v43, %v7045_v4  ;;  %v7073_v55 = vld [vmem:[%s14514_s3 + $0xa78] sm:$0xff]  ;;  %v8059_v42 = vpack.c.bf16 %v7064_v12, %v7060_v23  ;;  %v7066_v28 = vld [vmem:[%s14514_s3 + $0xa40] sm:$0xff]  ;;  %v12229_v50 = vld [vmem:[#allocation2 + $0xe8] sm:$0xff] }
 0x2a3   :  { %2751 = vmatmul.mubr.f32.gmra.mrb[40].mxu0 %v11987_v54  ;;  %2984 = vmatmul.mubr.f32.gmra.mrb[208].mxu1 %v11987_v54  ;;  %v7070_v60 = vld [vmem:[%s14514_s3 + $0xa60] sm:$0xff]  ;;  %v8061_v43 = vpack.c.bf16 %v7073_v55, %v7069_v3  ;;  %v8065_v11 = vpack.c.bf16 %v7135_v10, %v7131_v0  ;;  %v12309_v26 = vld [vmem:[#allocation2 + $0x168] sm:$0xff]  ;;  %v12325_v23 = vld [vmem:[#allocation2 + $0x170] sm:$0xff] }
 0x2a4   :  { %6913 = vmatprep.mubr.msk.f32.mxu0 %vm1604_vm1, %v11989_v13  ;;  %6941 = vmatprep.mubr.msk.f32.mxu1 %vm1604_vm1, %v11989_v13  ;;  %v8007_v19 = vpack.c.bf16 %v7070_v60, %v7066_v28  ;;  %v12329_v12 = vld [vmem:[#allocation2 + $0x188] sm:$0xff]  ;;  %v12351_v3 = vld [vmem:[#allocation2 + $0x1a0] sm:$0xff]  ;;  %v7141_v60 = vld [vmem:[%s14514_s3 + $0xad8] sm:$0xff] }
 0x2a5   :  { %7980 = vmatpush1.bf16.msra.mxu0 %v7979_v57  ;;  %8036 = vmatpush1.bf16.msra.mxu1 %v8035_v63  ;;  %v12123_v57 = vld [vmem:[#allocation2 + $0xa0] sm:$0xff]  ;;  %v12125_v63 = vld [vmem:[#allocation2 + $0xb8] sm:$0xff]  ;;  %v7143_v28 = vld [vmem:[%s14514_s3 + $0xae8] sm:$0xff] }
 0x2a6   :  { %7982 = vmatprep.subr.bf16.mxu0 %v7981_v30  ;;  %8038 = vmatprep.subr.bf16.mxu1 %v8037_v7  ;;  %v7050_v30 = vld [vmem:[%s14514_s3 + $0x9c0] sm:$0xff] }
 0x2a7   :  { %2757 = vmatmul.mubr.f32.gmra.mrb[42].mxu0 %v12021_v46  ;;  %2990 = vmatmul.mubr.f32.gmra.mrb[210].mxu1 %v12021_v46  ;;  %v7054_v7 = vld [vmem:[%s14514_s3 + $0x9e0] sm:$0xff] }
 0x2a8   :  { %6914 = vmatprep.mubr.msk.f32.mxu0 %vm1604_vm1, %v12023_v5  ;;  %6942 = vmatprep.mubr.msk.f32.mxu1 %vm1604_vm1, %v12023_v5  ;;  %v7130_v55 = vld [vmem:[%s14514_s3 + $0xa80] sm:$0xff] }
 0x2a9   :  { %7984 = vmatpush1.bf16.msra.mxu0 %v7983_v31  ;;  %8040 = vmatpush1.bf16.msra.mxu1 %v8039_v22  ;;  %v7061_v31 = vld [vmem:[%s14514_s3 + $0xa18] sm:$0xff]  ;;  %v7142_v0 = vld [vmem:[%s14514_s3 + $0xae0] sm:$0xff] }
 0x2aa   :  { %7986 = vmatprep.subr.bf16.mxu0 %v7985_v17  ;;  %8042 = vmatprep.subr.bf16.mxu1 %v8041_v15  ;;  %v7065_v22 = vld [vmem:[%s14514_s3 + $0xa38] sm:$0xff]  ;;  %v7999_v17 = vpack.c.bf16 %v7054_v7, %v7050_v30  ;;  %v8055_v15 = vpack.c.bf16 %v7056_v35, %v7052_v40  ;;  %v12245_v30 = vld [vmem:[#allocation2 + $0xf0] sm:$0xff]  ;;  %v12249_v7 = vld [vmem:[#allocation2 + $0x108] sm:$0xff] }
 0x2ab   :  { %2763 = vmatmul.mubr.f32.gmra.mrb[44].mxu0 %v12055_v58  ;;  %2996 = vmatmul.mubr.f32.gmra.mrb[212].mxu1 %v12055_v58  ;;  %v8057_v24 = vpack.c.bf16 %v7065_v22, %v7061_v31  ;;  %v12265_v40 = vld [vmem:[#allocation2 + $0x110] sm:$0xff]  ;;  %v12269_v35 = vld [vmem:[#allocation2 + $0x128] sm:$0xff] }
 0x2ac   :  { %6915 = vmatprep.mubr.msk.f32.mxu0 %vm1604_vm1, %v12057_v49  ;;  %6943 = vmatprep.mubr.msk.f32.mxu1 %vm1604_vm1, %v12057_v49  ;;  %v12285_v31 = vld [vmem:[#allocation2 + $0x130] sm:$0xff]  ;;  %v12289_v22 = vld [vmem:[#allocation2 + $0x148] sm:$0xff] }
 0x2ad   :  { %7988 = vmatpush1.bf16.msra.mxu0 %v7987_v20  ;;  %8044 = vmatpush1.bf16.msra.mxu1 %v8043_v36  ;;  %v7067_v20 = vld [vmem:[%s14514_s3 + $0xa48] sm:$0xff] }
 0x2ae   :  { %7990 = vmatprep.subr.bf16.mxu0 %v7989_v62  ;;  %8046 = vmatprep.subr.bf16.mxu1 %v8045_v37  ;;  %v7071_v36 = vld [vmem:[%s14514_s3 + $0xa68] sm:$0xff]  ;;  %v12191_v62 = vld [vmem:[#allocation2 + $0xc0] sm:$0xff]  ;;  %v12193_v37 = vld [vmem:[#allocation2 + $0xd8] sm:$0xff] }
 0x2af   :  { %2769 = vmatmul.mubr.f32.gmra.mrb[46].mxu0 %v12089_v61  ;;  %3002 = vmatmul.mubr.f32.gmra.mrb[214].mxu1 %v12089_v61  ;;  %v8005_v4 = vpack.c.bf16 %v7071_v36, %v7067_v20  ;;  %v12335_v20 = vld [vmem:[#allocation2 + $0x180] sm:$0xff]  ;;  %v12343_v36 = vld [vmem:[#allocation2 + $0x190] sm:$0xff] }
 0x2b0   :  { %6916 = vmatprep.mubr.msk.f32.mxu0 %vm1604_vm1, %v12091_v21  ;;  %6944 = vmatprep.mubr.msk.f32.mxu1 %vm1604_vm1, %v12091_v21 }
 0x2b1   :  { %7992 = vmatpush1.bf16.msra.mxu0 %v7991_v48  ;;  %8048 = vmatpush1.bf16.msra.mxu1 %v8047_v32  ;;  %v7068_v48 = vld [vmem:[%s14514_s3 + $0xa50] sm:$0xff] }
 0x2b2   :  { %7994 = vmatprep.subr.bf16.mxu0 %v7993_v9  ;;  %8050 = vmatprep.subr.bf16.mxu1 %v8049_v53  ;;  %v7072_v32 = vld [vmem:[%s14514_s3 + $0xa70] sm:$0xff]  ;;  %v7133_v9 = vld [vmem:[%s14514_s3 + $0xa98] sm:$0xff] }
 0x2b3   :  { %2775 = vmatmul.mubr.f32.gmra.mrb[48].mxu0 %v12123_v57  ;;  %3008 = vmatmul.mubr.f32.gmra.mrb[216].mxu1 %v12123_v57  ;;  %v7137_v53 = vld [vmem:[%s14514_s3 + $0xab8] sm:$0xff]  ;;  %v8063_v39 = vpack.c.bf16 %v7072_v32, %v7068_v48  ;;  %v7138_v32 = vld [vmem:[%s14514_s3 + $0xac0] sm:$0xff] }
 0x2b4   :  { %6917 = vmatprep.mubr.msk.f32.mxu0 %vm1604_vm1, %v12125_v63  ;;  %6945 = vmatprep.mubr.msk.f32.mxu1 %vm1604_vm1, %v12125_v63  ;;  %v8121_v45 = vpack.c.bf16 %v7137_v53, %v7133_v9  ;;  %v7140_v53 = vld [vmem:[%s14514_s3 + $0xad0] sm:$0xff] }
 0x2b5   :  { %7996 = vmatpush1.bf16.msra.mxu0 %v7995_v1  ;;  %8052 = vmatpush1.bf16.msra.mxu1 %v8051_v2  ;;  %v12235_v1 = vld [vmem:[#allocation2 + $0xe0] sm:$0xff]  ;;  %v12239_v2 = vld [vmem:[#allocation2 + $0xf8] sm:$0xff] }
 0x2b6   :  { %7998 = vmatprep.subr.bf16.mxu0 %v7997_v14  ;;  %8054 = vmatprep.subr.bf16.mxu1 %v8053_v56  ;;  %v12255_v14 = vld [vmem:[#allocation2 + $0x100] sm:$0xff]  ;;  %v12259_v56 = vld [vmem:[#allocation2 + $0x118] sm:$0xff] }
 0x2b7   :  { %2781 = vmatmul.mubr.f32.gmra.mrb[50].mxu0 %v12157_v44  ;;  %3014 = vmatmul.mubr.f32.gmra.mrb[218].mxu1 %v12157_v44 }
 0x2b8   :  { %6918 = vmatprep.mubr.msk.f32.mxu0 %vm1604_vm1, %v12159_v29  ;;  %6946 = vmatprep.mubr.msk.f32.mxu1 %vm1604_vm1, %v12159_v29 }
 0x2b9   :  { %8000 = vmatpush1.bf16.msra.mxu0 %v7999_v17  ;;  %8056 = vmatpush1.bf16.msra.mxu1 %v8055_v15  ;;  %v12295_v17 = vld [vmem:[#allocation2 + $0x140] sm:$0xff]  ;;  %v12299_v15 = vld [vmem:[#allocation2 + $0x158] sm:$0xff] }
 0x2ba   :  { %8002 = vmatprep.subr.bf16.mxu0 %v8001_v33  ;;  %8058 = vmatprep.subr.bf16.mxu1 %v8057_v24  ;;  %v12315_v33 = vld [vmem:[#allocation2 + $0x160] sm:$0xff]  ;;  %v12319_v24 = vld [vmem:[#allocation2 + $0x178] sm:$0xff] }
 0x2bb   :  { %2787 = vmatmul.mubr.f32.gmra.mrb[52].mxu0 %v12191_v62  ;;  %3020 = vmatmul.mubr.f32.gmra.mrb[220].mxu1 %v12191_v62 }
 0x2bc   :  { %6919 = vmatprep.mubr.msk.f32.mxu0 %vm1604_vm1, %v12193_v37  ;;  %6947 = vmatprep.mubr.msk.f32.mxu1 %vm1604_vm1, %v12193_v37 }
 0x2bd   :  { %8004 = vmatpush1.bf16.msra.mxu0 %v8003_v25  ;;  %8060 = vmatpush1.bf16.msra.mxu1 %v8059_v42  ;;  %v7132_v25 = vld [vmem:[%s14514_s3 + $0xa90] sm:$0xff] }
 0x2be   :  { %8006 = vmatprep.subr.bf16.mxu0 %v8005_v4  ;;  %8062 = vmatprep.subr.bf16.mxu1 %v8061_v43  ;;  %v7136_v42 = vld [vmem:[%s14514_s3 + $0xab0] sm:$0xff]  ;;  %v7145_v4 = vld [vmem:[%s14514_s3 + $0xaf8] sm:$0xff] }
 0x2bf   :  { %2793 = vmatmul.mubr.f32.gmra.mrb[54].mxu0 %v12225_v34  ;;  %3026 = vmatmul.mubr.f32.gmra.mrb[222].mxu1 %v12225_v34  ;;  %v8123_v48 = vpack.c.bf16 %v7136_v42, %v7132_v25  ;;  %v8125_v9 = vpack.c.bf16 %v7145_v4, %v7141_v60  ;;  %v7150_v25 = vld [vmem:[%s14514_s3 + $0xb20] sm:$0xff]  ;;  %v7155_v60 = vld [vmem:[%s14514_s3 + $0xb48] sm:$0xff] }
 0x2c0   :  { %6920 = vmatprep.mubr.msk.f32.mxu0 %vm1604_vm1, %v12229_v50  ;;  %6948 = vmatprep.mubr.msk.f32.mxu1 %vm1604_vm1, %v12229_v50  ;;  %v7159_v4 = vld [vmem:[%s14514_s3 + $0xb68] sm:$0xff] }
 0x2c1   :  { %8008 = vmatpush1.bf16.msra.mxu0 %v8007_v19  ;;  %8064 = vmatpush1.bf16.msra.mxu1 %v8063_v39  ;;  %v7147_v19 = vld [vmem:[%s14514_s3 + $0xb08] sm:$0xff] }
 0x2c2   :  { %8066 = vmatprep.subr.bf16.mxu0 %v8065_v11  ;;  %8122 = vmatprep.subr.bf16.mxu1 %v8121_v45  ;;  %v7151_v39 = vld [vmem:[%s14514_s3 + $0xb28] sm:$0xff]  ;;  %v7149_v11 = vld [vmem:[%s14514_s3 + $0xb18] sm:$0xff] }
 0x2c3   :  { %2799 = vmatmul.mubr.f32.gmra.mrb[56].mxu0 %v12235_v1  ;;  %3032 = vmatmul.mubr.f32.gmra.mrb[224].mxu1 %v12235_v1  ;;  %v7153_v45 = vld [vmem:[%s14514_s3 + $0xb38] sm:$0xff]  ;;  %v8073_v42 = vpack.c.bf16 %v7151_v39, %v7147_v19  ;;  %v7163_v19 = vld [vmem:[%s14514_s3 + $0xb88] sm:$0xff] }
 0x2c4   :  { %6921 = vmatprep.mubr.msk.f32.mxu0 %vm1604_vm1, %v12239_v2  ;;  %6949 = vmatprep.mubr.msk.f32.mxu1 %vm1604_vm1, %v12239_v2  ;;  %v7167_v39 = vld [vmem:[%s14514_s3 + $0xba8] sm:$0xff] }
 0x2c7   :  { %2805 = vmatmul.mubr.f32.gmra.mrb[58].mxu0 %v12245_v30  ;;  %3038 = vmatmul.mubr.f32.gmra.mrb[226].mxu1 %v12245_v30 }
 0x2c8   :  { %6922 = vmatprep.mubr.msk.f32.mxu0 %vm1604_vm1, %v12249_v7  ;;  %6950 = vmatprep.mubr.msk.f32.mxu1 %vm1604_vm1, %v12249_v7 }
 0x2cb   :  { %2811 = vmatmul.mubr.f32.gmra.mrb[60].mxu0 %v12255_v14  ;;  %3044 = vmatmul.mubr.f32.gmra.mrb[228].mxu1 %v12255_v14 }
 0x2cc   :  { %6923 = vmatprep.mubr.msk.f32.mxu0 %vm1604_vm1, %v12259_v56  ;;  %6951 = vmatprep.mubr.msk.f32.mxu1 %vm1604_vm1, %v12259_v56 }
 0x2cf   :  { %2817 = vmatmul.mubr.f32.gmra.mrb[62].mxu0 %v12265_v40  ;;  %3050 = vmatmul.mubr.f32.gmra.mrb[230].mxu1 %v12265_v40 }
 0x2d0   :  { %6924 = vmatprep.mubr.msk.f32.mxu0 %vm1604_vm1, %v12269_v35  ;;  %6952 = vmatprep.mubr.msk.f32.mxu1 %vm1604_vm1, %v12269_v35 }
 0x2d3   :  { %2823 = vmatmul.mubr.f32.gmra.mrb[64].mxu0 %v12275_v41  ;;  %3056 = vmatmul.mubr.f32.gmra.mrb[232].mxu1 %v12275_v41 }
 0x2d4   :  { %6925 = vmatprep.mubr.msk.f32.mxu0 %vm1604_vm1, %v12279_v18  ;;  %6953 = vmatprep.mubr.msk.f32.mxu1 %vm1604_vm1, %v12279_v18 }
 0x2d7   :  { %2829 = vmatmul.mubr.f32.gmra.mrb[66].mxu0 %v12285_v31  ;;  %3062 = vmatmul.mubr.f32.gmra.mrb[234].mxu1 %v12285_v31 }
 0x2d8   :  { %6926 = vmatprep.mubr.msk.f32.mxu0 %vm1604_vm1, %v12289_v22  ;;  %6954 = vmatprep.mubr.msk.f32.mxu1 %vm1604_vm1, %v12289_v22 }
 0x2db   :  { %2835 = vmatmul.mubr.f32.gmra.mrb[68].mxu0 %v12295_v17  ;;  %3068 = vmatmul.mubr.f32.gmra.mrb[236].mxu1 %v12295_v17 }
 0x2dc   :  { %6927 = vmatprep.mubr.msk.f32.mxu0 %vm1604_vm1, %v12299_v15  ;;  %6955 = vmatprep.mubr.msk.f32.mxu1 %vm1604_vm1, %v12299_v15 }
 0x2df   :  { %2841 = vmatmul.mubr.f32.gmra.mrb[70].mxu0 %v12305_v8  ;;  %3074 = vmatmul.mubr.f32.gmra.mrb[238].mxu1 %v12305_v8 }
 0x2e0   :  { %6928 = vmatprep.mubr.msk.f32.mxu0 %vm1604_vm1, %v12309_v26  ;;  %6956 = vmatprep.mubr.msk.f32.mxu1 %vm1604_vm1, %v12309_v26 }
 0x2e3   :  { %2847 = vmatmul.mubr.f32.gmra.mrb[72].mxu0 %v12315_v33  ;;  %3080 = vmatmul.mubr.f32.gmra.mrb[240].mxu1 %v12315_v33 }
 0x2e4   :  { %6929 = vmatprep.mubr.msk.f32.mxu0 %vm1604_vm1, %v12319_v24  ;;  %6957 = vmatprep.mubr.msk.f32.mxu1 %vm1604_vm1, %v12319_v24 }
 0x2e7   :  { %2853 = vmatmul.mubr.f32.gmra.mrb[74].mxu0 %v12325_v23  ;;  %3086 = vmatmul.mubr.f32.gmra.mrb[242].mxu1 %v12325_v23 }
 0x2e8   :  { %6930 = vmatprep.mubr.msk.f32.mxu0 %vm1604_vm1, %v12329_v12  ;;  %6958 = vmatprep.mubr.msk.f32.mxu1 %vm1604_vm1, %v12329_v12 }
 0x2eb   :  { %2859 = vmatmul.mubr.f32.gmra.mrb[76].mxu0 %v12335_v20  ;;  %3092 = vmatmul.mubr.f32.gmra.mrb[244].mxu1 %v12335_v20 }
 0x2ec   :  { %6931 = vmatprep.mubr.msk.f32.mxu0 %vm1604_vm1, %v11701_v51  ;;  %6959 = vmatprep.mubr.msk.f32.mxu1 %vm1604_vm1, %v11701_v51  ;;  %v12359_v51 = vld [vmem:[#allocation2 + $0x1b0] sm:$0xff] }
 0x2ef   :  { %2865 = vmatmul.mubr.f32.gmra.mrb[78].mxu0 %v12343_v36  ;;  %3098 = vmatmul.mubr.f32.gmra.mrb[246].mxu1 %v12343_v36 }
 0x2f0   :  { %6932 = vmatprep.mubr.msk.f32.mxu0 %vm1604_vm1, %v11719_v52  ;;  %6960 = vmatprep.mubr.msk.f32.mxu1 %vm1604_vm1, %v11719_v52  ;;  %v7134_v52 = vld [vmem:[%s14514_s3 + $0xaa0] sm:$0xff] }
 0x2f1   :  { %v8067_v43 = vpack.c.bf16 %v7134_v52, %v7130_v55  ;;  %v7146_v52 = vld [vmem:[%s14514_s3 + $0xb00] sm:$0xff] }
 0x2f3   :  { %2871 = vmatmul.mubr.f32.gmra.mrb[80].mxu0 %v12351_v3  ;;  %3104 = vmatmul.mubr.f32.gmra.mrb[248].mxu1 %v12351_v3 }
 0x2f4   :  { %6933 = vmatprep.mubr.msk.f32.mxu0 %vm1604_vm1, %v11735_v6  ;;  %6961 = vmatprep.mubr.msk.f32.mxu1 %vm1604_vm1, %v11735_v6  ;;  %v7139_v6 = vld [vmem:[%s14514_s3 + $0xac8] sm:$0xff] }
 0x2f5   :  { %v8069_v10 = vpack.c.bf16 %v7143_v28, %v7139_v6  ;;  %v8129_v6 = vpack.c.bf16 %v7153_v45, %v7149_v11  ;;  %v7152_v28 = vld [vmem:[%s14514_s3 + $0xb30] sm:$0xff]  ;;  %v7165_v11 = vld [vmem:[%s14514_s3 + $0xb98] sm:$0xff] }
 0x2f6   :  { %v7169_v45 = vld [vmem:[%s14514_s3 + $0xbb8] sm:$0xff] }
 0x2f7   :  { %2877 = vmatmul.mubr.f32.gmra.mrb[82].mxu0 %v12359_v51  ;;  %3110 = vmatmul.mubr.f32.gmra.mrb[250].mxu1 %v12359_v51 }
 0x2f8   :  { %7074 = vmatprep.mubr.msk.f32.mxu0 %vm1604_vm1, %v11887_v59  ;;  %7102 = vmatprep.mubr.msk.f32.mxu1 %vm1604_vm1, %v11887_v59  ;;  %v7144_v59 = vld [vmem:[%s14514_s3 + $0xaf0] sm:$0xff] }
 0x2f9   :  { %v8127_v55 = vpack.c.bf16 %v7144_v59, %v7140_v53  ;;  %v7160_v59 = vld [vmem:[%s14514_s3 + $0xb70] sm:$0xff] }
 0x2fb   :  { %3434 = vmatmul.mubr.f32.vlgmr.msra.gmra.mrb[28].mxu0 %v11919_v27  ;;  %3667 = vmatmul.mubr.f32.vlgmr.msra.gmra.mrb[196].mxu1 %v11919_v27  ;;  %v8071_v27 = vpack.c.bf16 %v7142_v0, %v7138_v32  ;;  %v7154_v0 = vld [vmem:[%s14514_s3 + $0xb40] sm:$0xff] }
 0x2fc   :  { %7075 = vmatprep.mubr.msk.f32.mxu0 %vm1604_vm1, %v11921_v47  ;;  %7103 = vmatprep.mubr.msk.f32.mxu1 %vm1604_vm1, %v11921_v47  ;;  %v7148_v47 = vld [vmem:[%s14514_s3 + $0xb10] sm:$0xff] }
 0x2fd   :  { %8068 = vmatpush1.bf16.msra.mxu0 %v8067_v43  ;;  %8124 = vmatpush1.bf16.msra.mxu1 %v8123_v48  ;;  %v7157_v43 = vld [vmem:[%s14514_s3 + $0xb58] sm:$0xff]  ;;  %v8131_v32 = vpack.c.bf16 %v7152_v28, %v7148_v47  ;;  %v7171_v47 = vld [vmem:[%s14514_s3 + $0xbc8] sm:$0xff] }
 0x2fe   :  { %8070 = vmatprep.subr.bf16.mxu0 %v8069_v10  ;;  %8126 = vmatprep.subr.bf16.mxu1 %v8125_v9  ;;  %v7161_v48 = vld [vmem:[%s14514_s3 + $0xb78] sm:$0xff]  ;;  %v7158_v10 = vld [vmem:[%s14514_s3 + $0xb60] sm:$0xff]  ;;  %v8077_v9 = vpack.c.bf16 %v7159_v4, %v7155_v60  ;;  %v7175_v28 = vld [vmem:[%s14514_s3 + $0xbe8] sm:$0xff] }
 0x2ff   :  { %3440 = vmatmul.mubr.f32.gmra.mrb[30].mxu0 %v11953_v16  ;;  %3673 = vmatmul.mubr.f32.gmra.mrb[198].mxu1 %v11953_v16  ;;  %v8075_v16 = vpack.c.bf16 %v7150_v25, %v7146_v52  ;;  %v8133_v53 = vpack.c.bf16 %v7161_v48, %v7157_v43  ;;  %v7166_v52 = vld [vmem:[%s14514_s3 + $0xba0] sm:$0xff]  ;;  %v8081_v25 = vpack.c.bf16 %v7167_v39, %v7163_v19  ;;  %v7173_v60 = vld [vmem:[%s14514_s3 + $0xbd8] sm:$0xff] }
 0x300   :  { %7076 = vmatprep.mubr.msk.f32.mxu0 %vm1604_vm1, %v11955_v38  ;;  %7104 = vmatprep.mubr.msk.f32.mxu1 %vm1604_vm1, %v11955_v38  ;;  %v7156_v38 = vld [vmem:[%s14514_s3 + $0xb50] sm:$0xff]  ;;  %v7177_v4 = vld [vmem:[%s14514_s3 + $0xbf8] sm:$0xff]  ;;  %v7170_v48 = vld [vmem:[%s14514_s3 + $0xbc0] sm:$0xff] }
 0x301   :  { %8072 = vmatpush1.bf16.msra.mxu0 %v8071_v27  ;;  %8128 = vmatpush1.bf16.msra.mxu1 %v8127_v55  ;;  %v8135_v27 = vpack.c.bf16 %v7160_v59, %v7156_v38  ;;  %v7162_v55 = vld [vmem:[%s14514_s3 + $0xb80] sm:$0xff]  ;;  %v7181_v38 = vld [vmem:[%s14514_s3 + $0xc18] sm:$0xff] }
 0x302   :  { %8074 = vmatprep.subr.bf16.mxu0 %v8073_v42  ;;  %8130 = vmatprep.subr.bf16.mxu1 %v8129_v6  ;;  %v8137_v42 = vpack.c.bf16 %v7169_v45, %v7165_v11  ;;  %v7168_v6 = vld [vmem:[%s14514_s3 + $0xbb0] sm:$0xff]  ;;  %v7185_v59 = vld [vmem:[%s14514_s3 + $0xc38] sm:$0xff]  ;;  %v7178_v39 = vld [vmem:[%s14514_s3 + $0xc00] sm:$0xff] }
 0x303   :  { %3446 = vmatmul.mubr.f32.gmra.mrb[32].mxu0 %v11987_v54  ;;  %3679 = vmatmul.mubr.f32.gmra.mrb[200].mxu1 %v11987_v54  ;;  %v8079_v54 = vpack.c.bf16 %v7158_v10, %v7154_v0  ;;  %v8141_v0 = vpack.c.bf16 %v7177_v4, %v7173_v60  ;;  %v7176_v10 = vld [vmem:[%s14514_s3 + $0xbf0] sm:$0xff]  ;;  %v7182_v11 = vld [vmem:[%s14514_s3 + $0xc20] sm:$0xff] }
 0x304   :  { %7077 = vmatprep.mubr.msk.f32.mxu0 %vm1604_vm1, %v11989_v13  ;;  %7105 = vmatprep.mubr.msk.f32.mxu1 %vm1604_vm1, %v11989_v13  ;;  %v7164_v13 = vld [vmem:[%s14514_s3 + $0xb90] sm:$0xff] }
 0x305   :  { %8076 = vmatpush1.bf16.msra.mxu0 %v8075_v16  ;;  %8132 = vmatpush1.bf16.msra.mxu1 %v8131_v32  ;;  %v8139_v43 = vpack.c.bf16 %v7168_v6, %v7164_v13  ;;  %v7174_v16 = vld [vmem:[%s14514_s3 + $0xbe0] sm:$0xff]  ;;  %v8085_v32 = vpack.c.bf16 %v7175_v28, %v7171_v47  ;;  %v7192_v4 = vld [vmem:[%s14514_s3 + $0xc70] sm:$0xff] }
 0x306   :  { %8078 = vmatprep.subr.bf16.mxu0 %v8077_v9  ;;  %8134 = vmatprep.subr.bf16.mxu1 %v8133_v53  ;;  %v7179_v9 = vld [vmem:[%s14514_s3 + $0xc08] sm:$0xff]  ;;  %v7186_v6 = vld [vmem:[%s14514_s3 + $0xc40] sm:$0xff] }
 0x307   :  { %3452 = vmatmul.mubr.f32.gmra.mrb[34].mxu0 %v12021_v46  ;;  %3685 = vmatmul.mubr.f32.gmra.mrb[202].mxu1 %v12021_v46  ;;  %v8083_v46 = vpack.c.bf16 %v7166_v52, %v7162_v55  ;;  %v7183_v53 = vld [vmem:[%s14514_s3 + $0xc28] sm:$0xff]  ;;  %v7190_v47 = vld [vmem:[%s14514_s3 + $0xc60] sm:$0xff] }
 0x308   :  { %7078 = vmatprep.mubr.msk.f32.mxu0 %vm1604_vm1, %v12023_v5  ;;  %7106 = vmatprep.mubr.msk.f32.mxu1 %vm1604_vm1, %v12023_v5  ;;  %v7172_v5 = vld [vmem:[%s14514_s3 + $0xbd0] sm:$0xff]  ;;  %v8089_v45 = vpack.c.bf16 %v7183_v53, %v7179_v9  ;;  %v7187_v55 = vld [vmem:[%s14514_s3 + $0xc48] sm:$0xff] }
 0x309   :  { %8080 = vmatpush1.bf16.msra.mxu0 %v8079_v54  ;;  %8136 = vmatpush1.bf16.msra.mxu1 %v8135_v27  ;;  %v8143_v19 = vpack.c.bf16 %v7176_v10, %v7172_v5  ;;  %v8145_v54 = vpack.c.bf16 %v7185_v59, %v7181_v38  ;;  %v7184_v27 = vld [vmem:[%s14514_s3 + $0xc30] sm:$0xff]  ;;  %v7191_v52 = vld [vmem:[%s14514_s3 + $0xc68] sm:$0xff]  ;;  %v7198_v5 = vld [vmem:[%s14514_s3 + $0xca0] sm:$0xff] }
 0x30a   :  { %8082 = vmatprep.subr.bf16.mxu0 %v8081_v25  ;;  %8138 = vmatprep.subr.bf16.mxu1 %v8137_v42  ;;  %v7189_v25 = vld [vmem:[%s14514_s3 + $0xc58] sm:$0xff]  ;;  %v8093_v28 = vpack.c.bf16 %v7191_v52, %v7187_v55  ;;  %v7200_v53 = vld [vmem:[%s14514_s3 + $0xcb0] sm:$0xff]  ;;  %v7203_v38 = vld [vmem:[%s14514_s3 + $0xcc8] sm:$0xff] }
 0x30b   :  { %3458 = vmatmul.mubr.f32.gmra.mrb[36].mxu0 %v12055_v58  ;;  %3691 = vmatmul.mubr.f32.gmra.mrb[204].mxu1 %v12055_v58  ;;  %v8087_v58 = vpack.c.bf16 %v7174_v16, %v7170_v48  ;;  %v7193_v42 = vld [vmem:[%s14514_s3 + $0xc78] sm:$0xff]  ;;  %v7207_v59 = vld [vmem:[%s14514_s3 + $0xce8] sm:$0xff] }
 0x30c   :  { %7079 = vmatprep.mubr.msk.f32.mxu0 %vm1604_vm1, %v12057_v49  ;;  %7107 = vmatprep.mubr.msk.f32.mxu1 %vm1604_vm1, %v12057_v49  ;;  %v7180_v49 = vld [vmem:[%s14514_s3 + $0xc10] sm:$0xff]  ;;  %v8149_v60 = vpack.c.bf16 %v7193_v42, %v7189_v25  ;;  %v7197_v48 = vld [vmem:[%s14514_s3 + $0xc98] sm:$0xff]  ;;  %v7211_v55 = vld [vmem:[%s14514_s3 + $0xd08] sm:$0xff] }
 0x30d   :  { %8084 = vmatpush1.bf16.msra.mxu0 %v8083_v46  ;;  %8140 = vmatpush1.bf16.msra.mxu1 %v8139_v43  ;;  %v8147_v13 = vpack.c.bf16 %v7184_v27, %v7180_v49  ;;  %v7195_v46 = vld [vmem:[%s14514_s3 + $0xc88] sm:$0xff]  ;;  %v7201_v16 = vld [vmem:[%s14514_s3 + $0xcb8] sm:$0xff]  ;;  %v7208_v27 = vld [vmem:[%s14514_s3 + $0xcf0] sm:$0xff] }
 0x30e   :  { %8086 = vmatprep.subr.bf16.mxu0 %v8085_v32  ;;  %8142 = vmatprep.subr.bf16.mxu1 %v8141_v0  ;;  %v7199_v43 = vld [vmem:[%s14514_s3 + $0xca8] sm:$0xff]  ;;  %v7194_v0 = vld [vmem:[%s14514_s3 + $0xc80] sm:$0xff]  ;;  %v8153_v9 = vpack.c.bf16 %v7201_v16, %v7197_v48  ;;  %v7213_v25 = vld [vmem:[%s14514_s3 + $0xd18] sm:$0xff] }
 0x30f   :  { %3464 = vmatmul.mubr.f32.gmra.mrb[38].mxu0 %v12089_v61  ;;  %3697 = vmatmul.mubr.f32.gmra.mrb[206].mxu1 %v12089_v61  ;;  %v8091_v61 = vpack.c.bf16 %v7182_v11, %v7178_v39  ;;  %v8097_v10 = vpack.c.bf16 %v7199_v43, %v7195_v46  ;;  %v7202_v11 = vld [vmem:[%s14514_s3 + $0xcc0] sm:$0xff]  ;;  %v7215_v52 = vld [vmem:[%s14514_s3 + $0xd28] sm:$0xff]  ;;  %v7217_v42 = vld [vmem:[%s14514_s3 + $0xd38] sm:$0xff] }
 0x310   :  { %7080 = vmatprep.mubr.msk.f32.mxu0 %vm1604_vm1, %v12091_v21  ;;  %7108 = vmatprep.mubr.msk.f32.mxu1 %vm1604_vm1, %v12091_v21  ;;  %v7188_v21 = vld [vmem:[%s14514_s3 + $0xc50] sm:$0xff]  ;;  %v7221_v46 = vld [vmem:[%s14514_s3 + $0xd58] sm:$0xff]  ;;  %v7218_v16 = vld [vmem:[%s14514_s3 + $0xd40] sm:$0xff] }
 0x311   :  { %8088 = vmatpush1.bf16.msra.mxu0 %v8087_v58  ;;  %8144 = vmatpush1.bf16.msra.mxu1 %v8143_v19  ;;  %v8151_v32 = vpack.c.bf16 %v7192_v4, %v7188_v21  ;;  %v7205_v58 = vld [vmem:[%s14514_s3 + $0xcd8] sm:$0xff]  ;;  %v7219_v21 = vld [vmem:[%s14514_s3 + $0xd48] sm:$0xff] }
 0x312   :  { %8090 = vmatprep.subr.bf16.mxu0 %v8089_v45  ;;  %8146 = vmatprep.subr.bf16.mxu1 %v8145_v54  ;;  %v7209_v19 = vld [vmem:[%s14514_s3 + $0xcf8] sm:$0xff]  ;;  %v7206_v45 = vld [vmem:[%s14514_s3 + $0xce0] sm:$0xff]  ;;  %v8101_v54 = vpack.c.bf16 %v7207_v59, %v7203_v38  ;;  %v7223_v4 = vld [vmem:[%s14514_s3 + $0xd68] sm:$0xff] }
 0x313   :  { %3470 = vmatmul.mubr.f32.gmra.mrb[40].mxu0 %v12123_v57  ;;  %3703 = vmatmul.mubr.f32.gmra.mrb[208].mxu1 %v12123_v57  ;;  %v8095_v57 = vpack.c.bf16 %v7190_v47, %v7186_v6  ;;  %v8157_v49 = vpack.c.bf16 %v7209_v19, %v7205_v58  ;;  %v7214_v6 = vld [vmem:[%s14514_s3 + $0xd20] sm:$0xff]  ;;  %v8105_v47 = vpack.c.bf16 %v7215_v52, %v7211_v55  ;;  %v7225_v43 = vld [vmem:[%s14514_s3 + $0xd78] sm:$0xff] }
 0x314   :  { %7081 = vmatprep.mubr.msk.f32.mxu0 %vm1604_vm1, %v12125_v63  ;;  %7109 = vmatprep.mubr.msk.f32.mxu1 %vm1604_vm1, %v12125_v63  ;;  %v7196_v63 = vld [vmem:[%s14514_s3 + $0xc90] sm:$0xff]  ;;  %v7226_v59 = vld [vmem:[%s14514_s3 + $0xd80] sm:$0xff] }
 0x315   :  { %8092 = vmatpush1.bf16.msra.mxu0 %v8091_v61  ;;  %8148 = vmatpush1.bf16.msra.mxu1 %v8147_v13  ;;  %v8155_v39 = vpack.c.bf16 %v7200_v53, %v7196_v63  ;;  %v7210_v13 = vld [vmem:[%s14514_s3 + $0xd00] sm:$0xff]  ;;  %v7229_v63 = vld [vmem:[%s14514_s3 + $0xd98] sm:$0xff] }
 0x316   :  { %8094 = vmatprep.subr.bf16.mxu0 %v8093_v28  ;;  %8150 = vmatprep.subr.bf16.mxu1 %v8149_v60  ;;  %v8161_v28 = vpack.c.bf16 %v7217_v42, %v7213_v25  ;;  %v7216_v60 = vld [vmem:[%s14514_s3 + $0xd30] sm:$0xff]  ;;  %v7233_v53 = vld [vmem:[%s14514_s3 + $0xdb8] sm:$0xff]  ;;  %v7230_v58 = vld [vmem:[%s14514_s3 + $0xda0] sm:$0xff] }
 0x317   :  { %3476 = vmatmul.mubr.f32.gmra.mrb[42].mxu0 %v12157_v44  ;;  %3709 = vmatmul.mubr.f32.gmra.mrb[210].mxu1 %v12157_v44  ;;  %v8099_v44 = vpack.c.bf16 %v7198_v5, %v7194_v0  ;;  %v8165_v0 = vpack.c.bf16 %v7225_v43, %v7221_v46  ;;  %v7224_v5 = vld [vmem:[%s14514_s3 + $0xd70] sm:$0xff]  ;;  %v7238_v55 = vld [vmem:[%s14514_s3 + $0xde0] sm:$0xff] }
 0x318   :  { %7082 = vmatprep.mubr.msk.f32.mxu0 %vm1604_vm1, %v12159_v29  ;;  %7110 = vmatprep.mubr.msk.f32.mxu1 %vm1604_vm1, %v12159_v29  ;;  %v7204_v29 = vld [vmem:[%s14514_s3 + $0xcd0] sm:$0xff] }
 0x319   :  { %8096 = vmatpush1.bf16.msra.mxu0 %v8095_v57  ;;  %8152 = vmatpush1.bf16.msra.mxu1 %v8151_v32  ;;  %v8159_v61 = vpack.c.bf16 %v7208_v27, %v7204_v29  ;;  %v7222_v57 = vld [vmem:[%s14514_s3 + $0xd60] sm:$0xff]  ;;  %v8109_v32 = vpack.c.bf16 %v7223_v4, %v7219_v21  ;;  %v7240_v42 = vld [vmem:[%s14514_s3 + $0xdf0] sm:$0xff]  ;;  %v3951_v4 = vld [vmem:[#allocation2 + $0x78] sm:$0xff] }
 0x31a   :  { %8098 = vmatprep.subr.bf16.mxu0 %v8097_v10  ;;  %8154 = vmatprep.subr.bf16.mxu1 %v8153_v9  ;;  %v7227_v10 = vld [vmem:[%s14514_s3 + $0xd88] sm:$0xff]  ;;  %v7234_v27 = vld [vmem:[%s14514_s3 + $0xdc0] sm:$0xff] }
 0x31b   :  { %3482 = vmatmul.mubr.f32.gmra.mrb[44].mxu0 %v12191_v62  ;;  %3715 = vmatmul.mubr.f32.gmra.mrb[212].mxu1 %v12191_v62  ;;  %v8103_v62 = vpack.c.bf16 %v7206_v45, %v7202_v11  ;;  %v7231_v9 = vld [vmem:[%s14514_s3 + $0xda8] sm:$0xff]  ;;  %v3948_v21 = vld [vmem:[#allocation2 + $0x60] sm:$0xff] }
 0x31c   :  { %7083 = vmatprep.mubr.msk.f32.mxu0 %vm1604_vm1, %v12193_v37  ;;  %7111 = vmatprep.mubr.msk.f32.mxu1 %vm1604_vm1, %v12193_v37  ;;  %v7212_v37 = vld [vmem:[%s14514_s3 + $0xd10] sm:$0xff]  ;;  %v8113_v19 = vpack.c.bf16 %v7231_v9, %v7227_v10  ;;  %v7235_v11 = vld [vmem:[%s14514_s3 + $0xdc8] sm:$0xff]  ;;  %v7317_v10 = vld [vmem:[%s14514_s3 + $0xe98] sm:$0xff] }
 0x31d   :  { %8100 = vmatpush1.bf16.msra.mxu0 %v8099_v44  ;;  %8156 = vmatpush1.bf16.msra.mxu1 %v8155_v39  ;;  %v8163_v48 = vpack.c.bf16 %v7216_v60, %v7212_v37  ;;  %v8169_v44 = vpack.c.bf16 %v7233_v53, %v7229_v63  ;;  %v7232_v39 = vld [vmem:[%s14514_s3 + $0xdb0] sm:$0xff]  ;;  %v7239_v45 = vld [vmem:[%s14514_s3 + $0xde8] sm:$0xff]  ;;  %v7313_v60 = vld [vmem:[%s14514_s3 + $0xe78] sm:$0xff] }
 0x31e   :  { %8102 = vmatprep.subr.bf16.mxu0 %v8101_v54  ;;  %8158 = vmatprep.subr.bf16.mxu1 %v8157_v49  ;;  %v7237_v54 = vld [vmem:[%s14514_s3 + $0xdd8] sm:$0xff]  ;;  %v8117_v52 = vpack.c.bf16 %v7239_v45, %v7235_v11  ;;  %v3950_v63 = vld [vmem:[#allocation2 + $0x70] sm:$0xff]  ;;  %v12941_v53 = vld [vmem:[#allocation2 + $0x88] sm:$0xff] }
 0x31f   :  { %3488 = vmatmul.mubr.f32.gmra.mrb[46].mxu0 %v12225_v34  ;;  %3721 = vmatmul.mubr.f32.gmra.mrb[214].mxu1 %v12225_v34  ;;  %v8107_v34 = vpack.c.bf16 %v7214_v6, %v7210_v13  ;;  %v7241_v49 = vld [vmem:[%s14514_s3 + $0xdf8] sm:$0xff]  ;;  %v7323_v11 = vld [vmem:[%s14514_s3 + $0xec8] sm:$0xff] }
 0x320   :  { %7084 = vmatprep.mubr.msk.f32.mxu0 %vm1604_vm1, %v12229_v50  ;;  %7112 = vmatprep.mubr.msk.f32.mxu1 %vm1604_vm1, %v12229_v50  ;;  %v7220_v50 = vld [vmem:[%s14514_s3 + $0xd50] sm:$0xff]  ;;  %v8173_v25 = vpack.c.bf16 %v7241_v49, %v7237_v54  ;;  %v7301_v13 = vld [vmem:[%s14514_s3 + $0xe18] sm:$0xff]  ;;  %v7327_v45 = vld [vmem:[%s14514_s3 + $0xee8] sm:$0xff] }
 0x321   :  { %8104 = vmatpush1.bf16.msra.mxu0 %v8103_v62  ;;  %8160 = vmatpush1.bf16.msra.mxu1 %v8159_v61  ;;  %v8167_v38 = vpack.c.bf16 %v7224_v5, %v7220_v50  ;;  %v7299_v62 = vld [vmem:[%s14514_s3 + $0xe08] sm:$0xff]  ;;  %v7305_v6 = vld [vmem:[%s14514_s3 + $0xe38] sm:$0xff] }
 0x322   :  { %8106 = vmatprep.subr.bf16.mxu0 %v8105_v47  ;;  %8162 = vmatprep.subr.bf16.mxu1 %v8161_v28  ;;  %v7303_v61 = vld [vmem:[%s14514_s3 + $0xe28] sm:$0xff]  ;;  %v8233_v37 = vpack.c.bf16 %v7305_v6, %v7301_v13  ;;  %v7321_v9 = vld [vmem:[%s14514_s3 + $0xeb8] sm:$0xff] }
 0x323   :  { %3494 = vmatmul.mubr.f32.gmra.mrb[48].mxu0 %v12235_v1  ;;  %3727 = vmatmul.mubr.f32.gmra.mrb[216].mxu1 %v12235_v1  ;;  %v8111_v1 = vpack.c.bf16 %v7222_v57, %v7218_v16  ;;  %v8177_v28 = vpack.c.bf16 %v7303_v61, %v7299_v62  ;;  %v7315_v50 = vld [vmem:[%s14514_s3 + $0xe88] sm:$0xff]  ;;  %v7325_v54 = vld [vmem:[%s14514_s3 + $0xed8] sm:$0xff]  ;;  %v7324_v62 = vld [vmem:[%s14514_s3 + $0xed0] sm:$0xff] }
 0x324   :  { %7085 = vmatprep.mubr.msk.f32.mxu0 %vm1604_vm1, %v12239_v2  ;;  %7113 = vmatprep.mubr.msk.f32.mxu1 %vm1604_vm1, %v12239_v2  ;;  %v7228_v2 = vld [vmem:[%s14514_s3 + $0xd90] sm:$0xff]  ;;  %v7319_v5 = vld [vmem:[%s14514_s3 + $0xea8] sm:$0xff]  ;;  %v7329_v49 = vld [vmem:[%s14514_s3 + $0xef8] sm:$0xff] }
 0x325   :  { %8108 = vmatpush1.bf16.msra.mxu0 %v8107_v34  ;;  %8164 = vmatpush1.bf16.msra.mxu1 %v8163_v48  ;;  %v8171_v29 = vpack.c.bf16 %v7232_v39, %v7228_v2  ;;  %v7306_v34 = vld [vmem:[%s14514_s3 + $0xe40] sm:$0xff]  ;;  %v7316_v2 = vld [vmem:[%s14514_s3 + $0xe90] sm:$0xff]  ;;  %v7331_v13 = vld [vmem:[%s14514_s3 + $0xf08] sm:$0xff] }
 0x326   :  { %8110 = vmatprep.subr.bf16.mxu0 %v8109_v32  ;;  %8166 = vmatprep.subr.bf16.mxu1 %v8165_v0  ;;  %v7310_v48 = vld [vmem:[%s14514_s3 + $0xe60] sm:$0xff]  ;;  %v7308_v32 = vld [vmem:[%s14514_s3 + $0xe50] sm:$0xff]  ;;  %v7335_v6 = vld [vmem:[%s14514_s3 + $0xf28] sm:$0xff] }
 0x327   :  { %3500 = vmatmul.mubr.f32.gmra.mrb[50].mxu0 %v12245_v30  ;;  %3733 = vmatmul.mubr.f32.gmra.mrb[218].mxu1 %v12245_v30  ;;  %v8115_v30 = vpack.c.bf16 %v7230_v58, %v7226_v59  ;;  %v7312_v0 = vld [vmem:[%s14514_s3 + $0xe70] sm:$0xff]  ;;  %v7314_v59 = vld [vmem:[%s14514_s3 + $0xe80] sm:$0xff] }
 0x328   :  { %7086 = vmatprep.mubr.msk.f32.mxu0 %vm1604_vm1, %v12249_v7  ;;  %7114 = vmatprep.mubr.msk.f32.mxu1 %vm1604_vm1, %v12249_v7  ;;  %v7236_v7 = vld [vmem:[%s14514_s3 + $0xdd0] sm:$0xff]  ;;  %v7318_v58 = vld [vmem:[%s14514_s3 + $0xea0] sm:$0xff] }
 0x329   :  { %8112 = vmatpush1.bf16.msra.mxu0 %v8111_v1  ;;  %8168 = vmatpush1.bf16.msra.mxu1 %v8167_v38  ;;  %v8175_v47 = vpack.c.bf16 %v7240_v42, %v7236_v7  ;;  %v8183_v1 = vpack.c.bf16 %v7310_v48, %v7306_v34  ;;  %v8239_v38 = vpack.c.bf16 %v7312_v0, %v7308_v32  ;;  %v7320_v39 = vld [vmem:[%s14514_s3 + $0xeb0] sm:$0xff]  ;;  %v13041_v34 = vld [vmem:[#allocation2 + $0xb8] sm:$0xff]  ;;  %v7342_v32 = vld [vmem:[%s14514_s3 + $0xf60] sm:$0xff] }
 0x32a   :  { %8114 = vmatprep.subr.bf16.mxu0 %v8113_v19  ;;  %8170 = vmatprep.subr.bf16.mxu1 %v8169_v44  ;;  %v8185_v19 = vpack.c.bf16 %v7319_v5, %v7315_v50  ;;  %v8241_v44 = vpack.c.bf16 %v7321_v9, %v7317_v10  ;;  %v8189_v7 = vpack.c.bf16 %v7327_v45, %v7323_v11  ;;  %v7328_v61 = vld [vmem:[%s14514_s3 + $0xef0] sm:$0xff]  ;;  %v7347_v9 = vld [vmem:[%s14514_s3 + $0xf88] sm:$0xff] }
 0x32b   :  { %3506 = vmatmul.mubr.f32.gmra.mrb[52].mxu0 %v12255_v14  ;;  %3739 = vmatmul.mubr.f32.gmra.mrb[220].mxu1 %v12255_v14  ;;  %v8119_v14 = vpack.c.bf16 %v7238_v55, %v7234_v27  ;;  %v8187_v27 = vpack.c.bf16 %v7318_v58, %v7314_v59  ;;  %v8243_v55 = vpack.c.bf16 %v7320_v39, %v7316_v2  ;;  %v7340_v5 = vld [vmem:[%s14514_s3 + $0xf50] sm:$0xff]  ;;  %v13075_v58 = vld [vmem:[#allocation2 + $0xc8] sm:$0xff]  ;;  %v7346_v2 = vld [vmem:[%s14514_s3 + $0xf80] sm:$0xff] }
 0x32c   :  { %7087 = vmatprep.mubr.msk.f32.mxu0 %vm1604_vm1, %v12259_v56  ;;  %7115 = vmatprep.mubr.msk.f32.mxu1 %vm1604_vm1, %v12259_v56  ;;  %v12825_v56 = vld [vmem:[#allocation2 + $0x198] sm:$0xff]  ;;  %v8245_v42 = vpack.c.bf16 %v7329_v49, %v7325_v54  ;;  %v7344_v10 = vld [vmem:[%s14514_s3 + $0xf70] sm:$0xff]  ;;  %v7350_v39 = vld [vmem:[%s14514_s3 + $0xfa0] sm:$0xff] }
 0x32d   :  { %8116 = vmatpush1.bf16.msra.mxu0 %v8115_v30  ;;  %8172 = vmatpush1.bf16.msra.mxu1 %v8171_v29  ;;  %v12971_v30 = vld [vmem:[#allocation2 + $0x80] sm:$0xff]  ;;  %v12973_v29 = vld [vmem:[#allocation2 + $0x98] sm:$0xff]  ;;  %v13073_v59 = vld [vmem:[#allocation2 + $0xb0] sm:$0xff] }
 0x32e   :  { %8118 = vmatprep.subr.bf16.mxu0 %v8117_v52  ;;  %8174 = vmatprep.subr.bf16.mxu1 %v8173_v25  ;;  %v7322_v52 = vld [vmem:[%s14514_s3 + $0xec0] sm:$0xff]  ;;  %v7348_v54 = vld [vmem:[%s14514_s3 + $0xf90] sm:$0xff] }
 0x32f   :  { %3512 = vmatmul.mubr.f32.gmra.mrb[54].mxu0 %v12265_v40  ;;  %3745 = vmatmul.mubr.f32.gmra.mrb[222].mxu1 %v12265_v40  ;;  %v12833_v40 = vld [vmem:[#allocation2 + $0x1a8] sm:$0xff]  ;;  %v7326_v25 = vld [vmem:[%s14514_s3 + $0xee0] sm:$0xff]  ;;  %v7352_v49 = vld [vmem:[%s14514_s3 + $0xfb0] sm:$0xff] }
 0x330   :  { %7088 = vmatprep.mubr.msk.f32.mxu0 %vm1604_vm1, %v12269_v35  ;;  %7116 = vmatprep.mubr.msk.f32.mxu1 %vm1604_vm1, %v12269_v35  ;;  %v12841_v35 = vld [vmem:[#allocation2 + $0x1b8] sm:$0xff] }
 0x331   :  { %8120 = vmatpush1.bf16.msra.mxu0 %v8119_v14  ;;  %8176 = vmatpush1.bf16.msra.mxu1 %v8175_v47  ;;  %v7333_v14 = vld [vmem:[%s14514_s3 + $0xf18] sm:$0xff] }
 0x332   :  { %8178 = vmatprep.subr.bf16.mxu0 %v8177_v28  ;;  %8234 = vmatprep.subr.bf16.mxu1 %v8233_v37  ;;  %v7337_v47 = vld [vmem:[%s14514_s3 + $0xf38] sm:$0xff]  ;;  %v13005_v28 = vld [vmem:[#allocation2 + $0x90] sm:$0xff]  ;;  %v13007_v37 = vld [vmem:[#allocation2 + $0xa8] sm:$0xff] }
 0x333   :  { %3518 = vmatmul.mubr.f32.gmra.mrb[56].mxu0 %v12275_v41  ;;  %3751 = vmatmul.mubr.f32.gmra.mrb[224].mxu1 %v12275_v41  ;;  %v12849_v41 = vld [vmem:[#allocation2 + $0x1c8] sm:$0xff] }
 0x334   :  { %7089 = vmatprep.mubr.msk.f32.mxu0 %vm1604_vm1, %v12279_v18  ;;  %7117 = vmatprep.mubr.msk.f32.mxu1 %vm1604_vm1, %v12279_v18  ;;  %v12855_v18 = vld [vmem:[#allocation2 + $0x1c0] sm:$0xff] }
 0x337   :  { %3524 = vmatmul.mubr.f32.gmra.mrb[58].mxu0 %v12285_v31  ;;  %3757 = vmatmul.mubr.f32.gmra.mrb[226].mxu1 %v12285_v31  ;;  %v12859_v31 = vld [vmem:[#allocation2 + $0x1d8] sm:$0xff] }
 0x338   :  { %7090 = vmatprep.mubr.msk.f32.mxu0 %vm1604_vm1, %v12289_v22  ;;  %7118 = vmatprep.mubr.msk.f32.mxu1 %vm1604_vm1, %v12289_v22  ;;  %v12865_v22 = vld [vmem:[#allocation2 + $0x1d0] sm:$0xff] }
 0x33b   :  { %3530 = vmatmul.mubr.f32.gmra.mrb[60].mxu0 %v12295_v17  ;;  %3763 = vmatmul.mubr.f32.gmra.mrb[228].mxu1 %v12295_v17  ;;  %v12869_v17 = vld [vmem:[#allocation2 + $0x1e8] sm:$0xff] }
 0x33c   :  { %7091 = vmatprep.mubr.msk.f32.mxu0 %vm1604_vm1, %v12299_v15  ;;  %7119 = vmatprep.mubr.msk.f32.mxu1 %vm1604_vm1, %v12299_v15  ;;  %v12875_v15 = vld [vmem:[#allocation2 + $0x1e0] sm:$0xff] }
 0x33f   :  { %3536 = vmatmul.mubr.f32.gmra.mrb[62].mxu0 %v12305_v8  ;;  %3769 = vmatmul.mubr.f32.gmra.mrb[230].mxu1 %v12305_v8  ;;  %v12879_v8 = vld [vmem:[#allocation2 + $0x1f8] sm:$0xff] }
 0x340   :  { %7092 = vmatprep.mubr.msk.f32.mxu0 %vm1604_vm1, %v12309_v26  ;;  %7120 = vmatprep.mubr.msk.f32.mxu1 %vm1604_vm1, %v12309_v26  ;;  %v12885_v26 = vld [vmem:[#allocation2 + $0x1f0] sm:$0xff] }
 0x343   :  { %3542 = vmatmul.mubr.f32.gmra.mrb[64].mxu0 %v12315_v33  ;;  %3775 = vmatmul.mubr.f32.gmra.mrb[232].mxu1 %v12315_v33  ;;  %v3949_v33 = vld [vmem:[#allocation2 + $0x68] sm:$0xff] }
 0x344   :  { %7093 = vmatprep.mubr.msk.f32.mxu0 %vm1604_vm1, %v12319_v24  ;;  %7121 = vmatprep.mubr.msk.f32.mxu1 %vm1604_vm1, %v12319_v24  ;;  %v7298_v24 = vld [vmem:[%s14514_s3 + $0xe00] sm:$0xff] }
 0x347   :  { %3548 = vmatmul.mubr.f32.gmra.mrb[66].mxu0 %v12325_v23  ;;  %3781 = vmatmul.mubr.f32.gmra.mrb[234].mxu1 %v12325_v23  ;;  %v7302_v23 = vld [vmem:[%s14514_s3 + $0xe20] sm:$0xff] }
 0x348   :  { %7094 = vmatprep.mubr.msk.f32.mxu0 %vm1604_vm1, %v12329_v12  ;;  %7122 = vmatprep.mubr.msk.f32.mxu1 %vm1604_vm1, %v12329_v12  ;;  %v7300_v12 = vld [vmem:[%s14514_s3 + $0xe10] sm:$0xff]  ;;  %v8179_v46 = vpack.c.bf16 %v7302_v23, %v7298_v24  ;;  %v8247_v24 = vpack.c.bf16 %v7328_v61, %v7324_v62  ;;  %v7330_v23 = vld [vmem:[%s14514_s3 + $0xf00] sm:$0xff]  ;;  %v8203_v62 = vpack.c.bf16 %v7350_v39, %v7346_v2 }
 0x349   :  { %v8259_v61 = vpack.c.bf16 %v7352_v49, %v7348_v54  ;;  %v7379_v54 = vld [vmem:[%s14514_s3 + $0x1088] sm:$0xff] }
 0x34a   :  { %v7383_v49 = vld [vmem:[%s14514_s3 + $0x10a8] sm:$0xff] }
 0x34b   :  { %3554 = vmatmul.mubr.f32.gmra.mrb[68].mxu0 %v12335_v20  ;;  %3787 = vmatmul.mubr.f32.gmra.mrb[236].mxu1 %v12335_v20  ;;  %v7304_v20 = vld [vmem:[%s14514_s3 + $0xe30] sm:$0xff] }
 0x34c   :  { %7095 = vmatprep.mubr.msk.f32.mxu0 %vm1604_vm1, %v12825_v56  ;;  %7123 = vmatprep.mubr.msk.f32.mxu1 %vm1604_vm1, %v12825_v56  ;;  %v8235_v43 = vpack.c.bf16 %v7304_v20, %v7300_v12  ;;  %v7334_v12 = vld [vmem:[%s14514_s3 + $0xf20] sm:$0xff]  ;;  %v8193_v20 = vpack.c.bf16 %v7335_v6, %v7331_v13 }
 0x34d   :  { %v8195_v48 = vpack.c.bf16 %v7334_v12, %v7330_v23  ;;  %v7354_v13 = vld [vmem:[%s14514_s3 + $0xfc0] sm:$0xff]  ;;  %v7363_v23 = vld [vmem:[%s14514_s3 + $0x1008] sm:$0xff] }
 0x34e   :  { %v7358_v6 = vld [vmem:[%s14514_s3 + $0xfe0] sm:$0xff]  ;;  %v7367_v12 = vld [vmem:[%s14514_s3 + $0x1028] sm:$0xff] }
 0x34f   :  { %3560 = vmatmul.mubr.f32.gmra.mrb[70].mxu0 %v12343_v36  ;;  %3793 = vmatmul.mubr.f32.gmra.mrb[238].mxu1 %v12343_v36  ;;  %v7307_v36 = vld [vmem:[%s14514_s3 + $0xe48] sm:$0xff] }
 0x350   :  { %7096 = vmatprep.mubr.msk.f32.mxu0 %vm1604_vm1, %v12833_v40  ;;  %7124 = vmatprep.mubr.msk.f32.mxu1 %vm1604_vm1, %v12833_v40 }
 0x353   :  { %3566 = vmatmul.mubr.f32.gmra.mrb[72].mxu0 %v12351_v3  ;;  %3799 = vmatmul.mubr.f32.gmra.mrb[240].mxu1 %v12351_v3  ;;  %v7311_v3 = vld [vmem:[%s14514_s3 + $0xe68] sm:$0xff] }
 0x354   :  { %7097 = vmatprep.mubr.msk.f32.mxu0 %vm1604_vm1, %v12841_v35  ;;  %7125 = vmatprep.mubr.msk.f32.mxu1 %vm1604_vm1, %v12841_v35  ;;  %v8181_v16 = vpack.c.bf16 %v7311_v3, %v7307_v36  ;;  %v8249_v36 = vpack.c.bf16 %v7337_v47, %v7333_v14  ;;  %v7332_v3 = vld [vmem:[%s14514_s3 + $0xf10] sm:$0xff] }
 0x357   :  { %3572 = vmatmul.mubr.f32.gmra.mrb[74].mxu0 %v12359_v51  ;;  %3805 = vmatmul.mubr.f32.gmra.mrb[242].mxu1 %v12359_v51  ;;  %v7309_v51 = vld [vmem:[%s14514_s3 + $0xe58] sm:$0xff] }
 0x358   :  { %7098 = vmatprep.mubr.msk.f32.mxu0 %vm1604_vm1, %v12849_v41  ;;  %7126 = vmatprep.mubr.msk.f32.mxu1 %vm1604_vm1, %v12849_v41  ;;  %v8237_v57 = vpack.c.bf16 %v7313_v60, %v7309_v51  ;;  %v7336_v51 = vld [vmem:[%s14514_s3 + $0xf30] sm:$0xff]  ;;  %v7339_v60 = vld [vmem:[%s14514_s3 + $0xf48] sm:$0xff] }
 0x35b   :  { %3578 = vmatmul.mubr.f32.gmra.mrb[76].mxu0 %v12855_v18  ;;  %3811 = vmatmul.mubr.f32.gmra.mrb[244].mxu1 %v12855_v18 }
 0x35c   :  { %7099 = vmatprep.mubr.msk.f32.mxu0 %vm1604_vm1, %v12859_v31  ;;  %7127 = vmatprep.mubr.msk.f32.mxu1 %vm1604_vm1, %v12859_v31 }
 0x35f   :  { %3584 = vmatmul.mubr.f32.gmra.mrb[78].mxu0 %v12865_v22  ;;  %3817 = vmatmul.mubr.f32.gmra.mrb[246].mxu1 %v12865_v22 }
 0x360   :  { %7100 = vmatprep.mubr.msk.f32.mxu0 %vm1604_vm1, %v12869_v17  ;;  %7128 = vmatprep.mubr.msk.f32.mxu1 %vm1604_vm1, %v12869_v17 }
 0x363   :  { %3590 = vmatmul.mubr.f32.gmra.mrb[80].mxu0 %v12875_v15  ;;  %3823 = vmatmul.mubr.f32.gmra.mrb[248].mxu1 %v12875_v15 }
 0x364   :  { %7101 = vmatprep.mubr.msk.f32.mxu0 %vm1604_vm1, %v12879_v8  ;;  %7129 = vmatprep.mubr.msk.f32.mxu1 %vm1604_vm1, %v12879_v8 }
 0x367   :  { %3596 = vmatmul.mubr.f32.gmra.mrb[82].mxu0 %v12885_v26  ;;  %3829 = vmatmul.mubr.f32.gmra.mrb[250].mxu1 %v12885_v26 }
 0x368   :  { %7242 = vmatprep.mubr.msk.f32.mxu0 %vm1604_vm1, %v3949_v33  ;;  %7270 = vmatprep.mubr.msk.f32.mxu1 %vm1604_vm1, %v3949_v33  ;;  %v8191_v33 = vpack.c.bf16 %v7326_v25, %v7322_v52  ;;  %v7357_v52 = vld [vmem:[%s14514_s3 + $0xfd8] sm:$0xff] }
 0x369   :  { %v7361_v25 = vld [vmem:[%s14514_s3 + $0xff8] sm:$0xff] }
 0x36a   :  { %v8261_v47 = vpack.c.bf16 %v7361_v25, %v7357_v52  ;;  %v13209_v52 = vld [vmem:[#allocation2 + $0xf0] sm:$0xff]  ;;  %v13211_v25 = vld [vmem:[#allocation2 + $0x108] sm:$0xff] }
 0x36b   :  { %4266 = vmatmul.mubr.f32.vlgmr.msra.gmra.mrb[28].mxu0 %v3948_v21  ;;  %4499 = vmatmul.mubr.f32.vlgmr.msra.gmra.mrb[196].mxu1 %v3948_v21  ;;  %v7343_v21 = vld [vmem:[%s14514_s3 + $0xf68] sm:$0xff] }
 0x36c   :  { %7243 = vmatprep.mubr.msk.f32.mxu0 %vm1604_vm1, %v3951_v4  ;;  %7271 = vmatprep.mubr.msk.f32.mxu1 %vm1604_vm1, %v3951_v4  ;;  %v7341_v4 = vld [vmem:[%s14514_s3 + $0xf58] sm:$0xff]  ;;  %v8197_v0 = vpack.c.bf16 %v7343_v21, %v7339_v60  ;;  %v8207_v60 = vpack.c.bf16 %v7358_v6, %v7354_v13  ;;  %v7378_v13 = vld [vmem:[%s14514_s3 + $0x1080] sm:$0xff] }
 0x36d   :  { %8180 = vmatpush1.bf16.msra.mxu0 %v8179_v46  ;;  %8236 = vmatpush1.bf16.msra.mxu1 %v8235_v43  ;;  %v7345_v46 = vld [vmem:[%s14514_s3 + $0xf78] sm:$0xff]  ;;  %v13039_v43 = vld [vmem:[#allocation2 + $0xa0] sm:$0xff] }
 0x36e   :  { %8182 = vmatprep.subr.bf16.mxu0 %v8181_v16  ;;  %8238 = vmatprep.subr.bf16.mxu1 %v8237_v57  ;;  %v8251_v16 = vpack.c.bf16 %v7336_v51, %v7332_v3  ;;  %v7338_v57 = vld [vmem:[%s14514_s3 + $0xf40] sm:$0xff]  ;;  %v8253_v50 = vpack.c.bf16 %v7345_v46, %v7341_v4  ;;  %v13141_v3 = vld [vmem:[#allocation2 + $0xd0] sm:$0xff]  ;;  %v13143_v51 = vld [vmem:[#allocation2 + $0xe8] sm:$0xff] }
 0x36f   :  { %4272 = vmatmul.mubr.f32.gmra.mrb[30].mxu0 %v3950_v63  ;;  %4505 = vmatmul.mubr.f32.gmra.mrb[198].mxu1 %v3950_v63  ;;  %v7351_v63 = vld [vmem:[%s14514_s3 + $0xfa8] sm:$0xff]  ;;  %v7362_v4 = vld [vmem:[%s14514_s3 + $0x1000] sm:$0xff] }
 0x370   :  { %7244 = vmatprep.mubr.msk.f32.mxu0 %vm1604_vm1, %v12941_v53  ;;  %7272 = vmatprep.mubr.msk.f32.mxu1 %vm1604_vm1, %v12941_v53  ;;  %v8201_v11 = vpack.c.bf16 %v7351_v63, %v7347_v9  ;;  %v7366_v46 = vld [vmem:[%s14514_s3 + $0x1020] sm:$0xff]  ;;  %v13177_v63 = vld [vmem:[#allocation2 + $0xf8] sm:$0xff] }
 0x371   :  { %8184 = vmatpush1.bf16.msra.mxu0 %v8183_v1  ;;  %8240 = vmatpush1.bf16.msra.mxu1 %v8239_v38  ;;  %v7349_v1 = vld [vmem:[%s14514_s3 + $0xf98] sm:$0xff]  ;;  %v13175_v9 = vld [vmem:[#allocation2 + $0xe0] sm:$0xff] }
 0x372   :  { %8186 = vmatprep.subr.bf16.mxu0 %v8185_v19  ;;  %8242 = vmatprep.subr.bf16.mxu1 %v8241_v44  ;;  %v7353_v38 = vld [vmem:[%s14514_s3 + $0xfb8] sm:$0xff]  ;;  %v8199_v19 = vpack.c.bf16 %v7342_v32, %v7338_v57  ;;  %v8255_v44 = vpack.c.bf16 %v7344_v10, %v7340_v5  ;;  %v7364_v57 = vld [vmem:[%s14514_s3 + $0x1010] sm:$0xff]  ;;  %v7382_v6 = vld [vmem:[%s14514_s3 + $0x10a0] sm:$0xff] }
 0x373   :  { %4278 = vmatmul.mubr.f32.gmra.mrb[32].mxu0 %v12971_v30  ;;  %4511 = vmatmul.mubr.f32.gmra.mrb[200].mxu1 %v12971_v30  ;;  %v8257_v45 = vpack.c.bf16 %v7353_v38, %v7349_v1  ;;  %v7368_v32 = vld [vmem:[%s14514_s3 + $0x1030] sm:$0xff]  ;;  %v7373_v5 = vld [vmem:[%s14514_s3 + $0x1058] sm:$0xff]  ;;  %v8211_v1 = vpack.c.bf16 %v7366_v46, %v7362_v4  ;;  %v8219_v4 = vpack.c.bf16 %v7382_v6, %v7378_v13 }
 0x374   :  { %7245 = vmatprep.mubr.msk.f32.mxu0 %vm1604_vm1, %v12973_v29  ;;  %7273 = vmatprep.mubr.msk.f32.mxu1 %vm1604_vm1, %v12973_v29  ;;  %v7377_v10 = vld [vmem:[%s14514_s3 + $0x1078] sm:$0xff]  ;;  %v8267_v38 = vpack.c.bf16 %v7368_v32, %v7364_v57 }
 0x375   :  { %8188 = vmatpush1.bf16.msra.mxu0 %v8187_v27  ;;  %8244 = vmatpush1.bf16.msra.mxu1 %v8243_v55  ;;  %v7355_v27 = vld [vmem:[%s14514_s3 + $0xfc8] sm:$0xff]  ;;  %v8269_v39 = vpack.c.bf16 %v7377_v10, %v7373_v5  ;;  %v7405_v13 = vld [vmem:[%s14514_s3 + $0x1158] sm:$0xff] }
 0x376   :  { %8190 = vmatprep.subr.bf16.mxu0 %v8189_v7  ;;  %8246 = vmatprep.subr.bf16.mxu1 %v8245_v42  ;;  %v7359_v55 = vld [vmem:[%s14514_s3 + $0xfe8] sm:$0xff]  ;;  %v13107_v7 = vld [vmem:[#allocation2 + $0xc0] sm:$0xff]  ;;  %v13109_v42 = vld [vmem:[#allocation2 + $0xd8] sm:$0xff] }
 0x377   :  { %4284 = vmatmul.mubr.f32.gmra.mrb[34].mxu0 %v13005_v28  ;;  %4517 = vmatmul.mubr.f32.gmra.mrb[202].mxu1 %v13005_v28  ;;  %v8205_v14 = vpack.c.bf16 %v7359_v55, %v7355_v27  ;;  %v7381_v27 = vld [vmem:[%s14514_s3 + $0x1098] sm:$0xff]  ;;  %v7395_v5 = vld [vmem:[%s14514_s3 + $0x1108] sm:$0xff] }
 0x378   :  { %7246 = vmatprep.mubr.msk.f32.mxu0 %vm1604_vm1, %v13007_v37  ;;  %7274 = vmatprep.mubr.msk.f32.mxu1 %vm1604_vm1, %v13007_v37  ;;  %v7385_v55 = vld [vmem:[%s14514_s3 + $0x10b8] sm:$0xff]  ;;  %v7399_v10 = vld [vmem:[%s14514_s3 + $0x1128] sm:$0xff] }
 0x379   :  { %8192 = vmatpush1.bf16.msra.mxu0 %v8191_v33  ;;  %8248 = vmatpush1.bf16.msra.mxu1 %v8247_v24  ;;  %v7356_v33 = vld [vmem:[%s14514_s3 + $0xfd0] sm:$0xff]  ;;  %v7409_v6 = vld [vmem:[%s14514_s3 + $0x1178] sm:$0xff] }
 0x37a   :  { %8194 = vmatprep.subr.bf16.mxu0 %v8193_v20  ;;  %8250 = vmatprep.subr.bf16.mxu1 %v8249_v36  ;;  %v7360_v24 = vld [vmem:[%s14514_s3 + $0xff0] sm:$0xff]  ;;  %v7365_v20 = vld [vmem:[%s14514_s3 + $0x1018] sm:$0xff] }
 0x37b   :  { %4290 = vmatmul.mubr.f32.gmra.mrb[36].mxu0 %v13039_v43  ;;  %4523 = vmatmul.mubr.f32.gmra.mrb[204].mxu1 %v13039_v43  ;;  %v7369_v36 = vld [vmem:[%s14514_s3 + $0x1038] sm:$0xff]  ;;  %v8263_v21 = vpack.c.bf16 %v7360_v24, %v7356_v33  ;;  %v7380_v33 = vld [vmem:[%s14514_s3 + $0x1090] sm:$0xff] }
 0x37c   :  { %7247 = vmatprep.mubr.msk.f32.mxu0 %vm1604_vm1, %v13041_v34  ;;  %7275 = vmatprep.mubr.msk.f32.mxu1 %vm1604_vm1, %v13041_v34  ;;  %v7384_v24 = vld [vmem:[%s14514_s3 + $0x10b0] sm:$0xff] }
 0x37d   :  { %8196 = vmatpush1.bf16.msra.mxu0 %v8195_v48  ;;  %8252 = vmatpush1.bf16.msra.mxu1 %v8251_v16  ;;  %v8209_v48 = vpack.c.bf16 %v7367_v12, %v7363_v23  ;;  %v8265_v16 = vpack.c.bf16 %v7369_v36, %v7365_v20  ;;  %v7387_v23 = vld [vmem:[%s14514_s3 + $0x10c8] sm:$0xff]  ;;  %v7389_v20 = vld [vmem:[%s14514_s3 + $0x10d8] sm:$0xff]  ;;  %v8275_v46 = vpack.c.bf16 %v7384_v24, %v7380_v33  ;;  %v7402_v24 = vld [vmem:[%s14514_s3 + $0x1140] sm:$0xff] }
 0x37e   :  { %8198 = vmatprep.subr.bf16.mxu0 %v8197_v0  ;;  %8254 = vmatprep.subr.bf16.mxu1 %v8253_v50  ;;  %v7371_v0 = vld [vmem:[%s14514_s3 + $0x1048] sm:$0xff]  ;;  %v7393_v36 = vld [vmem:[%s14514_s3 + $0x10f8] sm:$0xff] }
 0x37f   :  { %4296 = vmatmul.mubr.f32.gmra.mrb[38].mxu0 %v13073_v59  ;;  %4529 = vmatmul.mubr.f32.gmra.mrb[206].mxu1 %v13073_v59  ;;  %v7375_v50 = vld [vmem:[%s14514_s3 + $0x1068] sm:$0xff]  ;;  %v8277_v32 = vpack.c.bf16 %v7393_v36, %v7389_v20  ;;  %v7406_v20 = vld [vmem:[%s14514_s3 + $0x1160] sm:$0xff]  ;;  %v7404_v36 = vld [vmem:[%s14514_s3 + $0x1150] sm:$0xff] }
 0x380   :  { %7248 = vmatprep.mubr.msk.f32.mxu0 %vm1604_vm1, %v13075_v58  ;;  %7276 = vmatprep.mubr.msk.f32.mxu1 %vm1604_vm1, %v13075_v58  ;;  %v8213_v2 = vpack.c.bf16 %v7375_v50, %v7371_v0  ;;  %v7391_v12 = vld [vmem:[%s14514_s3 + $0x10e8] sm:$0xff]  ;;  %v7388_v0 = vld [vmem:[%s14514_s3 + $0x10d0] sm:$0xff] }
 0x381   :  { %8200 = vmatpush1.bf16.msra.mxu0 %v8199_v19  ;;  %8256 = vmatpush1.bf16.msra.mxu1 %v8255_v44  ;;  %v7370_v19 = vld [vmem:[%s14514_s3 + $0x1040] sm:$0xff]  ;;  %v8221_v57 = vpack.c.bf16 %v7391_v12, %v7387_v23  ;;  %v7392_v50 = vld [vmem:[%s14514_s3 + $0x10f0] sm:$0xff]  ;;  %v8285_v12 = vpack.c.bf16 %v7409_v6, %v7405_v13  ;;  %v5852_v13 = vld [vmem:[%s14516_s5 + $0x78] sm:$0xff] }
 0x382   :  { %8202 = vmatprep.subr.bf16.mxu0 %v8201_v11  ;;  %8258 = vmatprep.subr.bf16.mxu1 %v8257_v45  ;;  %v7374_v44 = vld [vmem:[%s14514_s3 + $0x1060] sm:$0xff]  ;;  %v7372_v11 = vld [vmem:[%s14514_s3 + $0x1050] sm:$0xff]  ;;  %v5854_v6 = vld [vmem:[%s14516_s5 + $0x88] sm:$0xff] }
 0x383   :  { %4302 = vmatmul.mubr.f32.gmra.mrb[40].mxu0 %v13107_v7  ;;  %4535 = vmatmul.mubr.f32.gmra.mrb[208].mxu1 %v13107_v7  ;;  %v7376_v45 = vld [vmem:[%s14514_s3 + $0x1070] sm:$0xff] }
 0x384   :  { %7249 = vmatprep.mubr.msk.f32.mxu0 %vm1604_vm1, %v13109_v42  ;;  %7277 = vmatprep.mubr.msk.f32.mxu1 %vm1604_vm1, %v13109_v42 }
 0x385   :  { %8204 = vmatpush1.bf16.msra.mxu0 %v8203_v62  ;;  %8260 = vmatpush1.bf16.msra.mxu1 %v8259_v61  ;;  %v8215_v62 = vpack.c.bf16 %v7374_v44, %v7370_v19  ;;  %v8271_v61 = vpack.c.bf16 %v7376_v45, %v7372_v11  ;;  %v13277_v19 = vld [vmem:[#allocation2 + $0x110] sm:$0xff]  ;;  %v13279_v44 = vld [vmem:[#allocation2 + $0x128] sm:$0xff]  ;;  %v7394_v11 = vld [vmem:[%s14514_s3 + $0x1100] sm:$0xff] }
 0x386   :  { %8206 = vmatprep.subr.bf16.mxu0 %v8205_v14  ;;  %8262 = vmatprep.subr.bf16.mxu1 %v8261_v47  ;;  %v8217_v14 = vpack.c.bf16 %v7383_v49, %v7379_v54  ;;  %v8273_v47 = vpack.c.bf16 %v7385_v55, %v7381_v27  ;;  %v7398_v45 = vld [vmem:[%s14514_s3 + $0x1120] sm:$0xff]  ;;  %v8225_v54 = vpack.c.bf16 %v7399_v10, %v7395_v5  ;;  %v7396_v27 = vld [vmem:[%s14514_s3 + $0x1110] sm:$0xff]  ;;  %v13357_v10 = vld [vmem:[#allocation2 + $0x168] sm:$0xff] }
 0x387   :  { %4308 = vmatmul.mubr.f32.gmra.mrb[42].mxu0 %v13141_v3  ;;  %4541 = vmatmul.mubr.f32.gmra.mrb[210].mxu1 %v13141_v3  ;;  %v7400_v55 = vld [vmem:[%s14514_s3 + $0x1130] sm:$0xff] }
 0x388   :  { %7250 = vmatprep.mubr.msk.f32.mxu0 %vm1604_vm1, %v13143_v51  ;;  %7278 = vmatprep.mubr.msk.f32.mxu1 %vm1604_vm1, %v13143_v51  ;;  %v8283_v33 = vpack.c.bf16 %v7400_v55, %v7396_v27  ;;  %v13353_v5 = vld [vmem:[#allocation2 + $0x150] sm:$0xff]  ;;  %v5844_v27 = vld [vmem:[%s14516_s5 + $0x38] sm:$0xff]  ;;  %v5846_v55 = vld [vmem:[%s14516_s5 + $0x48] sm:$0xff] }
 0x389   :  { %8208 = vmatpush1.bf16.msra.mxu0 %v8207_v60  ;;  %8264 = vmatpush1.bf16.msra.mxu1 %v8263_v21  ;;  %v13243_v60 = vld [vmem:[#allocation2 + $0x100] sm:$0xff]  ;;  %v13245_v21 = vld [vmem:[#allocation2 + $0x118] sm:$0xff] }
 0x38a   :  { %8210 = vmatprep.subr.bf16.mxu0 %v8209_v48  ;;  %8266 = vmatprep.subr.bf16.mxu1 %v8265_v16  ;;  %v7386_v48 = vld [vmem:[%s14514_s3 + $0x10c0] sm:$0xff] }
 0x38b   :  { %4314 = vmatmul.mubr.f32.gmra.mrb[44].mxu0 %v13175_v9  ;;  %4547 = vmatmul.mubr.f32.gmra.mrb[212].mxu1 %v13175_v9  ;;  %v7390_v16 = vld [vmem:[%s14514_s3 + $0x10e0] sm:$0xff] }
 0x38c   :  { %7251 = vmatprep.mubr.msk.f32.mxu0 %vm1604_vm1, %v13177_v63  ;;  %7279 = vmatprep.mubr.msk.f32.mxu1 %vm1604_vm1, %v13177_v63 }
 0x38d   :  { %8212 = vmatpush1.bf16.msra.mxu0 %v8211_v1  ;;  %8268 = vmatpush1.bf16.msra.mxu1 %v8267_v38  ;;  %v7397_v1 = vld [vmem:[%s14514_s3 + $0x1118] sm:$0xff] }
 0x38e   :  { %8214 = vmatprep.subr.bf16.mxu0 %v8213_v2  ;;  %8270 = vmatprep.subr.bf16.mxu1 %v8269_v39  ;;  %v7401_v38 = vld [vmem:[%s14514_s3 + $0x1138] sm:$0xff]  ;;  %v8223_v2 = vpack.c.bf16 %v7390_v16, %v7386_v48  ;;  %v8279_v39 = vpack.c.bf16 %v7392_v50, %v7388_v0  ;;  %v8231_v48 = vpack.c.bf16 %v7406_v20, %v7402_v24  ;;  %v13343_v0 = vld [vmem:[#allocation2 + $0x140] sm:$0xff] }
 0x38f   :  { %4320 = vmatmul.mubr.f32.gmra.mrb[46].mxu0 %v13209_v52  ;;  %4553 = vmatmul.mubr.f32.gmra.mrb[214].mxu1 %v13209_v52  ;;  %v8281_v49 = vpack.c.bf16 %v7401_v38, %v7397_v1  ;;  %v13347_v50 = vld [vmem:[#allocation2 + $0x158] sm:$0xff]  ;;  %v13363_v1 = vld [vmem:[#allocation2 + $0x160] sm:$0xff] }
 0x390   :  { %7252 = vmatprep.mubr.msk.f32.mxu0 %vm1604_vm1, %v13211_v25  ;;  %7280 = vmatprep.mubr.msk.f32.mxu1 %vm1604_vm1, %v13211_v25  ;;  %v13367_v38 = vld [vmem:[#allocation2 + $0x178] sm:$0xff]  ;;  %v4820_v20 = vld [vmem:[#allocation2 + $0x1c0] sm:$0xff] }
 0x391   :  { %8216 = vmatpush1.bf16.msra.mxu0 %v8215_v62  ;;  %8272 = vmatpush1.bf16.msra.mxu1 %v8271_v61  ;;  %v7403_v62 = vld [vmem:[%s14514_s3 + $0x1148] sm:$0xff]  ;;  %v5860_v24 = vld [vmem:[%s14516_s5 + $0xb8] sm:$0xff] }
 0x392   :  { %8218 = vmatprep.subr.bf16.mxu0 %v8217_v14  ;;  %8274 = vmatprep.subr.bf16.mxu1 %v8273_v47  ;;  %v7407_v61 = vld [vmem:[%s14514_s3 + $0x1168] sm:$0xff]  ;;  %v13311_v14 = vld [vmem:[#allocation2 + $0x120] sm:$0xff]  ;;  %v8227_v47 = vpack.c.bf16 %v7398_v45, %v7394_v11  ;;  %v13391_v45 = vld [vmem:[#allocation2 + $0x190] sm:$0xff] }
 0x393   :  { %4326 = vmatmul.mubr.f32.gmra.mrb[48].mxu0 %v13243_v60  ;;  %4559 = vmatmul.mubr.f32.gmra.mrb[216].mxu1 %v13243_v60  ;;  %v8229_v23 = vpack.c.bf16 %v7407_v61, %v7403_v62  ;;  %v13383_v11 = vld [vmem:[#allocation2 + $0x180] sm:$0xff]  ;;  %v5848_v62 = vld [vmem:[%s14516_s5 + $0x58] sm:$0xff]  ;;  %v5850_v61 = vld [vmem:[%s14516_s5 + $0x68] sm:$0xff] }
 0x394   :  { %7253 = vmatprep.mubr.msk.f32.mxu0 %vm1604_vm1, %v13245_v21  ;;  %7281 = vmatprep.mubr.msk.f32.mxu1 %vm1604_vm1, %v13245_v21 }
 0x395   :  { %8220 = vmatpush1.bf16.msra.mxu0 %v8219_v4  ;;  %8276 = vmatpush1.bf16.msra.mxu1 %v8275_v46  ;;  %v7408_v4 = vld [vmem:[%s14514_s3 + $0x1170] sm:$0xff]  ;;  %v13327_v46 = vld [vmem:[#allocation2 + $0x138] sm:$0xff] }
 0x396   :  { %8222 = vmatprep.subr.bf16.mxu0 %v8221_v57  ;;  %8278 = vmatprep.subr.bf16.mxu1 %v8277_v32  ;;  %v8287_v16 = vpack.c.bf16 %v7408_v4, %v7404_v36  ;;  %v13333_v57 = vld [vmem:[#allocation2 + $0x130] sm:$0xff]  ;;  %v13337_v32 = vld [vmem:[#allocation2 + $0x148] sm:$0xff]  ;;  %v4823_v36 = vld [vmem:[#allocation2 + $0x1d8] sm:$0xff] }
 0x397   :  { %4332 = vmatmul.mubr.f32.gmra.mrb[50].mxu0 %v13277_v19  ;;  %4565 = vmatmul.mubr.f32.gmra.mrb[218].mxu1 %v13277_v19  ;;  %v4822_v4 = vld [vmem:[#allocation2 + $0x1d0] sm:$0xff] }
 0x398   :  { %7254 = vmatprep.mubr.msk.f32.mxu0 %vm1604_vm1, %v13279_v44  ;;  %7282 = vmatprep.mubr.msk.f32.mxu1 %vm1604_vm1, %v13279_v44 }
 0x399   :  { %8224 = vmatpush1.bf16.msra.mxu0 %v8223_v2  ;;  %8280 = vmatpush1.bf16.msra.mxu1 %v8279_v39  ;;  %v13373_v2 = vld [vmem:[#allocation2 + $0x170] sm:$0xff]  ;;  %v13377_v39 = vld [vmem:[#allocation2 + $0x188] sm:$0xff] }
 0x39a   :  { %8226 = vmatprep.subr.bf16.mxu0 %v8225_v54  ;;  %8282 = vmatprep.subr.bf16.mxu1 %v8281_v49  ;;  %v13399_v54 = vld [vmem:[#allocation2 + $0x1a0] sm:$0xff]  ;;  %v5842_v49 = vld [vmem:[%s14516_s5 + $0x28] sm:$0xff] }
 0x39b   :  { %4338 = vmatmul.mubr.f32.gmra.mrb[52].mxu0 %v13311_v14  ;;  %4571 = vmatmul.mubr.f32.gmra.mrb[220].mxu1 %v13311_v14 }
 0x39c   :  { %7255 = vmatprep.mubr.msk.f32.mxu0 %vm1604_vm1, %v13327_v46  ;;  %7283 = vmatprep.mubr.msk.f32.mxu1 %vm1604_vm1, %v13327_v46 }
 0x39d   :  { %8228 = vmatpush1.bf16.msra.mxu0 %v8227_v47  ;;  %8284 = vmatpush1.bf16.msra.mxu1 %v8283_v33  ;;  %v5856_v47 = vld [vmem:[%s14516_s5 + $0x98] sm:$0xff]  ;;  %v5858_v33 = vld [vmem:[%s14516_s5 + $0xa8] sm:$0xff] }
 0x39e   :  { %8230 = vmatprep.subr.bf16.mxu0 %v8229_v23  ;;  %8286 = vmatprep.subr.bf16.mxu1 %v8285_v12  ;;  %v4819_v23 = vld [vmem:[#allocation2 + $0x1b8] sm:$0xff]  ;;  %v4821_v12 = vld [vmem:[#allocation2 + $0x1c8] sm:$0xff] }
 0x39f   :  { %4344 = vmatmul.mubr.f32.gmra.mrb[54].mxu0 %v13333_v57  ;;  %4577 = vmatmul.mubr.f32.gmra.mrb[222].mxu1 %v13333_v57 }
 0x3a0   :  { %7256 = vmatprep.mubr.msk.f32.mxu0 %vm1604_vm1, %v13337_v32  ;;  %7284 = vmatprep.mubr.msk.f32.mxu1 %vm1604_vm1, %v13337_v32 }
 0x3a1   :  { %8232 = vmatpush1.bf16.msra.mxu0 %v8231_v48  ;;  %8288 = vmatpush1.bf16.msra.mxu1 %v8287_v16  ;;  %v4824_v48 = vld [vmem:[#allocation2 + $0x1e0] sm:$0xff] }
 0x3a2   :  { %v5861_v16 = vld [vmem:[%s14516_s5 + $0xc0] sm:$0xff] }
 0x3a3   :  { %4350 = vmatmul.mubr.f32.gmra.mrb[56].mxu0 %v13343_v0  ;;  %4583 = vmatmul.mubr.f32.gmra.mrb[224].mxu1 %v13343_v0 }
 0x3a4   :  { %7257 = vmatprep.mubr.msk.f32.mxu0 %vm1604_vm1, %v13347_v50  ;;  %7285 = vmatprep.mubr.msk.f32.mxu1 %vm1604_vm1, %v13347_v50 }
 0x3a7   :  { %4356 = vmatmul.mubr.f32.gmra.mrb[58].mxu0 %v13353_v5  ;;  %4589 = vmatmul.mubr.f32.gmra.mrb[226].mxu1 %v13353_v5 }
 0x3a8   :  { %7258 = vmatprep.mubr.msk.f32.mxu0 %vm1604_vm1, %v13357_v10  ;;  %7286 = vmatprep.mubr.msk.f32.mxu1 %vm1604_vm1, %v13357_v10 }
 0x3ab   :  { %4362 = vmatmul.mubr.f32.gmra.mrb[60].mxu0 %v13363_v1  ;;  %4595 = vmatmul.mubr.f32.gmra.mrb[228].mxu1 %v13363_v1 }
 0x3ac   :  { %7259 = vmatprep.mubr.msk.f32.mxu0 %vm1604_vm1, %v13367_v38  ;;  %7287 = vmatprep.mubr.msk.f32.mxu1 %vm1604_vm1, %v13367_v38 }
 0x3af   :  { %4368 = vmatmul.mubr.f32.gmra.mrb[62].mxu0 %v13373_v2  ;;  %4601 = vmatmul.mubr.f32.gmra.mrb[230].mxu1 %v13373_v2 }
 0x3b0   :  { %7260 = vmatprep.mubr.msk.f32.mxu0 %vm1604_vm1, %v13377_v39  ;;  %7288 = vmatprep.mubr.msk.f32.mxu1 %vm1604_vm1, %v13377_v39 }
 0x3b3   :  { %4374 = vmatmul.mubr.f32.gmra.mrb[64].mxu0 %v13383_v11  ;;  %4607 = vmatmul.mubr.f32.gmra.mrb[232].mxu1 %v13383_v11 }
 0x3b4   :  { %7261 = vmatprep.mubr.msk.f32.mxu0 %vm1604_vm1, %v12825_v56  ;;  %7289 = vmatprep.mubr.msk.f32.mxu1 %vm1604_vm1, %v12825_v56  ;;  %v13407_v56 = vld [vmem:[#allocation2 + $0x1b0] sm:$0xff] }
 0x3b7   :  { %4380 = vmatmul.mubr.f32.gmra.mrb[66].mxu0 %v13391_v45  ;;  %4613 = vmatmul.mubr.f32.gmra.mrb[234].mxu1 %v13391_v45 }
 0x3b8   :  { %7262 = vmatprep.mubr.msk.f32.mxu0 %vm1604_vm1, %v12833_v40  ;;  %7290 = vmatprep.mubr.msk.f32.mxu1 %vm1604_vm1, %v12833_v40  ;;  %v9162_v40 = vmov 0.0|0.0  }
 0x3b9   :  { %8289 = vmatprep.subr.bf16.mxu0 %v9162_v40  ;;  %8603 = vmatprep.subr.bf16.mxu1 %v9162_v40 }
 0x3bb   :  { %4386 = vmatmul.mubr.f32.gmra.mrb[68].mxu0 %v13399_v54  ;;  %4619 = vmatmul.mubr.f32.gmra.mrb[236].mxu1 %v13399_v54 }
 0x3bc   :  { %7263 = vmatprep.mubr.msk.f32.mxu0 %vm1604_vm1, %v12841_v35  ;;  %7291 = vmatprep.mubr.msk.f32.mxu1 %vm1604_vm1, %v12841_v35  ;;  %v13435_v35 = vld [vmem:[#allocation2 + $0x208] sm:$0xff] }
 0x3bf   :  { %4392 = vmatmul.mubr.f32.gmra.mrb[70].mxu0 %v13407_v56  ;;  %4625 = vmatmul.mubr.f32.gmra.mrb[238].mxu1 %v13407_v56 }
 0x3c0   :  { %7264 = vmatprep.mubr.msk.f32.mxu0 %vm1604_vm1, %v12849_v41  ;;  %7292 = vmatprep.mubr.msk.f32.mxu1 %vm1604_vm1, %v12849_v41  ;;  %v13443_v41 = vld [vmem:[#allocation2 + $0x218] sm:$0xff] }
 0x3c3   :  { %4398 = vmatmul.mubr.f32.gmra.mrb[72].mxu0 %v12855_v18  ;;  %4631 = vmatmul.mubr.f32.gmra.mrb[240].mxu1 %v12855_v18  ;;  %v13445_v18 = vld [vmem:[#allocation2] sm:$0xff] }
 0x3c4   :  { %7265 = vmatprep.mubr.msk.f32.mxu0 %vm1604_vm1, %v12859_v31  ;;  %7293 = vmatprep.mubr.msk.f32.mxu1 %vm1604_vm1, %v12859_v31  ;;  %v5837_v31 = vld [vmem:[%s14516_s5] sm:$0xff] }
 0x3c7   :  { %4404 = vmatmul.mubr.f32.gmra.mrb[74].mxu0 %v12865_v22  ;;  %4637 = vmatmul.mubr.f32.gmra.mrb[242].mxu1 %v12865_v22  ;;  %v5838_v22 = vld [vmem:[%s14516_s5 + $0x8] sm:$0xff] }
 0x3c8   :  { %7266 = vmatprep.mubr.msk.f32.mxu0 %vm1604_vm1, %v12869_v17  ;;  %7294 = vmatprep.mubr.msk.f32.mxu1 %vm1604_vm1, %v12869_v17  ;;  %v8290_v17 = vpack.c.bf16 %v5838_v22, %v5837_v31  ;;  %v7625_v22 = vld [vmem:[%s14516_s5 + $0x570] sm:$0xff] }
 0x3cb   :  { %4410 = vmatmul.mubr.f32.gmra.mrb[76].mxu0 %v12875_v15  ;;  %4643 = vmatmul.mubr.f32.gmra.mrb[244].mxu1 %v12875_v15  ;;  %v5839_v15 = vld [vmem:[%s14516_s5 + $0x10] sm:$0xff] }
 0x3cc   :  { %7267 = vmatprep.mubr.msk.f32.mxu0 %vm1604_vm1, %v12879_v8  ;;  %7295 = vmatprep.mubr.msk.f32.mxu1 %vm1604_vm1, %v12879_v8  ;;  %v5840_v8 = vld [vmem:[%s14516_s5 + $0x18] sm:$0xff] }
 0x3cf   :  { %4416 = vmatmul.mubr.f32.gmra.mrb[78].mxu0 %v12885_v26  ;;  %4649 = vmatmul.mubr.f32.gmra.mrb[246].mxu1 %v12885_v26  ;;  %v8293_v26 = vpack.c.bf16 %v5840_v8, %v5839_v15  ;;  %v7627_v8 = vld [vmem:[%s14516_s5 + $0x580] sm:$0xff] }
 0x3d0   :  { %7268 = vmatprep.mubr.msk.f32.mxu0 %vm1604_vm1, %v13435_v35  ;;  %7296 = vmatprep.mubr.msk.f32.mxu1 %vm1604_vm1, %v13435_v35 }
 0x3d3   :  { %4422 = vmatmul.mubr.f32.gmra.mrb[80].mxu0 %v13445_v18  ;;  %4655 = vmatmul.mubr.f32.gmra.mrb[248].mxu1 %v13445_v18 }
 0x3d4   :  { %7269 = vmatprep.mubr.msk.f32.mxu0 %vm1604_vm1, %v13443_v41  ;;  %7297 = vmatprep.mubr.msk.f32.mxu1 %vm1604_vm1, %v13443_v41 }
 0x3d7   :  { %4428 = vmatmul.mubr.f32.gmra.mrb[82].mxu0 %v13445_v18  ;;  %4661 = vmatmul.mubr.f32.gmra.mrb[250].mxu1 %v13445_v18 }
 0x3d8   :  { %7410 = vmatprep.mubr.msk.f32.mxu0 %vm1604_vm1, %v12941_v53  ;;  %7438 = vmatprep.mubr.msk.f32.mxu1 %vm1604_vm1, %v12941_v53  ;;  %v5841_v53 = vld [vmem:[%s14516_s5 + $0x20] sm:$0xff] }
 0x3db   :  { %5098 = vmatmul.mubr.f32.vlgmr.msra.gmra.mrb[28].mxu0 %v12971_v30  ;;  %5331 = vmatmul.mubr.f32.vlgmr.msra.gmra.mrb[196].mxu1 %v12971_v30  ;;  %v8296_v30 = vpack.c.bf16 %v5842_v49, %v5841_v53  ;;  %v7629_v49 = vld [vmem:[%s14516_s5 + $0x590] sm:$0xff] }
 0x3dc   :  { %7411 = vmatprep.mubr.msk.f32.mxu0 %vm1604_vm1, %v12973_v29  ;;  %7439 = vmatprep.mubr.msk.f32.mxu1 %vm1604_vm1, %v12973_v29  ;;  %v5843_v29 = vld [vmem:[%s14516_s5 + $0x30] sm:$0xff] }
 0x3dd   :  { %8291 = vmatpush1.bf16.msra.mxu0 %v8290_v17  ;;  %v7626_v17 = vld [vmem:[%s14516_s5 + $0x578] sm:$0xff] }
 0x3de   :  { %8292 = vmatprep.subr.bf16.mxu0 %v9162_v40  ;;  %v13731_v15 = vpack.c.bf16 %v7626_v17, %v7625_v22 }
 0x3df   :  { %5104 = vmatmul.mubr.f32.gmra.mrb[30].mxu0 %v13005_v28  ;;  %5337 = vmatmul.mubr.f32.gmra.mrb[198].mxu1 %v13005_v28  ;;  %v8299_v28 = vpack.c.bf16 %v5844_v27, %v5843_v29  ;;  %v7631_v27 = vld [vmem:[%s14516_s5 + $0x5a0] sm:$0xff] }
 0x3e0   :  { %7412 = vmatprep.mubr.msk.f32.mxu0 %vm1604_vm1, %v13007_v37  ;;  %7440 = vmatprep.mubr.msk.f32.mxu1 %vm1604_vm1, %v13007_v37  ;;  %v5845_v37 = vld [vmem:[%s14516_s5 + $0x40] sm:$0xff] }
 0x3e1   :  { %8294 = vmatpush1.bf16.msra.mxu0 %v8293_v26  ;;  %v7628_v26 = vld [vmem:[%s14516_s5 + $0x588] sm:$0xff] }
 0x3e2   :  { %8295 = vmatprep.subr.bf16.mxu0 %v9162_v40  ;;  %v13741_v53 = vpack.c.bf16 %v7628_v26, %v7627_v8 }
 0x3e3   :  { %5110 = vmatmul.mubr.f32.gmra.mrb[32].mxu0 %v13039_v43  ;;  %5343 = vmatmul.mubr.f32.gmra.mrb[200].mxu1 %v13039_v43  ;;  %v8302_v43 = vpack.c.bf16 %v5846_v55, %v5845_v37  ;;  %v7633_v55 = vld [vmem:[%s14516_s5 + $0x5b0] sm:$0xff] }
 0x3e4   :  { %7413 = vmatprep.mubr.msk.f32.mxu0 %vm1604_vm1, %v13041_v34  ;;  %7441 = vmatprep.mubr.msk.f32.mxu1 %vm1604_vm1, %v13041_v34  ;;  %v5847_v34 = vld [vmem:[%s14516_s5 + $0x50] sm:$0xff] }
 0x3e5   :  { %8297 = vmatpush1.bf16.msra.mxu0 %v8296_v30  ;;  %v7630_v30 = vld [vmem:[%s14516_s5 + $0x598] sm:$0xff] }
 0x3e6   :  { %8298 = vmatprep.subr.bf16.mxu0 %v9162_v40  ;;  %v13751_v29 = vpack.c.bf16 %v7630_v30, %v7629_v49 }
 0x3e7   :  { %5116 = vmatmul.mubr.f32.gmra.mrb[34].mxu0 %v13073_v59  ;;  %5349 = vmatmul.mubr.f32.gmra.mrb[202].mxu1 %v13073_v59  ;;  %v8305_v59 = vpack.c.bf16 %v5848_v62, %v5847_v34  ;;  %v7635_v62 = vld [vmem:[%s14516_s5 + $0x5c0] sm:$0xff] }
 0x3e8   :  { %7414 = vmatprep.mubr.msk.f32.mxu0 %vm1604_vm1, %v13075_v58  ;;  %7442 = vmatprep.mubr.msk.f32.mxu1 %vm1604_vm1, %v13075_v58  ;;  %v5849_v58 = vld [vmem:[%s14516_s5 + $0x60] sm:$0xff] }
 0x3e9   :  { %8300 = vmatpush1.bf16.msra.mxu0 %v8299_v28  ;;  %v7632_v28 = vld [vmem:[%s14516_s5 + $0x5a8] sm:$0xff] }
 0x3ea   :  { %8301 = vmatprep.subr.bf16.mxu0 %v9162_v40  ;;  %v13761_v37 = vpack.c.bf16 %v7632_v28, %v7631_v27 }
 0x3eb   :  { %5122 = vmatmul.mubr.f32.gmra.mrb[36].mxu0 %v13107_v7  ;;  %5355 = vmatmul.mubr.f32.gmra.mrb[204].mxu1 %v13107_v7  ;;  %v8308_v7 = vpack.c.bf16 %v5850_v61, %v5849_v58  ;;  %v7637_v61 = vld [vmem:[%s14516_s5 + $0x5d0] sm:$0xff] }
 0x3ec   :  { %7415 = vmatprep.mubr.msk.f32.mxu0 %vm1604_vm1, %v13109_v42  ;;  %7443 = vmatprep.mubr.msk.f32.mxu1 %vm1604_vm1, %v13109_v42  ;;  %v5851_v42 = vld [vmem:[%s14516_s5 + $0x70] sm:$0xff] }
 0x3ed   :  { %8303 = vmatpush1.bf16.msra.mxu0 %v8302_v43  ;;  %v7634_v43 = vld [vmem:[%s14516_s5 + $0x5b8] sm:$0xff] }
 0x3ee   :  { %8304 = vmatprep.subr.bf16.mxu0 %v9162_v40  ;;  %v13771_v34 = vpack.c.bf16 %v7634_v43, %v7633_v55 }
 0x3ef   :  { %5128 = vmatmul.mubr.f32.gmra.mrb[38].mxu0 %v13141_v3  ;;  %5361 = vmatmul.mubr.f32.gmra.mrb[206].mxu1 %v13141_v3  ;;  %v8311_v3 = vpack.c.bf16 %v5852_v13, %v5851_v42  ;;  %v7639_v13 = vld [vmem:[%s14516_s5 + $0x5e0] sm:$0xff] }
 0x3f0   :  { %7416 = vmatprep.mubr.msk.f32.mxu0 %vm1604_vm1, %v13143_v51  ;;  %7444 = vmatprep.mubr.msk.f32.mxu1 %vm1604_vm1, %v13143_v51  ;;  %v5853_v51 = vld [vmem:[%s14516_s5 + $0x80] sm:$0xff] }
 0x3f1   :  { %8306 = vmatpush1.bf16.msra.mxu0 %v8305_v59  ;;  %v7636_v59 = vld [vmem:[%s14516_s5 + $0x5c8] sm:$0xff] }
 0x3f2   :  { %8307 = vmatprep.subr.bf16.mxu0 %v9162_v40  ;;  %v13781_v58 = vpack.c.bf16 %v7636_v59, %v7635_v62  ;;  %v7469_v59 = vld [vmem:[%s14516_s5 + $0xe0] sm:$0xff] }
 0x3f3   :  { %5134 = vmatmul.mubr.f32.gmra.mrb[40].mxu0 %v13175_v9  ;;  %5367 = vmatmul.mubr.f32.gmra.mrb[208].mxu1 %v13175_v9  ;;  %v8314_v9 = vpack.c.bf16 %v5854_v6, %v5853_v51  ;;  %v7641_v6 = vld [vmem:[%s14516_s5 + $0x5f0] sm:$0xff] }
 0x3f4   :  { %7417 = vmatprep.mubr.msk.f32.mxu0 %vm1604_vm1, %v13177_v63  ;;  %7445 = vmatprep.mubr.msk.f32.mxu1 %vm1604_vm1, %v13177_v63  ;;  %v5855_v63 = vld [vmem:[%s14516_s5 + $0x90] sm:$0xff] }
 0x3f5   :  { %8309 = vmatpush1.bf16.msra.mxu0 %v8308_v7  ;;  %v7638_v7 = vld [vmem:[%s14516_s5 + $0x5d8] sm:$0xff] }
 0x3f6   :  { %8310 = vmatprep.subr.bf16.mxu0 %v9162_v40  ;;  %v13791_v42 = vpack.c.bf16 %v7638_v7, %v7637_v61  ;;  %v7470_v61 = vld [vmem:[%s14516_s5 + $0xe8] sm:$0xff] }
 0x3f7   :  { %5140 = vmatmul.mubr.f32.gmra.mrb[42].mxu0 %v13209_v52  ;;  %5373 = vmatmul.mubr.f32.gmra.mrb[210].mxu1 %v13209_v52  ;;  %v8317_v52 = vpack.c.bf16 %v5856_v47, %v5855_v63  ;;  %v7643_v47 = vld [vmem:[%s14516_s5 + $0x600] sm:$0xff] }
 0x3f8   :  { %7418 = vmatprep.mubr.msk.f32.mxu0 %vm1604_vm1, %v13211_v25  ;;  %7446 = vmatprep.mubr.msk.f32.mxu1 %vm1604_vm1, %v13211_v25  ;;  %v5857_v25 = vld [vmem:[%s14516_s5 + $0xa0] sm:$0xff] }
 0x3f9   :  { %8312 = vmatpush1.bf16.msra.mxu0 %v8311_v3  ;;  %v7640_v3 = vld [vmem:[%s14516_s5 + $0x5e8] sm:$0xff] }
 0x3fa   :  { %8313 = vmatprep.subr.bf16.mxu0 %v9162_v40  ;;  %v13801_v51 = vpack.c.bf16 %v7640_v3, %v7639_v13 }
 0x3fb   :  { %5146 = vmatmul.mubr.f32.gmra.mrb[44].mxu0 %v13243_v60  ;;  %5379 = vmatmul.mubr.f32.gmra.mrb[212].mxu1 %v13243_v60  ;;  %v8320_v60 = vpack.c.bf16 %v5858_v33, %v5857_v25  ;;  %v7645_v33 = vld [vmem:[%s14516_s5 + $0x610] sm:$0xff] }
 0x3fc   :  { %7419 = vmatprep.mubr.msk.f32.mxu0 %vm1604_vm1, %v13245_v21  ;;  %7447 = vmatprep.mubr.msk.f32.mxu1 %vm1604_vm1, %v13245_v21  ;;  %v5859_v21 = vld [vmem:[%s14516_s5 + $0xb0] sm:$0xff] }
 0x3fd   :  { %8315 = vmatpush1.bf16.msra.mxu0 %v8314_v9  ;;  %v7642_v9 = vld [vmem:[%s14516_s5 + $0x5f8] sm:$0xff] }
 0x3fe   :  { %8316 = vmatprep.subr.bf16.mxu0 %v9162_v40  ;;  %v13811_v63 = vpack.c.bf16 %v7642_v9, %v7641_v6 }
 0x3ff   :  { %5152 = vmatmul.mubr.f32.gmra.mrb[46].mxu0 %v13277_v19  ;;  %5385 = vmatmul.mubr.f32.gmra.mrb[214].mxu1 %v13277_v19  ;;  %v8323_v19 = vpack.c.bf16 %v5860_v24, %v5859_v21 }
 0x400   :  { %7420 = vmatprep.mubr.msk.f32.mxu0 %vm1604_vm1, %v13279_v44  ;;  %7448 = vmatprep.mubr.msk.f32.mxu1 %vm1604_vm1, %v13279_v44  ;;  %v4815_v44 = vld [vmem:[#allocation2 + $0x198] sm:$0xff] }
 0x401   :  { %8318 = vmatpush1.bf16.msra.mxu0 %v8317_v52  ;;  %v7644_v52 = vld [vmem:[%s14516_s5 + $0x608] sm:$0xff] }
 0x402   :  { %8319 = vmatprep.subr.bf16.mxu0 %v9162_v40  ;;  %v13821_v25 = vpack.c.bf16 %v7644_v52, %v7643_v47 }
 0x403   :  { %5158 = vmatmul.mubr.f32.gmra.mrb[48].mxu0 %v13311_v14  ;;  %5391 = vmatmul.mubr.f32.gmra.mrb[216].mxu1 %v13311_v14  ;;  %v4817_v14 = vld [vmem:[#allocation2 + $0x1a8] sm:$0xff] }
 0x404   :  { %7421 = vmatprep.mubr.msk.f32.mxu0 %vm1604_vm1, %v13327_v46  ;;  %7449 = vmatprep.mubr.msk.f32.mxu1 %vm1604_vm1, %v13327_v46  ;;  %v4825_v46 = vld [vmem:[#allocation2 + $0x1e8] sm:$0xff] }
 0x405   :  { %8321 = vmatpush1.bf16.msra.mxu0 %v8320_v60  ;;  %v7646_v60 = vld [vmem:[%s14516_s5 + $0x618] sm:$0xff] }
 0x406   :  { %8322 = vmatprep.subr.bf16.mxu0 %v9162_v40  ;;  %v13831_v21 = vpack.c.bf16 %v7646_v60, %v7645_v33 }
 0x407   :  { %5164 = vmatmul.mubr.f32.gmra.mrb[50].mxu0 %v13333_v57  ;;  %5397 = vmatmul.mubr.f32.gmra.mrb[218].mxu1 %v13333_v57  ;;  %v5862_v57 = vld [vmem:[%s14516_s5 + $0xc8] sm:$0xff] }
 0x408   :  { %7422 = vmatprep.mubr.msk.f32.mxu0 %vm1604_vm1, %v13337_v32  ;;  %7450 = vmatprep.mubr.msk.f32.mxu1 %vm1604_vm1, %v13337_v32  ;;  %v4827_v32 = vld [vmem:[#allocation2 + $0x1f8] sm:$0xff] }
 0x409   :  { %8324 = vmatpush1.bf16.msra.mxu0 %v8323_v19 }
 0x40a   :  { %8325 = vmatprep.subr.bf16.mxu0 %v9162_v40 }
 0x40b   :  { %5170 = vmatmul.mubr.f32.gmra.mrb[52].mxu0 %v13343_v0  ;;  %5403 = vmatmul.mubr.f32.gmra.mrb[220].mxu1 %v13343_v0  ;;  %v8326_v0 = vpack.c.bf16 %v5862_v57, %v5861_v16 }
 0x40c   :  { %7423 = vmatprep.mubr.msk.f32.mxu0 %vm1604_vm1, %v13347_v50  ;;  %7451 = vmatprep.mubr.msk.f32.mxu1 %vm1604_vm1, %v13347_v50  ;;  %v4826_v50 = vld [vmem:[#allocation2 + $0x1f0] sm:$0xff] }
 0x40d   :  { %8327 = vmatpush1.bf16.msra.mxu0 %v8326_v0 }
 0x40e   :  { %8328 = vmatprep.subr.bf16.mxu0 %v9162_v40 }
 0x40f   :  { %5176 = vmatmul.mubr.f32.gmra.mrb[54].mxu0 %v13353_v5  ;;  %5409 = vmatmul.mubr.f32.gmra.mrb[222].mxu1 %v13353_v5  ;;  %v4833_v5 = vld [vmem:[#allocation2 + $0x228] sm:$0xff] }
 0x410   :  { %7424 = vmatprep.mubr.msk.f32.mxu0 %vm1604_vm1, %v13357_v10  ;;  %7452 = vmatprep.mubr.msk.f32.mxu1 %vm1604_vm1, %v13357_v10  ;;  %v5863_v10 = vld [vmem:[%s14516_s5 + $0xd0] sm:$0xff] }
 0x413   :  { %5182 = vmatmul.mubr.f32.gmra.mrb[56].mxu0 %v13363_v1  ;;  %5415 = vmatmul.mubr.f32.gmra.mrb[224].mxu1 %v13363_v1  ;;  %v5864_v1 = vld [vmem:[%s14516_s5 + $0xd8] sm:$0xff] }
 0x414   :  { %7425 = vmatprep.mubr.msk.f32.mxu0 %vm1604_vm1, %v13367_v38  ;;  %7453 = vmatprep.mubr.msk.f32.mxu1 %vm1604_vm1, %v13367_v38  ;;  %v8329_v38 = vpack.c.bf16 %v5864_v1, %v5863_v10 }
 0x416   :  { %8330 = vmatpush1.bf16.msra.mxu0 %v8329_v38 }
 0x417   :  { %5188 = vmatmul.mubr.f32.gmra.mrb[58].mxu0 %v13373_v2  ;;  %5421 = vmatmul.mubr.f32.gmra.mrb[226].mxu1 %v13373_v2  ;;  %v4835_v2 = vld [vmem:[#allocation2 + $0x238] sm:$0xff] }
 0x418   :  { %7426 = vmatprep.mubr.msk.f32.mxu0 %vm1604_vm1, %v13377_v39  ;;  %7454 = vmatprep.mubr.msk.f32.mxu1 %vm1604_vm1, %v13377_v39  ;;  %v7619_v39 = vld [vmem:[%s14516_s5 + $0x540] sm:$0xff] }
 0x419   :  { %8331 = vmatprep.subr.bf16.mxu0 %v9162_v40 }
 0x41b   :  { %5194 = vmatmul.mubr.f32.gmra.mrb[60].mxu0 %v13383_v11  ;;  %5427 = vmatmul.mubr.f32.gmra.mrb[228].mxu1 %v13383_v11  ;;  %v7620_v11 = vld [vmem:[%s14516_s5 + $0x548] sm:$0xff] }
 0x41c   :  { %7427 = vmatprep.mubr.msk.f32.mxu0 %vm1604_vm1, %v4815_v44  ;;  %7455 = vmatprep.mubr.msk.f32.mxu1 %vm1604_vm1, %v4815_v44 }
 0x41f   :  { %5200 = vmatmul.mubr.f32.gmra.mrb[62].mxu0 %v13391_v45  ;;  %5433 = vmatmul.mubr.f32.gmra.mrb[230].mxu1 %v13391_v45  ;;  %v13701_v45 = vpack.c.bf16 %v7620_v11, %v7619_v39 }
 0x420   :  { %7428 = vmatprep.mubr.msk.f32.mxu0 %vm1604_vm1, %v4817_v14  ;;  %7456 = vmatprep.mubr.msk.f32.mxu1 %vm1604_vm1, %v4817_v14 }
 0x421   :  { %8617 = vmatpush1.bf16.msra.mxu1 %v13701_v45 }
 0x422   :  { %8604 = vmatprep.subr.bf16.mxu1 %v9162_v40 }
 0x423   :  { %5206 = vmatmul.mubr.f32.gmra.mrb[64].mxu0 %v13399_v54  ;;  %5439 = vmatmul.mubr.f32.gmra.mrb[232].mxu1 %v13399_v54  ;;  %v7621_v54 = vld [vmem:[%s14516_s5 + $0x550] sm:$0xff] }
 0x424   :  { %7429 = vmatprep.mubr.msk.f32.mxu0 %vm1604_vm1, %v4819_v23  ;;  %7457 = vmatprep.mubr.msk.f32.mxu1 %vm1604_vm1, %v4819_v23 }
 0x427   :  { %5212 = vmatmul.mubr.f32.gmra.mrb[66].mxu0 %v13407_v56  ;;  %5445 = vmatmul.mubr.f32.gmra.mrb[234].mxu1 %v13407_v56  ;;  %v7622_v56 = vld [vmem:[%s14516_s5 + $0x558] sm:$0xff] }
 0x428   :  { %7430 = vmatprep.mubr.msk.f32.mxu0 %vm1604_vm1, %v4821_v12  ;;  %7458 = vmatprep.mubr.msk.f32.mxu1 %vm1604_vm1, %v4821_v12 }
 0x42b   :  { %5218 = vmatmul.mubr.f32.gmra.mrb[68].mxu0 %v4820_v20  ;;  %5451 = vmatmul.mubr.f32.gmra.mrb[236].mxu1 %v4820_v20  ;;  %v5667_v20 = vld [vmem:[%s14517_s4] sm:$0xf] }
 0x42c   :  { %7431 = vmatprep.mubr.msk.f32.mxu0 %vm1604_vm1, %v4823_v36  ;;  %7459 = vmatprep.mubr.msk.f32.mxu1 %vm1604_vm1, %v4823_v36 }
 0x42f   :  { %5224 = vmatmul.mubr.f32.gmra.mrb[70].mxu0 %v4822_v4  ;;  %5457 = vmatmul.mubr.f32.gmra.mrb[238].mxu1 %v4822_v4 }
 0x430   :  { %7432 = vmatprep.mubr.msk.f32.mxu0 %vm1604_vm1, %v4825_v46  ;;  %7460 = vmatprep.mubr.msk.f32.mxu1 %vm1604_vm1, %v4825_v46  ;;  %v14817_v46 = vld [vmem:[#allocation75_spill] sm:$0xff] }
 0x431   :  { %v14819_v57 = vsub.s32 2, %v14817_v46  ;;  %v14821_v1 = vsub.s32 3, %v14817_v46 }
 0x433   :  { %5230 = vmatmul.mubr.f32.gmra.mrb[72].mxu0 %v4824_v48  ;;  %5463 = vmatmul.mubr.f32.gmra.mrb[240].mxu1 %v4824_v48  ;;  %v14818_v48 = vsub.s32 0, %v14817_v46  ;;  %v13851_v38 = vrot.slane %v5667_v20, %v14821_v1 }
 0x434   :  { %7433 = vmatprep.mubr.msk.f32.mxu0 %vm1604_vm1, %v4827_v32  ;;  %7461 = vmatprep.mubr.msk.f32.mxu1 %vm1604_vm1, %v4827_v32  ;;  %v13843_v32 = vrot.slane %v5667_v20, %v14819_v57 }
 0x435   :  { %v13839_v16 = vrot.slane %v5667_v20, %v14818_v48 }
 0x437   :  { %5236 = vmatmul.mubr.f32.gmra.mrb[74].mxu0 %v4826_v50  ;;  %5469 = vmatmul.mubr.f32.gmra.mrb[242].mxu1 %v4826_v50 }
 0x438   :  { %7434 = vmatprep.mubr.msk.f32.mxu0 %vm1604_vm1, %v13435_v35  ;;  %7462 = vmatprep.mubr.msk.f32.mxu1 %vm1604_vm1, %v13435_v35  ;;  %v13711_v35 = vpack.c.bf16 %v7622_v56, %v7621_v54 }
 0x43a   :  { %8618 = vmatpush1.bf16.msra.mxu1 %v13711_v35 }
 0x43b   :  { %5242 = vmatmul.mubr.f32.gmra.mrb[76].mxu0 %v13445_v18  ;;  %5475 = vmatmul.mubr.f32.gmra.mrb[244].mxu1 %v13445_v18 }
 0x43c   :  { %7435 = vmatprep.mubr.msk.f32.mxu0 %vm1604_vm1, %v13443_v41  ;;  %7463 = vmatprep.mubr.msk.f32.mxu1 %vm1604_vm1, %v13443_v41  ;;  %v7623_v41 = vld [vmem:[%s14516_s5 + $0x560] sm:$0xff] }
 0x43d   :  { %8605 = vmatprep.subr.bf16.mxu1 %v9162_v40 }
 0x43f   :  { %5248 = vmatmul.mubr.f32.gmra.mrb[78].mxu0 %v13445_v18  ;;  %5481 = vmatmul.mubr.f32.gmra.mrb[246].mxu1 %v13445_v18 }
 0x440   :  { %7436 = vmatprep.mubr.msk.f32.mxu0 %vm1604_vm1, %v4833_v5  ;;  %7464 = vmatprep.mubr.msk.f32.mxu1 %vm1604_vm1, %v4833_v5  ;;  %v14820_v5 = vsub.s32 1, %v14817_v46 }
 0x442   :  { %v13847_v10 = vrot.slane %v5667_v20, %v14820_v5 }
 0x443   :  { %5254 = vmatmul.mubr.f32.gmra.mrb[80].mxu0 %v13445_v18  ;;  %5487 = vmatmul.mubr.f32.gmra.mrb[248].mxu1 %v13445_v18 }
 0x444   :  { %7437 = vmatprep.mubr.msk.f32.mxu0 %vm1604_vm1, %v4835_v2  ;;  %7465 = vmatprep.mubr.msk.f32.mxu1 %vm1604_vm1, %v4835_v2 }
 0x447   :  { %5260 = vmatmul.mubr.f32.gmra.mrb[82].mxu0 %v13445_v18  ;;  %5493 = vmatmul.mubr.f32.gmra.mrb[250].mxu1 %v13445_v18  ;;  %v7624_v18 = vld [vmem:[%s14516_s5 + $0x568] sm:$0xff] }
 0x448   :  { %v13721_v31 = vpack.c.bf16 %v7624_v18, %v7623_v41 }
 0x44a   :  { %8619 = vmatpush1.bf16.msra.mxu1 %v13721_v31 }
 0x44b   :  { %8606 = vmatprep.subr.bf16.mxu1 %v9162_v40 }
 0x44e   :  { %8620 = vmatpush1.bf16.msra.mxu1 %v13731_v15 }
 0x44f   :  { %8607 = vmatprep.subr.bf16.mxu1 %v9162_v40 }
 0x452   :  { %8621 = vmatpush1.bf16.msra.mxu1 %v13741_v53 }
 0x453   :  { %8608 = vmatprep.subr.bf16.mxu1 %v9162_v40 }
 0x456   :  { %8622 = vmatpush1.bf16.msra.mxu1 %v13751_v29 }
 0x457   :  { %8609 = vmatprep.subr.bf16.mxu1 %v9162_v40 }
 0x45a   :  { %8623 = vmatpush1.bf16.msra.mxu1 %v13761_v37 }
 0x45b   :  { %8610 = vmatprep.subr.bf16.mxu1 %v9162_v40 }
 0x45e   :  { %8624 = vmatpush1.bf16.msra.mxu1 %v13771_v34 }
 0x45f   :  { %8611 = vmatprep.subr.bf16.mxu1 %v9162_v40 }
 0x462   :  { %8625 = vmatpush1.bf16.msra.mxu1 %v13781_v58 }
 0x463   :  { %8612 = vmatprep.subr.bf16.mxu1 %v9162_v40 }
 0x466   :  { %8626 = vmatpush1.bf16.msra.mxu1 %v13791_v42 }
 0x467   :  { %8613 = vmatprep.subr.bf16.mxu1 %v9162_v40 }
 0x46a   :  { %8627 = vmatpush1.bf16.msra.mxu1 %v13801_v51 }
 0x46b   :  { %8614 = vmatprep.subr.bf16.mxu1 %v9162_v40 }
 0x46e   :  { %8628 = vmatpush1.bf16.msra.mxu1 %v13811_v63 }
 0x46f   :  { %8615 = vmatprep.subr.bf16.mxu1 %v9162_v40 }
 0x472   :  { %8629 = vmatpush1.bf16.msra.mxu1 %v13821_v25 }
 0x473   :  { %8616 = vmatprep.subr.bf16.mxu1 %v9162_v40 }
 0x476   :  { %8630 = vmatpush1.bf16.msra.mxu1 %v13831_v21 }
 0x4ae   :  { %v5099_v24 = vpop.f32.mrb[28].mxu0  ;;  %v5332_v19 = vpop.f32.mrb[196].mxu1 }
 0x4af   :  { %v5101_v44 = vpop.f32.mrb[29].mxu0  ;;  %v5334_v14 = vpop.f32.mrb[197].mxu1 }
 0x4b2   :  { %v5105_v23 = vpop.f32.mrb[30].mxu0  ;;  %v5338_v12 = vpop.f32.mrb[198].mxu1 }
 0x4b3   :  { %v5107_v36 = vpop.f32.mrb[31].mxu0  ;;  %v5340_v4 = vpop.f32.mrb[199].mxu1 }
 0x4b6   :  { %v5111_v0 = vpop.f32.mrb[32].mxu0  ;;  %v5344_v50 = vpop.f32.mrb[200].mxu1 }
 0x4b7   :  { %v5611_v2 = vmax.f32 %v5099_v24, %v5111_v0  ;;  %v5613_v39 = vmax.f32 %v5332_v19, %v5344_v50  ;;  %v5113_v11 = vpop.f32.mrb[33].mxu0  ;;  %v5346_v54 = vpop.f32.mrb[201].mxu1 }
 0x4b8   :  { %v5612_v56 = vmax.f32 %v5101_v44, %v5113_v11  ;;  %v5614_v41 = vmax.f32 %v5334_v14, %v5346_v54  ;;  %v8332_v14 = vpack.c.bf16 %v7470_v61, %v7469_v59  ;;  %v7473_v54 = vld [vmem:[%s14516_s5 + $0x100] sm:$0xff] }
 0x4b9   :  { %v5689_v18 = vadd.f32 %v13839_v16, %v5611_v2  ;;  %v5691_v22 = vadd.f32 %v13843_v32, %v5613_v39 }
 0x4ba   :  { %v5690_v17 = vadd.f32 %v13847_v10, %v5612_v56  ;;  %v5692_v8 = vadd.f32 %v13851_v38, %v5614_v41  ;;  %v5117_v26 = vpop.f32.mrb[34].mxu0  ;;  %v5350_v49 = vpop.f32.mrb[202].mxu1  ;;  %v7474_v56 = vld [vmem:[%s14516_s5 + $0x108] sm:$0xff] }
 0x4bb   :  { %v5745_v30 = vmax.f32 %v5689_v18, 0.0  ;;  %v5747_v27 = vmax.f32 %v5691_v22, 0.0  ;;  %v5615_v28 = vmax.f32 %v5105_v23, %v5117_v26  ;;  %v5617_v55 = vmax.f32 %v5338_v12, %v5350_v49  ;;  %v5119_v43 = vpop.f32.mrb[35].mxu0  ;;  %v5352_v62 = vpop.f32.mrb[203].mxu1 }
 0x4bc   :  { %v5746_v7 = vmax.f32 %v5690_v17, 0.0  ;;  %v5748_v13 = vmax.f32 %v5692_v8, 0.0  ;;  %v5616_v3 = vmax.f32 %v5107_v36, %v5119_v43  ;;  %v5618_v6 = vmax.f32 %v5340_v4, %v5352_v62  ;;  %v7471_v36 = vld [vmem:[%s14516_s5 + $0xf0] sm:$0xff]  ;;  %v7472_v4 = vld [vmem:[%s14516_s5 + $0xf8] sm:$0xff] }
 0x4bd   :  { %v5801_v9 = vmax.f32 %v5745_v30, %v5747_v27  ;;  %v5693_v47 = vadd.f32 %v13839_v16, %v5615_v28  ;;  %v5695_v52 = vadd.f32 %v13843_v32, %v5617_v55  ;;  %v8335_v2 = vpack.c.bf16 %v7472_v4, %v7471_v36  ;;  %v7475_v30 = vld [vmem:[%s14516_s5 + $0x110] sm:$0xff]  ;;  %v7476_v27 = vld [vmem:[%s14516_s5 + $0x118] sm:$0xff] }
 0x4be   :  { %v5802_v33 = vmax.f32 %v5746_v7, %v5748_v13  ;;  %v5694_v60 = vadd.f32 %v13847_v10, %v5616_v3  ;;  %v5696_v24 = vadd.f32 %v13851_v38, %v5618_v6  ;;  %v5123_v19 = vpop.f32.mrb[36].mxu0  ;;  %v5356_v44 = vpop.f32.mrb[204].mxu1  ;;  %v8338_v22 = vpack.c.bf16 %v7474_v56, %v7473_v54  ;;  %v7480_v56 = vld [vmem:[%s14516_s5 + $0x138] sm:$0xff] }
 0x4bf   :  { %v5749_v23 = vmax.f32 %v5693_v47, 0.0  ;;  %v5751_v12 = vmax.f32 %v5695_v52, 0.0  ;;  %v5125_v20 = vpop.f32.mrb[37].mxu0  ;;  %v5358_v46 = vpop.f32.mrb[205].mxu1  ;;  %v8341_v3 = vpack.c.bf16 %v7476_v27, %v7475_v30 }
 0x4c0   :  { %v5750_v48 = vmax.f32 %v5694_v60, 0.0  ;;  %v5752_v57 = vmax.f32 %v5696_v24, 0.0  ;;  %7467 = vmatprep.mubr.msk.f32.mxu0 %vm1604_vm1, %v5802_v33  ;;  %v7477_v24 = vld [vmem:[%s14516_s5 + $0x120] sm:$0xff] }
 0x4c1   :  { %5936 = vmatmul.mubr.f32.vlgmr.msra.gmra.mrb[84].mxu0 %v5801_v9  ;;  %v5803_v0 = vmax.f32 %v5749_v23, %v5751_v12 }
 0x4c2   :  { %v5804_v50 = vmax.f32 %v5750_v48, %v5752_v57  ;;  %8333 = vmatpush1.bf16.msra.mxu0 %v8332_v14  ;;  %v5129_v5 = vpop.f32.mrb[38].mxu0  ;;  %v5362_v1 = vpop.f32.mrb[206].mxu1 }
 0x4c3   :  { %v5131_v39 = vpop.f32.mrb[39].mxu0  ;;  %v5364_v11 = vpop.f32.mrb[207].mxu1  ;;  %8334 = vmatprep.subr.bf16.mxu0 %v9162_v40 }
 0x4c4   :  { %7468 = vmatprep.mubr.msk.f32.mxu0 %vm1604_vm1, %v5804_v50 }
 0x4c5   :  { %5941 = vmatmul.mubr.f32.gmra.mrb[86].mxu0 %v5803_v0 }
 0x4c6   :  { %8336 = vmatpush1.bf16.msra.mxu0 %v8335_v2  ;;  %v5135_v41 = vpop.f32.mrb[40].mxu0  ;;  %v5368_v18 = vpop.f32.mrb[208].mxu1 }
 0x4c7   :  { %v5619_v17 = vmax.f32 %v5123_v19, %v5135_v41  ;;  %v5621_v8 = vmax.f32 %v5356_v44, %v5368_v18  ;;  %v5137_v26 = vpop.f32.mrb[41].mxu0  ;;  %v5370_v49 = vpop.f32.mrb[209].mxu1  ;;  %8337 = vmatprep.subr.bf16.mxu0 %v9162_v40  ;;  %v7478_v19 = vld [vmem:[%s14516_s5 + $0x128] sm:$0xff] }
 0x4c8   :  { %v5620_v28 = vmax.f32 %v5125_v20, %v5137_v26  ;;  %v5622_v55 = vmax.f32 %v5358_v46, %v5370_v49 }
 0x4c9   :  { %v5697_v43 = vadd.f32 %v13839_v16, %v5619_v17  ;;  %v5699_v62 = vadd.f32 %v13843_v32, %v5621_v8 }
 0x4ca   :  { %v5698_v59 = vadd.f32 %v13847_v10, %v5620_v28  ;;  %v5700_v61 = vadd.f32 %v13851_v38, %v5622_v55  ;;  %8339 = vmatpush1.bf16.msra.mxu0 %v8338_v22  ;;  %v5141_v7 = vpop.f32.mrb[42].mxu0  ;;  %v5374_v13 = vpop.f32.mrb[210].mxu1  ;;  %v7481_v28 = vld [vmem:[%s14516_s5 + $0x140] sm:$0xff]  ;;  %v7482_v55 = vld [vmem:[%s14516_s5 + $0x148] sm:$0xff] }
 0x4cb   :  { %v5753_v6 = vmax.f32 %v5697_v43, 0.0  ;;  %v5755_v9 = vmax.f32 %v5699_v62, 0.0  ;;  %v5623_v47 = vmax.f32 %v5129_v5, %v5141_v7  ;;  %v5625_v52 = vmax.f32 %v5362_v1, %v5374_v13  ;;  %v5143_v33 = vpop.f32.mrb[43].mxu0  ;;  %v5376_v60 = vpop.f32.mrb[211].mxu1  ;;  %8340 = vmatprep.subr.bf16.mxu0 %v9162_v40 }
 0x4cc   :  { %v5754_v44 = vmax.f32 %v5698_v59, 0.0  ;;  %v5756_v14 = vmax.f32 %v5700_v61, 0.0  ;;  %v5624_v23 = vmax.f32 %v5131_v39, %v5143_v33  ;;  %v5626_v12 = vmax.f32 %v5364_v11, %v5376_v60  ;;  %v7479_v11 = vld [vmem:[%s14516_s5 + $0x130] sm:$0xff] }
 0x4cd   :  { %v13900_v20 = vmax.f32 %v5753_v6, %v5755_v9  ;;  %v5701_v46 = vadd.f32 %v13839_v16, %v5623_v47  ;;  %v5703_v36 = vadd.f32 %v13843_v32, %v5625_v52  ;;  %v8344_v5 = vpack.c.bf16 %v7478_v19, %v7477_v24  ;;  %v7483_v6 = vld [vmem:[%s14516_s5 + $0x150] sm:$0xff]  ;;  %v7484_v9 = vld [vmem:[%s14516_s5 + $0x158] sm:$0xff] }
 0x4ce   :  { %v5806_v4 = vmax.f32 %v5754_v44, %v5756_v14  ;;  %v5702_v48 = vadd.f32 %v13847_v10, %v5624_v23  ;;  %v5704_v57 = vadd.f32 %v13851_v38, %v5626_v12  ;;  %8342 = vmatpush1.bf16.msra.mxu0 %v8341_v3  ;;  %v5147_v0 = vpop.f32.mrb[44].mxu0  ;;  %v5380_v50 = vpop.f32.mrb[212].mxu1  ;;  %v8347_v49 = vpack.c.bf16 %v7480_v56, %v7479_v11 }
 0x4cf   :  { %v5757_v1 = vmax.f32 %v5701_v46, 0.0  ;;  %v5759_v2 = vmax.f32 %v5703_v36, 0.0  ;;  %v5149_v54 = vpop.f32.mrb[45].mxu0  ;;  %v5382_v39 = vpop.f32.mrb[213].mxu1  ;;  %8343 = vmatprep.subr.bf16.mxu0 %v9162_v40  ;;  %v8350_v59 = vpack.c.bf16 %v7482_v55, %v7481_v28  ;;  %v8353_v23 = vpack.c.bf16 %v7484_v9, %v7483_v6 }
 0x4d0   :  { %v5758_v41 = vmax.f32 %v5702_v48, 0.0  ;;  %v5760_v18 = vmax.f32 %v5704_v57, 0.0  ;;  %7497 = vmatprep.mubr.msk.f32.mxu0 %vm1604_vm1, %v5806_v4 }
 0x4d1   :  { %v13914_v22 = vmax.f32 %v5757_v1, %v5759_v2 }
 0x4d2   :  { %v13916_v17 = vmax.f32 %v5758_v41, %v5760_v18  ;;  %8345 = vmatpush1.bf16.msra.mxu0 %v8344_v5  ;;  %v5153_v8 = vpop.f32.mrb[46].mxu0  ;;  %v5386_v26 = vpop.f32.mrb[214].mxu1 }
 0x4d3   :  { %v5155_v30 = vpop.f32.mrb[47].mxu0  ;;  %v5388_v27 = vpop.f32.mrb[215].mxu1  ;;  %8346 = vmatprep.subr.bf16.mxu0 %v9162_v40 }
 0x4d6   :  { %8348 = vmatpush1.bf16.msra.mxu0 %v8347_v49  ;;  %v5159_v43 = vpop.f32.mrb[48].mxu0  ;;  %v5392_v62 = vpop.f32.mrb[216].mxu1 }
 0x4d7   :  { %v5627_v61 = vmax.f32 %v5147_v0, %v5159_v43  ;;  %v5629_v7 = vmax.f32 %v5380_v50, %v5392_v62  ;;  %v5161_v13 = vpop.f32.mrb[49].mxu0  ;;  %v5394_v3 = vpop.f32.mrb[217].mxu1  ;;  %8349 = vmatprep.subr.bf16.mxu0 %v9162_v40  ;;  %v7485_v0 = vld [vmem:[%s14516_s5 + $0x160] sm:$0xff]  ;;  %v7486_v50 = vld [vmem:[%s14516_s5 + $0x168] sm:$0xff]  ;;  %v7487_v62 = vld [vmem:[%s14516_s5 + $0x170] sm:$0xff] }
 0x4d8   :  { %v5628_v47 = vmax.f32 %v5149_v54, %v5161_v13  ;;  %v5630_v52 = vmax.f32 %v5382_v39, %v5394_v3  ;;  %v8356_v28 = vpack.c.bf16 %v7486_v50, %v7485_v0 }
 0x4d9   :  { %v5705_v33 = vadd.f32 %v13839_v16, %v5627_v61  ;;  %v5707_v60 = vadd.f32 %v13843_v32, %v5629_v7 }
 0x4da   :  { %v5706_v24 = vadd.f32 %v13847_v10, %v5628_v47  ;;  %v5708_v19 = vadd.f32 %v13851_v38, %v5630_v52  ;;  %8351 = vmatpush1.bf16.msra.mxu0 %v8350_v59  ;;  %v5165_v44 = vpop.f32.mrb[50].mxu0  ;;  %v5398_v14 = vpop.f32.mrb[218].mxu1  ;;  %v7488_v59 = vld [vmem:[%s14516_s5 + $0x178] sm:$0xff] }
 0x4db   :  { %v5761_v12 = vmax.f32 %v5705_v33, 0.0  ;;  %v5763_v46 = vmax.f32 %v5707_v60, 0.0  ;;  %v5631_v36 = vmax.f32 %v5153_v8, %v5165_v44  ;;  %v5633_v4 = vmax.f32 %v5386_v26, %v5398_v14  ;;  %v5167_v48 = vpop.f32.mrb[51].mxu0  ;;  %v5400_v57 = vpop.f32.mrb[219].mxu1  ;;  %8352 = vmatprep.subr.bf16.mxu0 %v9162_v40  ;;  %v7489_v60 = vld [vmem:[%s14516_s5 + $0x180] sm:$0xff] }
 0x4dc   :  { %v5762_v5 = vmax.f32 %v5706_v24, 0.0  ;;  %v5764_v1 = vmax.f32 %v5708_v19, 0.0  ;;  %v5632_v2 = vmax.f32 %v5155_v30, %v5167_v48  ;;  %v5634_v54 = vmax.f32 %v5388_v27, %v5400_v57  ;;  %v7490_v24 = vld [vmem:[%s14516_s5 + $0x188] sm:$0xff]  ;;  %v7492_v48 = vld [vmem:[%s14516_s5 + $0x198] sm:$0xff] }
 0x4dd   :  { %v13943_v39 = vmax.f32 %v5761_v12, %v5763_v46  ;;  %v5709_v11 = vadd.f32 %v13839_v16, %v5631_v36  ;;  %v5711_v56 = vadd.f32 %v13843_v32, %v5633_v4  ;;  %v8359_v47 = vpack.c.bf16 %v7488_v59, %v7487_v62  ;;  %v7491_v4 = vld [vmem:[%s14516_s5 + $0x190] sm:$0xff] }
 0x4de   :  { %v13947_v41 = vmax.f32 %v5762_v5, %v5764_v1  ;;  %v5710_v18 = vadd.f32 %v13847_v10, %v5632_v2  ;;  %v5712_v8 = vadd.f32 %v13851_v38, %v5634_v54  ;;  %8354 = vmatpush1.bf16.msra.mxu0 %v8353_v23  ;;  %v5171_v26 = vpop.f32.mrb[52].mxu0  ;;  %v5404_v49 = vpop.f32.mrb[220].mxu1  ;;  %v8362_v14 = vpack.c.bf16 %v7490_v24, %v7489_v60 }
 0x4df   :  { %v5765_v55 = vmax.f32 %v5709_v11, 0.0  ;;  %v5767_v43 = vmax.f32 %v5711_v56, 0.0  ;;  %v5173_v30 = vpop.f32.mrb[53].mxu0  ;;  %v5406_v27 = vpop.f32.mrb[221].mxu1  ;;  %8355 = vmatprep.subr.bf16.mxu0 %v9162_v40  ;;  %v8365_v56 = vpack.c.bf16 %v7492_v48, %v7491_v4 }
 0x4e0   :  { %v5766_v61 = vmax.f32 %v5710_v18, 0.0  ;;  %v5768_v7 = vmax.f32 %v5712_v8, 0.0 }
 0x4e1   :  { %v13958_v13 = vmax.f32 %v5765_v55, %v5767_v43  ;;  %v7493_v43 = vld [vmem:[%s14516_s5 + $0x1a0] sm:$0xff] }
 0x4e2   :  { %v13960_v3 = vmax.f32 %v5766_v61, %v5768_v7  ;;  %8357 = vmatpush1.bf16.msra.mxu0 %v8356_v28  ;;  %v5177_v6 = vpop.f32.mrb[54].mxu0  ;;  %v5410_v9 = vpop.f32.mrb[222].mxu1 }
 0x4e3   :  { %v5179_v52 = vpop.f32.mrb[55].mxu0  ;;  %v5412_v33 = vpop.f32.mrb[223].mxu1  ;;  %8358 = vmatprep.subr.bf16.mxu0 %v9162_v40 }
 0x4e6   :  { %8360 = vmatpush1.bf16.msra.mxu0 %v8359_v47  ;;  %v5183_v19 = vpop.f32.mrb[56].mxu0  ;;  %v5416_v44 = vpop.f32.mrb[224].mxu1 }
 0x4e7   :  { %v5635_v23 = vmax.f32 %v5171_v26, %v5183_v19  ;;  %v5637_v12 = vmax.f32 %v5404_v49, %v5416_v44  ;;  %v5185_v46 = vpop.f32.mrb[57].mxu0  ;;  %v5418_v36 = vpop.f32.mrb[225].mxu1  ;;  %8361 = vmatprep.subr.bf16.mxu0 %v9162_v40 }
 0x4e8   :  { %v5636_v57 = vmax.f32 %v5173_v30, %v5185_v46  ;;  %v5638_v0 = vmax.f32 %v5406_v27, %v5418_v36  ;;  %v7494_v30 = vld [vmem:[%s14516_s5 + $0x1a8] sm:$0xff]  ;;  %v7495_v46 = vld [vmem:[%s14516_s5 + $0x1b0] sm:$0xff]  ;;  %v7496_v36 = vld [vmem:[%s14516_s5 + $0x1b8] sm:$0xff] }
 0x4e9   :  { %v5713_v50 = vadd.f32 %v13839_v16, %v5635_v23  ;;  %v5715_v5 = vadd.f32 %v13843_v32, %v5637_v12 }
 0x4ea   :  { %v5714_v1 = vadd.f32 %v13847_v10, %v5636_v57  ;;  %v5716_v2 = vadd.f32 %v13851_v38, %v5638_v0  ;;  %8363 = vmatpush1.bf16.msra.mxu0 %v8362_v14  ;;  %v5189_v54 = vpop.f32.mrb[58].mxu0  ;;  %v5422_v11 = vpop.f32.mrb[226].mxu1  ;;  %v8368_v14 = vpack.c.bf16 %v7494_v30, %v7493_v43  ;;  %v7501_v30 = vld [vmem:[%s14516_s5 + $0x1d0] sm:$0xff] }
 0x4eb   :  { %v5769_v18 = vmax.f32 %v5713_v50, 0.0  ;;  %v5771_v8 = vmax.f32 %v5715_v5, 0.0  ;;  %v5639_v26 = vmax.f32 %v5177_v6, %v5189_v54  ;;  %v5641_v49 = vmax.f32 %v5410_v9, %v5422_v11  ;;  %v5191_v28 = vpop.f32.mrb[59].mxu0  ;;  %v5424_v55 = vpop.f32.mrb[227].mxu1  ;;  %8364 = vmatprep.subr.bf16.mxu0 %v9162_v40  ;;  %v7499_v11 = vld [vmem:[%s14516_s5 + $0x1c0] sm:$0xff] }
 0x4ec   :  { %v5770_v27 = vmax.f32 %v5714_v1, 0.0  ;;  %v5772_v62 = vmax.f32 %v5716_v2, 0.0  ;;  %v5640_v59 = vmax.f32 %v5179_v52, %v5191_v28  ;;  %v5642_v61 = vmax.f32 %v5412_v33, %v5424_v55 }
 0x4ed   :  { %v13987_v7 = vmax.f32 %v5769_v18, %v5771_v8  ;;  %v5717_v6 = vadd.f32 %v13839_v16, %v5639_v26  ;;  %v5719_v9 = vadd.f32 %v13843_v32, %v5641_v49  ;;  %v8371_v1 = vpack.c.bf16 %v7496_v36, %v7495_v46 }
 0x4ee   :  { %v13991_v47 = vmax.f32 %v5770_v27, %v5772_v62  ;;  %v5718_v60 = vadd.f32 %v13847_v10, %v5640_v59  ;;  %v5720_v24 = vadd.f32 %v13851_v38, %v5642_v61  ;;  %8366 = vmatpush1.bf16.msra.mxu0 %v8365_v56  ;;  %v5195_v19 = vpop.f32.mrb[60].mxu0  ;;  %v5428_v44 = vpop.f32.mrb[228].mxu1  ;;  %v7500_v56 = vld [vmem:[%s14516_s5 + $0x1c8] sm:$0xff]  ;;  %v7502_v27 = vld [vmem:[%s14516_s5 + $0x1d8] sm:$0xff] }
 0x4ef   :  { %v5773_v23 = vmax.f32 %v5717_v6, 0.0  ;;  %v5775_v12 = vmax.f32 %v5719_v9, 0.0  ;;  %v5197_v52 = vpop.f32.mrb[61].mxu0  ;;  %v5430_v33 = vpop.f32.mrb[229].mxu1  ;;  %8367 = vmatprep.subr.bf16.mxu0 %v9162_v40  ;;  %v8374_v26 = vpack.c.bf16 %v7500_v56, %v7499_v11 }
 0x4f0   :  { %v5774_v4 = vmax.f32 %v5718_v60, 0.0  ;;  %v5776_v48 = vmax.f32 %v5720_v24, 0.0 }
 0x4f1   :  { %v14002_v57 = vmax.f32 %v5773_v23, %v5775_v12  ;;  %v7504_v23 = vld [vmem:[%s14516_s5 + $0x1e8] sm:$0xff] }
 0x4f2   :  { %v14004_v0 = vmax.f32 %v5774_v4, %v5776_v48  ;;  %8369 = vmatpush1.bf16.msra.mxu0 %v8368_v14  ;;  %v5201_v50 = vpop.f32.mrb[62].mxu0  ;;  %v5434_v5 = vpop.f32.mrb[230].mxu1  ;;  %v7503_v14 = vld [vmem:[%s14516_s5 + $0x1e0] sm:$0xff] }
 0x4f3   :  { %v5203_v2 = vpop.f32.mrb[63].mxu0  ;;  %v5436_v54 = vpop.f32.mrb[231].mxu1  ;;  %8370 = vmatprep.subr.bf16.mxu0 %v9162_v40 }
 0x4f6   :  { %8372 = vmatpush1.bf16.msra.mxu0 %v8371_v1  ;;  %v5207_v18 = vpop.f32.mrb[64].mxu0  ;;  %v5440_v8 = vpop.f32.mrb[232].mxu1 }
 0x4f7   :  { %v5643_v49 = vmax.f32 %v5195_v19, %v5207_v18  ;;  %v5645_v28 = vmax.f32 %v5428_v44, %v5440_v8  ;;  %v5209_v55 = vpop.f32.mrb[65].mxu0  ;;  %v5442_v43 = vpop.f32.mrb[233].mxu1  ;;  %8373 = vmatprep.subr.bf16.mxu0 %v9162_v40  ;;  %v8377_v44 = vpack.c.bf16 %v7502_v27, %v7501_v30  ;;  %v8380_v8 = vpack.c.bf16 %v7504_v23, %v7503_v14  ;;  %v7506_v30 = vld [vmem:[%s14516_s5 + $0x1f8] sm:$0xff] }
 0x4f8   :  { %v5644_v62 = vmax.f32 %v5197_v52, %v5209_v55  ;;  %v5646_v59 = vmax.f32 %v5430_v33, %v5442_v43 }
 0x4f9   :  { %v5721_v61 = vadd.f32 %v13839_v16, %v5643_v49  ;;  %v5723_v6 = vadd.f32 %v13843_v32, %v5645_v28  ;;  %6048 = vmatmul.mubr.f32.vlgmr.msra.gmra.mrb[84].mxu0 %v13900_v20 }
 0x4fa   :  { %v5722_v9 = vadd.f32 %v13847_v10, %v5644_v62  ;;  %v5724_v60 = vadd.f32 %v13851_v38, %v5646_v59  ;;  %7498 = vmatprep.mubr.msk.f32.mxu0 %vm1604_vm1, %v13916_v17  ;;  %8375 = vmatpush1.bf16.msra.mxu0 %v8374_v26  ;;  %v5213_v24 = vpop.f32.mrb[66].mxu0  ;;  %v5446_v19 = vpop.f32.mrb[234].mxu1 }
 0x4fb   :  { %v5777_v20 = vmax.f32 %v5721_v61, 0.0  ;;  %v5779_v12 = vmax.f32 %v5723_v6, 0.0  ;;  %v5647_v52 = vmax.f32 %v5201_v50, %v5213_v24  ;;  %v5649_v33 = vmax.f32 %v5434_v5, %v5446_v19  ;;  %v5215_v46 = vpop.f32.mrb[67].mxu0  ;;  %v5448_v36 = vpop.f32.mrb[235].mxu1  ;;  %8376 = vmatprep.subr.bf16.mxu0 %v9162_v40  ;;  %v7507_v19 = vld [vmem:[%s14516_s5 + $0x200] sm:$0xff] }
 0x4fc   :  { %v5778_v17 = vmax.f32 %v5722_v9, 0.0  ;;  %v5780_v4 = vmax.f32 %v5724_v60, 0.0  ;;  %v5648_v48 = vmax.f32 %v5203_v2, %v5215_v46  ;;  %v5650_v1 = vmax.f32 %v5436_v54, %v5448_v36  ;;  %v7509_v36 = vld [vmem:[%s14516_s5 + $0x210] sm:$0xff] }
 0x4fd   :  { %v14034_v11 = vmax.f32 %v5777_v20, %v5779_v12  ;;  %v5725_v56 = vadd.f32 %v13839_v16, %v5647_v52  ;;  %v5727_v18 = vadd.f32 %v13843_v32, %v5649_v33  ;;  %6053 = vmatmul.mubr.f32.gmra.mrb[86].mxu0 %v13914_v22  ;;  %v7505_v22 = vld [vmem:[%s14516_s5 + $0x1f0] sm:$0xff] }
 0x4fe   :  { %v14039_v26 = vmax.f32 %v5778_v17, %v5780_v4  ;;  %v5726_v50 = vadd.f32 %v13847_v10, %v5648_v48  ;;  %v5728_v5 = vadd.f32 %v13851_v38, %v5650_v1  ;;  %8378 = vmatpush1.bf16.msra.mxu0 %v8377_v44  ;;  %7527 = vmatprep.mubr.msk.f32.mxu0 %vm1604_vm1, %v13947_v41  ;;  %v5219_v2 = vpop.f32.mrb[68].mxu0  ;;  %v5452_v54 = vpop.f32.mrb[236].mxu1  ;;  %v7508_v44 = vld [vmem:[%s14516_s5 + $0x208] sm:$0xff]  ;;  %v7510_v17 = vld [vmem:[%s14516_s5 + $0x218] sm:$0xff] }
 0x4ff   :  { %v5781_v49 = vmax.f32 %v5725_v56, 0.0  ;;  %v5783_v28 = vmax.f32 %v5727_v18, 0.0  ;;  %v5221_v55 = vpop.f32.mrb[69].mxu0  ;;  %v5454_v43 = vpop.f32.mrb[237].mxu1  ;;  %8379 = vmatprep.subr.bf16.mxu0 %v9162_v40  ;;  %v8383_v9 = vpack.c.bf16 %v7506_v30, %v7505_v22  ;;  %v8386_v20 = vpack.c.bf16 %v7508_v44, %v7507_v19 }
 0x500   :  { %v5782_v27 = vmax.f32 %v5726_v50, 0.0  ;;  %v5784_v62 = vmax.f32 %v5728_v5, 0.0 }
 0x501   :  { %v14052_v59 = vmax.f32 %v5781_v49, %v5783_v28 }
 0x502   :  { %v14054_v41 = vmax.f32 %v5782_v27, %v5784_v62  ;;  %8381 = vmatpush1.bf16.msra.mxu0 %v8380_v8  ;;  %v5225_v61 = vpop.f32.mrb[70].mxu0  ;;  %v5458_v6 = vpop.f32.mrb[238].mxu1 }
 0x503   :  { %v5227_v60 = vpop.f32.mrb[71].mxu0  ;;  %v5460_v24 = vpop.f32.mrb[239].mxu1  ;;  %8382 = vmatprep.subr.bf16.mxu0 %v9162_v40 }
 0x506   :  { %8384 = vmatpush1.bf16.msra.mxu0 %v8383_v9  ;;  %v5231_v14 = vpop.f32.mrb[72].mxu0  ;;  %v5464_v23 = vpop.f32.mrb[240].mxu1 }
 0x507   :  { %v5651_v12 = vmax.f32 %v5219_v2, %v5231_v14  ;;  %v5653_v52 = vmax.f32 %v5452_v54, %v5464_v23  ;;  %v5233_v33 = vpop.f32.mrb[73].mxu0  ;;  %v5466_v46 = vpop.f32.mrb[241].mxu1  ;;  %8385 = vmatprep.subr.bf16.mxu0 %v9162_v40  ;;  %v8389_v2 = vpack.c.bf16 %v7510_v17, %v7509_v36 }
 0x508   :  { %v5652_v4 = vmax.f32 %v5221_v55, %v5233_v33  ;;  %v5654_v48 = vmax.f32 %v5454_v43, %v5466_v46  ;;  %v7511_v55 = vld [vmem:[%s14516_s5 + $0x220] sm:$0xff]  ;;  %v7512_v43 = vld [vmem:[%s14516_s5 + $0x228] sm:$0xff] }
 0x509   :  { %v5729_v1 = vadd.f32 %v13839_v16, %v5651_v12  ;;  %v5731_v56 = vadd.f32 %v13843_v32, %v5653_v52  ;;  %v8392_v46 = vpack.c.bf16 %v7512_v43, %v7511_v55 }
 0x50a   :  { %v5730_v18 = vadd.f32 %v13847_v10, %v5652_v4  ;;  %v5732_v8 = vadd.f32 %v13851_v38, %v5654_v48  ;;  %8387 = vmatpush1.bf16.msra.mxu0 %v8386_v20  ;;  %v5237_v50 = vpop.f32.mrb[74].mxu0  ;;  %v5470_v5 = vpop.f32.mrb[242].mxu1  ;;  %v7513_v4 = vld [vmem:[%s14516_s5 + $0x230] sm:$0xff]  ;;  %v7514_v48 = vld [vmem:[%s14516_s5 + $0x238] sm:$0xff] }
 0x50b   :  { %v5785_v54 = vmax.f32 %v5729_v1, 0.0  ;;  %v5787_v49 = vmax.f32 %v5731_v56, 0.0  ;;  %v5655_v28 = vmax.f32 %v5225_v61, %v5237_v50  ;;  %v5657_v22 = vmax.f32 %v5458_v6, %v5470_v5  ;;  %v5239_v30 = vpop.f32.mrb[75].mxu0  ;;  %v5472_v27 = vpop.f32.mrb[243].mxu1  ;;  %8388 = vmatprep.subr.bf16.mxu0 %v9162_v40 }
 0x50c   :  { %v5786_v62 = vmax.f32 %v5730_v18, 0.0  ;;  %v5788_v9 = vmax.f32 %v5732_v8, 0.0  ;;  %v5656_v19 = vmax.f32 %v5227_v60, %v5239_v30  ;;  %v5658_v44 = vmax.f32 %v5460_v24, %v5472_v27 }
 0x50d   :  { %v14081_v14 = vmax.f32 %v5785_v54, %v5787_v49  ;;  %v5733_v61 = vadd.f32 %v13839_v16, %v5655_v28  ;;  %v5735_v6 = vadd.f32 %v13843_v32, %v5657_v22  ;;  %v7515_v28 = vld [vmem:[%s14516_s5 + $0x240] sm:$0xff]  ;;  %v7516_v22 = vld [vmem:[%s14516_s5 + $0x248] sm:$0xff] }
 0x50e   :  { %v14085_v23 = vmax.f32 %v5786_v62, %v5788_v9  ;;  %v5734_v20 = vadd.f32 %v13847_v10, %v5656_v19  ;;  %v5736_v12 = vadd.f32 %v13851_v38, %v5658_v44  ;;  %8390 = vmatpush1.bf16.msra.mxu0 %v8389_v2  ;;  %v5243_v52 = vpop.f32.mrb[76].mxu0  ;;  %v5476_v33 = vpop.f32.mrb[244].mxu1  ;;  %v8395_v2 = vpack.c.bf16 %v7514_v48, %v7513_v4  ;;  %v7517_v44 = vld [vmem:[%s14516_s5 + $0x250] sm:$0xff] }
 0x50f   :  { %v5789_v36 = vmax.f32 %v5733_v61, 0.0  ;;  %v5791_v17 = vmax.f32 %v5735_v6, 0.0  ;;  %v5245_v60 = vpop.f32.mrb[77].mxu0  ;;  %v5478_v24 = vpop.f32.mrb[245].mxu1  ;;  %8391 = vmatprep.subr.bf16.mxu0 %v9162_v40  ;;  %v8398_v55 = vpack.c.bf16 %v7516_v22, %v7515_v28  ;;  %v7518_v61 = vld [vmem:[%s14516_s5 + $0x258] sm:$0xff] }
 0x510   :  { %v5790_v1 = vmax.f32 %v5734_v20, 0.0  ;;  %v5792_v56 = vmax.f32 %v5736_v12, 0.0  ;;  %v8401_v4 = vpack.c.bf16 %v7518_v61, %v7517_v44 }
 0x511   :  { %v14096_v18 = vmax.f32 %v5789_v36, %v5791_v17 }
 0x512   :  { %v14098_v8 = vmax.f32 %v5790_v1, %v5792_v56  ;;  %8393 = vmatpush1.bf16.msra.mxu0 %v8392_v46  ;;  %v5249_v50 = vpop.f32.mrb[78].mxu0  ;;  %v5482_v5 = vpop.f32.mrb[246].mxu1 }
 0x513   :  { %v5251_v54 = vpop.f32.mrb[79].mxu0  ;;  %v5484_v49 = vpop.f32.mrb[247].mxu1  ;;  %8394 = vmatprep.subr.bf16.mxu0 %v9162_v40 }
 0x516   :  { %8396 = vmatpush1.bf16.msra.mxu0 %v8395_v2  ;;  %v5255_v30 = vpop.f32.mrb[80].mxu0  ;;  %v5488_v27 = vpop.f32.mrb[248].mxu1 }
 0x517   :  { %v5659_v43 = vmax.f32 %v5243_v52, %v5255_v30  ;;  %v5661_v62 = vmax.f32 %v5476_v33, %v5488_v27  ;;  %v5257_v9 = vpop.f32.mrb[81].mxu0  ;;  %v5490_v19 = vpop.f32.mrb[249].mxu1  ;;  %8397 = vmatprep.subr.bf16.mxu0 %v9162_v40 }
 0x518   :  { %v5660_v6 = vmax.f32 %v5245_v60, %v5257_v9  ;;  %v5662_v20 = vmax.f32 %v5478_v24, %v5490_v19  ;;  %v7519_v60 = vld [vmem:[%s14516_s5 + $0x260] sm:$0xff]  ;;  %v7520_v24 = vld [vmem:[%s14516_s5 + $0x268] sm:$0xff] }
 0x519   :  { %v5737_v12 = vadd.f32 %v13839_v16, %v5659_v43  ;;  %v5739_v46 = vadd.f32 %v13843_v32, %v5661_v62  ;;  %v8404_v61 = vpack.c.bf16 %v7520_v24, %v7519_v60  ;;  %v7533_v60 = vld [vmem:[%s14516_s5 + $0x2c0] sm:$0xff]  ;;  %v7534_v24 = vld [vmem:[%s14516_s5 + $0x2c8] sm:$0xff] }
 0x51a   :  { %v5738_v52 = vadd.f32 %v13847_v10, %v5660_v6  ;;  %v5740_v33 = vadd.f32 %v13851_v38, %v5662_v20  ;;  %8399 = vmatpush1.bf16.msra.mxu0 %v8398_v55  ;;  %v5261_v36 = vpop.f32.mrb[82].mxu0  ;;  %v5494_v17 = vpop.f32.mrb[250].mxu1 }
 0x51b   :  { %v5793_v48 = vmax.f32 %v5737_v12, 0.0  ;;  %v5795_v1 = vmax.f32 %v5739_v46, 0.0  ;;  %v5663_v56 = vmax.f32 %v5249_v50, %v5261_v36  ;;  %v5665_v2 = vmax.f32 %v5482_v5, %v5494_v17  ;;  %v5263_v28 = vpop.f32.mrb[83].mxu0  ;;  %v5496_v22 = vpop.f32.mrb[251].mxu1  ;;  %8400 = vmatprep.subr.bf16.mxu0 %v9162_v40  ;;  %v7523_v46 = vld [vmem:[%s14516_s5 + $0x280] sm:$0xff]  ;;  %v7525_v36 = vld [vmem:[%s14516_s5 + $0x290] sm:$0xff] }
 0x51c   :  { %v5794_v30 = vmax.f32 %v5738_v52, 0.0  ;;  %v5796_v27 = vmax.f32 %v5740_v33, 0.0  ;;  %v5664_v55 = vmax.f32 %v5251_v54, %v5263_v28  ;;  %v5666_v43 = vmax.f32 %v5484_v49, %v5496_v22  ;;  %v7521_v54 = vld [vmem:[%s14516_s5 + $0x270] sm:$0xff]  ;;  %v7524_v52 = vld [vmem:[%s14516_s5 + $0x288] sm:$0xff]  ;;  %v7526_v17 = vld [vmem:[%s14516_s5 + $0x298] sm:$0xff] }
 0x51d   :  { %v14125_v62 = vmax.f32 %v5793_v48, %v5795_v1  ;;  %v5741_v50 = vadd.f32 %v13839_v16, %v5663_v56  ;;  %v5743_v5 = vadd.f32 %v13843_v32, %v5665_v2  ;;  %v7522_v16 = vld [vmem:[%s14516_s5 + $0x278] sm:$0xff]  ;;  %v8410_v33 = vpack.c.bf16 %v7524_v52, %v7523_v46  ;;  %v7529_v48 = vld [vmem:[%s14516_s5 + $0x2a0] sm:$0xff]  ;;  %v7530_v1 = vld [vmem:[%s14516_s5 + $0x2a8] sm:$0xff] }
 0x51e   :  { %v14129_v9 = vmax.f32 %v5794_v30, %v5796_v27  ;;  %v5742_v19 = vadd.f32 %v13847_v10, %v5664_v55  ;;  %v5744_v44 = vadd.f32 %v13851_v38, %v5666_v43  ;;  %8402 = vmatpush1.bf16.msra.mxu0 %v8401_v4  ;;  %v8407_v38 = vpack.c.bf16 %v7522_v16, %v7521_v54  ;;  %v7531_v2 = vld [vmem:[%s14516_s5 + $0x2b0] sm:$0xff]  ;;  %v7532_v28 = vld [vmem:[%s14516_s5 + $0x2b8] sm:$0xff]  ;;  %v7545_v16 = vld [vmem:[%s14516_s5 + $0x320] sm:$0xff] }
 0x51f   :  { %v5797_v6 = vmax.f32 %v5741_v50, 0.0  ;;  %v5799_v20 = vmax.f32 %v5743_v5, 0.0  ;;  %8403 = vmatprep.subr.bf16.mxu0 %v9162_v40  ;;  %v8413_v4 = vpack.c.bf16 %v7526_v17, %v7525_v36  ;;  %v8416_v56 = vpack.c.bf16 %v7530_v1, %v7529_v48  ;;  %v7536_v30 = vld [vmem:[%s14516_s5 + $0x2d8] sm:$0xff]  ;;  %v7539_v43 = vld [vmem:[%s14516_s5 + $0x2f0] sm:$0xff]  ;;  %v7549_v46 = vld [vmem:[%s14516_s5 + $0x340] sm:$0xff] }
 0x520   :  { %v5798_v32 = vmax.f32 %v5742_v19, 0.0  ;;  %v5800_v49 = vmax.f32 %v5744_v44, 0.0  ;;  %v8419_v22 = vpack.c.bf16 %v7532_v28, %v7531_v2  ;;  %v7540_v50 = vld [vmem:[%s14516_s5 + $0x2f8] sm:$0xff]  ;;  %v7541_v19 = vld [vmem:[%s14516_s5 + $0x300] sm:$0xff]  ;;  %v7542_v44 = vld [vmem:[%s14516_s5 + $0x308] sm:$0xff] }
 0x521   :  { %v5827_v12 = vmax.f32 %v5797_v6, %v5799_v20  ;;  %v8431_v5 = vpack.c.bf16 %v7540_v50, %v7539_v43  ;;  %v7543_v6 = vld [vmem:[%s14516_s5 + $0x310] sm:$0xff]  ;;  %v7544_v20 = vld [vmem:[%s14516_s5 + $0x318] sm:$0xff]  ;;  %v7550_v52 = vld [vmem:[%s14516_s5 + $0x348] sm:$0xff] }
 0x522   :  { %v5828_v10 = vmax.f32 %v5798_v32, %v5800_v49  ;;  %8405 = vmatpush1.bf16.msra.mxu0 %v8404_v61  ;;  %v8434_v61 = vpack.c.bf16 %v7542_v44, %v7541_v19  ;;  %v8437_v54 = vpack.c.bf16 %v7544_v20, %v7543_v6  ;;  %v7546_v32 = vld [vmem:[%s14516_s5 + $0x328] sm:$0xff]  ;;  %v7551_v36 = vld [vmem:[%s14516_s5 + $0x350] sm:$0xff]  ;;  %v7552_v17 = vld [vmem:[%s14516_s5 + $0x358] sm:$0xff] }
 0x523   :  { %8406 = vmatprep.subr.bf16.mxu0 %v9162_v40  ;;  %v8440_v49 = vpack.c.bf16 %v7546_v32, %v7545_v16  ;;  %v7553_v48 = vld [vmem:[%s14516_s5 + $0x360] sm:$0xff]  ;;  %v7554_v1 = vld [vmem:[%s14516_s5 + $0x368] sm:$0xff]  ;;  %v7555_v2 = vld [vmem:[%s14516_s5 + $0x370] sm:$0xff] }
 0x524   :  { %7648 = vmatprep.mubr.msk.f32.mxu1 %vm1604_vm1, %v5828_v10  ;;  %v7548_v10 = vld [vmem:[%s14516_s5 + $0x338] sm:$0xff]  ;;  %v7572_v6 = vld [vmem:[%s14516_s5 + $0x3e8] sm:$0xff] }
 0x525   :  { %6613 = vmatmul.mubr.f32.vlgmr.msra.gmra.mrb[252].mxu1 %v5827_v12  ;;  %v7547_v12 = vld [vmem:[%s14516_s5 + $0x330] sm:$0xff]  ;;  %v7556_v28 = vld [vmem:[%s14516_s5 + $0x378] sm:$0xff] }
 0x526   :  { %8408 = vmatpush1.bf16.msra.mxu0 %v8407_v38  ;;  %v8443_v38 = vpack.c.bf16 %v7548_v10, %v7547_v12  ;;  %v7570_v19 = vld [vmem:[%s14516_s5 + $0x3d8] sm:$0xff]  ;;  %v7576_v12 = vld [vmem:[%s14516_s5 + $0x408] sm:$0xff] }
 0x527   :  { %8409 = vmatprep.subr.bf16.mxu0 %v9162_v40  ;;  %v7574_v16 = vld [vmem:[%s14516_s5 + $0x3f8] sm:$0xff] }
 0x52a   :  { %8411 = vmatpush1.bf16.msra.mxu0 %v8410_v33  ;;  %v8446_v33 = vpack.c.bf16 %v7550_v52, %v7549_v46  ;;  %v7578_v46 = vld [vmem:[%s14516_s5 + $0x418] sm:$0xff] }
 0x52b   :  { %8412 = vmatprep.subr.bf16.mxu0 %v9162_v40 }
 0x52e   :  { %8414 = vmatpush1.bf16.msra.mxu0 %v8413_v4  ;;  %v8449_v4 = vpack.c.bf16 %v7552_v17, %v7551_v36  ;;  %v7580_v36 = vld [vmem:[%s14516_s5 + $0x428] sm:$0xff] }
 0x52f   :  { %8415 = vmatprep.subr.bf16.mxu0 %v9162_v40 }
 0x531   :  { %6160 = vmatmul.mubr.f32.vlgmr.msra.gmra.mrb[84].mxu0 %v13943_v39  ;;  %v8422_v39 = vpack.c.bf16 %v7534_v24, %v7533_v60  ;;  %v7559_v60 = vld [vmem:[%s14516_s5 + $0x380] sm:$0xff]  ;;  %v7560_v24 = vld [vmem:[%s14516_s5 + $0x388] sm:$0xff] }
 0x532   :  { %7528 = vmatprep.mubr.msk.f32.mxu0 %vm1604_vm1, %v13960_v3  ;;  %8417 = vmatpush1.bf16.msra.mxu0 %v8416_v56  ;;  %v7535_v3 = vld [vmem:[%s14516_s5 + $0x2d0] sm:$0xff]  ;;  %v8452_v56 = vpack.c.bf16 %v7554_v1, %v7553_v48  ;;  %v7582_v48 = vld [vmem:[%s14516_s5 + $0x438] sm:$0xff] }
 0x533   :  { %8418 = vmatprep.subr.bf16.mxu0 %v9162_v40  ;;  %v8425_v27 = vpack.c.bf16 %v7536_v30, %v7535_v3  ;;  %v7561_v3 = vld [vmem:[%s14516_s5 + $0x390] sm:$0xff]  ;;  %v7562_v30 = vld [vmem:[%s14516_s5 + $0x398] sm:$0xff] }
 0x535   :  { %6165 = vmatmul.mubr.f32.gmra.mrb[86].mxu0 %v13958_v13  ;;  %v7537_v13 = vld [vmem:[%s14516_s5 + $0x2e0] sm:$0xff] }
 0x536   :  { %8420 = vmatpush1.bf16.msra.mxu0 %v8419_v22  ;;  %7557 = vmatprep.mubr.msk.f32.mxu0 %vm1604_vm1, %v13991_v47  ;;  %v7538_v47 = vld [vmem:[%s14516_s5 + $0x2e8] sm:$0xff]  ;;  %v8455_v22 = vpack.c.bf16 %v7556_v28, %v7555_v2 }
 0x537   :  { %8421 = vmatprep.subr.bf16.mxu0 %v9162_v40  ;;  %v8428_v55 = vpack.c.bf16 %v7538_v47, %v7537_v13  ;;  %v7563_v13 = vld [vmem:[%s14516_s5 + $0x3a0] sm:$0xff]  ;;  %v7564_v47 = vld [vmem:[%s14516_s5 + $0x3a8] sm:$0xff] }
 0x538   :  { %v7584_v2 = vld [vmem:[%s14516_s5 + $0x448] sm:$0xff] }
 0x53a   :  { %8423 = vmatpush1.bf16.msra.mxu0 %v8422_v39  ;;  %v8458_v39 = vpack.c.bf16 %v7560_v24, %v7559_v60  ;;  %v7586_v60 = vld [vmem:[%s14516_s5 + $0x458] sm:$0xff] }
 0x53b   :  { %8424 = vmatprep.subr.bf16.mxu0 %v9162_v40 }
 0x53e   :  { %8426 = vmatpush1.bf16.msra.mxu0 %v8425_v27  ;;  %v8461_v27 = vpack.c.bf16 %v7562_v30, %v7561_v3  ;;  %v7590_v3 = vld [vmem:[%s14516_s5 + $0x468] sm:$0xff] }
 0x53f   :  { %8427 = vmatprep.subr.bf16.mxu0 %v9162_v40 }
 0x542   :  { %8429 = vmatpush1.bf16.msra.mxu0 %v8428_v55  ;;  %v7566_v55 = vld [vmem:[%s14516_s5 + $0x3b8] sm:$0xff] }
 0x543   :  { %8430 = vmatprep.subr.bf16.mxu0 %v9162_v40 }
 0x546   :  { %8432 = vmatpush1.bf16.msra.mxu0 %v8431_v5  ;;  %v7569_v5 = vld [vmem:[%s14516_s5 + $0x3d0] sm:$0xff] }
 0x547   :  { %8433 = vmatprep.subr.bf16.mxu0 %v9162_v40  ;;  %v8473_v44 = vpack.c.bf16 %v7570_v19, %v7569_v5  ;;  %v7601_v19 = vld [vmem:[%s14516_s5 + $0x4c0] sm:$0xff] }
 0x54a   :  { %8435 = vmatpush1.bf16.msra.mxu0 %v8434_v61  ;;  %v7571_v61 = vld [vmem:[%s14516_s5 + $0x3e0] sm:$0xff] }
 0x54b   :  { %8436 = vmatprep.subr.bf16.mxu0 %v9162_v40  ;;  %v8476_v20 = vpack.c.bf16 %v7572_v6, %v7571_v61  ;;  %v7603_v6 = vld [vmem:[%s14516_s5 + $0x4d0] sm:$0xff] }
 0x54e   :  { %8438 = vmatpush1.bf16.msra.mxu0 %v8437_v54  ;;  %v7573_v54 = vld [vmem:[%s14516_s5 + $0x3f0] sm:$0xff] }
 0x54f   :  { %8439 = vmatprep.subr.bf16.mxu0 %v9162_v40  ;;  %v8479_v32 = vpack.c.bf16 %v7574_v16, %v7573_v54  ;;  %v7605_v16 = vld [vmem:[%s14516_s5 + $0x4e0] sm:$0xff] }
 0x552   :  { %8441 = vmatpush1.bf16.msra.mxu0 %v8440_v49  ;;  %v7575_v49 = vld [vmem:[%s14516_s5 + $0x400] sm:$0xff] }
 0x553   :  { %8442 = vmatprep.subr.bf16.mxu0 %v9162_v40  ;;  %v8482_v10 = vpack.c.bf16 %v7576_v12, %v7575_v49  ;;  %v7607_v12 = vld [vmem:[%s14516_s5 + $0x4f0] sm:$0xff] }
 0x556   :  { %8444 = vmatpush1.bf16.msra.mxu0 %v8443_v38  ;;  %v7577_v38 = vld [vmem:[%s14516_s5 + $0x410] sm:$0xff] }
 0x557   :  { %8445 = vmatprep.subr.bf16.mxu0 %v9162_v40  ;;  %v8485_v52 = vpack.c.bf16 %v7578_v46, %v7577_v38  ;;  %v7609_v46 = vld [vmem:[%s14516_s5 + $0x500] sm:$0xff] }
 0x55a   :  { %8447 = vmatpush1.bf16.msra.mxu0 %v8446_v33  ;;  %v7579_v33 = vld [vmem:[%s14516_s5 + $0x420] sm:$0xff] }
 0x55b   :  { %8448 = vmatprep.subr.bf16.mxu0 %v9162_v40  ;;  %v8488_v17 = vpack.c.bf16 %v7580_v36, %v7579_v33  ;;  %v7611_v36 = vld [vmem:[%s14516_s5 + $0x510] sm:$0xff] }
 0x55e   :  { %8450 = vmatpush1.bf16.msra.mxu0 %v8449_v4  ;;  %v7581_v4 = vld [vmem:[%s14516_s5 + $0x430] sm:$0xff] }
 0x55f   :  { %8451 = vmatprep.subr.bf16.mxu0 %v9162_v40  ;;  %v8491_v1 = vpack.c.bf16 %v7582_v48, %v7581_v4  ;;  %v7613_v48 = vld [vmem:[%s14516_s5 + $0x520] sm:$0xff] }
 0x562   :  { %8453 = vmatpush1.bf16.msra.mxu0 %v8452_v56  ;;  %v7583_v56 = vld [vmem:[%s14516_s5 + $0x440] sm:$0xff] }
 0x563   :  { %8454 = vmatprep.subr.bf16.mxu0 %v9162_v40  ;;  %v8494_v28 = vpack.c.bf16 %v7584_v2, %v7583_v56  ;;  %v7615_v2 = vld [vmem:[%s14516_s5 + $0x530] sm:$0xff] }
 0x566   :  { %8456 = vmatpush1.bf16.msra.mxu0 %v8455_v22  ;;  %v7585_v22 = vld [vmem:[%s14516_s5 + $0x450] sm:$0xff] }
 0x567   :  { %8457 = vmatprep.subr.bf16.mxu0 %v9162_v40  ;;  %v8497_v24 = vpack.c.bf16 %v7586_v60, %v7585_v22 }
 0x569   :  { %6272 = vmatmul.mubr.f32.vlgmr.msra.gmra.mrb[84].mxu0 %v13987_v7  ;;  %v8464_v7 = vpack.c.bf16 %v7564_v47, %v7563_v13  ;;  %v7592_v13 = vld [vmem:[%s14516_s5 + $0x478] sm:$0xff] }
 0x56a   :  { %7558 = vmatprep.mubr.msk.f32.mxu0 %vm1604_vm1, %v14004_v0  ;;  %8459 = vmatpush1.bf16.msra.mxu0 %v8458_v39  ;;  %v7565_v0 = vld [vmem:[%s14516_s5 + $0x3b0] sm:$0xff]  ;;  %v7589_v39 = vld [vmem:[%s14516_s5 + $0x460] sm:$0xff] }
 0x56b   :  { %8460 = vmatprep.subr.bf16.mxu0 %v9162_v40  ;;  %v8467_v43 = vpack.c.bf16 %v7566_v55, %v7565_v0  ;;  %v8500_v30 = vpack.c.bf16 %v7590_v3, %v7589_v39  ;;  %v7594_v0 = vld [vmem:[%s14516_s5 + $0x488] sm:$0xff]  ;;  %v7596_v55 = vld [vmem:[%s14516_s5 + $0x498] sm:$0xff] }
 0x56d   :  { %6277 = vmatmul.mubr.f32.gmra.mrb[86].mxu0 %v14002_v57  ;;  %v7567_v57 = vld [vmem:[%s14516_s5 + $0x3c0] sm:$0xff] }
 0x56e   :  { %8462 = vmatpush1.bf16.msra.mxu0 %v8461_v27  ;;  %7587 = vmatprep.mubr.msk.f32.mxu0 %vm1604_vm1, %v14039_v26  ;;  %v7568_v26 = vld [vmem:[%s14516_s5 + $0x3c8] sm:$0xff]  ;;  %v7591_v27 = vld [vmem:[%s14516_s5 + $0x470] sm:$0xff] }
 0x56f   :  { %8463 = vmatprep.subr.bf16.mxu0 %v9162_v40  ;;  %v8470_v50 = vpack.c.bf16 %v7568_v26, %v7567_v57  ;;  %v8503_v47 = vpack.c.bf16 %v7592_v13, %v7591_v27  ;;  %v7599_v26 = vld [vmem:[%s14516_s5 + $0x4b0] sm:$0xff] }
 0x572   :  { %8465 = vmatpush1.bf16.msra.mxu0 %v8464_v7  ;;  %v7593_v7 = vld [vmem:[%s14516_s5 + $0x480] sm:$0xff] }
 0x573   :  { %8466 = vmatprep.subr.bf16.mxu0 %v9162_v40 }
 0x576   :  { %8468 = vmatpush1.bf16.msra.mxu0 %v8467_v43 }
 0x577   :  { %8469 = vmatprep.subr.bf16.mxu0 %v9162_v40 }
 0x57a   :  { %8471 = vmatpush1.bf16.msra.mxu0 %v8470_v50  ;;  %v7600_v50 = vld [vmem:[%s14516_s5 + $0x4b8] sm:$0xff] }
 0x57b   :  { %8472 = vmatprep.subr.bf16.mxu0 %v9162_v40  ;;  %v8515_v5 = vpack.c.bf16 %v7600_v50, %v7599_v26 }
 0x57e   :  { %8474 = vmatpush1.bf16.msra.mxu0 %v8473_v44  ;;  %v7602_v44 = vld [vmem:[%s14516_s5 + $0x4c8] sm:$0xff] }
 0x57f   :  { %8475 = vmatprep.subr.bf16.mxu0 %v9162_v40  ;;  %v8518_v61 = vpack.c.bf16 %v7602_v44, %v7601_v19 }
 0x582   :  { %8477 = vmatpush1.bf16.msra.mxu0 %v8476_v20  ;;  %v7604_v20 = vld [vmem:[%s14516_s5 + $0x4d8] sm:$0xff] }
 0x583   :  { %8478 = vmatprep.subr.bf16.mxu0 %v9162_v40  ;;  %v8521_v54 = vpack.c.bf16 %v7604_v20, %v7603_v6 }
 0x586   :  { %8480 = vmatpush1.bf16.msra.mxu0 %v8479_v32  ;;  %v7606_v32 = vld [vmem:[%s14516_s5 + $0x4e8] sm:$0xff] }
 0x587   :  { %8481 = vmatprep.subr.bf16.mxu0 %v9162_v40  ;;  %v8524_v49 = vpack.c.bf16 %v7606_v32, %v7605_v16 }
 0x58a   :  { %8483 = vmatpush1.bf16.msra.mxu0 %v8482_v10  ;;  %v7608_v10 = vld [vmem:[%s14516_s5 + $0x4f8] sm:$0xff] }
 0x58b   :  { %8484 = vmatprep.subr.bf16.mxu0 %v9162_v40  ;;  %v8527_v38 = vpack.c.bf16 %v7608_v10, %v7607_v12 }
 0x58e   :  { %8486 = vmatpush1.bf16.msra.mxu0 %v8485_v52  ;;  %v7610_v52 = vld [vmem:[%s14516_s5 + $0x508] sm:$0xff] }
 0x58f   :  { %8487 = vmatprep.subr.bf16.mxu0 %v9162_v40  ;;  %v8530_v33 = vpack.c.bf16 %v7610_v52, %v7609_v46 }
 0x592   :  { %8489 = vmatpush1.bf16.msra.mxu0 %v8488_v17  ;;  %v7612_v17 = vld [vmem:[%s14516_s5 + $0x518] sm:$0xff] }
 0x593   :  { %8490 = vmatprep.subr.bf16.mxu0 %v9162_v40  ;;  %v8533_v4 = vpack.c.bf16 %v7612_v17, %v7611_v36 }
 0x596   :  { %8492 = vmatpush1.bf16.msra.mxu0 %v8491_v1  ;;  %v7614_v1 = vld [vmem:[%s14516_s5 + $0x528] sm:$0xff] }
 0x597   :  { %8493 = vmatprep.subr.bf16.mxu0 %v9162_v40  ;;  %v8536_v56 = vpack.c.bf16 %v7614_v1, %v7613_v48 }
 0x59a   :  { %8495 = vmatpush1.bf16.msra.mxu0 %v8494_v28  ;;  %v7616_v28 = vld [vmem:[%s14516_s5 + $0x538] sm:$0xff] }
 0x59b   :  { %8496 = vmatprep.subr.bf16.mxu0 %v9162_v40  ;;  %v8539_v22 = vpack.c.bf16 %v7616_v28, %v7615_v2 }
 0x59e   :  { %8498 = vmatpush1.bf16.msra.mxu0 %v8497_v24 }
 0x59f   :  { %8499 = vmatprep.subr.bf16.mxu0 %v9162_v40 }
 0x5a1   :  { %6384 = vmatmul.mubr.f32.vlgmr.msra.gmra.mrb[84].mxu0 %v14034_v11  ;;  %v8506_v11 = vpack.c.bf16 %v7594_v0, %v7593_v7 }
 0x5a2   :  { %7588 = vmatprep.mubr.msk.f32.mxu0 %vm1604_vm1, %v14054_v41  ;;  %8501 = vmatpush1.bf16.msra.mxu0 %v8500_v30  ;;  %v7595_v41 = vld [vmem:[%s14516_s5 + $0x490] sm:$0xff] }
 0x5a3   :  { %8502 = vmatprep.subr.bf16.mxu0 %v9162_v40  ;;  %v8509_v43 = vpack.c.bf16 %v7596_v55, %v7595_v41 }
 0x5a5   :  { %6389 = vmatmul.mubr.f32.gmra.mrb[86].mxu0 %v14052_v59  ;;  %v7597_v59 = vld [vmem:[%s14516_s5 + $0x4a0] sm:$0xff] }
 0x5a6   :  { %8504 = vmatpush1.bf16.msra.mxu0 %v8503_v47  ;;  %7617 = vmatprep.mubr.msk.f32.mxu0 %vm1604_vm1, %v14085_v23  ;;  %v7598_v23 = vld [vmem:[%s14516_s5 + $0x4a8] sm:$0xff] }
 0x5a7   :  { %8505 = vmatprep.subr.bf16.mxu0 %v9162_v40  ;;  %v8512_v57 = vpack.c.bf16 %v7598_v23, %v7597_v59 }
 0x5aa   :  { %8507 = vmatpush1.bf16.msra.mxu0 %v8506_v11 }
 0x5ab   :  { %8508 = vmatprep.subr.bf16.mxu0 %v9162_v40 }
 0x5ae   :  { %8510 = vmatpush1.bf16.msra.mxu0 %v8509_v43 }
 0x5af   :  { %8511 = vmatprep.subr.bf16.mxu0 %v9162_v40 }
 0x5b2   :  { %8513 = vmatpush1.bf16.msra.mxu0 %v8512_v57 }
 0x5b3   :  { %8514 = vmatprep.subr.bf16.mxu0 %v9162_v40 }
 0x5b6   :  { %8516 = vmatpush1.bf16.msra.mxu0 %v8515_v5 }
 0x5b7   :  { %8517 = vmatprep.subr.bf16.mxu0 %v9162_v40 }
 0x5ba   :  { %8519 = vmatpush1.bf16.msra.mxu0 %v8518_v61 }
 0x5bb   :  { %8520 = vmatprep.subr.bf16.mxu0 %v9162_v40 }
 0x5be   :  { %8522 = vmatpush1.bf16.msra.mxu0 %v8521_v54 }
 0x5bf   :  { %8523 = vmatprep.subr.bf16.mxu0 %v9162_v40 }
 0x5c2   :  { %8525 = vmatpush1.bf16.msra.mxu0 %v8524_v49 }
 0x5c3   :  { %8526 = vmatprep.subr.bf16.mxu0 %v9162_v40 }
 0x5c6   :  { %8528 = vmatpush1.bf16.msra.mxu0 %v8527_v38 }
 0x5c7   :  { %8529 = vmatprep.subr.bf16.mxu0 %v9162_v40 }
 0x5ca   :  { %8531 = vmatpush1.bf16.msra.mxu0 %v8530_v33 }
 0x5cb   :  { %8532 = vmatprep.subr.bf16.mxu0 %v9162_v40 }
 0x5ce   :  { %8534 = vmatpush1.bf16.msra.mxu0 %v8533_v4 }
 0x5cf   :  { %8535 = vmatprep.subr.bf16.mxu0 %v9162_v40 }
 0x5d2   :  { %8537 = vmatpush1.bf16.msra.mxu0 %v8536_v56 }
 0x5d3   :  { %8538 = vmatprep.subr.bf16.mxu0 %v9162_v40 }
 0x5d6   :  { %8540 = vmatpush1.bf16.msra.mxu0 %v8539_v22 }
 0x5d7   :  { %8541 = vmatprep.subr.bf16.mxu0 %v9162_v40 }
 0x5d9   :  { %6496 = vmatmul.mubr.f32.vlgmr.msra.gmra.mrb[84].mxu0 %v14081_v14 }
 0x5da   :  { %7618 = vmatprep.mubr.msk.f32.mxu0 %vm1604_vm1, %v14098_v8  ;;  %8543 = vmatpush1.bf16.msra.mxu0 %v13701_v45 }
 0x5db   :  { %8544 = vmatprep.subr.bf16.mxu0 %v9162_v40 }
 0x5dd   :  { %6501 = vmatmul.mubr.f32.gmra.mrb[86].mxu0 %v14096_v18 }
 0x5de   :  { %8546 = vmatpush1.bf16.msra.mxu0 %v13711_v35  ;;  %7647 = vmatprep.mubr.msk.f32.mxu0 %vm1604_vm1, %v14129_v9 }
 0x5df   :  { %8547 = vmatprep.subr.bf16.mxu0 %v9162_v40 }
 0x5e2   :  { %8549 = vmatpush1.bf16.msra.mxu0 %v13721_v31  ;;  %v7466_v31 = vld [vmem:[%s14518_s6] ss:$0 sm:$0xff] }
 0x5e3   :  { %8550 = vmatprep.subr.bf16.mxu0 %v9162_v40 }
 0x5e6   :  { %8552 = vmatpush1.bf16.msra.mxu0 %v13731_v15 }
 0x5e7   :  { %8553 = vmatprep.subr.bf16.mxu0 %v9162_v40 }
 0x5ea   :  { %8555 = vmatpush1.bf16.msra.mxu0 %v13741_v53 }
 0x5eb   :  { %8556 = vmatprep.subr.bf16.mxu0 %v9162_v40 }
 0x5ee   :  { %8558 = vmatpush1.bf16.msra.mxu0 %v13751_v29 }
 0x5ef   :  { %8559 = vmatprep.subr.bf16.mxu0 %v9162_v40 }
 0x5f2   :  { %8561 = vmatpush1.bf16.msra.mxu0 %v13761_v37 }
 0x5f3   :  { %8562 = vmatprep.subr.bf16.mxu0 %v9162_v40 }
 0x5f6   :  { %8564 = vmatpush1.bf16.msra.mxu0 %v13771_v34 }
 0x5f7   :  { %8565 = vmatprep.subr.bf16.mxu0 %v9162_v40 }
 0x5f8   :  { %v6614_v45 = vpop.f32.mrb[252].mxu1 }
 0x5f9   :  { %v6616_v35 = vpop.f32.mrb[253].mxu1 }
 0x5fa   :  { %8567 = vmatpush1.bf16.msra.mxu0 %v13781_v58 }
 0x5fb   :  { %8568 = vmatprep.subr.bf16.mxu0 %v9162_v40 }
 0x5fe   :  { %8570 = vmatpush1.bf16.msra.mxu0 %v13791_v42 }
 0x5ff   :  { %8571 = vmatprep.subr.bf16.mxu0 %v9162_v40 }
 0x602   :  { %8573 = vmatpush1.bf16.msra.mxu0 %v13801_v51 }
 0x603   :  { %8574 = vmatprep.subr.bf16.mxu0 %v9162_v40 }
 0x606   :  { %8576 = vmatpush1.bf16.msra.mxu0 %v13811_v63 }
 0x607   :  { %8577 = vmatprep.subr.bf16.mxu0 %v9162_v40 }
 0x60a   :  { %8579 = vmatpush1.bf16.msra.mxu0 %v13821_v25 }
 0x60b   :  { %8580 = vmatprep.subr.bf16.mxu0 %v9162_v40 }
 0x60e   :  { %8582 = vmatpush1.bf16.msra.mxu0 %v13831_v21 }
 0x611   :  { %6608 = vmatmul.mubr.f32.vlgmr.msra.gmra.mrb[84].mxu0 %v14125_v62 }
 0x6b0   :  { %v6502_v15 = vpop.f32.mrb[86].mxu0 }
 0x6b1   :  { %v8632_v53 = vadd.f32 %v7466_v31, %v6502_v15  ;;  %v6504_v29 = vpop.f32.mrb[87].mxu0 }
 0x6b3   :  { %v8633_v37 = vadd.f32 %v8632_v53, %v6614_v45 }
 0x6b5   :  { %6621 = vst [vmem:[%s14519_s7 + $0x8] sm:$0xff] %v8633_v37 }
 0x6e4   :  { %v6609_v34 = vpop.f32.mrb[84].mxu0 }
 0x6e5   :  { %v8631_v58 = vadd.f32 %v7466_v31, %v6609_v34  ;;  %v6611_v42 = vpop.f32.mrb[85].mxu0 }
 0x6e7   :  { %6620 = vst [vmem:[%s14519_s7] sm:$0xff] %v8631_v58 }

</bundles_post_ra>
